<compile_context>
chip_gen: v7x
topology: tpu7x:2x2x1
jax: 0.10.0
libtpu: 0.0.40
codegen_flags: <defaults>
</compile_context>

<pallas_src>
import functools

import jax
import jax.numpy as jnp
from jax.experimental import pallas as pl
from jax.experimental.pallas import tpu as pltpu


# ----------------------------------------------------------------------------
# Pallas kernel: fused  (M, K) @ (K, N)  + bias  (+ ReLU)
# ----------------------------------------------------------------------------
def _matmul_bias_act_kernel(x_ref, w_ref, b_ref, o_ref, *, relu):
    acc = jnp.dot(x_ref[...], w_ref[...], preferred_element_type=jnp.float32)
    y = acc + b_ref[...]
    if relu:
        y = jnp.maximum(y, 0.0)
    o_ref[...] = y.astype(o_ref.dtype)


def matmul_bias_act(x, w, b, *, relu, out_dtype=jnp.float32):
    """x: (M, K) bf16, w: (K, N) bf16, b: (N,) f32  ->  (M, N) out_dtype.

    M is guaranteed (by the callers below) to be a multiple of 8 (and of 32
    for the conv layers), so stores are full unmasked tiles.  M is split into
    at most two row tiles marked "parallel": megacore split on v7x, DMA
    pipelining on v5e/v6e.  K and N are lane-aligned (multiples of 128).
    """
    M, K = x.shape
    Kw, N = w.shape
    assert K == Kw, (K, Kw)
    # Half-M tile when it stays a multiple of 16 (safe for bf16 sublane
    # packing); otherwise a single block.
    if M >= 64 and (M // 2) % 16 == 0:
        tm = M // 2
    else:
        tm = M
    grid = (M // tm,)
    b2 = b.reshape(1, N).astype(jnp.float32)
    return pl.pallas_call(
        functools.partial(_matmul_bias_act_kernel, relu=relu),
        out_shape=jax.ShapeDtypeStruct((M, N), out_dtype),
        grid_spec=pltpu.PrefetchScalarGridSpec(
            num_scalar_prefetch=0,
            grid=grid,
            in_specs=[
                pl.BlockSpec((tm, K), lambda i: (i, 0)),
                pl.BlockSpec((K, N), lambda i: (0, 0)),
                pl.BlockSpec((1, N), lambda i: (0, 0)),
            ],
            out_specs=pl.BlockSpec((tm, N), lambda i: (i, 0)),
        ),
        compiler_params=pltpu.CompilerParams(
            dimension_semantics=("parallel",)),
    )(x, w, b2)


# ----------------------------------------------------------------------------
# XLA glue: valid-padding im2col -> single (M, K*Cin) operand
# ----------------------------------------------------------------------------
def _im2col(x, k, stride):
    """x: (N, H, W, C) -> ((N*Ho*Wo, k*k*C), (Ho, Wo)); column order (kh,kw,C)."""
    N, H, W, C = x.shape
    Ho = (H - k) // stride + 1
    Wo = (W - k) // stride + 1
    cols = []
    for i in range(k):
        for j in range(k):
            sl = jax.lax.slice(
                x, (0, i, j, 0),
                (N, i + stride * (Ho - 1) + 1, j + stride * (Wo - 1) + 1, C),
                (1, stride, stride, 1))
            cols.append(sl.reshape(N * Ho * Wo, C))
    return jnp.concatenate(cols, axis=1), (Ho, Wo)


def _round_up(x, m):
    return ((x + m - 1) // m) * m


# ----------------------------------------------------------------------------
# Parameters (synthetic, deterministic)
# ----------------------------------------------------------------------------
# (cin, cout, kernel, stride) — padding is 0 for all convs in CNN_v3.
_CONV_CFG = [
    (3, 32, 8, 4),
    (32, 64, 4, 2),
    (64, 64, 3, 1),
]


def _conv_out(size, k, s):
    return (size - k) // s + 1


def _lane_group(cout):
    """Replication factor so the kernel output is 128 lanes wide."""
    return 128 // cout if (cout < 128 and 128 % cout == 0) else 1


def init_params(key, *, in_hw, out_size):
    H, W = in_hw
    convs = []
    for (cin, cout, k, s) in _CONV_CFG:
        key, kw_, kb_ = jax.random.split(key, 3)
        fan_in = cin * k * k
        # NOTE: real PyTorch Conv2d checkpoints are (Cout, Cin, kh, kw); they
        # would need .transpose(2, 3, 1, 0) to reach this (kh, kw, Cin, Cout).
        w = jax.random.normal(kw_, (k, k, cin, cout), jnp.float32) \
            * (2.0 / fan_in) ** 0.5
        b = jax.random.normal(kb_, (cout,), jnp.float32) * 0.01
        g = _lane_group(cout)
        w_flat = w.reshape(k * k * cin, cout)
        # Block-diagonal replication: (g*K, g*cout) with g*cout == 128.
        w_bd = jnp.kron(jnp.eye(g, dtype=jnp.float32), w_flat)
        convs.append(dict(
            w=w.astype(jnp.bfloat16),          # HWIO, used by the reference
            b=b,
            w_bd=w_bd.astype(jnp.bfloat16),
            b_tiled=jnp.tile(b, g),
        ))
        H, W = _conv_out(H, k, s), _conv_out(W, k, s)

    feat_dim = H * W * _CONV_CFG[-1][1]          # == 8960 for a 108x140 input
    key, kwl, kbl = jax.random.split(key, 3)
    # PyTorch Linear weight is (out, C*H*W) == (out, C, H, W); permute the
    # feature axis so an NHWC flatten reproduces nn.Flatten's C,H,W order.
    wl_torch = jax.random.normal(kwl, (out_size, _CONV_CFG[-1][1], H, W),
                                 jnp.float32) / (feat_dim ** 0.5)
    wl = jnp.transpose(wl_torch, (2, 3, 1, 0)).reshape(feat_dim, out_size)
    bl = jax.random.normal(kbl, (out_size,), jnp.float32) * 0.01
    return dict(convs=convs, wl=wl.astype(jnp.bfloat16), bl=bl)


# ----------------------------------------------------------------------------
# Forward pass (Pallas) and pure-JAX reference
# ----------------------------------------------------------------------------
def cnn_v3_forward(x_nchw, params):
    """x: (N, 3, H, W) f32  ->  (N, out_size) f32."""
    x = jnp.transpose(x_nchw, (0, 2, 3, 1)).astype(jnp.bfloat16)   # NHWC
    for (cin, cout, k, s), lyr in zip(_CONV_CFG, params["convs"]):
        n = x.shape[0]
        p, (ho, wo) = _im2col(x, k, s)            # (m, k*k*cin) bf16
        m, kdim = p.shape
        g = _lane_group(cout)
        # Zero-pad rows so the grouped operand has a multiple of 32 rows
        # (full sublane tiles, clean half-M split for the grid).
        m_pad = _round_up(m, 32 * g)
        if m_pad != m:
            p = jnp.pad(p, ((0, m_pad - m), (0, 0)))
        pg = p.reshape(m_pad // g, g * kdim)      # free row-major regroup
        y = matmul_bias_act(pg, lyr["w_bd"], lyr["b_tiled"], relu=True,
                            out_dtype=jnp.bfloat16)
        y = y.reshape(m_pad, cout)[:m]            # drop padded rows
        x = y.reshape(n, ho, wo, cout)            # already bf16
    n = x.shape[0]
    feat = x.reshape(n, -1)                       # nn.Flatten (see init note)
    n_pad = _round_up(n, 8)
    if n_pad != n:
        feat = jnp.pad(feat, ((0, n_pad - n), (0, 0)))
    out = matmul_bias_act(feat, params["wl"], params["bl"], relu=False,
                          out_dtype=jnp.float32)
    return out[:n]


def cnn_v3_reference(x_nchw, params):
    """Pure-JAX reference using the same bf16-operand / f32-accum math."""
    x = jnp.transpose(x_nchw, (0, 2, 3, 1)).astype(jnp.bfloat16)
    for (cin, cout, k, s), lyr in zip(_CONV_CFG, params["convs"]):
        y = jax.lax.conv_general_dilated(
            x, lyr["w"], window_strides=(s, s), padding="VALID",
            dimension_numbers=("NHWC", "HWIO", "NHWC"),
            preferred_element_type=jnp.float32)
        y = jnp.maximum(y + lyr["b"], 0.0)
        x = y.astype(jnp.bfloat16)
    feat = x.reshape(x.shape[0], -1)
    out = jnp.dot(feat, params["wl"], preferred_element_type=jnp.float32)
    return out + params["bl"]


# ----------------------------------------------------------------------------
if __name__ == "__main__":
    key = jax.random.PRNGKey(0)
    kx, kp = jax.random.split(key)

    # Smallest input consistent with the module's Linear(8960, out):
    # 3 x 108 x 140 -> conv stack output 64 x 10 x 14 = 8960 features.
    N, H, W = 2, 108, 140
    out_size = 256
    x = jax.random.normal(kx, (N, 3, H, W), jnp.float32)
    params = init_params(kp, in_hw=(H, W), out_size=out_size)

    out = jax.block_until_ready(jax.jit(cnn_v3_forward)(x, params))
    assert out.shape == (N, out_size), out.shape
    assert bool(jnp.all(jnp.isfinite(out)))

    ref = jax.block_until_ready(jax.jit(cnn_v3_reference)(x, params))
    err = float(jnp.max(jnp.abs(out - ref)))
    scale = float(jnp.max(jnp.abs(ref))) + 1e-6
    assert err / scale < 5e-2, (err, scale)

    print("KERNEL_OK")
</pallas_src>

<mosaic_0001>
module attributes {stable_mosaic.version = 11 : i64} {
  func.func @_matmul_bias_act_kernel(%arg0: i32, %arg1: memref<224x768xbf16, #tpu.memory_space<vmem>>, %arg2: memref<768x128xbf16, #tpu.memory_space<vmem>>, %arg3: memref<1x128xf32, #tpu.memory_space<vmem>>, %arg4: memref<224x128xbf16, #tpu.memory_space<vmem>>) attributes {dimension_semantics = [#tpu.dimension_semantics<parallel>], iteration_bounds = array<i64: 2>, scalar_prefetch = 0 : i64, scratch_operands = 0 : i64, tpu.core_type = #tpu.core_type<tc>, window_params = [{transform_indices = @transform_0, window_bounds = array<i64: 224, 768>}, {pipeline_mode = #tpu.pipeline_mode<synchronous>, transform_indices = @transform_1, window_bounds = array<i64: 768, 128>}, {pipeline_mode = #tpu.pipeline_mode<synchronous>, transform_indices = @transform_2, window_bounds = array<i64: 1, 128>}, {transform_indices = @transform_3, window_bounds = array<i64: 224, 128>}]} {
    %c0 = arith.constant 0 : index
    %c0_0 = arith.constant 0 : index
    %0 = vector.load %arg1[%c0, %c0_0] : memref<224x768xbf16, #tpu.memory_space<vmem>>, vector<224x768xbf16>
    %c0_1 = arith.constant 0 : index
    %c0_2 = arith.constant 0 : index
    %1 = vector.load %arg2[%c0_1, %c0_2] : memref<768x128xbf16, #tpu.memory_space<vmem>>, vector<768x128xbf16>
    %cst = arith.constant dense<0.000000e+00> : vector<224x128xf32>
    %2 = tpu.matmul %0, %1, %cst {dimension_numbers = #tpu.dot_dimension_numbers<[1], [0], [0], [1], [0, 0, 1, 1], [], []>} : vector<224x768xbf16>, vector<768x128xbf16>, vector<224x128xf32> -> vector<224x128xf32>
    %c0_3 = arith.constant 0 : index
    %c0_4 = arith.constant 0 : index
    %3 = vector.load %arg3[%c0_3, %c0_4] : memref<1x128xf32, #tpu.memory_space<vmem>>, vector<1x128xf32>
    %4 = vector.broadcast %3 : vector<1x128xf32> to vector<224x128xf32>
    %5 = arith.addf %2, %4 : vector<224x128xf32>
    %cst_5 = arith.constant 0.000000e+00 : f32
    %6 = vector.broadcast %cst_5 : f32 to vector<224x128xf32>
    %7 = arith.maximumf %5, %6 : vector<224x128xf32>
    %8 = arith.truncf %7 : vector<224x128xf32> to vector<224x128xbf16>
    %c0_6 = arith.constant 0 : index
    %c0_7 = arith.constant 0 : index
    %9 = vector.load %arg4[%c0_6, %c0_7] : memref<224x128xbf16, #tpu.memory_space<vmem>>, vector<224x128xbf16>
    tpu.vector_store %arg4[%c0_6, %c0_7], %8 {strides = array<i32>} : memref<224x128xbf16, #tpu.memory_space<vmem>>, vector<224x128xbf16>,
    return
  }
  func.func @transform_0(%arg0: i32) -> (i32, i32) {
    %c0_i32 = arith.constant 0 : i32
    %c0_i32_0 = arith.constant 0 : i32
    return %arg0, %c0_i32 : i32, i32
  }
  func.func @transform_1(%arg0: i32) -> (i32, i32) {
    %c0_i32 = arith.constant 0 : i32
    %c0_i32_0 = arith.constant 0 : i32
    %c0_i32_1 = arith.constant 0 : i32
    return %c0_i32, %c0_i32_0 : i32, i32
  }
  func.func @transform_2(%arg0: i32) -> (i32, i32) {
    %c0_i32 = arith.constant 0 : i32
    %c0_i32_0 = arith.constant 0 : i32
    %c0_i32_1 = arith.constant 0 : i32
    return %c0_i32, %c0_i32_0 : i32, i32
  }
  func.func @transform_3(%arg0: i32) -> (i32, i32) {
    %c0_i32 = arith.constant 0 : i32
    %c0_i32_0 = arith.constant 0 : i32
    return %arg0, %c0_i32 : i32, i32
  }
}

module attributes {stable_mosaic.version = 11 : i64} {
  func.func @_matmul_bias_act_kernel(%arg0: i32, %arg1: memref<96x1024xbf16, #tpu.memory_space<vmem>>, %arg2: memref<1024x128xbf16, #tpu.memory_space<vmem>>, %arg3: memref<1x128xf32, #tpu.memory_space<vmem>>, %arg4: memref<96x128xbf16, #tpu.memory_space<vmem>>) attributes {dimension_semantics = [#tpu.dimension_semantics<parallel>], iteration_bounds = array<i64: 2>, scalar_prefetch = 0 : i64, scratch_operands = 0 : i64, tpu.core_type = #tpu.core_type<tc>, window_params = [{transform_indices = @transform_0, window_bounds = array<i64: 96, 1024>}, {pipeline_mode = #tpu.pipeline_mode<synchronous>, transform_indices = @transform_1, window_bounds = array<i64: 1024, 128>}, {pipeline_mode = #tpu.pipeline_mode<synchronous>, transform_indices = @transform_2, window_bounds = array<i64: 1, 128>}, {transform_indices = @transform_3, window_bounds = array<i64: 96, 128>}]} {
    %c0 = arith.constant 0 : index
    %c0_0 = arith.constant 0 : index
    %0 = vector.load %arg1[%c0, %c0_0] : memref<96x1024xbf16, #tpu.memory_space<vmem>>, vector<96x1024xbf16>
    %c0_1 = arith.constant 0 : index
    %c0_2 = arith.constant 0 : index
    %1 = vector.load %arg2[%c0_1, %c0_2] : memref<1024x128xbf16, #tpu.memory_space<vmem>>, vector<1024x128xbf16>
    %cst = arith.constant dense<0.000000e+00> : vector<96x128xf32>
    %2 = tpu.matmul %0, %1, %cst {dimension_numbers = #tpu.dot_dimension_numbers<[1], [0], [0], [1], [0, 0, 1, 1], [], []>} : vector<96x1024xbf16>, vector<1024x128xbf16>, vector<96x128xf32> -> vector<96x128xf32>
    %c0_3 = arith.constant 0 : index
    %c0_4 = arith.constant 0 : index
    %3 = vector.load %arg3[%c0_3, %c0_4] : memref<1x128xf32, #tpu.memory_space<vmem>>, vector<1x128xf32>
    %4 = vector.broadcast %3 : vector<1x128xf32> to vector<96x128xf32>
    %5 = arith.addf %2, %4 : vector<96x128xf32>
    %cst_5 = arith.constant 0.000000e+00 : f32
    %6 = vector.broadcast %cst_5 : f32 to vector<96x128xf32>
    %7 = arith.maximumf %5, %6 : vector<96x128xf32>
    %8 = arith.truncf %7 : vector<96x128xf32> to vector<96x128xbf16>
    %c0_6 = arith.constant 0 : index
    %c0_7 = arith.constant 0 : index
    %9 = vector.load %arg4[%c0_6, %c0_7] : memref<96x128xbf16, #tpu.memory_space<vmem>>, vector<96x128xbf16>
    tpu.vector_store %arg4[%c0_6, %c0_7], %8 {strides = array<i32>} : memref<96x128xbf16, #tpu.memory_space<vmem>>, vector<96x128xbf16>,
    return
  }
  func.func @transform_0(%arg0: i32) -> (i32, i32) {
    %c0_i32 = arith.constant 0 : i32
    %c0_i32_0 = arith.constant 0 : i32
    return %arg0, %c0_i32 : i32, i32
  }
  func.func @transform_1(%arg0: i32) -> (i32, i32) {
    %c0_i32 = arith.constant 0 : i32
    %c0_i32_0 = arith.constant 0 : i32
    %c0_i32_1 = arith.constant 0 : i32
    return %c0_i32, %c0_i32_0 : i32, i32
  }
  func.func @transform_2(%arg0: i32) -> (i32, i32) {
    %c0_i32 = arith.constant 0 : i32
    %c0_i32_0 = arith.constant 0 : i32
    %c0_i32_1 = arith.constant 0 : i32
    return %c0_i32, %c0_i32_0 : i32, i32
  }
  func.func @transform_3(%arg0: i32) -> (i32, i32) {
    %c0_i32 = arith.constant 0 : i32
    %c0_i32_0 = arith.constant 0 : i32
    return %arg0, %c0_i32 : i32, i32
  }
}

module attributes {stable_mosaic.version = 11 : i64} {
  func.func @_matmul_bias_act_kernel(%arg0: i32, %arg1: memref<80x1152xbf16, #tpu.memory_space<vmem>>, %arg2: memref<1152x128xbf16, #tpu.memory_space<vmem>>, %arg3: memref<1x128xf32, #tpu.memory_space<vmem>>, %arg4: memref<80x128xbf16, #tpu.memory_space<vmem>>) attributes {dimension_semantics = [#tpu.dimension_semantics<parallel>], iteration_bounds = array<i64: 2>, scalar_prefetch = 0 : i64, scratch_operands = 0 : i64, tpu.core_type = #tpu.core_type<tc>, window_params = [{transform_indices = @transform_0, window_bounds = array<i64: 80, 1152>}, {pipeline_mode = #tpu.pipeline_mode<synchronous>, transform_indices = @transform_1, window_bounds = array<i64: 1152, 128>}, {pipeline_mode = #tpu.pipeline_mode<synchronous>, transform_indices = @transform_2, window_bounds = array<i64: 1, 128>}, {transform_indices = @transform_3, window_bounds = array<i64: 80, 128>}]} {
    %c0 = arith.constant 0 : index
    %c0_0 = arith.constant 0 : index
    %0 = vector.load %arg1[%c0, %c0_0] : memref<80x1152xbf16, #tpu.memory_space<vmem>>, vector<80x1152xbf16>
    %c0_1 = arith.constant 0 : index
    %c0_2 = arith.constant 0 : index
    %1 = vector.load %arg2[%c0_1, %c0_2] : memref<1152x128xbf16, #tpu.memory_space<vmem>>, vector<1152x128xbf16>
    %cst = arith.constant dense<0.000000e+00> : vector<80x128xf32>
    %2 = tpu.matmul %0, %1, %cst {dimension_numbers = #tpu.dot_dimension_numbers<[1], [0], [0], [1], [0, 0, 1, 1], [], []>} : vector<80x1152xbf16>, vector<1152x128xbf16>, vector<80x128xf32> -> vector<80x128xf32>
    %c0_3 = arith.constant 0 : index
    %c0_4 = arith.constant 0 : index
    %3 = vector.load %arg3[%c0_3, %c0_4] : memref<1x128xf32, #tpu.memory_space<vmem>>, vector<1x128xf32>
    %4 = vector.broadcast %3 : vector<1x128xf32> to vector<80x128xf32>
    %5 = arith.addf %2, %4 : vector<80x128xf32>
    %cst_5 = arith.constant 0.000000e+00 : f32
    %6 = vector.broadcast %cst_5 : f32 to vector<80x128xf32>
    %7 = arith.maximumf %5, %6 : vector<80x128xf32>
    %8 = arith.truncf %7 : vector<80x128xf32> to vector<80x128xbf16>
    %c0_6 = arith.constant 0 : index
    %c0_7 = arith.constant 0 : index
    %9 = vector.load %arg4[%c0_6, %c0_7] : memref<80x128xbf16, #tpu.memory_space<vmem>>, vector<80x128xbf16>
    tpu.vector_store %arg4[%c0_6, %c0_7], %8 {strides = array<i32>} : memref<80x128xbf16, #tpu.memory_space<vmem>>, vector<80x128xbf16>,
    return
  }
  func.func @transform_0(%arg0: i32) -> (i32, i32) {
    %c0_i32 = arith.constant 0 : i32
    %c0_i32_0 = arith.constant 0 : i32
    return %arg0, %c0_i32 : i32, i32
  }
  func.func @transform_1(%arg0: i32) -> (i32, i32) {
    %c0_i32 = arith.constant 0 : i32
    %c0_i32_0 = arith.constant 0 : i32
    %c0_i32_1 = arith.constant 0 : i32
    return %c0_i32, %c0_i32_0 : i32, i32
  }
  func.func @transform_2(%arg0: i32) -> (i32, i32) {
    %c0_i32 = arith.constant 0 : i32
    %c0_i32_0 = arith.constant 0 : i32
    %c0_i32_1 = arith.constant 0 : i32
    return %c0_i32, %c0_i32_0 : i32, i32
  }
  func.func @transform_3(%arg0: i32) -> (i32, i32) {
    %c0_i32 = arith.constant 0 : i32
    %c0_i32_0 = arith.constant 0 : i32
    return %arg0, %c0_i32 : i32, i32
  }
}

module attributes {stable_mosaic.version = 11 : i64} {
  func.func @_matmul_bias_act_kernel(%arg0: i32, %arg1: memref<8x8960xbf16, #tpu.memory_space<vmem>>, %arg2: memref<8960x256xbf16, #tpu.memory_space<vmem>>, %arg3: memref<1x256xf32, #tpu.memory_space<vmem>>, %arg4: memref<8x256xf32, #tpu.memory_space<vmem>>) attributes {dimension_semantics = [#tpu.dimension_semantics<parallel>], iteration_bounds = array<i64: 1>, scalar_prefetch = 0 : i64, scratch_operands = 0 : i64, tpu.core_type = #tpu.core_type<tc>, window_params = [{transform_indices = @transform_0, window_bounds = array<i64: 8, 8960>}, {pipeline_mode = #tpu.pipeline_mode<synchronous>, transform_indices = @transform_1, window_bounds = array<i64: 8960, 256>}, {pipeline_mode = #tpu.pipeline_mode<synchronous>, transform_indices = @transform_2, window_bounds = array<i64: 1, 256>}, {transform_indices = @transform_3, window_bounds = array<i64: 8, 256>}]} {
    %c0 = arith.constant 0 : index
    %c0_0 = arith.constant 0 : index
    %0 = vector.load %arg1[%c0, %c0_0] : memref<8x8960xbf16, #tpu.memory_space<vmem>>, vector<8x8960xbf16>
    %c0_1 = arith.constant 0 : index
    %c0_2 = arith.constant 0 : index
    %1 = vector.load %arg2[%c0_1, %c0_2] : memref<8960x256xbf16, #tpu.memory_space<vmem>>, vector<8960x256xbf16>
    %cst = arith.constant dense<0.000000e+00> : vector<8x256xf32>
    %2 = tpu.matmul %0, %1, %cst {dimension_numbers = #tpu.dot_dimension_numbers<[1], [0], [0], [1], [0, 0, 1, 1], [], []>} : vector<8x8960xbf16>, vector<8960x256xbf16>, vector<8x256xf32> -> vector<8x256xf32>
    %c0_3 = arith.constant 0 : index
    %c0_4 = arith.constant 0 : index
    %3 = vector.load %arg3[%c0_3, %c0_4] : memref<1x256xf32, #tpu.memory_space<vmem>>, vector<1x256xf32>
    %4 = vector.broadcast %3 : vector<1x256xf32> to vector<8x256xf32>
    %5 = arith.addf %2, %4 : vector<8x256xf32>
    %c0_5 = arith.constant 0 : index
    %c0_6 = arith.constant 0 : index
    %6 = vector.load %arg4[%c0_5, %c0_6] : memref<8x256xf32, #tpu.memory_space<vmem>>, vector<8x256xf32>
    tpu.vector_store %arg4[%c0_5, %c0_6], %5 {strides = array<i32>} : memref<8x256xf32, #tpu.memory_space<vmem>>, vector<8x256xf32>,
    return
  }
  func.func @transform_0(%arg0: i32) -> (i32, i32) {
    %c0_i32 = arith.constant 0 : i32
    %c0_i32_0 = arith.constant 0 : i32
    return %arg0, %c0_i32 : i32, i32
  }
  func.func @transform_1(%arg0: i32) -> (i32, i32) {
    %c0_i32 = arith.constant 0 : i32
    %c0_i32_0 = arith.constant 0 : i32
    %c0_i32_1 = arith.constant 0 : i32
    return %c0_i32, %c0_i32_0 : i32, i32
  }
  func.func @transform_2(%arg0: i32) -> (i32, i32) {
    %c0_i32 = arith.constant 0 : i32
    %c0_i32_0 = arith.constant 0 : i32
    %c0_i32_1 = arith.constant 0 : i32
    return %c0_i32, %c0_i32_0 : i32, i32
  }
  func.func @transform_3(%arg0: i32) -> (i32, i32) {
    %c0_i32 = arith.constant 0 : i32
    %c0_i32_0 = arith.constant 0 : i32
    return %arg0, %c0_i32 : i32, i32
  }
}

</mosaic_0001>

<bundles_post_ra>
// kernel: cnn_v3_forward.4
= control target key start
LH: loop header
LB: loop body
LE: loop exit
PB: predicated region body
PF: predicated region fallthrough
CT: control target
= control target key end

     0   :  { %s2540_s12 = smov 0   ;;  %s2924_s0 = inlined_call_operand.vmem [shape: bf16[448,768], index: 0, kind: input, shape index: {}]   ;;  %s2925_s1 = inlined_call_operand.vmem [shape: bf16[768,128], index: 1, kind: input, shape index: {}]   ;;  %s2926_s2 = inlined_call_operand.vmem [shape: f32[1,128], index: 2, kind: input, shape index: {}]   ;;  %s2927_s3 = inlined_call_operand.vmem [shape: bf16[448,128], index: 3, kind: output, shape index: {}]  }
   0x1 LB: > { %s1732_s13 = sadd.s32 4294967295, %s2518_s12   ;;  %p1736_p0 = scmp.ge.s32.totalorder %s2518_s12, 1  ;;  %s2518_s12 = sphi %s2540_s12, %s13_s12  }
   0x2   : > { %p139_p1 = scmp.lt.s32.totalorder %s2518_s12, 3 }
   0x4   : > { %p140_p2 = pnand %p1736_p0, %p139_p1 }
   0x5   : > { %v2338_v0 = vld [vmem:[%s2925_s1 + $0x40] sm:$0xff] (!%p140_p2)   ;;  %s164_s16 = smul.u32 (!%p140_p2), 28, %s1732_s13  ;;  %v2340_v2 = vld [vmem:[%s2925_s1 + $0x48] sm:$0xff] (!%p140_p2)   ;;  %v2342_v4 = vld [vmem:[%s2925_s1 + $0x50] sm:$0xff] (!%p140_p2)  }
   0x6   : > { %143 = sbr.rel (%p140_p2) target bundleno = 424 (0x1a8), region = 32  ;;  %v2339_v1 = vld [vmem:[%s2925_s1] sm:$0xff] (!%p140_p2)   ;;  %2013 = vmatprep.subr.bf16.mxu0 (!%p140_p2), %v2338_v0  ;;  %2313 = vmatprep.subr.bf16.mxu1 (!%p140_p2), %v2338_v0  ;;  %v2341_v3 = vld [vmem:[%s2925_s1 + $0x8] sm:$0xff] (!%p140_p2)   ;;  %v2343_v5 = vld [vmem:[%s2925_s1 + $0x10] sm:$0xff] (!%p140_p2)  }
   0x7   : > { %p165_p3 = scmp.lt.s32.totalorder (!%p140_p2), %s164_s16, 55  ;;  %2014 = vmatpush3.bf16.msra.mxu0 (!%p140_p2), %v2339_v1  ;;  %2321 = vmatpush3.bf16.msra.mxu1 (!%p140_p2), %v2339_v1  ;;  %v2344_v6 = vld [vmem:[%s2925_s1 + $0x58] sm:$0xff] (!%p140_p2)   ;;  %v2346_v8 = vld [vmem:[%s2925_s1 + $0x60] sm:$0xff] (!%p140_p2)   ;;  %v2348_v10 = vld [vmem:[%s2925_s1 + $0x68] sm:$0xff] (!%p140_p2)  }
   0x8   : > { %2015 = vmatprep.subr.bf16.mxu0 (!%p140_p2), %v2340_v2  ;;  %2314 = vmatprep.subr.bf16.mxu1 (!%p140_p2), %v2340_v2  ;;  %v2345_v7 = vld [vmem:[%s2925_s1 + $0x18] sm:$0xff] (!%p140_p2)   ;;  %v2347_v9 = vld [vmem:[%s2925_s1 + $0x20] sm:$0xff] (!%p140_p2)   ;;  %v2349_v13 = vld [vmem:[%s2925_s1 + $0x28] sm:$0xff] (!%p140_p2)  }
   0x9   : > { %v2350_v14 = vld [vmem:[%s2925_s1 + $0x70] sm:$0xff] (!%p140_p2)   ;;  %v2352_v16 = vld [vmem:[%s2925_s1 + $0x78] sm:$0xff] (!%p140_p2)   ;;  %v2360_v18 = vld [vmem:[%s2925_s1 + $0xc0] sm:$0xff] (!%p140_p2)  }
   0xa   : > { %v2351_v15 = vld [vmem:[%s2925_s1 + $0x30] sm:$0xff] (!%p140_p2)   ;;  %v2353_v17 = vld [vmem:[%s2925_s1 + $0x38] sm:$0xff] (!%p140_p2)   ;;  %v2362_v21 = vld [vmem:[%s2925_s1 + $0x140] sm:$0xff] (!%p140_p2)  }
   0xb   : > { %2016 = vmatpush3.bf16.msra.mxu0 (!%p140_p2), %v2341_v3  ;;  %2322 = vmatpush3.bf16.msra.mxu1 (!%p140_p2), %v2341_v3  ;;  %v2361_v22 = vld [vmem:[%s2925_s1 + $0x80] sm:$0xff] (!%p140_p2)   ;;  %v2368_v26 = vld [vmem:[%s2925_s1 + $0xc8] sm:$0xff] (!%p140_p2)   ;;  %v2374_v30 = vld [vmem:[%s2925_s1 + $0xd0] sm:$0xff] (!%p140_p2)  }
   0xc   : > { %2017 = vmatprep.subr.bf16.mxu0 (!%p140_p2), %v2342_v4  ;;  %2315 = vmatprep.subr.bf16.mxu1 (!%p140_p2), %v2342_v4  ;;  %v2363_v23 = vld [vmem:[%s2925_s1 + $0x100] sm:$0xff] (!%p140_p2)   ;;  %v2371_v27 = vld [vmem:[%s2925_s1 + $0x88] sm:$0xff] (!%p140_p2)   ;;  %v2382_v33 = vld [vmem:[%s2925_s1 + $0x150] sm:$0xff] (!%p140_p2)  }
   0xd   : > { %s2929_s16 = smov (!%p165_p3, %s164_s16), 55  ;;  %v2372_v28 = vld [vmem:[%s2925_s1 + $0x148] sm:$0xff]   ;;  %v2379_v36 = vld [vmem:[%s2925_s1 + $0x90] sm:$0xff]   ;;  %v2384_v38 = vld [vmem:[%s2925_s1 + $0xd8] sm:$0xff]  }
   0xe   : > { %s2329_s29 = smul.u32 24, %s2929_s16  ;;  %v2373_v29 = vld [vmem:[%s2925_s1 + $0x108] sm:$0xff]   ;;  %v2383_v37 = vld [vmem:[%s2925_s1 + $0x110] sm:$0xff]   ;;  %v2390_v39 = vld [vmem:[%s2925_s1 + $0x158] sm:$0xff]   ;;  %s1738_s19 = sshll.u32 %s2929_s16, 2 }
   0xf   : > { %2018 = vmatpush3.bf16.msra.mxu0 %v2343_v5  ;;  %2323 = vmatpush3.bf16.msra.mxu1 %v2343_v5  ;;  %v2385_v40 = vld [vmem:[%s2925_s1 + $0x98] sm:$0xff]   ;;  %v2394_v44 = vld [vmem:[%s2925_s1 + $0xe0] sm:$0xff]   ;;  %v2404_v50 = vld [vmem:[%s2925_s1 + $0xe8] sm:$0xff]   ;;  %s2869_s16 = scalar_lea.vmem %s2927_s3, %s1738_s19 }
  0x10   : > { %2019 = vmatprep.subr.bf16.mxu0 %v2344_v6  ;;  %2316 = vmatprep.subr.bf16.mxu1 %v2344_v6  ;;  %s2581_s9 = scalar_lea.vmem %s2924_s0, %s2329_s29  ;;  %v2393_v41 = vld [vmem:[%s2925_s1 + $0x118] sm:$0xff]   ;;  %v2396_v45 = vld [vmem:[%s2925_s1 + $0x160] sm:$0xff]   ;;  %v2405_v51 = vld [vmem:[%s2925_s1 + $0xa8] sm:$0xff]  }
  0x11   : > { %v2356_v11 = vld [vmem:[%s2581_s9 + $0x4] ss:$24 sps:$4 sm:$0xff]   ;;  %v2359_v12 = vld [vmem:[%s2581_s9 + $0x154] ss:$24 sps:$4 sm:$0xff]   ;;  %v2354_v19 = vld [vmem:[%s2581_s9] ss:$24 sps:$4 sm:$0xff]  }
  0x12   : > { %1105 = vmatprep.mubr.bf16.mxu0 %v2356_v11  ;;  %1161 = vmatprep.mubr.bf16.mxu1 %v2359_v12  ;;  %v2357_v20 = vld [vmem:[%s2581_s9 + $0x150] ss:$24 sps:$4 sm:$0xff]   ;;  %v2364_v24 = vld [vmem:[%s2581_s9 + $0x34] ss:$24 sps:$4 sm:$0xff]   ;;  %v2366_v25 = vld [vmem:[%s2581_s9 + $0x184] ss:$24 sps:$4 sm:$0xff]  }
  0x13   : > { %2020 = vmatpush3.bf16.msra.mxu0 %v2345_v7  ;;  %2324 = vmatpush3.bf16.msra.mxu1 %v2345_v7  ;;  %v2369_v31 = vld [vmem:[%s2581_s9 + $0x30] ss:$24 sps:$4 sm:$0xff]   ;;  %v2370_v32 = vld [vmem:[%s2581_s9 + $0x180] ss:$24 sps:$4 sm:$0xff]   ;;  %v2375_v34 = vld [vmem:[%s2581_s9 + $0x64] ss:$24 sps:$4 sm:$0xff]  }
  0x14   : > { %2021 = vmatprep.subr.bf16.mxu0 %v2346_v8  ;;  %2317 = vmatprep.subr.bf16.mxu1 %v2346_v8  ;;  %v2377_v35 = vld [vmem:[%s2581_s9 + $0x1b4] ss:$24 sps:$4 sm:$0xff]   ;;  %v2380_v42 = vld [vmem:[%s2581_s9 + $0x60] ss:$24 sps:$4 sm:$0xff]   ;;  %v2381_v43 = vld [vmem:[%s2581_s9 + $0x1b0] ss:$24 sps:$4 sm:$0xff]  }
  0x15   : > { %v2386_v46 = vld [vmem:[%s2581_s9 + $0x94] ss:$24 sps:$4 sm:$0xff]   ;;  %v2388_v47 = vld [vmem:[%s2581_s9 + $0x1e4] ss:$24 sps:$4 sm:$0xff]   ;;  %v2391_v52 = vld [vmem:[%s2581_s9 + $0x90] ss:$24 sps:$4 sm:$0xff]  }
  0x16   : > { %v2395_v48 = vld [vmem:[%s2925_s1 + $0xa0] sm:$0xff]   ;;  %v2406_v53 = vld [vmem:[%s2925_s1 + $0x168] sm:$0xff]   ;;  %v2414_v58 = vld [vmem:[%s2925_s1 + $0xf0] sm:$0xff]  }
  0x17   : > { %2022 = vmatpush3.bf16.msra.mxu0 %v2347_v9  ;;  %2325 = vmatpush3.bf16.msra.mxu1 %v2347_v9  ;;  %v2401_v49 = vld [vmem:[%s2925_s1 + $0x120] sm:$0xff]   ;;  %v2407_v54 = vld [vmem:[%s2925_s1 + $0x128] sm:$0xff]   ;;  %v2415_v59 = vld [vmem:[%s2925_s1 + $0xb0] sm:$0xff]  }
  0x18   : > { %2023 = vmatprep.subr.bf16.mxu0 %v2348_v10  ;;  %2318 = vmatprep.subr.bf16.mxu1 %v2348_v10  ;;  %v2392_v55 = vld [vmem:[%s2581_s9 + $0x1e0] ss:$24 sps:$4 sm:$0xff]   ;;  %v2397_v56 = vld [vmem:[%s2581_s9 + $0xc4] ss:$24 sps:$4 sm:$0xff]   ;;  %v2399_v57 = vld [vmem:[%s2581_s9 + $0x214] ss:$24 sps:$4 sm:$0xff]  }
  0x19   : > { %v2416_v60 = vld [vmem:[%s2925_s1 + $0x170] sm:$0xff]   ;;  %v2402_v62 = vld [vmem:[%s2581_s9 + $0xc0] ss:$24 sps:$4 sm:$0xff]   ;;  %v2410_v1 = vld [vmem:[%s2581_s9 + $0x244] ss:$24 sps:$4 sm:$0xff]  }
  0x1a   : > { %v2417_v61 = vld [vmem:[%s2925_s1 + $0x130] sm:$0xff]   ;;  %v2424_v2 = vld [vmem:[%s2925_s1 + $0xf8] sm:$0xff]   ;;  %v2430_v12 = vld [vmem:[%s2581_s9 + $0xc] ss:$24 sps:$4 sm:$0xff]  }
  0x1b   : > { %2024 = vmatpush3.bf16.msra.mxu0 %v2349_v13  ;;  %2326 = vmatpush3.bf16.msra.mxu1 %v2349_v13  ;;  %v2403_v63 = vld [vmem:[%s2581_s9 + $0x210] ss:$24 sps:$4 sm:$0xff]   ;;  %v2408_v0 = vld [vmem:[%s2581_s9 + $0xf4] ss:$24 sps:$4 sm:$0xff]   ;;  %v2425_v3 = vld [vmem:[%s2925_s1 + $0xb8] sm:$0xff]  }
  0x1c   : > { %2025 = vmatprep.subr.bf16.mxu0 %v2350_v14  ;;  %2319 = vmatprep.subr.bf16.mxu1 %v2350_v14  ;;  %v2426_v4 = vld [vmem:[%s2925_s1 + $0x178] sm:$0xff]   ;;  %v2412_v6 = vld [vmem:[%s2581_s9 + $0xf0] ss:$24 sps:$4 sm:$0xff]   ;;  %v2420_v9 = vld [vmem:[%s2581_s9 + $0x274] ss:$24 sps:$4 sm:$0xff]  }
  0x1d   : > { %v2427_v5 = vld [vmem:[%s2925_s1 + $0x138] sm:$0xff]   ;;  %v2423_v11 = vld [vmem:[%s2581_s9 + $0x270] ss:$24 sps:$4 sm:$0xff]   ;;  %v2433_v13 = vld [vmem:[%s2581_s9 + $0x14] ss:$24 sps:$4 sm:$0xff]  }
  0x1e   : > { %v2413_v7 = vld [vmem:[%s2581_s9 + $0x240] ss:$24 sps:$4 sm:$0xff]   ;;  %v2418_v8 = vld [vmem:[%s2581_s9 + $0x124] ss:$24 sps:$4 sm:$0xff]  }
  0x1f   : > { %2026 = vmatpush3.bf16.msra.mxu0 %v2351_v15  ;;  %2327 = vmatpush3.bf16.msra.mxu1 %v2351_v15  ;;  %v2422_v10 = vld [vmem:[%s2581_s9 + $0x120] ss:$24 sps:$4 sm:$0xff]   ;;  %v2431_v15 = vld [vmem:[%s2581_s9 + $0x10] ss:$24 sps:$4 sm:$0xff]  }
  0x20   : > { %2027 = vmatprep.subr.bf16.mxu0 %v2352_v16  ;;  %2320 = vmatprep.subr.bf16.mxu1 %v2352_v16  ;;  %v2428_v14 = vld [vmem:[%s2581_s9 + $0x8] ss:$24 sps:$4 sm:$0xff]   ;;  %v2434_v16 = vld [vmem:[%s2581_s9 + $0x3c] ss:$24 sps:$4 sm:$0xff]  }
  0x23   : > { %2028 = vmatpush3.bf16.msra.mxu0 %v2353_v17  ;;  %2328 = vmatpush3.bf16.msra.mxu1 %v2353_v17  ;;  %v2436_v17 = vld [vmem:[%s2581_s9 + $0x44] ss:$24 sps:$4 sm:$0xff]  }
  0x24   : > { %2113 = vmatprep.subr.bf16.mxu1 %v2360_v18  ;;  %2213 = vmatprep.subr.bf16.mxu0 %v2362_v21  ;;  %v2438_v18 = vld [vmem:[%s2581_s9 + $0x38] ss:$24 sps:$4 sm:$0xff]   ;;  %v2442_v21 = vld [vmem:[%s2581_s9 + $0x74] ss:$24 sps:$4 sm:$0xff]  }
  0x26   : > { %1106 = vmatmul.mubr.bf16.vlgmr.msra.gmra.mrb[0].mxu0 %v2354_v19  ;;  %1162 = vmatmul.mubr.bf16.vlgmr.msra.gmra.mrb[0].mxu1 %v2357_v20  ;;  %v2439_v19 = vld [vmem:[%s2581_s9 + $0x40] ss:$24 sps:$4 sm:$0xff]   ;;  %v2440_v20 = vld [vmem:[%s2581_s9 + $0x6c] ss:$24 sps:$4 sm:$0xff]  }
  0x27   : > { %2114 = vmatpush3.bf16.msra.mxu1 %v2361_v22  ;;  %2214 = vmatpush3.bf16.msra.mxu0 %v2363_v23  ;;  %v2444_v22 = vld [vmem:[%s2581_s9 + $0x68] ss:$24 sps:$4 sm:$0xff]  }
  0x28   : > { %1113 = vmatprep.mubr.bf16.mxu0 %v2364_v24  ;;  %1169 = vmatprep.mubr.bf16.mxu1 %v2366_v25  ;;  %v2445_v23 = vld [vmem:[%s2581_s9 + $0x70] ss:$24 sps:$4 sm:$0xff]   ;;  %v2446_v24 = vld [vmem:[%s2581_s9 + $0x9c] ss:$24 sps:$4 sm:$0xff]  }
  0x29   : > { %2115 = vmatprep.subr.bf16.mxu1 %v2368_v26  ;;  %2215 = vmatprep.subr.bf16.mxu0 %v2372_v28  ;;  %v2448_v25 = vld [vmem:[%s2581_s9 + $0xa4] ss:$24 sps:$4 sm:$0xff]   ;;  %v2450_v26 = vld [vmem:[%s2581_s9 + $0x98] ss:$24 sps:$4 sm:$0xff]  }
  0x2a   : > { %v2452_v28 = vld [vmem:[%s2581_s9 + $0xcc] ss:$24 sps:$4 sm:$0xff]  }
  0x2b   : > { %2116 = vmatpush3.bf16.msra.mxu1 %v2371_v27  ;;  %2216 = vmatpush3.bf16.msra.mxu0 %v2373_v29  ;;  %v2451_v27 = vld [vmem:[%s2581_s9 + $0xa0] ss:$24 sps:$4 sm:$0xff]   ;;  %v2454_v29 = vld [vmem:[%s2581_s9 + $0xd4] ss:$24 sps:$4 sm:$0xff]  }
  0x2c   : > { %2117 = vmatprep.subr.bf16.mxu1 %v2374_v30  ;;  %2217 = vmatprep.subr.bf16.mxu0 %v2382_v33  ;;  %v2456_v30 = vld [vmem:[%s2581_s9 + $0xc8] ss:$24 sps:$4 sm:$0xff]   ;;  %v2460_v33 = vld [vmem:[%s2581_s9 + $0x104] ss:$24 sps:$4 sm:$0xff]  }
  0x2e   : > { %1114 = vmatmul.mubr.bf16.gmra.mrb[4].mxu0 %v2369_v31  ;;  %1170 = vmatmul.mubr.bf16.gmra.mrb[4].mxu1 %v2370_v32  ;;  %v2457_v31 = vld [vmem:[%s2581_s9 + $0xd0] ss:$24 sps:$4 sm:$0xff]   ;;  %v2458_v32 = vld [vmem:[%s2581_s9 + $0xfc] ss:$24 sps:$4 sm:$0xff]  }
  0x2f   : > { %1121 = vmatprep.mubr.bf16.mxu0 %v2375_v34  ;;  %1177 = vmatprep.mubr.bf16.mxu1 %v2377_v35  ;;  %v2462_v34 = vld [vmem:[%s2581_s9 + $0xf8] ss:$24 sps:$4 sm:$0xff]  }
  0x30   : > { %2118 = vmatpush3.bf16.msra.mxu1 %v2379_v36  ;;  %2218 = vmatpush3.bf16.msra.mxu0 %v2383_v37  ;;  %v2463_v35 = vld [vmem:[%s2581_s9 + $0x100] ss:$24 sps:$4 sm:$0xff]   ;;  %v2464_v36 = vld [vmem:[%s2581_s9 + $0x12c] ss:$24 sps:$4 sm:$0xff]  }
  0x31   : > { %2119 = vmatprep.subr.bf16.mxu1 %v2384_v38  ;;  %2219 = vmatprep.subr.bf16.mxu0 %v2390_v39  ;;  %v2466_v37 = vld [vmem:[%s2581_s9 + $0x134] ss:$24 sps:$4 sm:$0xff]   ;;  %v2468_v38 = vld [vmem:[%s2581_s9 + $0x128] ss:$24 sps:$4 sm:$0xff]  }
  0x32   : > { %v2469_v39 = vld [vmem:[%s2581_s9 + $0x130] ss:$24 sps:$4 sm:$0xff]  }
  0x34   : > { %2120 = vmatpush3.bf16.msra.mxu1 %v2385_v40  ;;  %2220 = vmatpush3.bf16.msra.mxu0 %v2393_v41  ;;  %v2470_v40 = vld [vmem:[%s2581_s9 + $0x15c] ss:$24 sps:$4 sm:$0xff]  }
  0x35   : > { %2121 = vmatprep.subr.bf16.mxu1 %v2394_v44  ;;  %2221 = vmatprep.subr.bf16.mxu0 %v2396_v45  ;;  %v2472_v41 = vld [vmem:[%s2581_s9 + $0x164] ss:$24 sps:$4 sm:$0xff]   ;;  %v2478_v45 = vld [vmem:[%s2581_s9 + $0x194] ss:$24 sps:$4 sm:$0xff]  }
  0x36   : > { %1122 = vmatmul.mubr.bf16.gmra.mrb[8].mxu0 %v2380_v42  ;;  %1178 = vmatmul.mubr.bf16.gmra.mrb[8].mxu1 %v2381_v43  ;;  %v2474_v42 = vld [vmem:[%s2581_s9 + $0x158] ss:$24 sps:$4 sm:$0xff]   ;;  %v2476_v44 = vld [vmem:[%s2581_s9 + $0x18c] ss:$24 sps:$4 sm:$0xff]  }
  0x37   : > { %1129 = vmatprep.mubr.bf16.mxu0 %v2386_v46  ;;  %1185 = vmatprep.mubr.bf16.mxu1 %v2388_v47  ;;  %v2475_v43 = vld [vmem:[%s2581_s9 + $0x160] ss:$24 sps:$4 sm:$0xff]   ;;  %v2481_v47 = vld [vmem:[%s2581_s9 + $0x190] ss:$24 sps:$4 sm:$0xff]  }
  0x38   : > { %2122 = vmatpush3.bf16.msra.mxu1 %v2395_v48  ;;  %2222 = vmatpush3.bf16.msra.mxu0 %v2401_v49  ;;  %v2480_v46 = vld [vmem:[%s2581_s9 + $0x188] ss:$24 sps:$4 sm:$0xff]   ;;  %v2482_v48 = vld [vmem:[%s2581_s9 + $0x1bc] ss:$24 sps:$4 sm:$0xff]  }
  0x39   : > { %2123 = vmatprep.subr.bf16.mxu1 %v2404_v50  ;;  %2223 = vmatprep.subr.bf16.mxu0 %v2406_v53  ;;  %v2484_v49 = vld [vmem:[%s2581_s9 + $0x1c4] ss:$24 sps:$4 sm:$0xff]   ;;  %v2486_v50 = vld [vmem:[%s2581_s9 + $0x1b8] ss:$24 sps:$4 sm:$0xff]   ;;  %v2490_v53 = vld [vmem:[%s2581_s9 + $0x1f4] ss:$24 sps:$4 sm:$0xff]  }
  0x3c   : > { %2124 = vmatpush3.bf16.msra.mxu1 %v2405_v51  ;;  %2224 = vmatpush3.bf16.msra.mxu0 %v2407_v54  ;;  %v2487_v51 = vld [vmem:[%s2581_s9 + $0x1c0] ss:$24 sps:$4 sm:$0xff]  }
  0x3d   : > { %2125 = vmatprep.subr.bf16.mxu1 %v2414_v58  ;;  %2225 = vmatprep.subr.bf16.mxu0 %v2416_v60  ;;  %v2492_v54 = vld [vmem:[%s2581_s9 + $0x1e8] ss:$24 sps:$4 sm:$0xff]   ;;  %v2498_v58 = vld [vmem:[%s2581_s9 + $0x218] ss:$24 sps:$4 sm:$0xff]   ;;  %v2500_v60 = vld [vmem:[%s2581_s9 + $0x24c] ss:$24 sps:$4 sm:$0xff]  }
  0x3e   : > { %1130 = vmatmul.mubr.bf16.gmra.mrb[12].mxu0 %v2391_v52  ;;  %1186 = vmatmul.mubr.bf16.gmra.mrb[12].mxu1 %v2392_v55  ;;  %v2488_v52 = vld [vmem:[%s2581_s9 + $0x1ec] ss:$24 sps:$4 sm:$0xff]   ;;  %v2493_v55 = vld [vmem:[%s2581_s9 + $0x1f0] ss:$24 sps:$4 sm:$0xff]  }
  0x3f   : > { %1137 = vmatprep.mubr.bf16.mxu0 %v2397_v56  ;;  %1193 = vmatprep.mubr.bf16.mxu1 %v2399_v57  ;;  %v2494_v56 = vld [vmem:[%s2581_s9 + $0x21c] ss:$24 sps:$4 sm:$0xff]  }
  0x40   : > { %2126 = vmatpush3.bf16.msra.mxu1 %v2415_v59  ;;  %2226 = vmatpush3.bf16.msra.mxu0 %v2417_v61  ;;  %v2496_v57 = vld [vmem:[%s2581_s9 + $0x224] ss:$24 sps:$4 sm:$0xff]   ;;  %v2499_v59 = vld [vmem:[%s2581_s9 + $0x220] ss:$24 sps:$4 sm:$0xff]   ;;  %v2502_v61 = vld [vmem:[%s2581_s9 + $0x254] ss:$24 sps:$4 sm:$0xff]  }
  0x41   : > { %2127 = vmatprep.subr.bf16.mxu1 %v2424_v2  ;;  %2227 = vmatprep.subr.bf16.mxu0 %v2426_v4  ;;  %v2510_v2 = vld [vmem:[%s2581_s9 + $0x278] ss:$24 sps:$4 sm:$0xff]  }
  0x44   : > { %2128 = vmatpush3.bf16.msra.mxu1 %v2425_v3  ;;  %2228 = vmatpush3.bf16.msra.mxu0 %v2427_v5  ;;  %v2511_v3 = vld [vmem:[%s2581_s9 + $0x280] ss:$24 sps:$4 sm:$0xff]  }
  0x46   : > { %1138 = vmatmul.mubr.bf16.gmra.mrb[16].mxu0 %v2402_v62  ;;  %1194 = vmatmul.mubr.bf16.gmra.mrb[16].mxu1 %v2403_v63  ;;  %v2504_v62 = vld [vmem:[%s2581_s9 + $0x248] ss:$24 sps:$4 sm:$0xff]  }
  0x47   : > { %1145 = vmatprep.mubr.bf16.mxu0 %v2408_v0  ;;  %1201 = vmatprep.mubr.bf16.mxu1 %v2410_v1  ;;  %v2505_v63 = vld [vmem:[%s2581_s9 + $0x250] ss:$24 sps:$4 sm:$0xff]   ;;  %v2506_v0 = vld [vmem:[%s2581_s9 + $0x27c] ss:$24 sps:$4 sm:$0xff]  }
  0x48   : > { %v2508_v1 = vld [vmem:[%s2581_s9 + $0x284] ss:$24 sps:$4 sm:$0xff]  }
  0x4e   : > { %1146 = vmatmul.mubr.bf16.gmra.mrb[20].mxu0 %v2412_v6  ;;  %1202 = vmatmul.mubr.bf16.gmra.mrb[20].mxu1 %v2413_v7 }
  0x4f   : > { %1153 = vmatprep.mubr.bf16.mxu0 %v2418_v8  ;;  %1209 = vmatprep.mubr.bf16.mxu1 %v2420_v9 }
  0x56   : > { %1154 = vmatmul.mubr.bf16.gmra.mrb[24].mxu0 %v2422_v10  ;;  %1210 = vmatmul.mubr.bf16.gmra.mrb[24].mxu1 %v2423_v11 }
  0x57   : > { %1250 = vmatprep.mubr.bf16.mxu1 %v2430_v12  ;;  %1395 = vmatprep.mubr.bf16.mxu0 %v2433_v13 }
  0x5e   : > { %1251 = vmatmul.mubr.bf16.vlgmr.msra.gmra.mrb[28].mxu1 %v2428_v14  ;;  %1396 = vmatmul.mubr.bf16.vlgmr.msra.gmra.mrb[28].mxu0 %v2431_v15 }
  0x5f   : > { %1258 = vmatprep.mubr.bf16.mxu1 %v2434_v16  ;;  %1403 = vmatprep.mubr.bf16.mxu0 %v2436_v17 }
  0x66   : > { %1259 = vmatmul.mubr.bf16.gmra.mrb[32].mxu1 %v2438_v18  ;;  %1404 = vmatmul.mubr.bf16.gmra.mrb[32].mxu0 %v2439_v19 }
  0x67   : > { %1266 = vmatprep.mubr.bf16.mxu1 %v2440_v20  ;;  %1411 = vmatprep.mubr.bf16.mxu0 %v2442_v21 }
  0x6e   : > { %1267 = vmatmul.mubr.bf16.gmra.mrb[36].mxu1 %v2444_v22  ;;  %1412 = vmatmul.mubr.bf16.gmra.mrb[36].mxu0 %v2445_v23 }
  0x6f   : > { %1274 = vmatprep.mubr.bf16.mxu1 %v2446_v24  ;;  %1419 = vmatprep.mubr.bf16.mxu0 %v2448_v25  ;;  %v2797_v24 = vld [vmem:[%s2926_s2] ss:$0 sm:$0xff] }
  0x76   : > { %1275 = vmatmul.mubr.bf16.gmra.mrb[40].mxu1 %v2450_v26  ;;  %1420 = vmatmul.mubr.bf16.gmra.mrb[40].mxu0 %v2451_v27 }
  0x77   : > { %1282 = vmatprep.mubr.bf16.mxu1 %v2452_v28  ;;  %1427 = vmatprep.mubr.bf16.mxu0 %v2454_v29 }
  0x7e   : > { %1283 = vmatmul.mubr.bf16.gmra.mrb[44].mxu1 %v2456_v30  ;;  %1428 = vmatmul.mubr.bf16.gmra.mrb[44].mxu0 %v2457_v31 }
  0x7f   : > { %1290 = vmatprep.mubr.bf16.mxu1 %v2458_v32  ;;  %1435 = vmatprep.mubr.bf16.mxu0 %v2460_v33 }
  0x86   : > { %1291 = vmatmul.mubr.bf16.gmra.mrb[48].mxu1 %v2462_v34  ;;  %1436 = vmatmul.mubr.bf16.gmra.mrb[48].mxu0 %v2463_v35 }
  0x87   : > { %1298 = vmatprep.mubr.bf16.mxu1 %v2464_v36  ;;  %1443 = vmatprep.mubr.bf16.mxu0 %v2466_v37 }
  0x8e   : > { %1299 = vmatmul.mubr.bf16.gmra.mrb[52].mxu1 %v2468_v38  ;;  %1444 = vmatmul.mubr.bf16.gmra.mrb[52].mxu0 %v2469_v39 }
  0x8f   : > { %1306 = vmatprep.mubr.bf16.mxu1 %v2470_v40  ;;  %1451 = vmatprep.mubr.bf16.mxu0 %v2472_v41 }
  0x96   : > { %1307 = vmatmul.mubr.bf16.gmra.mrb[56].mxu1 %v2474_v42  ;;  %1452 = vmatmul.mubr.bf16.gmra.mrb[56].mxu0 %v2475_v43 }
  0x97   : > { %1314 = vmatprep.mubr.bf16.mxu1 %v2476_v44  ;;  %1459 = vmatprep.mubr.bf16.mxu0 %v2478_v45 }
  0x9e   : > { %1315 = vmatmul.mubr.bf16.gmra.mrb[60].mxu1 %v2480_v46  ;;  %1460 = vmatmul.mubr.bf16.gmra.mrb[60].mxu0 %v2481_v47 }
  0x9f   : > { %1322 = vmatprep.mubr.bf16.mxu1 %v2482_v48  ;;  %1467 = vmatprep.mubr.bf16.mxu0 %v2484_v49 }
  0xa6   : > { %1323 = vmatmul.mubr.bf16.gmra.mrb[64].mxu1 %v2486_v50  ;;  %1468 = vmatmul.mubr.bf16.gmra.mrb[64].mxu0 %v2487_v51 }
  0xa7   : > { %1330 = vmatprep.mubr.bf16.mxu1 %v2488_v52  ;;  %1475 = vmatprep.mubr.bf16.mxu0 %v2490_v53 }
  0xae   : > { %1331 = vmatmul.mubr.bf16.gmra.mrb[68].mxu1 %v2492_v54  ;;  %1476 = vmatmul.mubr.bf16.gmra.mrb[68].mxu0 %v2493_v55 }
  0xaf   : > { %1338 = vmatprep.mubr.bf16.mxu1 %v2494_v56  ;;  %1483 = vmatprep.mubr.bf16.mxu0 %v2496_v57 }
  0xb6   : > { %1339 = vmatmul.mubr.bf16.gmra.mrb[72].mxu1 %v2498_v58  ;;  %1484 = vmatmul.mubr.bf16.gmra.mrb[72].mxu0 %v2499_v59 }
  0xb7   : > { %1346 = vmatprep.mubr.bf16.mxu1 %v2500_v60  ;;  %1491 = vmatprep.mubr.bf16.mxu0 %v2502_v61 }
  0xbe   : > { %1347 = vmatmul.mubr.bf16.gmra.mrb[76].mxu1 %v2504_v62  ;;  %1492 = vmatmul.mubr.bf16.gmra.mrb[76].mxu0 %v2505_v63 }
  0xbf   : > { %1354 = vmatprep.mubr.bf16.mxu1 %v2506_v0  ;;  %1499 = vmatprep.mubr.bf16.mxu0 %v2508_v1 }
  0xc6   : > { %1355 = vmatmul.mubr.bf16.gmra.mrb[80].mxu1 %v2510_v2  ;;  %1500 = vmatmul.mubr.bf16.gmra.mrb[80].mxu0 %v2511_v3 }
  0xf9   : > { %v2029_v4 = vpop.f32.mrb[0].mxu0  ;;  %v2071_v5 = vpop.f32.mrb[0].mxu1 }
  0xfa   : > { %v2030_v6 = vpop.f32.mrb[1].mxu0  ;;  %v2072_v7 = vpop.f32.mrb[1].mxu1 }
  0xfb   : > { %v2784_v8 = vadd.f32 %v2030_v6, %v2029_v4  ;;  %v2786_v9 = vadd.f32 %v2072_v7, %v2071_v5  ;;  %v2032_v10 = vpop.f32.mrb[2].mxu0  ;;  %v2074_v11 = vpop.f32.mrb[2].mxu1 }
  0xfc   : > { %v2033_v12 = vpop.f32.mrb[3].mxu0  ;;  %v2075_v13 = vpop.f32.mrb[3].mxu1 }
  0xfd   : > { %v2788_v14 = vadd.f32 %v2033_v12, %v2032_v10  ;;  %v2790_v15 = vadd.f32 %v2075_v13, %v2074_v11 }
 0x101   : > { %v2035_v16 = vpop.f32.mrb[4].mxu0  ;;  %v2077_v17 = vpop.f32.mrb[4].mxu1 }
 0x102   : > { %v2036_v18 = vpop.f32.mrb[5].mxu0  ;;  %v2078_v19 = vpop.f32.mrb[5].mxu1 }
 0x103   : > { %v2792_v20 = vadd.f32 %v2036_v18, %v2035_v16  ;;  %v2079_v21 = vadd.f32 %v2078_v19, %v2077_v17  ;;  %v2038_v22 = vpop.f32.mrb[6].mxu0  ;;  %v2080_v23 = vpop.f32.mrb[6].mxu1 }
 0x104   : > { %v2039_v25 = vpop.f32.mrb[7].mxu0  ;;  %v2081_v26 = vpop.f32.mrb[7].mxu1 }
 0x105   : > { %v2800_v27 = vadd.f32 %v2079_v21, %v2797_v24  ;;  %v2802_v28 = vadd.f32 %v2039_v25, %v2038_v22  ;;  %v2082_v29 = vadd.f32 %v2081_v26, %v2080_v23 }
 0x107   : > { %v2805_v30 = vadd.f32 %v2082_v29, %v2797_v24 }
 0x109   : > { %v2041_v31 = vpop.f32.mrb[8].mxu0  ;;  %v2083_v32 = vpop.f32.mrb[8].mxu1 }
 0x10a   : > { %v2042_v33 = vpop.f32.mrb[9].mxu0  ;;  %v2084_v34 = vpop.f32.mrb[9].mxu1 }
 0x10b   : > { %v2807_v35 = vadd.f32 %v2042_v33, %v2041_v31  ;;  %v2085_v36 = vadd.f32 %v2084_v34, %v2083_v32  ;;  %v2044_v37 = vpop.f32.mrb[10].mxu0  ;;  %v2086_v38 = vpop.f32.mrb[10].mxu1 }
 0x10c   : > { %v2045_v39 = vpop.f32.mrb[11].mxu0  ;;  %v2087_v40 = vpop.f32.mrb[11].mxu1 }
 0x10d   : > { %v2810_v41 = vadd.f32 %v2085_v36, %v2797_v24  ;;  %v2812_v42 = vadd.f32 %v2045_v39, %v2044_v37  ;;  %v2088_v43 = vadd.f32 %v2087_v40, %v2086_v38 }
 0x10f   : > { %v2815_v44 = vadd.f32 %v2088_v43, %v2797_v24 }
 0x111   : > { %v2047_v45 = vpop.f32.mrb[12].mxu0  ;;  %v2089_v46 = vpop.f32.mrb[12].mxu1 }
 0x112   : > { %v2048_v47 = vpop.f32.mrb[13].mxu0  ;;  %v2090_v48 = vpop.f32.mrb[13].mxu1 }
 0x113   : > { %v2817_v49 = vadd.f32 %v2048_v47, %v2047_v45  ;;  %v2091_v50 = vadd.f32 %v2090_v48, %v2089_v46  ;;  %v2050_v51 = vpop.f32.mrb[14].mxu0  ;;  %v2092_v52 = vpop.f32.mrb[14].mxu1 }
 0x114   : > { %v2051_v53 = vpop.f32.mrb[15].mxu0  ;;  %v2093_v54 = vpop.f32.mrb[15].mxu1 }
 0x115   : > { %v2820_v55 = vadd.f32 %v2091_v50, %v2797_v24  ;;  %v2822_v56 = vadd.f32 %v2051_v53, %v2050_v51  ;;  %v2094_v57 = vadd.f32 %v2093_v54, %v2092_v52 }
 0x117   : > { %v2825_v58 = vadd.f32 %v2094_v57, %v2797_v24  ;;  %v1108_v57 = vadd.f32 %v2784_v8, %v2797_v24  ;;  %v1116_v8 = vadd.f32 %v2792_v20, %v2797_v24 }
 0x119   : > { %v2053_v59 = vpop.f32.mrb[16].mxu0  ;;  %v2095_v60 = vpop.f32.mrb[16].mxu1 }
 0x11a   : > { %v2054_v61 = vpop.f32.mrb[17].mxu0  ;;  %v2096_v62 = vpop.f32.mrb[17].mxu1 }
 0x11b   : > { %v2827_v63 = vadd.f32 %v2054_v61, %v2053_v59  ;;  %v2097_v0 = vadd.f32 %v2096_v62, %v2095_v60  ;;  %v2056_v1 = vpop.f32.mrb[18].mxu0  ;;  %v2098_v2 = vpop.f32.mrb[18].mxu1 }
 0x11c   : > { %v2057_v3 = vpop.f32.mrb[19].mxu0  ;;  %v2099_v4 = vpop.f32.mrb[19].mxu1 }
 0x11d   : > { %v2830_v5 = vadd.f32 %v2097_v0, %v2797_v24  ;;  %v2832_v6 = vadd.f32 %v2057_v3, %v2056_v1  ;;  %v2100_v7 = vadd.f32 %v2099_v4, %v2098_v2  ;;  %v1111_v2 = vadd.f32 %v2788_v14, %v2797_v24 }
 0x11f   : > { %v2835_v10 = vadd.f32 %v2100_v7, %v2797_v24 }
 0x121   : > { %v2059_v11 = vpop.f32.mrb[20].mxu0  ;;  %v2101_v12 = vpop.f32.mrb[20].mxu1 }
 0x122   : > { %v2060_v13 = vpop.f32.mrb[21].mxu0  ;;  %v2102_v16 = vpop.f32.mrb[21].mxu1 }
 0x123   : > { %v2837_v17 = vadd.f32 %v2060_v13, %v2059_v11  ;;  %v2103_v18 = vadd.f32 %v2102_v16, %v2101_v12  ;;  %v2062_v19 = vpop.f32.mrb[22].mxu0  ;;  %v2104_v21 = vpop.f32.mrb[22].mxu1 }
 0x124   : > { %v2063_v22 = vpop.f32.mrb[23].mxu0  ;;  %v2105_v23 = vpop.f32.mrb[23].mxu1 }
 0x125   : > { %v2840_v25 = vadd.f32 %v2103_v18, %v2797_v24  ;;  %v2842_v26 = vadd.f32 %v2063_v22, %v2062_v19  ;;  %v2106_v29 = vadd.f32 %v2105_v23, %v2104_v21 }
 0x127   : > { %v2845_v31 = vadd.f32 %v2106_v29, %v2797_v24 }
 0x129   : > { %v2065_v32 = vpop.f32.mrb[24].mxu0  ;;  %v2107_v33 = vpop.f32.mrb[24].mxu1 }
 0x12a   : > { %v2066_v34 = vpop.f32.mrb[25].mxu0  ;;  %v2108_v36 = vpop.f32.mrb[25].mxu1 }
 0x12b   : > { %v2847_v37 = vadd.f32 %v2066_v34, %v2065_v32  ;;  %v2109_v38 = vadd.f32 %v2108_v36, %v2107_v33  ;;  %v2068_v39 = vpop.f32.mrb[26].mxu0  ;;  %v2110_v40 = vpop.f32.mrb[26].mxu1  ;;  %v1119_v34 = vadd.f32 %v2802_v28, %v2797_v24  ;;  %v1124_v28 = vadd.f32 %v2807_v35, %v2797_v24 }
 0x12c   : > { %v2069_v43 = vpop.f32.mrb[27].mxu0  ;;  %v2111_v45 = vpop.f32.mrb[27].mxu1 }
 0x12d   : > { %v2850_v46 = vadd.f32 %v2109_v38, %v2797_v24  ;;  %v2852_v47 = vadd.f32 %v2069_v43, %v2068_v39  ;;  %v2112_v48 = vadd.f32 %v2111_v45, %v2110_v40 }
 0x12f   : > { %v2855_v50 = vadd.f32 %v2112_v48, %v2797_v24 }
 0x131   : > { %v2129_v51 = vpop.f32.mrb[28].mxu1  ;;  %v2229_v52 = vpop.f32.mrb[28].mxu0 }
 0x132   : > { %v2130_v53 = vpop.f32.mrb[29].mxu1  ;;  %v2230_v54 = vpop.f32.mrb[29].mxu0 }
 0x133   : > { %v2131_v59 = vadd.f32 %v2130_v53, %v2129_v51  ;;  %v2231_v60 = vadd.f32 %v2230_v54, %v2229_v52  ;;  %v2132_v61 = vpop.f32.mrb[30].mxu1  ;;  %v2232_v62 = vpop.f32.mrb[30].mxu0 }
 0x134   : > { %v2133_v0 = vpop.f32.mrb[31].mxu1  ;;  %v2233_v1 = vpop.f32.mrb[31].mxu0 }
 0x135   : > { %v1253_v3 = vadd.f32 %v2131_v59, %v1108_v57  ;;  %v2134_v4 = vadd.f32 %v2133_v0, %v2132_v61  ;;  %v2234_v7 = vadd.f32 %v2233_v1, %v2232_v62 }
 0x137   : > { %v1398_v11 = vadd.f32 %v2231_v60, %v1253_v3  ;;  %v1256_v12 = vadd.f32 %v2134_v4, %v1111_v2  ;;  %v1127_v2 = vadd.f32 %v2812_v42, %v2797_v24 }
 0x139   : > { %v1401_v13 = vadd.f32 %v2234_v7, %v1256_v12  ;;  %v2135_v16 = vpop.f32.mrb[32].mxu1  ;;  %v2235_v18 = vpop.f32.mrb[32].mxu0  ;;  %v1508_v22 = vmax.f32 %v1398_v11, 0.0 }
 0x13a   : > { %v2136_v19 = vpop.f32.mrb[33].mxu1  ;;  %v2236_v21 = vpop.f32.mrb[33].mxu0 }
 0x13b   : > { %v1509_v23 = vmax.f32 %v1401_v13, 0.0  ;;  %v2137_v29 = vadd.f32 %v2136_v19, %v2135_v16  ;;  %v2237_v32 = vadd.f32 %v2236_v21, %v2235_v18  ;;  %v2138_v33 = vpop.f32.mrb[34].mxu1  ;;  %v2238_v14 = vpop.f32.mrb[34].mxu0  ;;  %v1132_v21 = vadd.f32 %v2817_v49, %v2797_v24 }
 0x13c   : > { %v2139_v36 = vpop.f32.mrb[35].mxu1  ;;  %v2239_v38 = vpop.f32.mrb[35].mxu0 }
 0x13d   : > { %v1933_v20 = vpack.c.bf16 %v1509_v23, %v1508_v22  ;;  %v1261_v39 = vadd.f32 %v2137_v29, %v1116_v8  ;;  %v2140_v40 = vadd.f32 %v2139_v36, %v2138_v33  ;;  %v2240_v43 = vadd.f32 %v2239_v38, %v2238_v14 }
 0x13e   : > { %v1135_v36 = vadd.f32 %v2822_v56, %v2797_v24 }
 0x13f   : > { %1934 = vst [vmem:[%s2869_s16] sm:$0xff] %v1933_v20   ;;  %v1406_v45 = vadd.f32 %v2237_v32, %v1261_v39  ;;  %v1264_v48 = vadd.f32 %v2140_v40, %v1119_v34 }
 0x141   : > { %v1409_v51 = vadd.f32 %v2240_v43, %v1264_v48  ;;  %v2141_v52 = vpop.f32.mrb[36].mxu1  ;;  %v2241_v53 = vpop.f32.mrb[36].mxu0  ;;  %v1510_v59 = vmax.f32 %v1406_v45, 0.0 }
 0x142   : > { %v2142_v54 = vpop.f32.mrb[37].mxu1  ;;  %v2242_v57 = vpop.f32.mrb[37].mxu0 }
 0x143   : > { %v1511_v60 = vmax.f32 %v1409_v51, 0.0  ;;  %v2143_v61 = vadd.f32 %v2142_v54, %v2141_v52  ;;  %v2243_v62 = vadd.f32 %v2242_v57, %v2241_v53  ;;  %v2144_v0 = vpop.f32.mrb[38].mxu1  ;;  %v2244_v1 = vpop.f32.mrb[38].mxu0 }
 0x144   : > { %v2145_v3 = vpop.f32.mrb[39].mxu1  ;;  %v2245_v4 = vpop.f32.mrb[39].mxu0 }
 0x145   : > { %v1938_v7 = vpack.c.bf16 %v1511_v60, %v1510_v59  ;;  %v1269_v11 = vadd.f32 %v2143_v61, %v1124_v28  ;;  %v2146_v12 = vadd.f32 %v2145_v3, %v2144_v0  ;;  %v2246_v13 = vadd.f32 %v2245_v4, %v2244_v1 }
 0x146   : > { %v1140_v28 = vadd.f32 %v2827_v63, %v2797_v24  ;;  %v1143_v1 = vadd.f32 %v2832_v6, %v2797_v24 }
 0x147   : > { %2000 = vst [vmem:[%s2869_s16 + $0x8] sm:$0xff] %v1938_v7   ;;  %v1414_v35 = vadd.f32 %v2243_v62, %v1269_v11  ;;  %v1272_v16 = vadd.f32 %v2146_v12, %v1127_v2 }
 0x149   : > { %v1417_v18 = vadd.f32 %v2246_v13, %v1272_v16  ;;  %v2147_v8 = vpop.f32.mrb[40].mxu1  ;;  %v2247_v19 = vpop.f32.mrb[40].mxu0  ;;  %v1512_v29 = vmax.f32 %v1414_v35, 0.0 }
 0x14a   : > { %v2148_v22 = vpop.f32.mrb[41].mxu1  ;;  %v2248_v23 = vpop.f32.mrb[41].mxu0 }
 0x14b   : > { %v1513_v42 = vmax.f32 %v1417_v18, 0.0  ;;  %v2149_v32 = vadd.f32 %v2148_v22, %v2147_v8  ;;  %v2249_v33 = vadd.f32 %v2248_v23, %v2247_v19  ;;  %v2150_v14 = vpop.f32.mrb[42].mxu1  ;;  %v2250_v34 = vpop.f32.mrb[42].mxu0  ;;  %v1148_v8 = vadd.f32 %v2837_v17, %v2797_v24 }
 0x14c   : > { %v2151_v38 = vpop.f32.mrb[43].mxu1  ;;  %v2251_v20 = vpop.f32.mrb[43].mxu0 }
 0x14d   : > { %v1943_v39 = vpack.c.bf16 %v1513_v42, %v1512_v29  ;;  %v1277_v40 = vadd.f32 %v2149_v32, %v1132_v21  ;;  %v2152_v43 = vadd.f32 %v2151_v38, %v2150_v14  ;;  %v2252_v45 = vadd.f32 %v2251_v20, %v2250_v34 }
 0x14f   : > { %2001 = vst [vmem:[%s2869_s16 + $0x10] sm:$0xff] %v1943_v39   ;;  %v1422_v49 = vadd.f32 %v2249_v33, %v1277_v40  ;;  %v1280_v48 = vadd.f32 %v2152_v43, %v1135_v36  ;;  %v1151_v33 = vadd.f32 %v2842_v26, %v2797_v24 }
 0x151   : > { %v1425_v51 = vadd.f32 %v2252_v45, %v1280_v48  ;;  %v2153_v52 = vpop.f32.mrb[44].mxu1  ;;  %v2253_v53 = vpop.f32.mrb[44].mxu0  ;;  %v1514_v59 = vmax.f32 %v1422_v49, 0.0  ;;  %v1156_v48 = vadd.f32 %v2847_v37, %v2797_v24 }
 0x152   : > { %v2154_v54 = vpop.f32.mrb[45].mxu1  ;;  %v2254_v57 = vpop.f32.mrb[45].mxu0 }
 0x153   : > { %v1515_v56 = vmax.f32 %v1425_v51, 0.0  ;;  %v2155_v60 = vadd.f32 %v2154_v54, %v2153_v52  ;;  %v2255_v61 = vadd.f32 %v2254_v57, %v2253_v53  ;;  %v2156_v62 = vpop.f32.mrb[46].mxu1  ;;  %v2256_v0 = vpop.f32.mrb[46].mxu0 }
 0x154   : > { %v2157_v2 = vpop.f32.mrb[47].mxu1  ;;  %v2257_v3 = vpop.f32.mrb[47].mxu0 }
 0x155   : > { %v1948_v4 = vpack.c.bf16 %v1515_v56, %v1514_v59  ;;  %v1285_v7 = vadd.f32 %v2155_v60, %v1140_v28  ;;  %v2158_v11 = vadd.f32 %v2157_v2, %v2156_v62  ;;  %v2258_v12 = vadd.f32 %v2257_v3, %v2256_v0 }
 0x156   : > { %v1159_v56 = vadd.f32 %v2852_v47, %v2797_v24 }
 0x157   : > { %2002 = vst [vmem:[%s2869_s16 + $0x18] sm:$0xff] %v1948_v4   ;;  %v1430_v63 = vadd.f32 %v2255_v61, %v1285_v7  ;;  %v1288_v13 = vadd.f32 %v2158_v11, %v1143_v1 }
 0x159   : > { %v1433_v35 = vadd.f32 %v2258_v12, %v1288_v13  ;;  %v2159_v16 = vpop.f32.mrb[48].mxu1  ;;  %v2259_v18 = vpop.f32.mrb[48].mxu0  ;;  %v1516_v22 = vmax.f32 %v1430_v63, 0.0  ;;  %v1164_v12 = vadd.f32 %v2786_v9, %v2797_v24 }
 0x15a   : > { %v2160_v19 = vpop.f32.mrb[49].mxu1  ;;  %v2260_v21 = vpop.f32.mrb[49].mxu0 }
 0x15b   : > { %v1517_v6 = vmax.f32 %v1433_v35, 0.0  ;;  %v2161_v23 = vadd.f32 %v2160_v19, %v2159_v16  ;;  %v2261_v29 = vadd.f32 %v2260_v21, %v2259_v18  ;;  %v2162_v42 = vpop.f32.mrb[50].mxu1  ;;  %v2262_v32 = vpop.f32.mrb[50].mxu0  ;;  %v1167_v21 = vadd.f32 %v2790_v15, %v2797_v24 }
 0x15c   : > { %v2163_v14 = vpop.f32.mrb[51].mxu1  ;;  %v2263_v34 = vpop.f32.mrb[51].mxu0 }
 0x15d   : > { %v1953_v36 = vpack.c.bf16 %v1517_v6, %v1516_v22  ;;  %v1293_v38 = vadd.f32 %v2161_v23, %v1148_v8  ;;  %v2164_v20 = vadd.f32 %v2163_v14, %v2162_v42  ;;  %v2264_v39 = vadd.f32 %v2263_v34, %v2262_v32 }
 0x15f   : > { %2003 = vst [vmem:[%s2869_s16 + $0x20] sm:$0xff] %v1953_v36   ;;  %v1438_v17 = vadd.f32 %v2261_v29, %v1293_v38  ;;  %v1296_v40 = vadd.f32 %v2164_v20, %v1151_v33 }
 0x161   : > { %v1441_v43 = vadd.f32 %v2264_v39, %v1296_v40  ;;  %v2165_v45 = vpop.f32.mrb[52].mxu1  ;;  %v2265_v49 = vpop.f32.mrb[52].mxu0  ;;  %v1518_v53 = vmax.f32 %v1438_v17, 0.0 }
 0x162   : > { %v2166_v51 = vpop.f32.mrb[53].mxu1  ;;  %v2266_v52 = vpop.f32.mrb[53].mxu0 }
 0x163   : > { %v1519_v26 = vmax.f32 %v1441_v43, 0.0  ;;  %v2167_v28 = vadd.f32 %v2166_v51, %v2165_v45  ;;  %v2267_v54 = vadd.f32 %v2266_v52, %v2265_v49  ;;  %v2168_v57 = vpop.f32.mrb[54].mxu1  ;;  %v2268_v59 = vpop.f32.mrb[54].mxu0 }
 0x164   : > { %v2169_v60 = vpop.f32.mrb[55].mxu1  ;;  %v2269_v61 = vpop.f32.mrb[55].mxu0 }
 0x165   : > { %v1958_v62 = vpack.c.bf16 %v1519_v26, %v1518_v53  ;;  %v1301_v0 = vadd.f32 %v2167_v28, %v1156_v48  ;;  %v2170_v1 = vadd.f32 %v2169_v60, %v2168_v57  ;;  %v2270_v2 = vadd.f32 %v2269_v61, %v2268_v59 }
 0x167   : > { %2004 = vst [vmem:[%s2869_s16 + $0x28] sm:$0xff] %v1958_v62   ;;  %v1446_v37 = vadd.f32 %v2267_v54, %v1301_v0  ;;  %v1304_v3 = vadd.f32 %v2170_v1, %v1159_v56 }
 0x169   : > { %v1449_v4 = vadd.f32 %v2270_v2, %v1304_v3  ;;  %v2171_v7 = vpop.f32.mrb[56].mxu1  ;;  %v2271_v11 = vpop.f32.mrb[56].mxu0  ;;  %v1520_v35 = vmax.f32 %v1446_v37, 0.0 }
 0x16a   : > { %v2172_v63 = vpop.f32.mrb[57].mxu1  ;;  %v2272_v13 = vpop.f32.mrb[57].mxu0 }
 0x16b   : > { %v1521_v47 = vmax.f32 %v1449_v4, 0.0  ;;  %v2173_v16 = vadd.f32 %v2172_v63, %v2171_v7  ;;  %v2273_v18 = vadd.f32 %v2272_v13, %v2271_v11  ;;  %v2174_v8 = vpop.f32.mrb[58].mxu1  ;;  %v2274_v19 = vpop.f32.mrb[58].mxu0 }
 0x16c   : > { %v2175_v22 = vpop.f32.mrb[59].mxu1  ;;  %v2275_v6 = vpop.f32.mrb[59].mxu0 }
 0x16d   : > { %v1963_v23 = vpack.c.bf16 %v1521_v47, %v1520_v35  ;;  %v1309_v29 = vadd.f32 %v2173_v16, %v1164_v12  ;;  %v2176_v42 = vadd.f32 %v2175_v22, %v2174_v8  ;;  %v2276_v32 = vadd.f32 %v2275_v6, %v2274_v19 }
 0x16f   : > { %2005 = vst [vmem:[%s2869_s16 + $0x30] sm:$0xff] %v1963_v23   ;;  %v1454_v9 = vadd.f32 %v2273_v18, %v1309_v29  ;;  %v1312_v33 = vadd.f32 %v2176_v42, %v1167_v21 }
 0x171   : > { %v1457_v14 = vadd.f32 %v2276_v32, %v1312_v33  ;;  %v2177_v34 = vpop.f32.mrb[60].mxu1  ;;  %v2277_v36 = vpop.f32.mrb[60].mxu0  ;;  %v1522_v39 = vmax.f32 %v1454_v9, 0.0 }
 0x172   : > { %v2178_v38 = vpop.f32.mrb[61].mxu1  ;;  %v2278_v20 = vpop.f32.mrb[61].mxu0 }
 0x173   : > { %v1523_v17 = vmax.f32 %v1457_v14, 0.0  ;;  %v2179_v40 = vadd.f32 %v2178_v38, %v2177_v34  ;;  %v2279_v43 = vadd.f32 %v2278_v20, %v2277_v36  ;;  %v2180_v15 = vpop.f32.mrb[62].mxu1  ;;  %v2280_v24 = vpop.f32.mrb[62].mxu0 }
 0x174   : > { %v2181_v45 = vpop.f32.mrb[63].mxu1  ;;  %v2281_v49 = vpop.f32.mrb[63].mxu0 }
 0x175   : > { %v1968_v48 = vpack.c.bf16 %v1523_v17, %v1522_v39  ;;  %v1317_v51 = vadd.f32 %v2179_v40, %v2800_v27  ;;  %v2182_v52 = vadd.f32 %v2181_v45, %v2180_v15  ;;  %v2282_v53 = vadd.f32 %v2281_v49, %v2280_v24 }
 0x177   : > { %2006 = vst [vmem:[%s2869_s16 + $0x38] sm:$0xff] %v1968_v48   ;;  %v1462_v26 = vadd.f32 %v2279_v43, %v1317_v51  ;;  %v1320_v28 = vadd.f32 %v2182_v52, %v2805_v30 }
 0x179   : > { %v1465_v54 = vadd.f32 %v2282_v53, %v1320_v28  ;;  %v2183_v57 = vpop.f32.mrb[64].mxu1  ;;  %v2283_v59 = vpop.f32.mrb[64].mxu0  ;;  %v1524_v61 = vmax.f32 %v1462_v26, 0.0 }
 0x17a   : > { %v2184_v56 = vpop.f32.mrb[65].mxu1  ;;  %v2284_v60 = vpop.f32.mrb[65].mxu0 }
 0x17b   : > { %v1525_v62 = vmax.f32 %v1465_v54, 0.0  ;;  %v2185_v0 = vadd.f32 %v2184_v56, %v2183_v57  ;;  %v2285_v1 = vadd.f32 %v2284_v60, %v2283_v59  ;;  %v2186_v2 = vpop.f32.mrb[66].mxu1  ;;  %v2286_v37 = vpop.f32.mrb[66].mxu0 }
 0x17c   : > { %v2187_v3 = vpop.f32.mrb[67].mxu1  ;;  %v2287_v27 = vpop.f32.mrb[67].mxu0 }
 0x17d   : > { %v1973_v4 = vpack.c.bf16 %v1525_v62, %v1524_v61  ;;  %v1325_v7 = vadd.f32 %v2185_v0, %v2810_v41  ;;  %v2188_v11 = vadd.f32 %v2187_v3, %v2186_v2  ;;  %v2288_v12 = vadd.f32 %v2287_v27, %v2286_v37 }
 0x17f   : > { %2007 = vst [vmem:[%s2869_s16 + $0x40] sm:$0xff] %v1973_v4   ;;  %v1470_v30 = vadd.f32 %v2285_v1, %v1325_v7  ;;  %v1328_v63 = vadd.f32 %v2188_v11, %v2815_v44 }
 0x181   : > { %v1473_v13 = vadd.f32 %v2288_v12, %v1328_v63  ;;  %v2189_v35 = vpop.f32.mrb[68].mxu1  ;;  %v2289_v47 = vpop.f32.mrb[68].mxu0  ;;  %v1526_v8 = vmax.f32 %v1470_v30, 0.0 }
 0x182   : > { %v2190_v16 = vpop.f32.mrb[69].mxu1  ;;  %v2290_v18 = vpop.f32.mrb[69].mxu0 }
 0x183   : > { %v1527_v19 = vmax.f32 %v1473_v13, 0.0  ;;  %v2191_v21 = vadd.f32 %v2190_v16, %v2189_v35  ;;  %v2291_v22 = vadd.f32 %v2290_v18, %v2289_v47  ;;  %v2192_v6 = vpop.f32.mrb[70].mxu1  ;;  %v2292_v23 = vpop.f32.mrb[70].mxu0 }
 0x184   : > { %v2193_v29 = vpop.f32.mrb[71].mxu1  ;;  %v2293_v41 = vpop.f32.mrb[71].mxu0 }
 0x185   : > { %v1978_v42 = vpack.c.bf16 %v1527_v19, %v1526_v8  ;;  %v1333_v32 = vadd.f32 %v2191_v21, %v2820_v55  ;;  %v2194_v9 = vadd.f32 %v2193_v29, %v2192_v6  ;;  %v2294_v33 = vadd.f32 %v2293_v41, %v2292_v23 }
 0x187   : > { %2008 = vst [vmem:[%s2869_s16 + $0x48] sm:$0xff] %v1978_v42   ;;  %v1478_v44 = vadd.f32 %v2291_v22, %v1333_v32  ;;  %v1336_v14 = vadd.f32 %v2194_v9, %v2825_v58 }
 0x189   : > { %v1481_v34 = vadd.f32 %v2294_v33, %v1336_v14  ;;  %v2195_v36 = vpop.f32.mrb[72].mxu1  ;;  %v2295_v38 = vpop.f32.mrb[72].mxu0  ;;  %v1528_v17 = vmax.f32 %v1478_v44, 0.0 }
 0x18a   : > { %v2196_v20 = vpop.f32.mrb[73].mxu1  ;;  %v2296_v39 = vpop.f32.mrb[73].mxu0 }
 0x18b   : > { %v1529_v40 = vmax.f32 %v1481_v34, 0.0  ;;  %v2197_v43 = vadd.f32 %v2196_v20, %v2195_v36  ;;  %v2297_v15 = vadd.f32 %v2296_v39, %v2295_v38  ;;  %v2198_v24 = vpop.f32.mrb[74].mxu1  ;;  %v2298_v45 = vpop.f32.mrb[74].mxu0 }
 0x18c   : > { %v2199_v49 = vpop.f32.mrb[75].mxu1  ;;  %v2299_v55 = vpop.f32.mrb[75].mxu0 }
 0x18d   : > { %v1983_v48 = vpack.c.bf16 %v1529_v40, %v1528_v17  ;;  %v1341_v51 = vadd.f32 %v2197_v43, %v2830_v5  ;;  %v2200_v52 = vadd.f32 %v2199_v49, %v2198_v24  ;;  %v2300_v53 = vadd.f32 %v2299_v55, %v2298_v45 }
 0x18f   : > { %2009 = vst [vmem:[%s2869_s16 + $0x50] sm:$0xff] %v1983_v48   ;;  %v1486_v58 = vadd.f32 %v2297_v15, %v1341_v51  ;;  %v1344_v26 = vadd.f32 %v2200_v52, %v2835_v10 }
 0x191   : > { %v1489_v28 = vadd.f32 %v2300_v53, %v1344_v26  ;;  %v2201_v54 = vpop.f32.mrb[76].mxu1  ;;  %v2301_v57 = vpop.f32.mrb[76].mxu0  ;;  %v1530_v60 = vmax.f32 %v1486_v58, 0.0 }
 0x192   : > { %v2202_v59 = vpop.f32.mrb[77].mxu1  ;;  %v2302_v56 = vpop.f32.mrb[77].mxu0 }
 0x193   : > { %v1531_v61 = vmax.f32 %v1489_v28, 0.0  ;;  %v2203_v62 = vadd.f32 %v2202_v59, %v2201_v54  ;;  %v2303_v0 = vadd.f32 %v2302_v56, %v2301_v57  ;;  %v2204_v1 = vpop.f32.mrb[78].mxu1  ;;  %v2304_v2 = vpop.f32.mrb[78].mxu0 }
 0x194   : > { %v2205_v37 = vpop.f32.mrb[79].mxu1  ;;  %v2305_v5 = vpop.f32.mrb[79].mxu0 }
 0x195   : > { %v1988_v3 = vpack.c.bf16 %v1531_v61, %v1530_v60  ;;  %v1349_v27 = vadd.f32 %v2203_v62, %v2840_v25  ;;  %v2206_v4 = vadd.f32 %v2205_v37, %v2204_v1  ;;  %v2306_v7 = vadd.f32 %v2305_v5, %v2304_v2 }
 0x197   : > { %2010 = vst [vmem:[%s2869_s16 + $0x58] sm:$0xff] %v1988_v3   ;;  %v1494_v10 = vadd.f32 %v2303_v0, %v1349_v27  ;;  %v1352_v11 = vadd.f32 %v2206_v4, %v2845_v31 }
 0x199   : > { %v1497_v12 = vadd.f32 %v2306_v7, %v1352_v11  ;;  %v2207_v30 = vpop.f32.mrb[80].mxu1  ;;  %v2307_v63 = vpop.f32.mrb[80].mxu0  ;;  %v1532_v47 = vmax.f32 %v1494_v10, 0.0 }
 0x19a   : > { %v2208_v13 = vpop.f32.mrb[81].mxu1  ;;  %v2308_v35 = vpop.f32.mrb[81].mxu0 }
 0x19b   : > { %v1533_v16 = vmax.f32 %v1497_v12, 0.0  ;;  %v2209_v18 = vadd.f32 %v2208_v13, %v2207_v30  ;;  %v2309_v8 = vadd.f32 %v2308_v35, %v2307_v63  ;;  %v2210_v19 = vpop.f32.mrb[82].mxu1  ;;  %v2310_v21 = vpop.f32.mrb[82].mxu0 }
 0x19c   : > { %v2211_v25 = vpop.f32.mrb[83].mxu1  ;;  %v2311_v22 = vpop.f32.mrb[83].mxu0 }
 0x19d   : > { %v1993_v6 = vpack.c.bf16 %v1533_v16, %v1532_v47  ;;  %v1357_v23 = vadd.f32 %v2209_v18, %v2850_v46  ;;  %v2212_v29 = vadd.f32 %v2211_v25, %v2210_v19  ;;  %v2312_v31 = vadd.f32 %v2311_v22, %v2310_v21 }
 0x19f   : > { %2011 = vst [vmem:[%s2869_s16 + $0x60] sm:$0xff] %v1993_v6   ;;  %v1502_v41 = vadd.f32 %v2309_v8, %v1357_v23  ;;  %v1360_v42 = vadd.f32 %v2212_v29, %v2855_v50 }
 0x1a1   : > { %v1505_v32 = vadd.f32 %v2312_v31, %v1360_v42  ;;  %v1534_v9 = vmax.f32 %v1502_v41, 0.0 }
 0x1a3   : > { %v1535_v33 = vmax.f32 %v1505_v32, 0.0 }
 0x1a5   : > { %v1998_v44 = vpack.c.bf16 %v1535_v33, %v1534_v9 }
 0x1a7   : > { %2012 = vst [vmem:[%s2869_s16 + $0x68] sm:$0xff] %v1998_v44  }
 0x1a8 PF: > { %s13_s12 = sadd.s32 1, %s2518_s12  }
 0x1a9   : > { %p10_p4 = scmp.ge.s32.totalorder %s13_s12, 4  }
 0x1ab   :  { %12 = sbr.rel (!%p10_p4) target bundleno = 1 (0x1), region = 62 }

// kernel: cnn_v3_forward.5
= control target key start
LH: loop header
LB: loop body
LE: loop exit
PB: predicated region body
PF: predicated region fallthrough
CT: control target
= control target key end

     0   :  { %s1928_s12 = smov 0   ;;  %s2254_s0 = inlined_call_operand.vmem [shape: bf16[192,1024], index: 0, kind: input, shape index: {}]   ;;  %s2255_s1 = inlined_call_operand.vmem [shape: bf16[1024,128], index: 1, kind: input, shape index: {}]   ;;  %s2256_s2 = inlined_call_operand.vmem [shape: f32[1,128], index: 2, kind: input, shape index: {}]   ;;  %s2257_s3 = inlined_call_operand.vmem [shape: bf16[192,128], index: 3, kind: output, shape index: {}]  }
   0x1 LB: > { %s1437_s13 = sadd.s32 4294967295, %s1906_s12   ;;  %p1441_p0 = scmp.ge.s32.totalorder %s1906_s12, 1  ;;  %s1906_s12 = sphi %s1928_s12, %s13_s12  }
   0x2   : > { %p139_p1 = scmp.lt.s32.totalorder %s1906_s12, 3 }
   0x4   : > { %p140_p2 = pnand %p1441_p0, %p139_p1 }
   0x5   : > { %v1836_v0 = vld [vmem:[%s2255_s1 + $0x40] sm:$0xff] (!%p140_p2)   ;;  %v1840_v4 = vld [vmem:[%s2255_s1 + $0x48] sm:$0xff] (!%p140_p2)   ;;  %v1844_v8 = vld [vmem:[%s2255_s1 + $0x50] sm:$0xff] (!%p140_p2)   ;;  %s164_s19 = smul.u32 (!%p140_p2), 12, %s1437_s13 }
   0x6   : > { %143 = sbr.rel (%p140_p2) target bundleno = 353 (0x161), region = 32  ;;  %v1837_v1 = vld [vmem:[%s2255_s1 + $0xc0] sm:$0xff] (!%p140_p2)   ;;  %1620 = vmatprep.subr.bf16.mxu0 (!%p140_p2), %v1836_v0  ;;  %v1841_v5 = vld [vmem:[%s2255_s1 + $0xc8] sm:$0xff] (!%p140_p2)   ;;  %v1845_v9 = vld [vmem:[%s2255_s1 + $0xd0] sm:$0xff] (!%p140_p2)  }
   0x7   : > { %v1838_v2 = vld [vmem:[%s2255_s1] sm:$0xff] (!%p140_p2)   ;;  %1672 = vmatprep.subr.bf16.mxu1 (!%p140_p2), %v1837_v1  ;;  %v1842_v6 = vld [vmem:[%s2255_s1 + $0x8] sm:$0xff] (!%p140_p2)   ;;  %v1846_v10 = vld [vmem:[%s2255_s1 + $0x10] sm:$0xff] (!%p140_p2)   ;;  %p165_p3 = scmp.lt.s32.totalorder (!%p140_p2), %s164_s19, 23 }
   0x8   : > { %v1839_v3 = vld [vmem:[%s2255_s1 + $0x80] sm:$0xff] (!%p140_p2)   ;;  %1621 = vmatpush3.bf16.msra.mxu0 (!%p140_p2), %v1838_v2  ;;  %v1843_v7 = vld [vmem:[%s2255_s1 + $0x88] sm:$0xff] (!%p140_p2)   ;;  %v1847_v11 = vld [vmem:[%s2255_s1 + $0x90] sm:$0xff] (!%p140_p2)  }
   0x9   : > { %1673 = vmatpush3.bf16.msra.mxu1 (!%p140_p2), %v1839_v3  ;;  %1622 = vmatprep.subr.bf16.mxu0 (!%p140_p2), %v1840_v4  ;;  %v1848_v12 = vld [vmem:[%s2255_s1 + $0x58] sm:$0xff] (!%p140_p2)   ;;  %v1852_v16 = vld [vmem:[%s2255_s1 + $0x60] sm:$0xff] (!%p140_p2)   ;;  %v1856_v20 = vld [vmem:[%s2255_s1 + $0x68] sm:$0xff] (!%p140_p2)  }
   0xa   : > { %1674 = vmatprep.subr.bf16.mxu1 (!%p140_p2), %v1841_v5  ;;  %v1849_v13 = vld [vmem:[%s2255_s1 + $0xd8] sm:$0xff] (!%p140_p2)   ;;  %v1853_v17 = vld [vmem:[%s2255_s1 + $0xe0] sm:$0xff] (!%p140_p2)   ;;  %v1857_v21 = vld [vmem:[%s2255_s1 + $0xe8] sm:$0xff] (!%p140_p2)  }
   0xb   : > { %v1850_v14 = vld [vmem:[%s2255_s1 + $0x18] sm:$0xff] (!%p140_p2)   ;;  %v1854_v18 = vld [vmem:[%s2255_s1 + $0x20] sm:$0xff] (!%p140_p2)   ;;  %v1858_v22 = vld [vmem:[%s2255_s1 + $0x28] sm:$0xff] (!%p140_p2)  }
   0xc   : > { %1623 = vmatpush3.bf16.msra.mxu0 (!%p140_p2), %v1842_v6  ;;  %v1851_v15 = vld [vmem:[%s2255_s1 + $0x98] sm:$0xff] (!%p140_p2)   ;;  %v1855_v19 = vld [vmem:[%s2255_s1 + $0xa0] sm:$0xff] (!%p140_p2)   ;;  %v1859_v23 = vld [vmem:[%s2255_s1 + $0xa8] sm:$0xff] (!%p140_p2)  }
   0xd   : > { %1675 = vmatpush3.bf16.msra.mxu1 %v1843_v7  ;;  %1624 = vmatprep.subr.bf16.mxu0 %v1844_v8  ;;  %s2259_s19 = smov (!%p165_p3, %s164_s19), 23  ;;  %v1860_v24 = vld [vmem:[%s2255_s1 + $0x70] sm:$0xff]   ;;  %v1864_v28 = vld [vmem:[%s2255_s1 + $0x78] sm:$0xff]   ;;  %v1868_v40 = vld [vmem:[%s2255_s1 + $0x140] sm:$0xff]  }
   0xe   : > { %1676 = vmatprep.subr.bf16.mxu1 %v1845_v9  ;;  %v1861_v25 = vld [vmem:[%s2255_s1 + $0xf0] sm:$0xff]   ;;  %s1572_s18 = sshll.u32 %s2259_s19, 5  ;;  %v1865_v29 = vld [vmem:[%s2255_s1 + $0xf8] sm:$0xff]   ;;  %v1869_v41 = vld [vmem:[%s2255_s1 + $0x100] sm:$0xff]  }
   0xf   : > { %v1862_v26 = vld [vmem:[%s2255_s1 + $0x30] sm:$0xff]   ;;  %s2034_s13 = scalar_lea.vmem %s2254_s0, %s1572_s18  ;;  %v1866_v30 = vld [vmem:[%s2255_s1 + $0x38] sm:$0xff]   ;;  %v1870_v42 = vld [vmem:[%s2255_s1 + $0x1c0] sm:$0xff]  }
  0x10   : > { %1625 = vmatpush3.bf16.msra.mxu0 %v1846_v10  ;;  %v1863_v27 = vld [vmem:[%s2255_s1 + $0xb0] sm:$0xff]   ;;  %v1867_v31 = vld [vmem:[%s2255_s1 + $0xb8] sm:$0xff]   ;;  %v178_v32 = vld [vmem:[%s2034_s13] sm:$0xff] }
  0x11   : > { %1677 = vmatpush3.bf16.msra.mxu1 %v1847_v11  ;;  %1626 = vmatprep.subr.bf16.mxu0 %v1848_v12  ;;  %v182_v33 = vld [vmem:[%s2034_s13 + $0x20] sm:$0xff]  ;;  %v179_v34 = vld [vmem:[%s2034_s13 + $0x8] sm:$0xff]  ;;  %v1876_v56 = vld [vmem:[%s2255_s1 + $0x150] sm:$0xff]  }
  0x12   : > { %1678 = vmatprep.subr.bf16.mxu1 %v1849_v13  ;;  %v1446_v35 = vcombine.low %v178_v32, %v182_v33  ;;  %v1447_v36 = vcombine.high %v178_v32, %v182_v33  ;;  %v183_v37 = vld [vmem:[%s2034_s13 + $0x28] sm:$0xff]  ;;  %v1871_v43 = vld [vmem:[%s2255_s1 + $0x180] sm:$0xff]   ;;  %v1877_v57 = vld [vmem:[%s2255_s1 + $0x110] sm:$0xff]  }
  0x13   : > { %v1448_v38 = vcombine.low %v179_v34, %v183_v37  ;;  %v1449_v39 = vcombine.high %v179_v34, %v183_v37  ;;  %v1872_v44 = vld [vmem:[%s2255_s1 + $0x148] sm:$0xff]   ;;  %v186_v45 = vld [vmem:[%s2034_s13 + $0x40] sm:$0xff]  ;;  %v1878_v58 = vld [vmem:[%s2255_s1 + $0x1d0] sm:$0xff]  }
  0x14   : > { %1627 = vmatpush3.bf16.msra.mxu0 %v1850_v14  ;;  %1017 = vmatprep.mubr.bf16.mxu0 %v1447_v36  ;;  %v190_v46 = vld [vmem:[%s2034_s13 + $0x60] sm:$0xff]  ;;  %v187_v48 = vld [vmem:[%s2034_s13 + $0x48] sm:$0xff]  ;;  %v1879_v1 = vld [vmem:[%s2255_s1 + $0x190] sm:$0xff]  }
  0x15   : > { %1679 = vmatpush3.bf16.msra.mxu1 %v1851_v15  ;;  %1628 = vmatprep.subr.bf16.mxu0 %v1852_v16  ;;  %v1455_v47 = vcombine.high %v186_v45, %v190_v46  ;;  %v191_v49 = vld [vmem:[%s2034_s13 + $0x68] sm:$0xff]  ;;  %v1454_v52 = vcombine.low %v186_v45, %v190_v46  ;;  %v194_v59 = vld [vmem:[%s2034_s13 + $0x80] sm:$0xff]  ;;  %v1880_v3 = vld [vmem:[%s2255_s1 + $0x158] sm:$0xff]  }
  0x16   : > { %1680 = vmatprep.subr.bf16.mxu1 %v1853_v17  ;;  %1098 = vmatprep.mubr.bf16.mxu1 %v1449_v39  ;;  %v1457_v50 = vcombine.high %v187_v48, %v191_v49  ;;  %v1873_v51 = vld [vmem:[%s2255_s1 + $0x108] sm:$0xff]   ;;  %v1456_v53 = vcombine.low %v187_v48, %v191_v49  ;;  %v198_v60 = vld [vmem:[%s2034_s13 + $0xa0] sm:$0xff]  ;;  %v1881_v5 = vld [vmem:[%s2255_s1 + $0x118] sm:$0xff]  }
  0x17   : > { %v1874_v54 = vld [vmem:[%s2255_s1 + $0x1c8] sm:$0xff]   ;;  %v1463_v63 = vcombine.high %v194_v59, %v198_v60  ;;  %v1462_v2 = vcombine.low %v194_v59, %v198_v60  ;;  %v1882_v6 = vld [vmem:[%s2255_s1 + $0x1d8] sm:$0xff]   ;;  %v202_v8 = vld [vmem:[%s2034_s13 + $0xc0] sm:$0xff] }
  0x18   : > { %1629 = vmatpush3.bf16.msra.mxu0 %v1854_v18  ;;  %v1875_v55 = vld [vmem:[%s2255_s1 + $0x188] sm:$0xff]   ;;  %v1883_v7 = vld [vmem:[%s2255_s1 + $0x198] sm:$0xff]   ;;  %v206_v9 = vld [vmem:[%s2034_s13 + $0xe0] sm:$0xff] }
  0x19   : > { %1681 = vmatpush3.bf16.msra.mxu1 %v1855_v19  ;;  %1630 = vmatprep.subr.bf16.mxu0 %v1856_v20  ;;  %v195_v61 = vld [vmem:[%s2034_s13 + $0x88] sm:$0xff]  ;;  %v1471_v11 = vcombine.high %v202_v8, %v206_v9  ;;  %v1884_v14 = vld [vmem:[%s2255_s1 + $0x160] sm:$0xff]   ;;  %v1470_v16 = vcombine.low %v202_v8, %v206_v9  ;;  %v1893_v32 = vld [vmem:[%s2255_s1 + $0x130] sm:$0xff]  }
  0x1a   : > { %1682 = vmatprep.subr.bf16.mxu1 %v1857_v21  ;;  %v199_v62 = vld [vmem:[%s2034_s13 + $0xa8] sm:$0xff]  ;;  %v1885_v15 = vld [vmem:[%s2255_s1 + $0x120] sm:$0xff]   ;;  %v1894_v34 = vld [vmem:[%s2255_s1 + $0x1f0] sm:$0xff]  }
  0x1b   : > { %v1465_v0 = vcombine.high %v195_v61, %v199_v62  ;;  %v1464_v4 = vcombine.low %v195_v61, %v199_v62  ;;  %v203_v10 = vld [vmem:[%s2034_s13 + $0xc8] sm:$0xff]  ;;  %v1886_v17 = vld [vmem:[%s2255_s1 + $0x1e0] sm:$0xff]   ;;  %v1899_v45 = vld [vmem:[%s2255_s1 + $0x1b8] sm:$0xff]  }
  0x1c   : > { %1631 = vmatpush3.bf16.msra.mxu0 %v1858_v22  ;;  %v207_v12 = vld [vmem:[%s2034_s13 + $0xe8] sm:$0xff]  ;;  %v1887_v19 = vld [vmem:[%s2255_s1 + $0x1a0] sm:$0xff]   ;;  %v184_v48 = vld [vmem:[%s2034_s13 + $0x30] sm:$0xff] }
  0x1d   : > { %1683 = vmatpush3.bf16.msra.mxu1 %v1859_v23  ;;  %1632 = vmatprep.subr.bf16.mxu0 %v1860_v24  ;;  %v1473_v13 = vcombine.high %v203_v10, %v207_v12  ;;  %v1472_v18 = vcombine.low %v203_v10, %v207_v12  ;;  %v1888_v20 = vld [vmem:[%s2255_s1 + $0x168] sm:$0xff]   ;;  %v210_v21 = vld [vmem:[%s2034_s13 + $0x100] sm:$0xff]  ;;  %v181_v49 = vld [vmem:[%s2034_s13 + $0x18] sm:$0xff] }
  0x1e   : > { %1684 = vmatprep.subr.bf16.mxu1 %v1861_v25  ;;  %v214_v22 = vld [vmem:[%s2034_s13 + $0x120] sm:$0xff]  ;;  %v211_v24 = vld [vmem:[%s2034_s13 + $0x108] sm:$0xff]  ;;  %v196_v62 = vld [vmem:[%s2034_s13 + $0x90] sm:$0xff] }
  0x1f   : > { %v1479_v23 = vcombine.high %v210_v21, %v214_v22  ;;  %v215_v25 = vld [vmem:[%s2034_s13 + $0x128] sm:$0xff]  ;;  %v222_v36 = vld [vmem:[%s2034_s13 + $0x160] sm:$0xff]  ;;  %v205_v8 = vld [vmem:[%s2034_s13 + $0xd8] sm:$0xff] }
  0x20   : > { %1633 = vmatpush3.bf16.msra.mxu0 %v1862_v26  ;;  %v1481_v26 = vcombine.high %v211_v24, %v215_v25  ;;  %v1480_v33 = vcombine.low %v211_v24, %v215_v25  ;;  %v219_v37 = vld [vmem:[%s2034_s13 + $0x148] sm:$0xff]  ;;  %v209_v9 = vld [vmem:[%s2034_s13 + $0xf8] sm:$0xff] }
  0x21   : > { %1685 = vmatpush3.bf16.msra.mxu1 %v1863_v27  ;;  %1634 = vmatprep.subr.bf16.mxu0 %v1864_v28  ;;  %v1889_v27 = vld [vmem:[%s2255_s1 + $0x128] sm:$0xff]   ;;  %v221_v24 = vld [vmem:[%s2034_s13 + $0x158] sm:$0xff] }
  0x22   : > { %1686 = vmatprep.subr.bf16.mxu1 %v1865_v29  ;;  %v1890_v28 = vld [vmem:[%s2255_s1 + $0x1e8] sm:$0xff]   ;;  %v225_v25 = vld [vmem:[%s2034_s13 + $0x178] sm:$0xff] }
  0x23   : > { %v1891_v29 = vld [vmem:[%s2255_s1 + $0x1a8] sm:$0xff]  }
  0x24   : > { %1635 = vmatpush3.bf16.msra.mxu0 %v1866_v30  ;;  %v1892_v30 = vld [vmem:[%s2255_s1 + $0x170] sm:$0xff]  }
  0x25   : > { %1687 = vmatpush3.bf16.msra.mxu1 %v1867_v31  ;;  %1724 = vmatprep.subr.bf16.mxu0 %v1868_v40  ;;  %v1478_v31 = vcombine.low %v210_v21, %v214_v22  ;;  %v220_v22 = vld [vmem:[%s2034_s13 + $0x150] sm:$0xff] }
  0x26   : > { %1776 = vmatprep.subr.bf16.mxu1 %v1870_v42  ;;  %v1896_v42 = vld [vmem:[%s2255_s1 + $0x178] sm:$0xff]  }
  0x27   : > { %1018 = vmatmul.mubr.bf16.vlgmr.msra.gmra.mrb[0].mxu0 %v1446_v35  ;;  %v218_v35 = vld [vmem:[%s2034_s13 + $0x140] sm:$0xff] }
  0x28   : > { %1099 = vmatmul.mubr.bf16.vlgmr.msra.gmra.mrb[0].mxu1 %v1448_v38  ;;  %1725 = vmatpush3.bf16.msra.mxu0 %v1869_v41  ;;  %v223_v38 = vld [vmem:[%s2034_s13 + $0x168] sm:$0xff]  ;;  %v1487_v39 = vcombine.high %v218_v35, %v222_v36  ;;  %v1895_v41 = vld [vmem:[%s2255_s1 + $0x1b0] sm:$0xff]   ;;  %v1486_v46 = vcombine.low %v218_v35, %v222_v36 }
  0x29   : > { %1777 = vmatpush3.bf16.msra.mxu1 %v1871_v43  ;;  %1726 = vmatprep.subr.bf16.mxu0 %v1872_v44  ;;  %v1489_v40 = vcombine.high %v219_v37, %v223_v38  ;;  %v1897_v43 = vld [vmem:[%s2255_s1 + $0x138] sm:$0xff]  }
  0x2a   : > { %1025 = vmatprep.mubr.bf16.mxu0 %v1455_v47  ;;  %1106 = vmatprep.mubr.bf16.mxu1 %v1457_v50  ;;  %v1898_v44 = vld [vmem:[%s2255_s1 + $0x1f8] sm:$0xff]   ;;  %v180_v47 = vld [vmem:[%s2034_s13 + $0x10] sm:$0xff]  ;;  %v1488_v50 = vcombine.low %v219_v37, %v223_v38 }
  0x2b   : > { %1778 = vmatprep.subr.bf16.mxu1 %v1874_v54  ;;  %v188_v54 = vld [vmem:[%s2034_s13 + $0x50] sm:$0xff] }
  0x2c   : > { %1727 = vmatpush3.bf16.msra.mxu0 %v1873_v51  ;;  %v1451_v51 = vcombine.high %v180_v47, %v184_v48 }
  0x2d   : > { %1779 = vmatpush3.bf16.msra.mxu1 %v1875_v55  ;;  %1728 = vmatprep.subr.bf16.mxu0 %v1876_v56  ;;  %v192_v55 = vld [vmem:[%s2034_s13 + $0x70] sm:$0xff]  ;;  %v189_v56 = vld [vmem:[%s2034_s13 + $0x58] sm:$0xff] }
  0x2e   : > { %1780 = vmatprep.subr.bf16.mxu1 %v1878_v58  ;;  %v1450_v58 = vcombine.low %v180_v47, %v184_v48  ;;  %v1459_v60 = vcombine.high %v188_v54, %v192_v55 }
  0x2f   : > { %1026 = vmatmul.mubr.bf16.gmra.mrb[4].mxu0 %v1454_v52  ;;  %v185_v52 = vld [vmem:[%s2034_s13 + $0x38] sm:$0xff] }
  0x30   : > { %1107 = vmatmul.mubr.bf16.gmra.mrb[4].mxu1 %v1456_v53  ;;  %1729 = vmatpush3.bf16.msra.mxu0 %v1877_v57  ;;  %v1453_v53 = vcombine.high %v181_v49, %v185_v52  ;;  %v193_v57 = vld [vmem:[%s2034_s13 + $0x78] sm:$0xff]  ;;  %v1452_v59 = vcombine.low %v181_v49, %v185_v52 }
  0x31   : > { %1033 = vmatprep.mubr.bf16.mxu0 %v1463_v63  ;;  %1114 = vmatprep.mubr.bf16.mxu1 %v1465_v0  ;;  %v1461_v61 = vcombine.high %v189_v56, %v193_v57  ;;  %v200_v63 = vld [vmem:[%s2034_s13 + $0xb0] sm:$0xff]  ;;  %v197_v0 = vld [vmem:[%s2034_s13 + $0x98] sm:$0xff] }
  0x32   : > { %1781 = vmatpush3.bf16.msra.mxu1 %v1879_v1  ;;  %1730 = vmatprep.subr.bf16.mxu0 %v1880_v3  ;;  %v201_v1 = vld [vmem:[%s2034_s13 + $0xb8] sm:$0xff]  ;;  %v1460_v3 = vcombine.low %v189_v56, %v193_v57  ;;  %v1466_v10 = vcombine.low %v196_v62, %v200_v63 }
  0x33   : > { %1782 = vmatprep.subr.bf16.mxu1 %v1882_v6  ;;  %v204_v6 = vld [vmem:[%s2034_s13 + $0xd0] sm:$0xff] }
  0x34   : > { %1731 = vmatpush3.bf16.msra.mxu0 %v1881_v5  ;;  %v1469_v5 = vcombine.high %v197_v0, %v201_v1 }
  0x35   : > { %1732 = vmatprep.subr.bf16.mxu0 %v1884_v14  ;;  %v212_v14 = vld [vmem:[%s2034_s13 + $0x110] sm:$0xff] }
  0x36   : > { %1783 = vmatpush3.bf16.msra.mxu1 %v1883_v7  ;;  %v208_v7 = vld [vmem:[%s2034_s13 + $0xf0] sm:$0xff] }
  0x37   : > { %1034 = vmatmul.mubr.bf16.gmra.mrb[8].mxu0 %v1462_v2  ;;  %1784 = vmatprep.subr.bf16.mxu1 %v1886_v17  ;;  %v1458_v2 = vcombine.low %v188_v54, %v192_v55  ;;  %v1475_v12 = vcombine.high %v204_v6, %v208_v7  ;;  %v217_v17 = vld [vmem:[%s2034_s13 + $0x138] sm:$0xff] }
  0x38   : > { %1115 = vmatmul.mubr.bf16.gmra.mrb[8].mxu1 %v1464_v4  ;;  %1041 = vmatprep.mubr.bf16.mxu0 %v1471_v11  ;;  %v1467_v4 = vcombine.high %v196_v62, %v200_v63  ;;  %v1468_v11 = vcombine.low %v197_v0, %v201_v1 }
  0x39   : > { %1122 = vmatprep.mubr.bf16.mxu1 %v1473_v13  ;;  %1733 = vmatpush3.bf16.msra.mxu0 %v1885_v15  ;;  %v1477_v13 = vcombine.high %v205_v8, %v209_v9  ;;  %v216_v15 = vld [vmem:[%s2034_s13 + $0x130] sm:$0xff] }
  0x3a   : > { %1785 = vmatpush3.bf16.msra.mxu1 %v1887_v19  ;;  %1734 = vmatprep.subr.bf16.mxu0 %v1888_v20  ;;  %v1476_v19 = vcombine.low %v205_v8, %v209_v9  ;;  %v1483_v20 = vcombine.high %v212_v14, %v216_v15 }
  0x3b   : > { %1786 = vmatprep.subr.bf16.mxu1 %v1890_v28 }
  0x3d   : > { %1735 = vmatpush3.bf16.msra.mxu0 %v1889_v27 }
  0x3e   : > { %1787 = vmatpush3.bf16.msra.mxu1 %v1891_v29  ;;  %1736 = vmatprep.subr.bf16.mxu0 %v1892_v30  ;;  %v1493_v29 = vcombine.high %v221_v24, %v225_v25 }
  0x3f   : > { %1042 = vmatmul.mubr.bf16.gmra.mrb[12].mxu0 %v1470_v16  ;;  %1788 = vmatprep.subr.bf16.mxu1 %v1894_v34  ;;  %v213_v16 = vld [vmem:[%s2034_s13 + $0x118] sm:$0xff]  ;;  %v2189_v34 = vld [vmem:[%s2256_s2] ss:$0 sm:$0xff] }
  0x40   : > { %1123 = vmatmul.mubr.bf16.gmra.mrb[12].mxu1 %v1472_v18  ;;  %1049 = vmatprep.mubr.bf16.mxu0 %v1479_v23  ;;  %v1474_v18 = vcombine.low %v204_v6, %v208_v7  ;;  %v1485_v21 = vcombine.high %v213_v16, %v217_v17  ;;  %v224_v23 = vld [vmem:[%s2034_s13 + $0x170] sm:$0xff]  ;;  %v1484_v27 = vcombine.low %v213_v16, %v217_v17  ;;  %s1444_s13 = sshll.u32 %s2259_s19, 2 }
  0x41   : > { %1130 = vmatprep.mubr.bf16.mxu1 %v1481_v26  ;;  %1737 = vmatpush3.bf16.msra.mxu0 %v1893_v32  ;;  %v1482_v26 = vcombine.low %v212_v14, %v216_v15  ;;  %v1491_v28 = vcombine.high %v220_v22, %v224_v23  ;;  %v1490_v30 = vcombine.low %v220_v22, %v224_v23  ;;  %s2233_s28 = scalar_lea.vmem %s2257_s3, %s1444_s13 }
  0x42   : > { %1789 = vmatpush3.bf16.msra.mxu1 %v1895_v41  ;;  %1738 = vmatprep.subr.bf16.mxu0 %v1896_v42 }
  0x43   : > { %1790 = vmatprep.subr.bf16.mxu1 %v1898_v44 }
  0x45   : > { %1739 = vmatpush3.bf16.msra.mxu0 %v1897_v43 }
  0x46   : > { %1791 = vmatpush3.bf16.msra.mxu1 %v1899_v45 }
  0x47   : > { %1050 = vmatmul.mubr.bf16.gmra.mrb[16].mxu0 %v1478_v31  ;;  %v1492_v31 = vcombine.low %v221_v24, %v225_v25 }
  0x48   : > { %1131 = vmatmul.mubr.bf16.gmra.mrb[16].mxu1 %v1480_v33  ;;  %1057 = vmatprep.mubr.bf16.mxu0 %v1487_v39 }
  0x49   : > { %1138 = vmatprep.mubr.bf16.mxu1 %v1489_v40 }
  0x4f   : > { %1058 = vmatmul.mubr.bf16.gmra.mrb[20].mxu0 %v1486_v46 }
  0x50   : > { %1139 = vmatmul.mubr.bf16.gmra.mrb[20].mxu1 %v1488_v50  ;;  %1179 = vmatprep.mubr.bf16.mxu0 %v1451_v51 }
  0x51   : > { %1260 = vmatprep.mubr.bf16.mxu1 %v1453_v53 }
  0x57   : > { %1180 = vmatmul.mubr.bf16.vlgmr.msra.gmra.mrb[24].mxu0 %v1450_v58 }
  0x58   : > { %1261 = vmatmul.mubr.bf16.vlgmr.msra.gmra.mrb[24].mxu1 %v1452_v59  ;;  %1187 = vmatprep.mubr.bf16.mxu0 %v1459_v60 }
  0x59   : > { %1268 = vmatprep.mubr.bf16.mxu1 %v1461_v61 }
  0x5f   : > { %1188 = vmatmul.mubr.bf16.gmra.mrb[28].mxu0 %v1458_v2 }
  0x60   : > { %1269 = vmatmul.mubr.bf16.gmra.mrb[28].mxu1 %v1460_v3  ;;  %1195 = vmatprep.mubr.bf16.mxu0 %v1467_v4 }
  0x61   : > { %1276 = vmatprep.mubr.bf16.mxu1 %v1469_v5 }
  0x67   : > { %1196 = vmatmul.mubr.bf16.gmra.mrb[32].mxu0 %v1466_v10 }
  0x68   : > { %1277 = vmatmul.mubr.bf16.gmra.mrb[32].mxu1 %v1468_v11  ;;  %1203 = vmatprep.mubr.bf16.mxu0 %v1475_v12 }
  0x69   : > { %1284 = vmatprep.mubr.bf16.mxu1 %v1477_v13 }
  0x6f   : > { %1204 = vmatmul.mubr.bf16.gmra.mrb[36].mxu0 %v1474_v18 }
  0x70   : > { %1285 = vmatmul.mubr.bf16.gmra.mrb[36].mxu1 %v1476_v19  ;;  %1211 = vmatprep.mubr.bf16.mxu0 %v1483_v20 }
  0x71   : > { %1292 = vmatprep.mubr.bf16.mxu1 %v1485_v21 }
  0x77   : > { %1212 = vmatmul.mubr.bf16.gmra.mrb[40].mxu0 %v1482_v26 }
  0x78   : > { %1293 = vmatmul.mubr.bf16.gmra.mrb[40].mxu1 %v1484_v27  ;;  %1219 = vmatprep.mubr.bf16.mxu0 %v1491_v28 }
  0x79   : > { %1300 = vmatprep.mubr.bf16.mxu1 %v1493_v29 }
  0x7f   : > { %1220 = vmatmul.mubr.bf16.gmra.mrb[44].mxu0 %v1490_v30 }
  0x80   : > { %1301 = vmatmul.mubr.bf16.gmra.mrb[44].mxu1 %v1492_v31 }
  0xfa   : > { %v1636_v32 = vpop.f32.mrb[0].mxu0 }
  0xfb   : > { %v1688_v33 = vpop.f32.mrb[0].mxu1  ;;  %v1637_v35 = vpop.f32.mrb[1].mxu0 }
  0xfc   : > { %v1638_v36 = vadd.f32 %v1637_v35, %v1636_v32  ;;  %v1689_v37 = vpop.f32.mrb[1].mxu1  ;;  %v1639_v38 = vpop.f32.mrb[2].mxu0 }
  0xfd   : > { %v1690_v39 = vadd.f32 %v1689_v37, %v1688_v33  ;;  %v1691_v40 = vpop.f32.mrb[2].mxu1  ;;  %v1640_v41 = vpop.f32.mrb[3].mxu0 }
  0xfe   : > { %v1020_v42 = vadd.f32 %v1638_v36, %v2189_v34  ;;  %v1641_v43 = vadd.f32 %v1640_v41, %v1639_v38  ;;  %v1692_v44 = vpop.f32.mrb[3].mxu1 }
  0xff   : > { %v1693_v45 = vadd.f32 %v1692_v44, %v1691_v40 }
 0x100   : > { %v2192_v46 = vadd.f32 %v1690_v39, %v1020_v42  ;;  %v1023_v47 = vadd.f32 %v1641_v43, %v2189_v34 }
 0x102   : > { %v2195_v48 = vadd.f32 %v1693_v45, %v1023_v47  ;;  %v1642_v49 = vpop.f32.mrb[4].mxu0 }
 0x103   : > { %v1694_v50 = vpop.f32.mrb[4].mxu1  ;;  %v1643_v51 = vpop.f32.mrb[5].mxu0 }
 0x104   : > { %v1644_v52 = vadd.f32 %v1643_v51, %v1642_v49  ;;  %v1695_v53 = vpop.f32.mrb[5].mxu1  ;;  %v1645_v54 = vpop.f32.mrb[6].mxu0 }
 0x105   : > { %v1696_v55 = vadd.f32 %v1695_v53, %v1694_v50  ;;  %v1697_v56 = vpop.f32.mrb[6].mxu1  ;;  %v1646_v57 = vpop.f32.mrb[7].mxu0 }
 0x106   : > { %v1028_v58 = vadd.f32 %v1644_v52, %v2189_v34  ;;  %v1647_v59 = vadd.f32 %v1646_v57, %v1645_v54  ;;  %v1698_v60 = vpop.f32.mrb[7].mxu1 }
 0x107   : > { %v1699_v61 = vadd.f32 %v1698_v60, %v1697_v56 }
 0x108   : > { %v2198_v62 = vadd.f32 %v1696_v55, %v1028_v58  ;;  %v1031_v63 = vadd.f32 %v1647_v59, %v2189_v34 }
 0x10a   : > { %v2201_v0 = vadd.f32 %v1699_v61, %v1031_v63  ;;  %v1648_v1 = vpop.f32.mrb[8].mxu0 }
 0x10b   : > { %v1700_v2 = vpop.f32.mrb[8].mxu1  ;;  %v1649_v3 = vpop.f32.mrb[9].mxu0 }
 0x10c   : > { %v1650_v4 = vadd.f32 %v1649_v3, %v1648_v1  ;;  %v1701_v5 = vpop.f32.mrb[9].mxu1  ;;  %v1651_v6 = vpop.f32.mrb[10].mxu0 }
 0x10d   : > { %v1702_v7 = vadd.f32 %v1701_v5, %v1700_v2  ;;  %v1703_v8 = vpop.f32.mrb[10].mxu1  ;;  %v1652_v9 = vpop.f32.mrb[11].mxu0 }
 0x10e   : > { %v1036_v10 = vadd.f32 %v1650_v4, %v2189_v34  ;;  %v1653_v11 = vadd.f32 %v1652_v9, %v1651_v6  ;;  %v1704_v12 = vpop.f32.mrb[11].mxu1 }
 0x10f   : > { %v1705_v13 = vadd.f32 %v1704_v12, %v1703_v8 }
 0x110   : > { %v2204_v14 = vadd.f32 %v1702_v7, %v1036_v10  ;;  %v1039_v15 = vadd.f32 %v1653_v11, %v2189_v34 }
 0x112   : > { %v2207_v16 = vadd.f32 %v1705_v13, %v1039_v15  ;;  %v1654_v17 = vpop.f32.mrb[12].mxu0 }
 0x113   : > { %v1706_v18 = vpop.f32.mrb[12].mxu1  ;;  %v1655_v19 = vpop.f32.mrb[13].mxu0 }
 0x114   : > { %v1656_v20 = vadd.f32 %v1655_v19, %v1654_v17  ;;  %v1707_v21 = vpop.f32.mrb[13].mxu1  ;;  %v1657_v22 = vpop.f32.mrb[14].mxu0 }
 0x115   : > { %v1708_v23 = vadd.f32 %v1707_v21, %v1706_v18  ;;  %v1709_v24 = vpop.f32.mrb[14].mxu1  ;;  %v1658_v25 = vpop.f32.mrb[15].mxu0 }
 0x116   : > { %v1044_v26 = vadd.f32 %v1656_v20, %v2189_v34  ;;  %v1659_v27 = vadd.f32 %v1658_v25, %v1657_v22  ;;  %v1710_v28 = vpop.f32.mrb[15].mxu1 }
 0x117   : > { %v1711_v29 = vadd.f32 %v1710_v28, %v1709_v24 }
 0x118   : > { %v2210_v30 = vadd.f32 %v1708_v23, %v1044_v26  ;;  %v1047_v31 = vadd.f32 %v1659_v27, %v2189_v34 }
 0x11a   : > { %v2213_v32 = vadd.f32 %v1711_v29, %v1047_v31  ;;  %v1660_v33 = vpop.f32.mrb[16].mxu0 }
 0x11b   : > { %v1712_v35 = vpop.f32.mrb[16].mxu1  ;;  %v1661_v36 = vpop.f32.mrb[17].mxu0 }
 0x11c   : > { %v1662_v37 = vadd.f32 %v1661_v36, %v1660_v33  ;;  %v1713_v38 = vpop.f32.mrb[17].mxu1  ;;  %v1663_v39 = vpop.f32.mrb[18].mxu0 }
 0x11d   : > { %v1714_v40 = vadd.f32 %v1713_v38, %v1712_v35  ;;  %v1715_v41 = vpop.f32.mrb[18].mxu1  ;;  %v1664_v42 = vpop.f32.mrb[19].mxu0 }
 0x11e   : > { %v1052_v43 = vadd.f32 %v1662_v37, %v2189_v34  ;;  %v1665_v44 = vadd.f32 %v1664_v42, %v1663_v39  ;;  %v1716_v45 = vpop.f32.mrb[19].mxu1 }
 0x11f   : > { %v1717_v47 = vadd.f32 %v1716_v45, %v1715_v41 }
 0x120   : > { %v2216_v49 = vadd.f32 %v1714_v40, %v1052_v43  ;;  %v1055_v50 = vadd.f32 %v1665_v44, %v2189_v34 }
 0x122   : > { %v2219_v51 = vadd.f32 %v1717_v47, %v1055_v50  ;;  %v1666_v52 = vpop.f32.mrb[20].mxu0 }
 0x123   : > { %v1718_v53 = vpop.f32.mrb[20].mxu1  ;;  %v1667_v54 = vpop.f32.mrb[21].mxu0 }
 0x124   : > { %v1668_v55 = vadd.f32 %v1667_v54, %v1666_v52  ;;  %v1719_v56 = vpop.f32.mrb[21].mxu1  ;;  %v1669_v57 = vpop.f32.mrb[22].mxu0 }
 0x125   : > { %v1720_v58 = vadd.f32 %v1719_v56, %v1718_v53  ;;  %v1721_v59 = vpop.f32.mrb[22].mxu1  ;;  %v1670_v60 = vpop.f32.mrb[23].mxu0 }
 0x126   : > { %v1060_v61 = vadd.f32 %v1668_v55, %v2189_v34  ;;  %v1671_v63 = vadd.f32 %v1670_v60, %v1669_v57  ;;  %v1722_v1 = vpop.f32.mrb[23].mxu1 }
 0x127   : > { %v1723_v2 = vadd.f32 %v1722_v1, %v1721_v59 }
 0x128   : > { %v2222_v3 = vadd.f32 %v1720_v58, %v1060_v61  ;;  %v1063_v4 = vadd.f32 %v1671_v63, %v2189_v34 }
 0x12a   : > { %v2225_v5 = vadd.f32 %v1723_v2, %v1063_v4  ;;  %v1740_v6 = vpop.f32.mrb[24].mxu0 }
 0x12b   : > { %v1792_v7 = vpop.f32.mrb[24].mxu1  ;;  %v1741_v8 = vpop.f32.mrb[25].mxu0 }
 0x12c   : > { %v1742_v9 = vadd.f32 %v1741_v8, %v1740_v6  ;;  %v1793_v10 = vpop.f32.mrb[25].mxu1  ;;  %v1743_v11 = vpop.f32.mrb[26].mxu0 }
 0x12d   : > { %v1794_v12 = vadd.f32 %v1793_v10, %v1792_v7  ;;  %v1795_v13 = vpop.f32.mrb[26].mxu1  ;;  %v1744_v15 = vpop.f32.mrb[27].mxu0 }
 0x12e   : > { %v1182_v17 = vadd.f32 %v1742_v9, %v2192_v46  ;;  %v1745_v18 = vadd.f32 %v1744_v15, %v1743_v11  ;;  %v1796_v19 = vpop.f32.mrb[27].mxu1 }
 0x12f   : > { %v1797_v20 = vadd.f32 %v1796_v19, %v1795_v13 }
 0x130   : > { %v1263_v21 = vadd.f32 %v1794_v12, %v1182_v17  ;;  %v1185_v34 = vadd.f32 %v1745_v18, %v2195_v48 }
 0x132   : > { %v1266_v22 = vadd.f32 %v1797_v20, %v1185_v34  ;;  %v1746_v23 = vpop.f32.mrb[28].mxu0  ;;  %v1309_v26 = vmax.f32 %v1263_v21, 0.0 }
 0x133   : > { %v1798_v24 = vpop.f32.mrb[28].mxu1  ;;  %v1747_v25 = vpop.f32.mrb[29].mxu0 }
 0x134   : > { %v1310_v27 = vmax.f32 %v1266_v22, 0.0  ;;  %v1748_v28 = vadd.f32 %v1747_v25, %v1746_v23  ;;  %v1799_v29 = vpop.f32.mrb[29].mxu1  ;;  %v1749_v31 = vpop.f32.mrb[30].mxu0 }
 0x135   : > { %v1800_v46 = vadd.f32 %v1799_v29, %v1798_v24  ;;  %v1801_v33 = vpop.f32.mrb[30].mxu1  ;;  %v1750_v35 = vpop.f32.mrb[31].mxu0 }
 0x136   : > { %v1588_v48 = vpack.c.bf16 %v1310_v27, %v1309_v26  ;;  %v1190_v36 = vadd.f32 %v1748_v28, %v2198_v62  ;;  %v1751_v37 = vadd.f32 %v1750_v35, %v1749_v31  ;;  %v1802_v38 = vpop.f32.mrb[31].mxu1 }
 0x137   : > { %v1803_v39 = vadd.f32 %v1802_v38, %v1801_v33 }
 0x138   : > { %1589 = vst [vmem:[%s2233_s28] sm:$0xff] %v1588_v48   ;;  %v1271_v40 = vadd.f32 %v1800_v46, %v1190_v36  ;;  %v1193_v41 = vadd.f32 %v1751_v37, %v2201_v0 }
 0x13a   : > { %v1274_v42 = vadd.f32 %v1803_v39, %v1193_v41  ;;  %v1752_v43 = vpop.f32.mrb[32].mxu0  ;;  %v1311_v47 = vmax.f32 %v1271_v40, 0.0 }
 0x13b   : > { %v1804_v44 = vpop.f32.mrb[32].mxu1  ;;  %v1753_v45 = vpop.f32.mrb[33].mxu0 }
 0x13c   : > { %v1312_v50 = vmax.f32 %v1274_v42, 0.0  ;;  %v1754_v52 = vadd.f32 %v1753_v45, %v1752_v43  ;;  %v1805_v53 = vpop.f32.mrb[33].mxu1  ;;  %v1755_v54 = vpop.f32.mrb[34].mxu0 }
 0x13d   : > { %v1806_v55 = vadd.f32 %v1805_v53, %v1804_v44  ;;  %v1807_v56 = vpop.f32.mrb[34].mxu1  ;;  %v1756_v62 = vpop.f32.mrb[35].mxu0 }
 0x13e   : > { %v1593_v57 = vpack.c.bf16 %v1312_v50, %v1311_v47  ;;  %v1198_v58 = vadd.f32 %v1754_v52, %v2204_v14  ;;  %v1757_v59 = vadd.f32 %v1756_v62, %v1755_v54  ;;  %v1808_v60 = vpop.f32.mrb[35].mxu1 }
 0x13f   : > { %v1809_v61 = vadd.f32 %v1808_v60, %v1807_v56 }
 0x140   : > { %1615 = vst [vmem:[%s2233_s28 + $0x8] sm:$0xff] %v1593_v57   ;;  %v1279_v0 = vadd.f32 %v1806_v55, %v1198_v58  ;;  %v1201_v63 = vadd.f32 %v1757_v59, %v2207_v16 }
 0x142   : > { %v1282_v1 = vadd.f32 %v1809_v61, %v1201_v63  ;;  %v1758_v2 = vpop.f32.mrb[36].mxu0  ;;  %v1313_v7 = vmax.f32 %v1279_v0, 0.0 }
 0x143   : > { %v1810_v4 = vpop.f32.mrb[36].mxu1  ;;  %v1759_v6 = vpop.f32.mrb[37].mxu0 }
 0x144   : > { %v1314_v8 = vmax.f32 %v1282_v1, 0.0  ;;  %v1760_v9 = vadd.f32 %v1759_v6, %v1758_v2  ;;  %v1811_v10 = vpop.f32.mrb[37].mxu1  ;;  %v1761_v11 = vpop.f32.mrb[38].mxu0 }
 0x145   : > { %v1812_v12 = vadd.f32 %v1811_v10, %v1810_v4  ;;  %v1813_v13 = vpop.f32.mrb[38].mxu1  ;;  %v1762_v14 = vpop.f32.mrb[39].mxu0 }
 0x146   : > { %v1598_v15 = vpack.c.bf16 %v1314_v8, %v1313_v7  ;;  %v1206_v17 = vadd.f32 %v1760_v9, %v2210_v30  ;;  %v1763_v18 = vadd.f32 %v1762_v14, %v1761_v11  ;;  %v1814_v19 = vpop.f32.mrb[39].mxu1 }
 0x147   : > { %v1815_v20 = vadd.f32 %v1814_v19, %v1813_v13 }
 0x148   : > { %1616 = vst [vmem:[%s2233_s28 + $0x10] sm:$0xff] %v1598_v15   ;;  %v1287_v16 = vadd.f32 %v1812_v12, %v1206_v17  ;;  %v1209_v21 = vadd.f32 %v1763_v18, %v2213_v32 }
 0x14a   : > { %v1290_v34 = vadd.f32 %v1815_v20, %v1209_v21  ;;  %v1764_v22 = vpop.f32.mrb[40].mxu0  ;;  %v1315_v25 = vmax.f32 %v1287_v16, 0.0 }
 0x14b   : > { %v1816_v23 = vpop.f32.mrb[40].mxu1  ;;  %v1765_v24 = vpop.f32.mrb[41].mxu0 }
 0x14c   : > { %v1316_v26 = vmax.f32 %v1290_v34, 0.0  ;;  %v1766_v27 = vadd.f32 %v1765_v24, %v1764_v22  ;;  %v1817_v28 = vpop.f32.mrb[41].mxu1  ;;  %v1767_v29 = vpop.f32.mrb[42].mxu0 }
 0x14d   : > { %v1818_v31 = vadd.f32 %v1817_v28, %v1816_v23  ;;  %v1819_v46 = vpop.f32.mrb[42].mxu1  ;;  %v1768_v30 = vpop.f32.mrb[43].mxu0 }
 0x14e   : > { %v1603_v33 = vpack.c.bf16 %v1316_v26, %v1315_v25  ;;  %v1214_v35 = vadd.f32 %v1766_v27, %v2216_v49  ;;  %v1769_v48 = vadd.f32 %v1768_v30, %v1767_v29  ;;  %v1820_v36 = vpop.f32.mrb[43].mxu1 }
 0x14f   : > { %v1821_v37 = vadd.f32 %v1820_v36, %v1819_v46 }
 0x150   : > { %1617 = vst [vmem:[%s2233_s28 + $0x18] sm:$0xff] %v1603_v33   ;;  %v1295_v32 = vadd.f32 %v1818_v31, %v1214_v35  ;;  %v1217_v38 = vadd.f32 %v1769_v48, %v2219_v51 }
 0x152   : > { %v1298_v39 = vadd.f32 %v1821_v37, %v1217_v38  ;;  %v1770_v40 = vpop.f32.mrb[44].mxu0  ;;  %v1317_v43 = vmax.f32 %v1295_v32, 0.0 }
 0x153   : > { %v1822_v41 = vpop.f32.mrb[44].mxu1  ;;  %v1771_v42 = vpop.f32.mrb[45].mxu0 }
 0x154   : > { %v1318_v44 = vmax.f32 %v1298_v39, 0.0  ;;  %v1772_v45 = vadd.f32 %v1771_v42, %v1770_v40  ;;  %v1823_v47 = vpop.f32.mrb[45].mxu1  ;;  %v1773_v50 = vpop.f32.mrb[46].mxu0 }
 0x155   : > { %v1824_v52 = vadd.f32 %v1823_v47, %v1822_v41  ;;  %v1825_v49 = vpop.f32.mrb[46].mxu1  ;;  %v1774_v53 = vpop.f32.mrb[47].mxu0 }
 0x156   : > { %v1608_v54 = vpack.c.bf16 %v1318_v44, %v1317_v43  ;;  %v1222_v55 = vadd.f32 %v1772_v45, %v2222_v3  ;;  %v1775_v56 = vadd.f32 %v1774_v53, %v1773_v50  ;;  %v1826_v62 = vpop.f32.mrb[47].mxu1 }
 0x157   : > { %v1827_v51 = vadd.f32 %v1826_v62, %v1825_v49 }
 0x158   : > { %1618 = vst [vmem:[%s2233_s28 + $0x20] sm:$0xff] %v1608_v54   ;;  %v1303_v57 = vadd.f32 %v1824_v52, %v1222_v55  ;;  %v1225_v58 = vadd.f32 %v1775_v56, %v2225_v5 }
 0x15a   : > { %v1306_v59 = vadd.f32 %v1827_v51, %v1225_v58  ;;  %v1319_v60 = vmax.f32 %v1303_v57, 0.0 }
 0x15c   : > { %v1320_v61 = vmax.f32 %v1306_v59, 0.0 }
 0x15e   : > { %v1613_v0 = vpack.c.bf16 %v1320_v61, %v1319_v60 }
 0x160   : > { %1619 = vst [vmem:[%s2233_s28 + $0x28] sm:$0xff] %v1613_v0  }
 0x161 PF: > { %s13_s12 = sadd.s32 1, %s1906_s12  }
 0x162   : > { %p10_p4 = scmp.ge.s32.totalorder %s13_s12, 4  }
 0x164   :  { %12 = sbr.rel (!%p10_p4) target bundleno = 1 (0x1), region = 62 }

// kernel: cnn_v3_forward.6
= control target key start
LH: loop header
LB: loop body
LE: loop exit
PB: predicated region body
PF: predicated region fallthrough
CT: control target
= control target key end

     0   :  { %s2125_s12 = smov 0   ;;  %s2502_s0 = inlined_call_operand.vmem [shape: bf16[160,1152], index: 0, kind: input, shape index: {}]   ;;  %s2503_s1 = inlined_call_operand.vmem [shape: bf16[1152,128], index: 1, kind: input, shape index: {}]   ;;  %s2504_s2 = inlined_call_operand.vmem [shape: f32[1,128], index: 2, kind: input, shape index: {}]   ;;  %s2505_s3 = inlined_call_operand.vmem [shape: bf16[160,128], index: 3, kind: output, shape index: {}]  }
   0x1 LB: > { %s1522_s13 = sadd.s32 4294967295, %s2101_s12   ;;  %p1526_p0 = scmp.ge.s32.totalorder %s2101_s12, 1  ;;  %s2101_s12 = sphi %s2125_s12, %s13_s12  }
   0x2   : > { %p139_p1 = scmp.lt.s32.totalorder %s2101_s12, 3 }
   0x4   : > { %p140_p2 = pnand %p1526_p0, %p139_p1 }
   0x5   : > { %v1958_v0 = vld [vmem:[%s2503_s1 + $0x40] sm:$0xff] (!%p140_p2)   ;;  %v1962_v4 = vld [vmem:[%s2503_s1 + $0x48] sm:$0xff] (!%p140_p2)   ;;  %v1966_v8 = vld [vmem:[%s2503_s1 + $0x50] sm:$0xff] (!%p140_p2)   ;;  %s164_s17 = smul.u32 (!%p140_p2), 10, %s1522_s13  ;;  %vm2104_vm0 = vmmov (!%p140_p2), 0  }
   0x6   : > { %143 = sbr.rel (%p140_p2) target bundleno = 356 (0x164), region = 32  ;;  %v1959_v1 = vld [vmem:[%s2503_s1 + $0xc0] sm:$0xff] (!%p140_p2)   ;;  %1698 = vmatprep.subr.bf16.mxu0 (!%p140_p2), %v1958_v0  ;;  %v1963_v5 = vld [vmem:[%s2503_s1 + $0xc8] sm:$0xff] (!%p140_p2)   ;;  %v1967_v9 = vld [vmem:[%s2503_s1 + $0xd0] sm:$0xff] (!%p140_p2)  }
   0x7   : > { %v1960_v2 = vld [vmem:[%s2503_s1] sm:$0xff] (!%p140_p2)   ;;  %1744 = vmatprep.subr.bf16.mxu1 (!%p140_p2), %v1959_v1  ;;  %v1964_v6 = vld [vmem:[%s2503_s1 + $0x8] sm:$0xff] (!%p140_p2)   ;;  %v1968_v10 = vld [vmem:[%s2503_s1 + $0x10] sm:$0xff] (!%p140_p2)   ;;  %p165_p3 = scmp.lt.s32.totalorder (!%p140_p2), %s164_s17, 19 }
   0x8   : > { %v1961_v3 = vld [vmem:[%s2503_s1 + $0x80] sm:$0xff] (!%p140_p2)   ;;  %1699 = vmatpush3.bf16.msra.mxu0 (!%p140_p2), %v1960_v2  ;;  %v1965_v7 = vld [vmem:[%s2503_s1 + $0x88] sm:$0xff] (!%p140_p2)   ;;  %v1969_v11 = vld [vmem:[%s2503_s1 + $0x90] sm:$0xff] (!%p140_p2)  }
   0x9   : > { %1745 = vmatpush3.bf16.msra.mxu1 (!%p140_p2), %v1961_v3  ;;  %1700 = vmatprep.subr.bf16.mxu0 (!%p140_p2), %v1962_v4  ;;  %v1970_v12 = vld [vmem:[%s2503_s1 + $0x58] sm:$0xff] (!%p140_p2)   ;;  %v1974_v16 = vld [vmem:[%s2503_s1 + $0x60] sm:$0xff] (!%p140_p2)   ;;  %v1978_v20 = vld [vmem:[%s2503_s1 + $0x68] sm:$0xff] (!%p140_p2)  }
   0xa   : > { %1746 = vmatprep.subr.bf16.mxu1 (!%p140_p2), %v1963_v5  ;;  %v1971_v13 = vld [vmem:[%s2503_s1 + $0xd8] sm:$0xff] (!%p140_p2)   ;;  %v1975_v17 = vld [vmem:[%s2503_s1 + $0xe0] sm:$0xff] (!%p140_p2)   ;;  %v1979_v21 = vld [vmem:[%s2503_s1 + $0xe8] sm:$0xff] (!%p140_p2)  }
   0xb   : > { %v1972_v14 = vld [vmem:[%s2503_s1 + $0x18] sm:$0xff] (!%p140_p2)   ;;  %v1976_v18 = vld [vmem:[%s2503_s1 + $0x20] sm:$0xff] (!%p140_p2)   ;;  %v1980_v22 = vld [vmem:[%s2503_s1 + $0x28] sm:$0xff] (!%p140_p2)  }
   0xc   : > { %1701 = vmatpush3.bf16.msra.mxu0 (!%p140_p2), %v1964_v6  ;;  %v1973_v15 = vld [vmem:[%s2503_s1 + $0x98] sm:$0xff] (!%p140_p2)   ;;  %v1977_v19 = vld [vmem:[%s2503_s1 + $0xa0] sm:$0xff] (!%p140_p2)   ;;  %v1981_v23 = vld [vmem:[%s2503_s1 + $0xa8] sm:$0xff] (!%p140_p2)  }
   0xd   : > { %1747 = vmatpush3.bf16.msra.mxu1 %v1965_v7  ;;  %1702 = vmatprep.subr.bf16.mxu0 %v1966_v8  ;;  %s2507_s17 = smov (!%p165_p3, %s164_s17), 19  ;;  %v1982_v24 = vld [vmem:[%s2503_s1 + $0x70] sm:$0xff]   ;;  %v1986_v28 = vld [vmem:[%s2503_s1 + $0x78] sm:$0xff]   ;;  %v1996_v36 = vld [vmem:[%s2503_s1 + $0x140] sm:$0xff]  }
   0xe   : > { %1748 = vmatprep.subr.bf16.mxu1 %v1967_v9  ;;  %v1983_v25 = vld [vmem:[%s2503_s1 + $0xf0] sm:$0xff]   ;;  %s1947_s16 = smul.u32 36, %s2507_s17  ;;  %v1987_v29 = vld [vmem:[%s2503_s1 + $0xf8] sm:$0xff]   ;;  %v1997_v37 = vld [vmem:[%s2503_s1 + $0x100] sm:$0xff]  }
   0xf   : > { %v1984_v26 = vld [vmem:[%s2503_s1 + $0x30] sm:$0xff]   ;;  %v1988_v30 = vld [vmem:[%s2503_s1 + $0x38] sm:$0xff]   ;;  %v1998_v38 = vld [vmem:[%s2503_s1 + $0x148] sm:$0xff]  }
  0x10   : > { %1703 = vmatpush3.bf16.msra.mxu0 %v1968_v10  ;;  %v1985_v27 = vld [vmem:[%s2503_s1 + $0xb0] sm:$0xff]   ;;  %s2231_s27 = scalar_lea.vmem %s2502_s0, %s1947_s16  ;;  %v1989_v31 = vld [vmem:[%s2503_s1 + $0xb8] sm:$0xff]   ;;  %v1999_v39 = vld [vmem:[%s2503_s1 + $0x108] sm:$0xff]  }
  0x11   : > { %1749 = vmatpush3.bf16.msra.mxu1 %v1969_v11  ;;  %1704 = vmatprep.subr.bf16.mxu0 %v1970_v12  ;;  %v1990_v32 = vld [vmem:[%s2231_s27] ss:$36 sps:$4 sm:$0xff]   ;;  %v1993_v34 = vld [vmem:[%s2231_s27 + $0x8] ss:$36 sps:$4 sm:$0xff]   ;;  %v2002_v41 = vld [vmem:[%s2231_s27 + $0x54] ss:$36 sps:$4 sm:$0xff]  }
  0x12   : > { %1750 = vmatprep.subr.bf16.mxu1 %v1971_v13  ;;  %v1992_v33 = vld [vmem:[%s2231_s27 + $0x4] ss:$36 sps:$4 sm:$0xff]   ;;  %v1995_v35 = vld [vmem:[%s2231_s27 + $0xc] ss:$36 sps:$4 sm:$0xff]   ;;  %v2012_v50 = vld [vmem:[%s2231_s27 + $0x94] ss:$36 sps:$4 sm:$0xff]  }
  0x13   : > { %1073 = vmatprep.mubr.bf16.mxu0 %v1992_v33  ;;  %1146 = vmatprep.mubr.bf16.mxu1 %v1995_v35  ;;  %v2000_v40 = vld [vmem:[%s2231_s27 + $0x4c] ss:$36 sps:$4 sm:$0xff]   ;;  %v2006_v44 = vld [vmem:[%s2503_s1 + $0x1c0] sm:$0xff]   ;;  %v2016_v52 = vld [vmem:[%s2503_s1 + $0x158] sm:$0xff]  }
  0x14   : > { %1705 = vmatpush3.bf16.msra.mxu0 %v1972_v14  ;;  %v2004_v42 = vld [vmem:[%s2231_s27 + $0x48] ss:$36 sps:$4 sm:$0xff]   ;;  %v2005_v43 = vld [vmem:[%s2231_s27 + $0x50] ss:$36 sps:$4 sm:$0xff]   ;;  %v2007_v45 = vld [vmem:[%s2503_s1 + $0x180] sm:$0xff]  }
  0x15   : > { %1751 = vmatpush3.bf16.msra.mxu1 %v1973_v15  ;;  %1706 = vmatprep.subr.bf16.mxu0 %v1974_v16  ;;  %v2008_v46 = vld [vmem:[%s2503_s1 + $0x150] sm:$0xff]   ;;  %v2010_v48 = vld [vmem:[%s2503_s1 + $0x1c8] sm:$0xff]   ;;  %v2014_v51 = vld [vmem:[%s2231_s27 + $0x9c] ss:$36 sps:$4 sm:$0xff]  }
  0x16   : > { %1752 = vmatprep.subr.bf16.mxu1 %v1975_v17  ;;  %v2009_v47 = vld [vmem:[%s2503_s1 + $0x110] sm:$0xff]   ;;  %v2011_v49 = vld [vmem:[%s2503_s1 + $0x188] sm:$0xff]   ;;  %v2018_v54 = vld [vmem:[%s2231_s27 + $0x98] ss:$36 sps:$4 sm:$0xff]  }
  0x17   : > { %v2017_v53 = vld [vmem:[%s2231_s27 + $0x90] ss:$36 sps:$4 sm:$0xff]   ;;  %v2019_v55 = vld [vmem:[%s2503_s1 + $0x118] sm:$0xff]   ;;  %v2022_v58 = vld [vmem:[%s2503_s1 + $0x160] sm:$0xff]  }
  0x18   : > { %1707 = vmatpush3.bf16.msra.mxu0 %v1976_v18  ;;  %v2020_v56 = vld [vmem:[%s2503_s1 + $0x1d0] sm:$0xff]   ;;  %v2023_v59 = vld [vmem:[%s2503_s1 + $0x1d8] sm:$0xff]   ;;  %v2024_v60 = vld [vmem:[%s2503_s1 + $0x120] sm:$0xff]  }
  0x19   : > { %1753 = vmatpush3.bf16.msra.mxu1 %v1977_v19  ;;  %1708 = vmatprep.subr.bf16.mxu0 %v1978_v20  ;;  %v2021_v57 = vld [vmem:[%s2503_s1 + $0x190] sm:$0xff]   ;;  %v2025_v61 = vld [vmem:[%s2503_s1 + $0x198] sm:$0xff]   ;;  %v2028_v63 = vld [vmem:[%s2231_s27 + $0xe4] ss:$36 sps:$4 sm:$0xff]  }
  0x1a   : > { %1754 = vmatprep.subr.bf16.mxu1 %v1979_v21  ;;  %v2026_v62 = vld [vmem:[%s2231_s27 + $0xdc] ss:$36 sps:$4 sm:$0xff]   ;;  %v2033_v3 = vld [vmem:[%s2503_s1 + $0x168] sm:$0xff]   ;;  %v2038_v8 = vld [vmem:[%s2503_s1 + $0x170] sm:$0xff]  }
  0x1b   : > { %v2030_v0 = vld [vmem:[%s2231_s27 + $0xd8] ss:$36 sps:$4 sm:$0xff]   ;;  %v2031_v1 = vld [vmem:[%s2231_s27 + $0xe0] ss:$36 sps:$4 sm:$0xff]   ;;  %v2035_v5 = vld [vmem:[%s2503_s1 + $0x128] sm:$0xff]  }
  0x1c   : > { %1709 = vmatpush3.bf16.msra.mxu0 %v1980_v22  ;;  %v2032_v2 = vld [vmem:[%s2503_s1 + $0x1e0] sm:$0xff]   ;;  %v2036_v6 = vld [vmem:[%s2503_s1 + $0x1e8] sm:$0xff]   ;;  %v2043_v11 = vld [vmem:[%s2503_s1 + $0x130] sm:$0xff]   ;;  %v2103_v22 = vmov 0.0  }
  0x1d   : > { %1755 = vmatpush3.bf16.msra.mxu1 %v1981_v23  ;;  %1710 = vmatprep.subr.bf16.mxu0 %v1982_v24  ;;  %v2034_v4 = vld [vmem:[%s2503_s1 + $0x1a0] sm:$0xff]   ;;  %v2037_v7 = vld [vmem:[%s2503_s1 + $0x1a8] sm:$0xff]   ;;  %v2046_v14 = vld [vmem:[%s2503_s1 + $0x1f0] sm:$0xff]  }
  0x1e   : > { %1756 = vmatprep.subr.bf16.mxu1 %v1983_v25  ;;  %v2039_v9 = vld [vmem:[%s2231_s27 + $0x124] ss:$36 sps:$4 sm:$0xff]   ;;  %v2041_v10 = vld [vmem:[%s2231_s27 + $0x12c] ss:$36 sps:$4 sm:$0xff]   ;;  %v2048_v16 = vld [vmem:[%s2503_s1 + $0x178] sm:$0xff]  }
  0x1f   : > { %v2044_v12 = vld [vmem:[%s2231_s27 + $0x120] ss:$36 sps:$4 sm:$0xff]   ;;  %v2045_v13 = vld [vmem:[%s2231_s27 + $0x128] ss:$36 sps:$4 sm:$0xff]   ;;  %v2047_v15 = vld [vmem:[%s2503_s1 + $0x1b0] sm:$0xff]  }
  0x20   : > { %1711 = vmatpush3.bf16.msra.mxu0 %v1984_v26  ;;  %v2049_v17 = vld [vmem:[%s2503_s1 + $0x138] sm:$0xff]   ;;  %v2052_v20 = vld [vmem:[%s2231_s27 + $0x10] ss:$36 sps:$4 sm:$0xff]   ;;  %v2058_v25 = vld [vmem:[%s2503_s1 + $0x200] sm:$0xff]  }
  0x21   : > { %1757 = vmatpush3.bf16.msra.mxu1 %v1985_v27  ;;  %1712 = vmatprep.subr.bf16.mxu0 %v1986_v28  ;;  %v2050_v18 = vld [vmem:[%s2503_s1 + $0x1f8] sm:$0xff]   ;;  %v2059_v26 = vld [vmem:[%s2503_s1 + $0x208] sm:$0xff]   ;;  %v2071_v35 = vld [vmem:[%s2231_s27 + $0xa0] ss:$36 sps:$4 sm:$0xff]  }
  0x22   : > { %1758 = vmatprep.subr.bf16.mxu1 %v1987_v29  ;;  %v2051_v19 = vld [vmem:[%s2503_s1 + $0x1b8] sm:$0xff]   ;;  %v2062_v28 = vld [vmem:[%s2231_s27 + $0x64] ss:$36 sps:$4 sm:$0xff]   ;;  %v2069_v33 = vld [vmem:[%s2231_s27 + $0xac] ss:$36 sps:$4 sm:$0xff]  }
  0x23   : > { %v2054_v21 = vld [vmem:[%s2231_s27 + $0x14] ss:$36 sps:$4 sm:$0xff]   ;;  %v2057_v24 = vld [vmem:[%s2231_s27 + $0x1c] ss:$36 sps:$4 sm:$0xff]  }
  0x24   : > { %1713 = vmatpush3.bf16.msra.mxu0 %v1988_v30  ;;  %v2055_v23 = vld [vmem:[%s2231_s27 + $0x18] ss:$36 sps:$4 sm:$0xff]   ;;  %v2065_v30 = vld [vmem:[%s2231_s27 + $0x60] ss:$36 sps:$4 sm:$0xff]  }
  0x25   : > { %1759 = vmatpush3.bf16.msra.mxu1 %v1989_v31  ;;  %1790 = vmatprep.subr.bf16.mxu0 %v1996_v36  ;;  %v2060_v27 = vld [vmem:[%s2231_s27 + $0x5c] ss:$36 sps:$4 sm:$0xff]   ;;  %v2066_v31 = vld [vmem:[%s2503_s1 + $0x210] sm:$0xff]   ;;  %v2072_v36 = vld [vmem:[%s2231_s27 + $0xa8] ss:$36 sps:$4 sm:$0xff]  }
  0x26   : > { %1836 = vmatprep.subr.bf16.mxu1 %v2006_v44  ;;  %v2064_v29 = vld [vmem:[%s2231_s27 + $0x58] ss:$36 sps:$4 sm:$0xff]  }
  0x27   : > { %1074 = vmatmul.mubr.bf16.vlgmr.msra.gmra.mrb[0].mxu0 %v1990_v32  ;;  %v2067_v32 = vld [vmem:[%s2231_s27 + $0xa4] ss:$36 sps:$4 sm:$0xff]   ;;  %v2084_v44 = vld [vmem:[%s2231_s27 + $0x13c] ss:$36 sps:$4 sm:$0xff]  }
  0x28   : > { %1147 = vmatmul.mubr.bf16.vlgmr.msra.gmra.mrb[0].mxu1 %v1993_v34  ;;  %1791 = vmatpush3.bf16.msra.mxu0 %v1997_v37  ;;  %v2073_v34 = vld [vmem:[%s2503_s1 + $0x218] sm:$0xff]   ;;  %v2074_v37 = vld [vmem:[%s2503_s1 + $0x220] sm:$0xff]  }
  0x29   : > { %1792 = vmatprep.subr.bf16.mxu0 %v1998_v38  ;;  %1081 = vmatprep.mubr.bf16.mxu0 %v2000_v40  ;;  %v2075_v38 = vld [vmem:[%s2231_s27 + $0xec] ss:$36 sps:$4 sm:$0xff]  }
  0x2a   : > { %1154 = vmatprep.mubr.bf16.mxu1 %v2002_v41  ;;  %1837 = vmatpush3.bf16.msra.mxu1 %v2007_v45  ;;  %v2081_v40 = vld [vmem:[%s2503_s1 + $0x228] sm:$0xff]   ;;  %v2086_v45 = vld [vmem:[%s2503_s1 + $0x230] sm:$0xff]  }
  0x2b   : > { %1838 = vmatprep.subr.bf16.mxu1 %v2010_v48  ;;  %v2079_v41 = vld [vmem:[%s2231_s27 + $0xe8] ss:$36 sps:$4 sm:$0xff]   ;;  %v2088_v48 = vld [vmem:[%s2231_s27 + $0x138] ss:$36 sps:$4 sm:$0xff]  }
  0x2c   : > { %1793 = vmatpush3.bf16.msra.mxu0 %v1999_v39  ;;  %v2077_v39 = vld [vmem:[%s2231_s27 + $0xf4] ss:$36 sps:$4 sm:$0xff]  }
  0x2d   : > { %1794 = vmatprep.subr.bf16.mxu0 %v2008_v46  ;;  %v2089_v46 = vld [vmem:[%s2503_s1 + $0x238] sm:$0xff]  }
  0x2e   : > { %1839 = vmatpush3.bf16.msra.mxu1 %v2011_v49  ;;  %v2090_v49 = vld [vmem:[%s2231_s27 + $0x20] ss:$36 sps:$4 sm:$0xff]  }
  0x2f   : > { %1082 = vmatmul.mubr.bf16.gmra.mrb[4].mxu0 %v2004_v42  ;;  %1840 = vmatprep.subr.bf16.mxu1 %v2020_v56  ;;  %v2080_v42 = vld [vmem:[%s2231_s27 + $0xf0] ss:$36 sps:$4 sm:$0xff]  }
  0x30   : > { %1155 = vmatmul.mubr.bf16.gmra.mrb[4].mxu1 %v2005_v43  ;;  %1795 = vmatpush3.bf16.msra.mxu0 %v2009_v47  ;;  %v2082_v43 = vld [vmem:[%s2231_s27 + $0x134] ss:$36 sps:$4 sm:$0xff]  }
  0x31   : > { %1089 = vmatprep.mubr.bf16.mxu0 %v2012_v50  ;;  %1162 = vmatprep.mubr.bf16.mxu1 %v2014_v51  ;;  %v2087_v47 = vld [vmem:[%s2231_s27 + $0x130] ss:$36 sps:$4 sm:$0xff]   ;;  %v2091_v50 = vld [vmem:[%s2231_s27 + $0xf8] ss:$36 sps:$4 sm:$0xff]   ;;  %v2092_v51 = vld [vmem:[%s2231_s27 + $0x68] ss:$36 sps:$4 sm:$0xff]  }
  0x32   : > { %1796 = vmatprep.subr.bf16.mxu0 %v2016_v52  ;;  %1841 = vmatpush3.bf16.msra.mxu1 %v2021_v57  ;;  %v2093_v52 = vld [vmem:[%s2231_s27 + $0x140] ss:$36 sps:$4 sm:$0xff]  }
  0x33   : > { %1842 = vmatprep.subr.bf16.mxu1 %v2023_v59 }
  0x34   : > { %1797 = vmatpush3.bf16.msra.mxu0 %v2019_v55  ;;  %v2428_v55 = vld [vmem:[%s2504_s2] ss:$0 sm:$0xff] }
  0x35   : > { %1798 = vmatprep.subr.bf16.mxu0 %v2022_v58 }
  0x36   : > { %1843 = vmatpush3.bf16.msra.mxu1 %v2025_v61 }
  0x37   : > { %1090 = vmatmul.mubr.bf16.gmra.mrb[8].mxu0 %v2017_v53  ;;  %1844 = vmatprep.subr.bf16.mxu1 %v2032_v2  ;;  %v2094_v53 = vld [vmem:[%s2231_s27 + $0xb0] ss:$36 sps:$4 sm:$0xff]   ;;  %s1528_s27 = sshll.u32 %s2507_s17, 2 }
  0x38   : > { %1163 = vmatmul.mubr.bf16.gmra.mrb[8].mxu1 %v2018_v54  ;;  %1799 = vmatpush3.bf16.msra.mxu0 %v2024_v60  ;;  %s2488_s20 = scalar_lea.vmem %s2505_s3, %s1528_s27 }
  0x39   : > { %1097 = vmatprep.mubr.bf16.mxu0 %v2026_v62  ;;  %1170 = vmatprep.mubr.bf16.mxu1 %v2028_v63 }
  0x3a   : > { %1800 = vmatprep.subr.bf16.mxu0 %v2033_v3  ;;  %1845 = vmatpush3.bf16.msra.mxu1 %v2034_v4 }
  0x3b   : > { %1846 = vmatprep.subr.bf16.mxu1 %v2036_v6 }
  0x3c   : > { %1801 = vmatpush3.bf16.msra.mxu0 %v2035_v5 }
  0x3d   : > { %1802 = vmatprep.subr.bf16.mxu0 %v2038_v8 }
  0x3e   : > { %1847 = vmatpush3.bf16.msra.mxu1 %v2037_v7 }
  0x3f   : > { %1098 = vmatmul.mubr.bf16.gmra.mrb[12].mxu0 %v2030_v0  ;;  %1848 = vmatprep.subr.bf16.mxu1 %v2046_v14 }
  0x40   : > { %1171 = vmatmul.mubr.bf16.gmra.mrb[12].mxu1 %v2031_v1  ;;  %1105 = vmatprep.mubr.bf16.mxu0 %v2039_v9 }
  0x41   : > { %1178 = vmatprep.mubr.bf16.mxu1 %v2041_v10  ;;  %1803 = vmatpush3.bf16.msra.mxu0 %v2043_v11 }
  0x42   : > { %1849 = vmatpush3.bf16.msra.mxu1 %v2047_v15  ;;  %1804 = vmatprep.subr.bf16.mxu0 %v2048_v16 }
  0x43   : > { %1850 = vmatprep.subr.bf16.mxu1 %v2050_v18 }
  0x45   : > { %1805 = vmatpush3.bf16.msra.mxu0 %v2049_v17 }
  0x46   : > { %1895 = vmatprep.subr.bf16.mxu0 %v2103_v22  ;;  %1851 = vmatpush3.bf16.msra.mxu1 %v2051_v19 }
  0x47   : > { %1106 = vmatmul.mubr.bf16.gmra.mrb[16].mxu0 %v2044_v12  ;;  %1931 = vmatprep.subr.bf16.mxu1 %v2103_v22 }
  0x48   : > { %1179 = vmatmul.mubr.bf16.gmra.mrb[16].mxu1 %v2045_v13  ;;  %1219 = vmatprep.mubr.bf16.mxu0 %v2054_v21 }
  0x49   : > { %1292 = vmatprep.mubr.bf16.mxu1 %v2057_v24 }
  0x4f   : > { %1220 = vmatmul.mubr.bf16.vlgmr.msra.gmra.mrb[20].mxu0 %v2052_v20 }
  0x50   : > { %1293 = vmatmul.mubr.bf16.vlgmr.msra.gmra.mrb[20].mxu1 %v2055_v23  ;;  %1896 = vmatpush3.bf16.msra.mxu0 %v2058_v25 }
  0x51   : > { %1897 = vmatprep.subr.bf16.mxu0 %v2103_v22  ;;  %1939 = vmatpush3.bf16.msra.mxu1 %v2058_v25 }
  0x52   : > { %1227 = vmatprep.mubr.bf16.mxu0 %v2060_v27  ;;  %1932 = vmatprep.subr.bf16.mxu1 %v2103_v22 }
  0x53   : > { %1300 = vmatprep.mubr.bf16.mxu1 %v2062_v28 }
  0x54   : > { %1898 = vmatpush3.bf16.msra.mxu0 %v2059_v26 }
  0x55   : > { %1899 = vmatprep.subr.bf16.mxu0 %v2103_v22  ;;  %1940 = vmatpush3.bf16.msra.mxu1 %v2059_v26 }
  0x56   : > { %1933 = vmatprep.subr.bf16.mxu1 %v2103_v22 }
  0x57   : > { %1228 = vmatmul.mubr.bf16.gmra.mrb[24].mxu0 %v2064_v29 }
  0x58   : > { %1301 = vmatmul.mubr.bf16.gmra.mrb[24].mxu1 %v2065_v30  ;;  %1900 = vmatpush3.bf16.msra.mxu0 %v2066_v31 }
  0x59   : > { %1235 = vmatprep.mubr.bf16.mxu0 %v2067_v32  ;;  %1308 = vmatprep.mubr.bf16.mxu1 %v2069_v33 }
  0x5a   : > { %1901 = vmatprep.subr.bf16.mxu0 %v2103_v22  ;;  %1941 = vmatpush3.bf16.msra.mxu1 %v2066_v31 }
  0x5b   : > { %1934 = vmatprep.subr.bf16.mxu1 %v2103_v22 }
  0x5c   : > { %1902 = vmatpush3.bf16.msra.mxu0 %v2073_v34 }
  0x5d   : > { %1903 = vmatprep.subr.bf16.mxu0 %v2103_v22 }
  0x5e   : > { %1942 = vmatpush3.bf16.msra.mxu1 %v2073_v34 }
  0x5f   : > { %1236 = vmatmul.mubr.bf16.gmra.mrb[28].mxu0 %v2071_v35  ;;  %1935 = vmatprep.subr.bf16.mxu1 %v2103_v22 }
  0x60   : > { %1309 = vmatmul.mubr.bf16.gmra.mrb[28].mxu1 %v2072_v36  ;;  %1904 = vmatpush3.bf16.msra.mxu0 %v2074_v37 }
  0x61   : > { %1243 = vmatprep.mubr.bf16.mxu0 %v2075_v38  ;;  %1316 = vmatprep.mubr.bf16.mxu1 %v2077_v39 }
  0x62   : > { %1943 = vmatpush3.bf16.msra.mxu1 %v2074_v37  ;;  %1905 = vmatprep.subr.bf16.mxu0 %v2103_v22 }
  0x63   : > { %1936 = vmatprep.subr.bf16.mxu1 %v2103_v22 }
  0x64   : > { %1906 = vmatpush3.bf16.msra.mxu0 %v2081_v40 }
  0x65   : > { %1907 = vmatprep.subr.bf16.mxu0 %v2103_v22 }
  0x66   : > { %1944 = vmatpush3.bf16.msra.mxu1 %v2081_v40 }
  0x67   : > { %1244 = vmatmul.mubr.bf16.gmra.mrb[32].mxu0 %v2079_v41  ;;  %1937 = vmatprep.subr.bf16.mxu1 %v2103_v22 }
  0x68   : > { %1317 = vmatmul.mubr.bf16.gmra.mrb[32].mxu1 %v2080_v42  ;;  %1251 = vmatprep.mubr.bf16.mxu0 %v2082_v43 }
  0x69   : > { %1324 = vmatprep.mubr.bf16.mxu1 %v2084_v44  ;;  %1908 = vmatpush3.bf16.msra.mxu0 %v2086_v45 }
  0x6a   : > { %1945 = vmatpush3.bf16.msra.mxu1 %v2086_v45  ;;  %1909 = vmatprep.subr.bf16.mxu0 %v2103_v22 }
  0x6b   : > { %1938 = vmatprep.subr.bf16.mxu1 %v2103_v22 }
  0x6d   : > { %1910 = vmatpush3.bf16.msra.mxu0 %v2089_v46 }
  0x6e   : > { %1946 = vmatpush3.bf16.msra.mxu1 %v2089_v46 }
  0x6f   : > { %1252 = vmatmul.mubr.bf16.gmra.mrb[36].mxu0 %v2087_v47 }
  0x70   : > { %1325 = vmatmul.mubr.bf16.gmra.mrb[36].mxu1 %v2088_v48  ;;  %1911 = vmatprep.mubr.msk.bf16.mxu0 %vm2104_vm0, %v2103_v22 }
  0x71   : > { %1923 = vmatprep.mubr.msk.bf16.mxu1 %vm2104_vm0, %v2103_v22 }
  0x77   : > { %1912 = vmatmul.mubr.bf16.vlgmr.msra.gmra.mrb[40].mxu0 %v2090_v49 }
  0x78   : > { %1924 = vmatmul.mubr.bf16.vlgmr.msra.gmra.mrb[40].mxu1 %v2091_v50  ;;  %1915 = vmatprep.mubr.msk.bf16.mxu0 %vm2104_vm0, %v2103_v22 }
  0x79   : > { %1927 = vmatprep.mubr.msk.bf16.mxu1 %vm2104_vm0, %v2103_v22 }
  0x7f   : > { %1916 = vmatmul.mubr.bf16.gmra.mrb[44].mxu0 %v2092_v51 }
  0x80   : > { %1928 = vmatmul.mubr.bf16.gmra.mrb[44].mxu1 %v2093_v52  ;;  %1919 = vmatprep.mubr.msk.bf16.mxu0 %vm2104_vm0, %v2103_v22 }
  0x87   : > { %1920 = vmatmul.mubr.bf16.gmra.mrb[48].mxu0 %v2094_v53 }
  0xfa   : > { %v1714_v54 = vpop.f32.mrb[0].mxu0 }
  0xfb   : > { %v1715_v56 = vpop.f32.mrb[1].mxu0  ;;  %v1760_v57 = vpop.f32.mrb[0].mxu1 }
  0xfc   : > { %v1716_v58 = vadd.f32 %v1715_v56, %v1714_v54  ;;  %v1717_v59 = vpop.f32.mrb[2].mxu0  ;;  %v1761_v60 = vpop.f32.mrb[1].mxu1 }
  0xfd   : > { %v1718_v61 = vpop.f32.mrb[3].mxu0  ;;  %v1762_v62 = vadd.f32 %v1761_v60, %v1760_v57  ;;  %v1763_v63 = vpop.f32.mrb[2].mxu1 }
  0xfe   : > { %v1076_v0 = vadd.f32 %v1716_v58, %v2428_v55  ;;  %v1719_v1 = vadd.f32 %v1718_v61, %v1717_v59  ;;  %v1764_v2 = vpop.f32.mrb[3].mxu1 }
  0xff   : > { %v1765_v3 = vadd.f32 %v1764_v2, %v1763_v63 }
 0x100   : > { %v1079_v4 = vadd.f32 %v1719_v1, %v2428_v55  ;;  %v2432_v5 = vadd.f32 %v1762_v62, %v1076_v0 }
 0x102   : > { %v2434_v6 = vadd.f32 %v1765_v3, %v1079_v4  ;;  %v1720_v7 = vpop.f32.mrb[4].mxu0 }
 0x103   : > { %v1721_v8 = vpop.f32.mrb[5].mxu0  ;;  %v1766_v9 = vpop.f32.mrb[4].mxu1 }
 0x104   : > { %v1722_v10 = vadd.f32 %v1721_v8, %v1720_v7  ;;  %v1723_v11 = vpop.f32.mrb[6].mxu0  ;;  %v1767_v12 = vpop.f32.mrb[5].mxu1 }
 0x105   : > { %v1724_v13 = vpop.f32.mrb[7].mxu0  ;;  %v1768_v14 = vadd.f32 %v1767_v12, %v1766_v9  ;;  %v1769_v15 = vpop.f32.mrb[6].mxu1 }
 0x106   : > { %v1084_v16 = vadd.f32 %v1722_v10, %v2428_v55  ;;  %v1725_v17 = vadd.f32 %v1724_v13, %v1723_v11  ;;  %v1770_v18 = vpop.f32.mrb[7].mxu1 }
 0x107   : > { %v1771_v19 = vadd.f32 %v1770_v18, %v1769_v15 }
 0x108   : > { %v1087_v20 = vadd.f32 %v1725_v17, %v2428_v55  ;;  %v2438_v21 = vadd.f32 %v1768_v14, %v1084_v16 }
 0x10a   : > { %v2440_v22 = vadd.f32 %v1771_v19, %v1087_v20  ;;  %v1726_v23 = vpop.f32.mrb[8].mxu0 }
 0x10b   : > { %v1727_v24 = vpop.f32.mrb[9].mxu0  ;;  %v1772_v25 = vpop.f32.mrb[8].mxu1 }
 0x10c   : > { %v1728_v26 = vadd.f32 %v1727_v24, %v1726_v23  ;;  %v1729_v27 = vpop.f32.mrb[10].mxu0  ;;  %v1773_v28 = vpop.f32.mrb[9].mxu1 }
 0x10d   : > { %v1730_v29 = vpop.f32.mrb[11].mxu0  ;;  %v1774_v30 = vadd.f32 %v1773_v28, %v1772_v25  ;;  %v1775_v31 = vpop.f32.mrb[10].mxu1 }
 0x10e   : > { %v1092_v32 = vadd.f32 %v1728_v26, %v2428_v55  ;;  %v1731_v33 = vadd.f32 %v1730_v29, %v1729_v27  ;;  %v1776_v34 = vpop.f32.mrb[11].mxu1 }
 0x10f   : > { %v1777_v35 = vadd.f32 %v1776_v34, %v1775_v31 }
 0x110   : > { %v1095_v36 = vadd.f32 %v1731_v33, %v2428_v55  ;;  %v2444_v37 = vadd.f32 %v1774_v30, %v1092_v32 }
 0x112   : > { %v2446_v38 = vadd.f32 %v1777_v35, %v1095_v36  ;;  %v1732_v39 = vpop.f32.mrb[12].mxu0 }
 0x113   : > { %v1778_v40 = vpop.f32.mrb[12].mxu1  ;;  %v1733_v41 = vpop.f32.mrb[13].mxu0 }
 0x114   : > { %v1779_v42 = vpop.f32.mrb[13].mxu1  ;;  %v1734_v43 = vadd.f32 %v1733_v41, %v1732_v39  ;;  %v1735_v44 = vpop.f32.mrb[14].mxu0 }
 0x115   : > { %v1780_v45 = vadd.f32 %v1779_v42, %v1778_v40  ;;  %v1781_v46 = vpop.f32.mrb[14].mxu1  ;;  %v1736_v47 = vpop.f32.mrb[15].mxu0 }
 0x116   : > { %v1782_v48 = vpop.f32.mrb[15].mxu1  ;;  %v1100_v49 = vadd.f32 %v1734_v43, %v2428_v55  ;;  %v1737_v50 = vadd.f32 %v1736_v47, %v1735_v44 }
 0x117   : > { %v1783_v51 = vadd.f32 %v1782_v48, %v1781_v46 }
 0x118   : > { %v1103_v52 = vadd.f32 %v1737_v50, %v2428_v55  ;;  %v2450_v53 = vadd.f32 %v1780_v45, %v1100_v49 }
 0x11a   : > { %v2452_v54 = vadd.f32 %v1783_v51, %v1103_v52  ;;  %v1738_v56 = vpop.f32.mrb[16].mxu0 }
 0x11b   : > { %v1784_v57 = vpop.f32.mrb[16].mxu1  ;;  %v1739_v58 = vpop.f32.mrb[17].mxu0 }
 0x11c   : > { %v1785_v59 = vpop.f32.mrb[17].mxu1  ;;  %v1740_v60 = vadd.f32 %v1739_v58, %v1738_v56  ;;  %v1741_v61 = vpop.f32.mrb[18].mxu0 }
 0x11d   : > { %v1786_v62 = vadd.f32 %v1785_v59, %v1784_v57  ;;  %v1787_v63 = vpop.f32.mrb[18].mxu1  ;;  %v1742_v0 = vpop.f32.mrb[19].mxu0 }
 0x11e   : > { %v1788_v1 = vpop.f32.mrb[19].mxu1  ;;  %v1108_v2 = vadd.f32 %v1740_v60, %v2428_v55  ;;  %v1743_v3 = vadd.f32 %v1742_v0, %v1741_v61 }
 0x11f   : > { %v1789_v4 = vadd.f32 %v1788_v1, %v1787_v63 }
 0x120   : > { %v1111_v7 = vadd.f32 %v1743_v3, %v2428_v55  ;;  %v2456_v8 = vadd.f32 %v1786_v62, %v1108_v2 }
 0x122   : > { %v2458_v9 = vadd.f32 %v1789_v4, %v1111_v7  ;;  %v1806_v10 = vpop.f32.mrb[20].mxu0 }
 0x123   : > { %v1807_v11 = vpop.f32.mrb[21].mxu0  ;;  %v1852_v12 = vpop.f32.mrb[20].mxu1 }
 0x124   : > { %v1808_v13 = vadd.f32 %v1807_v11, %v1806_v10  ;;  %v1809_v14 = vpop.f32.mrb[22].mxu0  ;;  %v1853_v15 = vpop.f32.mrb[21].mxu1 }
 0x125   : > { %v1810_v16 = vpop.f32.mrb[23].mxu0  ;;  %v1854_v17 = vadd.f32 %v1853_v15, %v1852_v12  ;;  %v1855_v18 = vpop.f32.mrb[22].mxu1 }
 0x126   : > { %v1222_v19 = vadd.f32 %v1808_v13, %v2432_v5  ;;  %v1811_v20 = vadd.f32 %v1810_v16, %v1809_v14  ;;  %v1856_v23 = vpop.f32.mrb[23].mxu1 }
 0x127   : > { %v1857_v24 = vadd.f32 %v1856_v23, %v1855_v18 }
 0x128   : > { %v1225_v55 = vadd.f32 %v1811_v20, %v2434_v6  ;;  %v2462_v25 = vadd.f32 %v1854_v17, %v1222_v19 }
 0x12a   : > { %v1812_v26 = vpop.f32.mrb[24].mxu0  ;;  %v2464_v27 = vadd.f32 %v1857_v24, %v1225_v55 }
 0x12b   : > { %v1813_v28 = vpop.f32.mrb[25].mxu0  ;;  %v1858_v29 = vpop.f32.mrb[24].mxu1 }
 0x12c   : > { %v1814_v30 = vadd.f32 %v1813_v28, %v1812_v26  ;;  %v1815_v31 = vpop.f32.mrb[26].mxu0  ;;  %v1859_v32 = vpop.f32.mrb[25].mxu1 }
 0x12d   : > { %v1816_v33 = vpop.f32.mrb[27].mxu0  ;;  %v1860_v34 = vadd.f32 %v1859_v32, %v1858_v29  ;;  %v1861_v35 = vpop.f32.mrb[26].mxu1 }
 0x12e   : > { %v1230_v5 = vadd.f32 %v1814_v30, %v2438_v21  ;;  %v1817_v36 = vadd.f32 %v1816_v33, %v1815_v31  ;;  %v1862_v39 = vpop.f32.mrb[27].mxu1 }
 0x12f   : > { %v1863_v40 = vadd.f32 %v1862_v39, %v1861_v35 }
 0x130   : > { %v1233_v6 = vadd.f32 %v1817_v36, %v2440_v22  ;;  %v2468_v41 = vadd.f32 %v1860_v34, %v1230_v5 }
 0x132   : > { %v1818_v42 = vpop.f32.mrb[28].mxu0  ;;  %v2470_v43 = vadd.f32 %v1863_v40, %v1233_v6 }
 0x133   : > { %v1819_v44 = vpop.f32.mrb[29].mxu0  ;;  %v1864_v45 = vpop.f32.mrb[28].mxu1 }
 0x134   : > { %v1820_v46 = vadd.f32 %v1819_v44, %v1818_v42  ;;  %v1821_v47 = vpop.f32.mrb[30].mxu0  ;;  %v1865_v48 = vpop.f32.mrb[29].mxu1 }
 0x135   : > { %v1822_v49 = vpop.f32.mrb[31].mxu0  ;;  %v1866_v50 = vadd.f32 %v1865_v48, %v1864_v45  ;;  %v1867_v51 = vpop.f32.mrb[30].mxu1 }
 0x136   : > { %v1238_v21 = vadd.f32 %v1820_v46, %v2444_v37  ;;  %v1823_v52 = vadd.f32 %v1822_v49, %v1821_v47  ;;  %v1868_v56 = vpop.f32.mrb[31].mxu1 }
 0x137   : > { %v1869_v57 = vadd.f32 %v1868_v56, %v1867_v51 }
 0x138   : > { %v1241_v22 = vadd.f32 %v1823_v52, %v2446_v38  ;;  %v2474_v58 = vadd.f32 %v1866_v50, %v1238_v21 }
 0x13a   : > { %v1824_v59 = vpop.f32.mrb[32].mxu0  ;;  %v2476_v60 = vadd.f32 %v1869_v57, %v1241_v22 }
 0x13b   : > { %v1825_v61 = vpop.f32.mrb[33].mxu0  ;;  %v1870_v62 = vpop.f32.mrb[32].mxu1 }
 0x13c   : > { %v1826_v63 = vadd.f32 %v1825_v61, %v1824_v59  ;;  %v1827_v0 = vpop.f32.mrb[34].mxu0  ;;  %v1871_v1 = vpop.f32.mrb[33].mxu1 }
 0x13d   : > { %v1828_v2 = vpop.f32.mrb[35].mxu0  ;;  %v1872_v3 = vadd.f32 %v1871_v1, %v1870_v62  ;;  %v1873_v4 = vpop.f32.mrb[34].mxu1 }
 0x13e   : > { %v1246_v37 = vadd.f32 %v1826_v63, %v2450_v53  ;;  %v1829_v7 = vadd.f32 %v1828_v2, %v1827_v0  ;;  %v1874_v10 = vpop.f32.mrb[35].mxu1 }
 0x13f   : > { %v1875_v11 = vadd.f32 %v1874_v10, %v1873_v4 }
 0x140   : > { %v1249_v38 = vadd.f32 %v1829_v7, %v2452_v54  ;;  %v1319_v12 = vadd.f32 %v1872_v3, %v1246_v37 }
 0x142   : > { %v1830_v13 = vpop.f32.mrb[36].mxu0  ;;  %v1322_v14 = vadd.f32 %v1875_v11, %v1249_v38 }
 0x143   : > { %v1831_v15 = vpop.f32.mrb[37].mxu0  ;;  %v1876_v16 = vpop.f32.mrb[36].mxu1 }
 0x144   : > { %v1832_v17 = vadd.f32 %v1831_v15, %v1830_v13  ;;  %v1833_v18 = vpop.f32.mrb[38].mxu0  ;;  %v1877_v19 = vpop.f32.mrb[37].mxu1 }
 0x145   : > { %v1834_v20 = vpop.f32.mrb[39].mxu0  ;;  %v1878_v23 = vadd.f32 %v1877_v19, %v1876_v16  ;;  %v1879_v24 = vpop.f32.mrb[38].mxu1 }
 0x146   : > { %v1254_v55 = vadd.f32 %v1832_v17, %v2456_v8  ;;  %v1835_v53 = vadd.f32 %v1834_v20, %v1833_v18  ;;  %v1880_v26 = vpop.f32.mrb[39].mxu1 }
 0x147   : > { %v1881_v28 = vadd.f32 %v1880_v26, %v1879_v24 }
 0x148   : > { %v1257_v29 = vadd.f32 %v1835_v53, %v2458_v9  ;;  %v1327_v54 = vadd.f32 %v1878_v23, %v1254_v55 }
 0x14a   : > { %v1367_v30 = vpop.f32.mrb[40].mxu0  ;;  %v1330_v31 = vadd.f32 %v1881_v28, %v1257_v29 }
 0x14b   : > { %v1368_v32 = vadd.f32 %v1367_v30, %v2462_v25  ;;  %v1391_v33 = vpop.f32.mrb[40].mxu1  ;;  %v1913_v34 = vpop.f32.mrb[41].mxu0 }
 0x14c   : > { %v1392_v35 = vadd.f32 %v1391_v33, %v1319_v12  ;;  %v1925_v5 = vpop.f32.mrb[41].mxu1  ;;  %v1370_v36 = vpop.f32.mrb[42].mxu0 }
 0x14d   : > { %v1371_v39 = vadd.f32 %v1370_v36, %v2464_v27  ;;  %v1394_v40 = vpop.f32.mrb[42].mxu1  ;;  %v1914_v8 = vpop.f32.mrb[43].mxu0  ;;  %v1406_v44 = vmax.f32 %v1368_v32, 0.0 }
 0x14e   : > { %v1395_v6 = vadd.f32 %v1394_v40, %v1322_v14  ;;  %v1926_v42 = vpop.f32.mrb[43].mxu1  ;;  %v1412_v9 = vmax.f32 %v1392_v35, 0.0 }
 0x14f   : > { %v1407_v45 = vmax.f32 %v1371_v39, 0.0 }
 0x150   : > { %v1413_v25 = vmax.f32 %v1395_v6, 0.0 }
 0x151   : > { %v1672_v46 = vpack.c.bf16 %v1407_v45, %v1406_v44 }
 0x152   : > { %v1687_v47 = vpack.c.bf16 %v1413_v25, %v1412_v9  ;;  %v1375_v48 = vpop.f32.mrb[44].mxu0 }
 0x153   : > { %1673 = vst [vmem:[%s2488_s20] sm:$0xff] %v1672_v46   ;;  %v1376_v27 = vadd.f32 %v1375_v48, %v2468_v41  ;;  %v1399_v49 = vpop.f32.mrb[44].mxu1  ;;  %v1917_v50 = vpop.f32.mrb[45].mxu0 }
 0x154   : > { %1696 = vst [vmem:[%s2488_s20 + $0x18] sm:$0xff] %v1687_v47   ;;  %v1400_v51 = vadd.f32 %v1399_v49, %v1327_v54  ;;  %v1929_v21 = vpop.f32.mrb[45].mxu1  ;;  %v1378_v52 = vpop.f32.mrb[46].mxu0 }
 0x155   : > { %v1379_v56 = vadd.f32 %v1378_v52, %v2470_v43  ;;  %v1402_v57 = vpop.f32.mrb[46].mxu1  ;;  %v1918_v22 = vpop.f32.mrb[47].mxu0  ;;  %v1408_v62 = vmax.f32 %v1376_v27, 0.0 }
 0x156   : > { %v1403_v59 = vadd.f32 %v1402_v57, %v1330_v31  ;;  %v1930_v61 = vpop.f32.mrb[47].mxu1  ;;  %v1414_v0 = vmax.f32 %v1400_v51, 0.0 }
 0x157   : > { %v1409_v63 = vmax.f32 %v1379_v56, 0.0 }
 0x158   : > { %v1415_v1 = vmax.f32 %v1403_v59, 0.0 }
 0x159   : > { %v1677_v41 = vpack.c.bf16 %v1409_v63, %v1408_v62 }
 0x15a   : > { %v1692_v2 = vpack.c.bf16 %v1415_v1, %v1414_v0  ;;  %v1383_v3 = vpop.f32.mrb[48].mxu0 }
 0x15b   : > { %1694 = vst [vmem:[%s2488_s20 + $0x8] sm:$0xff] %v1677_v41   ;;  %v1384_v4 = vadd.f32 %v1383_v3, %v2474_v58  ;;  %v1921_v37 = vpop.f32.mrb[49].mxu0 }
 0x15c   : > { %1697 = vst [vmem:[%s2488_s20 + $0x20] sm:$0xff] %v1692_v2   ;;  %v1386_v7 = vpop.f32.mrb[50].mxu0 }
 0x15d   : > { %v1387_v43 = vadd.f32 %v1386_v7, %v2476_v60  ;;  %v1922_v10 = vpop.f32.mrb[51].mxu0  ;;  %v1410_v11 = vmax.f32 %v1384_v4, 0.0 }
 0x15f   : > { %v1411_v38 = vmax.f32 %v1387_v43, 0.0 }
 0x161   : > { %v1682_v12 = vpack.c.bf16 %v1411_v38, %v1410_v11 }
 0x163   : > { %1695 = vst [vmem:[%s2488_s20 + $0x10] sm:$0xff] %v1682_v12  }
 0x164 PF: > { %s13_s12 = sadd.s32 1, %s2101_s12  }
 0x165   : > { %p10_p4 = scmp.ge.s32.totalorder %s13_s12, 4  }
 0x167   :  { %12 = sbr.rel (!%p10_p4) target bundleno = 1 (0x1), region = 62 }

// kernel: cnn_v3_forward.7
= control target key start
LH: loop header
LB: loop body
LE: loop exit
PB: predicated region body
PF: predicated region fallthrough
CT: control target
= control target key end

     0   :  { %s15235_s1 = inlined_call_operand.vmem [shape: bf16[8960,256], index: 1, kind: input, shape index: {}]   ;;  %s15236_s0 = inlined_call_operand.vmem [shape: bf16[8,8960], index: 0, kind: input, shape index: {}]   ;;  %s15237_s2 = inlined_call_operand.vmem [shape: f32[1,256], index: 2, kind: input, shape index: {}]   ;;  %s15238_s3 = inlined_call_operand.vmem [shape: f32[8,256], index: 3, kind: output, shape index: {}]  }
   0x1   :  { %v9793_v0 = vld [vmem:[%s15235_s1 + $0x4] ss:$8 sps:$4 sm:$0xff]   ;;  %v9797_v2 = vld [vmem:[%s15235_s1] ss:$8 sps:$4 sm:$0xff]   ;;  %v9799_v4 = vld [vmem:[%s15235_s1 + $0x14] ss:$8 sps:$4 sm:$0xff]  }
   0x2   :  { %v9795_v1 = vld [vmem:[%s15235_s1 + $0x1104] ss:$8 sps:$4 sm:$0xff]   ;;  %7026 = vmatprep.subr.bf16.mxu1 %v9793_v0  ;;  %v9798_v3 = vld [vmem:[%s15235_s1 + $0x1100] ss:$8 sps:$4 sm:$0xff]   ;;  %v9801_v5 = vld [vmem:[%s15235_s1 + $0x1114] ss:$8 sps:$4 sm:$0xff]  }
   0x3   :  { %7723 = vmatprep.subr.bf16.mxu0 %v9795_v1  ;;  %7027 = vmatpush1.bf16.msra.mxu1 %v9797_v2  ;;  %v9803_v6 = vld [vmem:[%s15235_s1 + $0x10] ss:$8 sps:$4 sm:$0xff]   ;;  %v9805_v8 = vld [vmem:[%s15235_s1 + $0x24] ss:$8 sps:$4 sm:$0xff]   ;;  %v9809_v10 = vld [vmem:[%s15235_s1 + $0x20] ss:$8 sps:$4 sm:$0xff]  }
   0x4   :  { %7724 = vmatpush1.bf16.msra.mxu0 %v9798_v3  ;;  %7028 = vmatprep.subr.bf16.mxu1 %v9799_v4  ;;  %v9804_v7 = vld [vmem:[%s15235_s1 + $0x1110] ss:$8 sps:$4 sm:$0xff]   ;;  %v9807_v9 = vld [vmem:[%s15235_s1 + $0x1124] ss:$8 sps:$4 sm:$0xff]   ;;  %v9810_v11 = vld [vmem:[%s15235_s1 + $0x1120] ss:$8 sps:$4 sm:$0xff]  }
   0x5   :  { %7725 = vmatprep.subr.bf16.mxu0 %v9801_v5  ;;  %v9811_v12 = vld [vmem:[%s15235_s1 + $0x34] ss:$8 sps:$4 sm:$0xff]   ;;  %v9815_v14 = vld [vmem:[%s15235_s1 + $0x30] ss:$8 sps:$4 sm:$0xff]   ;;  %v9817_v16 = vld [vmem:[%s15235_s1 + $0x44] ss:$8 sps:$4 sm:$0xff]  }
   0x6   :  { %v9813_v13 = vld [vmem:[%s15235_s1 + $0x1134] ss:$8 sps:$4 sm:$0xff]   ;;  %v9816_v15 = vld [vmem:[%s15235_s1 + $0x1130] ss:$8 sps:$4 sm:$0xff]   ;;  %v9819_v17 = vld [vmem:[%s15235_s1 + $0x1144] ss:$8 sps:$4 sm:$0xff]  }
   0x7   :  { %7029 = vmatpush1.bf16.msra.mxu1 %v9803_v6  ;;  %v9821_v18 = vld [vmem:[%s15235_s1 + $0x40] ss:$8 sps:$4 sm:$0xff]   ;;  %v9823_v20 = vld [vmem:[%s15235_s1 + $0x54] ss:$8 sps:$4 sm:$0xff]   ;;  %v9827_v22 = vld [vmem:[%s15235_s1 + $0x50] ss:$8 sps:$4 sm:$0xff]  }
   0x8   :  { %7726 = vmatpush1.bf16.msra.mxu0 %v9804_v7  ;;  %7030 = vmatprep.subr.bf16.mxu1 %v9805_v8  ;;  %v9822_v19 = vld [vmem:[%s15235_s1 + $0x1140] ss:$8 sps:$4 sm:$0xff]   ;;  %v9825_v21 = vld [vmem:[%s15235_s1 + $0x1154] ss:$8 sps:$4 sm:$0xff]   ;;  %v9828_v23 = vld [vmem:[%s15235_s1 + $0x1150] ss:$8 sps:$4 sm:$0xff]  }
   0x9   :  { %7727 = vmatprep.subr.bf16.mxu0 %v9807_v9  ;;  %v9829_v24 = vld [vmem:[%s15235_s1 + $0x64] ss:$8 sps:$4 sm:$0xff]   ;;  %v9833_v26 = vld [vmem:[%s15235_s1 + $0x60] ss:$8 sps:$4 sm:$0xff]   ;;  %v9835_v28 = vld [vmem:[%s15235_s1 + $0x74] ss:$8 sps:$4 sm:$0xff]  }
   0xa   :  { %v9831_v25 = vld [vmem:[%s15235_s1 + $0x1164] ss:$8 sps:$4 sm:$0xff]   ;;  %v9834_v27 = vld [vmem:[%s15235_s1 + $0x1160] ss:$8 sps:$4 sm:$0xff]   ;;  %v9837_v29 = vld [vmem:[%s15235_s1 + $0x1174] ss:$8 sps:$4 sm:$0xff]  }
   0xb   :  { %7031 = vmatpush1.bf16.msra.mxu1 %v9809_v10  ;;  %v9839_v30 = vld [vmem:[%s15235_s1 + $0x70] ss:$8 sps:$4 sm:$0xff]   ;;  %v9841_v32 = vld [vmem:[%s15235_s1 + $0x84] ss:$8 sps:$4 sm:$0xff]   ;;  %v9845_v34 = vld [vmem:[%s15235_s1 + $0x80] ss:$8 sps:$4 sm:$0xff]  }
   0xc   :  { %7728 = vmatpush1.bf16.msra.mxu0 %v9810_v11  ;;  %7032 = vmatprep.subr.bf16.mxu1 %v9811_v12  ;;  %v9840_v31 = vld [vmem:[%s15235_s1 + $0x1170] ss:$8 sps:$4 sm:$0xff]   ;;  %v9843_v33 = vld [vmem:[%s15235_s1 + $0x1184] ss:$8 sps:$4 sm:$0xff]   ;;  %v9846_v35 = vld [vmem:[%s15235_s1 + $0x1180] ss:$8 sps:$4 sm:$0xff]  }
   0xd   :  { %7729 = vmatprep.subr.bf16.mxu0 %v9813_v13  ;;  %v9847_v36 = vld [vmem:[%s15235_s1 + $0x94] ss:$8 sps:$4 sm:$0xff]   ;;  %v9851_v38 = vld [vmem:[%s15235_s1 + $0x90] ss:$8 sps:$4 sm:$0xff]   ;;  %v9853_v40 = vld [vmem:[%s15235_s1 + $0xa4] ss:$8 sps:$4 sm:$0xff]  }
   0xe   :  { %v9849_v37 = vld [vmem:[%s15235_s1 + $0x1194] ss:$8 sps:$4 sm:$0xff]   ;;  %v9852_v39 = vld [vmem:[%s15235_s1 + $0x1190] ss:$8 sps:$4 sm:$0xff]   ;;  %v9855_v41 = vld [vmem:[%s15235_s1 + $0x11a4] ss:$8 sps:$4 sm:$0xff]  }
   0xf   :  { %7033 = vmatpush1.bf16.msra.mxu1 %v9815_v14  ;;  %v9857_v42 = vld [vmem:[%s15235_s1 + $0xa0] ss:$8 sps:$4 sm:$0xff]   ;;  %v9859_v44 = vld [vmem:[%s15235_s1 + $0xb4] ss:$8 sps:$4 sm:$0xff]   ;;  %v9863_v47 = vld [vmem:[%s15235_s1 + $0xb0] ss:$8 sps:$4 sm:$0xff]  }
  0x10   :  { %7730 = vmatpush1.bf16.msra.mxu0 %v9816_v15  ;;  %7034 = vmatprep.subr.bf16.mxu1 %v9817_v16  ;;  %v9858_v43 = vld [vmem:[%s15235_s1 + $0x11a0] ss:$8 sps:$4 sm:$0xff]   ;;  %v9861_v45 = vld [vmem:[%s15235_s1 + $0x11b4] ss:$8 sps:$4 sm:$0xff]   ;;  %v9864_v49 = vld [vmem:[%s15235_s1 + $0x11b0] ss:$8 sps:$4 sm:$0xff]  }
  0x11   :  { %7731 = vmatprep.subr.bf16.mxu0 %v9819_v17  ;;  %v14_v46 = vld [vmem:[%s15236_s0] sm:$0xff]  ;;  %v31_v50 = vld [vmem:[%s15236_s0 + $0x88] sm:$0xff]  ;;  %v9871_v56 = vld [vmem:[%s15235_s1 + $0xd4] ss:$8 sps:$4 sm:$0xff]  }
  0x12   :  { %v8468_v48 = vcombine.high %v14_v46, %v14_v46  ;;  %v9865_v51 = vld [vmem:[%s15235_s1 + $0xc4] ss:$8 sps:$4 sm:$0xff]   ;;  %v8502_v53 = vcombine.high %v31_v50, %v31_v50  ;;  %v9869_v54 = vld [vmem:[%s15235_s1 + $0xc0] ss:$8 sps:$4 sm:$0xff]   ;;  %v9873_v57 = vld [vmem:[%s15235_s1 + $0x11d4] ss:$8 sps:$4 sm:$0xff]   ;;  %v8467_v6 = vcombine.low %v14_v46, %v14_v46  ;;  %v8501_v7 = vcombine.low %v31_v50, %v31_v50 }
  0x13   :  { %7035 = vmatpush1.bf16.msra.mxu1 %v9821_v18  ;;  %v9867_v52 = vld [vmem:[%s15235_s1 + $0x11c4] ss:$8 sps:$4 sm:$0xff]   ;;  %v9870_v55 = vld [vmem:[%s15235_s1 + $0x11c0] ss:$8 sps:$4 sm:$0xff]   ;;  %v9875_v58 = vld [vmem:[%s15235_s1 + $0xd0] ss:$8 sps:$4 sm:$0xff]  }
  0x14   :  { %7732 = vmatpush1.bf16.msra.mxu0 %v9822_v19  ;;  %7036 = vmatprep.subr.bf16.mxu1 %v9823_v20  ;;  %v9876_v59 = vld [vmem:[%s15235_s1 + $0x11d0] ss:$8 sps:$4 sm:$0xff]   ;;  %v9877_v60 = vld [vmem:[%s15235_s1 + $0xe4] ss:$8 sps:$4 sm:$0xff]   ;;  %v9881_v62 = vld [vmem:[%s15235_s1 + $0xe0] ss:$8 sps:$4 sm:$0xff]  }
  0x15   :  { %7733 = vmatprep.subr.bf16.mxu0 %v9825_v21  ;;  %7058 = vmatprep.mubr.bf16.mxu1 %v8468_v48  ;;  %v9879_v61 = vld [vmem:[%s15235_s1 + $0x11e4] ss:$8 sps:$4 sm:$0xff]   ;;  %v9882_v63 = vld [vmem:[%s15235_s1 + $0x11e0] ss:$8 sps:$4 sm:$0xff]   ;;  %v9883_v0 = vld [vmem:[%s15235_s1 + $0xf4] ss:$8 sps:$4 sm:$0xff]  }
  0x16   :  { %7755 = vmatprep.mubr.bf16.mxu0 %v8502_v53  ;;  %v9885_v1 = vld [vmem:[%s15235_s1 + $0x11f4] ss:$8 sps:$4 sm:$0xff]   ;;  %v9887_v2 = vld [vmem:[%s15235_s1 + $0xf0] ss:$8 sps:$4 sm:$0xff]   ;;  %v9893_v4 = vld [vmem:[%s15235_s1 + $0x104] ss:$8 sps:$4 sm:$0xff]  }
  0x17   :  { %7037 = vmatpush1.bf16.msra.mxu1 %v9827_v22  ;;  %v9888_v3 = vld [vmem:[%s15235_s1 + $0x11f0] ss:$8 sps:$4 sm:$0xff]   ;;  %v9898_v5 = vld [vmem:[%s15235_s1 + $0x1204] ss:$8 sps:$4 sm:$0xff]   ;;  %v9891_v8 = vld [vmem:[%s15235_s1 + $0x100] ss:$8 sps:$4 sm:$0xff]  }
  0x18   :  { %7734 = vmatpush1.bf16.msra.mxu0 %v9828_v23  ;;  %7038 = vmatprep.subr.bf16.mxu1 %v9829_v24  ;;  %v9896_v9 = vld [vmem:[%s15235_s1 + $0x1200] ss:$8 sps:$4 sm:$0xff]   ;;  %v9901_v10 = vld [vmem:[%s15235_s1 + $0x114] ss:$8 sps:$4 sm:$0xff]   ;;  %v9899_v12 = vld [vmem:[%s15235_s1 + $0x110] ss:$8 sps:$4 sm:$0xff]  }
  0x19   :  { %7735 = vmatprep.subr.bf16.mxu0 %v9831_v25  ;;  %v9904_v11 = vld [vmem:[%s15235_s1 + $0x1214] ss:$8 sps:$4 sm:$0xff]   ;;  %v9902_v13 = vld [vmem:[%s15235_s1 + $0x1210] ss:$8 sps:$4 sm:$0xff]   ;;  %v9907_v14 = vld [vmem:[%s15235_s1 + $0x124] ss:$8 sps:$4 sm:$0xff]  }
  0x1a   :  { %v9910_v15 = vld [vmem:[%s15235_s1 + $0x1224] ss:$8 sps:$4 sm:$0xff]   ;;  %v9905_v16 = vld [vmem:[%s15235_s1 + $0x120] ss:$8 sps:$4 sm:$0xff]   ;;  %v9913_v18 = vld [vmem:[%s15235_s1 + $0x134] ss:$8 sps:$4 sm:$0xff]  }
  0x1b   :  { %7039 = vmatpush1.bf16.msra.mxu1 %v9833_v26  ;;  %v9908_v17 = vld [vmem:[%s15235_s1 + $0x1220] ss:$8 sps:$4 sm:$0xff]   ;;  %v9916_v19 = vld [vmem:[%s15235_s1 + $0x1234] ss:$8 sps:$4 sm:$0xff]   ;;  %v9911_v20 = vld [vmem:[%s15235_s1 + $0x130] ss:$8 sps:$4 sm:$0xff]  }
  0x1c   :  { %7736 = vmatpush1.bf16.msra.mxu0 %v9834_v27  ;;  %7040 = vmatprep.subr.bf16.mxu1 %v9835_v28  ;;  %v9914_v21 = vld [vmem:[%s15235_s1 + $0x1230] ss:$8 sps:$4 sm:$0xff]   ;;  %v9919_v22 = vld [vmem:[%s15235_s1 + $0x144] ss:$8 sps:$4 sm:$0xff]   ;;  %v9917_v24 = vld [vmem:[%s15235_s1 + $0x140] ss:$8 sps:$4 sm:$0xff]  }
  0x1d   :  { %7737 = vmatprep.subr.bf16.mxu0 %v9837_v29  ;;  %v9922_v23 = vld [vmem:[%s15235_s1 + $0x1244] ss:$8 sps:$4 sm:$0xff]   ;;  %v9920_v25 = vld [vmem:[%s15235_s1 + $0x1240] ss:$8 sps:$4 sm:$0xff]   ;;  %v9925_v26 = vld [vmem:[%s15235_s1 + $0x154] ss:$8 sps:$4 sm:$0xff]  }
  0x1e   :  { %v9928_v27 = vld [vmem:[%s15235_s1 + $0x1254] ss:$8 sps:$4 sm:$0xff]   ;;  %v9923_v28 = vld [vmem:[%s15235_s1 + $0x150] ss:$8 sps:$4 sm:$0xff]   ;;  %v9955_v50 = vld [vmem:[%s15235_s1 + $0x1a4] ss:$8 sps:$4 sm:$0xff]  }
  0x1f   :  { %7041 = vmatpush1.bf16.msra.mxu1 %v9839_v30  ;;  %v9926_v29 = vld [vmem:[%s15235_s1 + $0x1250] ss:$8 sps:$4 sm:$0xff]   ;;  %v9931_v30 = vld [vmem:[%s15235_s1 + $0x164] ss:$8 sps:$4 sm:$0xff]   ;;  %v9949_v46 = vld [vmem:[%s15235_s1 + $0x194] ss:$8 sps:$4 sm:$0xff]  }
  0x20   :  { %7738 = vmatpush1.bf16.msra.mxu0 %v9840_v31  ;;  %7042 = vmatprep.subr.bf16.mxu1 %v9841_v32  ;;  %v9934_v31 = vld [vmem:[%s15235_s1 + $0x1264] ss:$8 sps:$4 sm:$0xff]   ;;  %v9947_v48 = vld [vmem:[%s15235_s1 + $0x190] ss:$8 sps:$4 sm:$0xff]   ;;  %v9956_v53 = vld [vmem:[%s15235_s1 + $0x12a0] ss:$8 sps:$4 sm:$0xff]  }
  0x21   :  { %7739 = vmatprep.subr.bf16.mxu0 %v9843_v33  ;;  %v11842_v32 = vld [vmem:[%s15236_s0 + $0x8] sm:$0xff] }
  0x22   :  { %v9929_v33 = vld [vmem:[%s15235_s1 + $0x160] ss:$8 sps:$4 sm:$0xff]  }
  0x23   :  { %7043 = vmatpush1.bf16.msra.mxu1 %v9845_v34  ;;  %v9932_v34 = vld [vmem:[%s15235_s1 + $0x1260] ss:$8 sps:$4 sm:$0xff]  }
  0x24   :  { %7740 = vmatpush1.bf16.msra.mxu0 %v9846_v35  ;;  %7044 = vmatprep.subr.bf16.mxu1 %v9847_v36  ;;  %v8470_v35 = vcombine.high %v11842_v32, %v11842_v32  ;;  %v11855_v36 = vld [vmem:[%s15236_s0 + $0x90] sm:$0xff] }
  0x25   :  { %7741 = vmatprep.subr.bf16.mxu0 %v9849_v37  ;;  %v9937_v37 = vld [vmem:[%s15235_s1 + $0x174] ss:$8 sps:$4 sm:$0xff]  }
  0x27   :  { %7045 = vmatpush1.bf16.msra.mxu1 %v9851_v38  ;;  %v8504_v38 = vcombine.high %v11855_v36, %v11855_v36 }
  0x28   :  { %7742 = vmatpush1.bf16.msra.mxu0 %v9852_v39  ;;  %7046 = vmatprep.subr.bf16.mxu1 %v9853_v40  ;;  %v9940_v39 = vld [vmem:[%s15235_s1 + $0x1274] ss:$8 sps:$4 sm:$0xff]   ;;  %v9935_v40 = vld [vmem:[%s15235_s1 + $0x170] ss:$8 sps:$4 sm:$0xff]  }
  0x29   :  { %7743 = vmatprep.subr.bf16.mxu0 %v9855_v41  ;;  %v9938_v41 = vld [vmem:[%s15235_s1 + $0x1270] ss:$8 sps:$4 sm:$0xff]  }
  0x2b   :  { %7047 = vmatpush1.bf16.msra.mxu1 %v9857_v42  ;;  %v9943_v42 = vld [vmem:[%s15235_s1 + $0x184] ss:$8 sps:$4 sm:$0xff]  }
  0x2c   :  { %7744 = vmatpush1.bf16.msra.mxu0 %v9858_v43  ;;  %7048 = vmatprep.subr.bf16.mxu1 %v9859_v44  ;;  %v9946_v43 = vld [vmem:[%s15235_s1 + $0x1284] ss:$8 sps:$4 sm:$0xff]   ;;  %v9941_v44 = vld [vmem:[%s15235_s1 + $0x180] ss:$8 sps:$4 sm:$0xff]  }
  0x2d   :  { %7745 = vmatprep.subr.bf16.mxu0 %v9861_v45  ;;  %v9944_v45 = vld [vmem:[%s15235_s1 + $0x1280] ss:$8 sps:$4 sm:$0xff]  }
  0x2f   :  { %7049 = vmatpush1.bf16.msra.mxu1 %v9863_v47  ;;  %v9952_v47 = vld [vmem:[%s15235_s1 + $0x1294] ss:$8 sps:$4 sm:$0xff]  }
  0x30   :  { %7746 = vmatpush1.bf16.msra.mxu0 %v9864_v49  ;;  %7050 = vmatprep.subr.bf16.mxu1 %v9865_v51  ;;  %v9950_v49 = vld [vmem:[%s15235_s1 + $0x1290] ss:$8 sps:$4 sm:$0xff]   ;;  %v9958_v51 = vld [vmem:[%s15235_s1 + $0x12a4] ss:$8 sps:$4 sm:$0xff]  }
  0x31   :  { %7747 = vmatprep.subr.bf16.mxu0 %v9867_v52  ;;  %v9953_v52 = vld [vmem:[%s15235_s1 + $0x1a0] ss:$8 sps:$4 sm:$0xff]  }
  0x33   :  { %7051 = vmatpush1.bf16.msra.mxu1 %v9869_v54  ;;  %v9961_v54 = vld [vmem:[%s15235_s1 + $0x1b4] ss:$8 sps:$4 sm:$0xff]  }
  0x34   :  { %7748 = vmatpush1.bf16.msra.mxu0 %v9870_v55  ;;  %7052 = vmatprep.subr.bf16.mxu1 %v9871_v56  ;;  %v9964_v55 = vld [vmem:[%s15235_s1 + $0x12b4] ss:$8 sps:$4 sm:$0xff]   ;;  %v9959_v56 = vld [vmem:[%s15235_s1 + $0x1b0] ss:$8 sps:$4 sm:$0xff]  }
  0x35   :  { %7749 = vmatprep.subr.bf16.mxu0 %v9873_v57  ;;  %v9962_v57 = vld [vmem:[%s15235_s1 + $0x12b0] ss:$8 sps:$4 sm:$0xff]  }
  0x37   :  { %7053 = vmatpush1.bf16.msra.mxu1 %v9875_v58  ;;  %v9967_v58 = vld [vmem:[%s15235_s1 + $0x1c4] ss:$8 sps:$4 sm:$0xff]  }
  0x38   :  { %7750 = vmatpush1.bf16.msra.mxu0 %v9876_v59  ;;  %7054 = vmatprep.subr.bf16.mxu1 %v9877_v60  ;;  %v9970_v59 = vld [vmem:[%s15235_s1 + $0x12c4] ss:$8 sps:$4 sm:$0xff]   ;;  %v9965_v60 = vld [vmem:[%s15235_s1 + $0x1c0] ss:$8 sps:$4 sm:$0xff]  }
  0x39   :  { %7751 = vmatprep.subr.bf16.mxu0 %v9879_v61  ;;  %v9968_v61 = vld [vmem:[%s15235_s1 + $0x12c0] ss:$8 sps:$4 sm:$0xff]  }
  0x3b   :  { %7055 = vmatpush1.bf16.msra.mxu1 %v9881_v62  ;;  %v9973_v62 = vld [vmem:[%s15235_s1 + $0x1d4] ss:$8 sps:$4 sm:$0xff]  }
  0x3c   :  { %7752 = vmatpush1.bf16.msra.mxu0 %v9882_v63  ;;  %7056 = vmatprep.subr.bf16.mxu1 %v9883_v0  ;;  %v9976_v63 = vld [vmem:[%s15235_s1 + $0x12d4] ss:$8 sps:$4 sm:$0xff]   ;;  %v9971_v0 = vld [vmem:[%s15235_s1 + $0x1d0] ss:$8 sps:$4 sm:$0xff]  }
  0x3d   :  { %7753 = vmatprep.subr.bf16.mxu0 %v9885_v1  ;;  %v9974_v1 = vld [vmem:[%s15235_s1 + $0x12d0] ss:$8 sps:$4 sm:$0xff]  }
  0x3f   :  { %7057 = vmatpush1.bf16.msra.mxu1 %v9887_v2  ;;  %v9979_v2 = vld [vmem:[%s15235_s1 + $0x1e4] ss:$8 sps:$4 sm:$0xff]  }
  0x40   :  { %7754 = vmatpush1.bf16.msra.mxu0 %v9888_v3  ;;  %7067 = vmatprep.subr.bf16.mxu1 %v9893_v4  ;;  %v9982_v3 = vld [vmem:[%s15235_s1 + $0x12e4] ss:$8 sps:$4 sm:$0xff]   ;;  %v9977_v4 = vld [vmem:[%s15235_s1 + $0x1e0] ss:$8 sps:$4 sm:$0xff]  }
  0x41   :  { %7764 = vmatprep.subr.bf16.mxu0 %v9898_v5  ;;  %v9980_v5 = vld [vmem:[%s15235_s1 + $0x12e0] ss:$8 sps:$4 sm:$0xff]  }
  0x42   :  { %7059 = vmatmul.mubr.bf16.vlgmr.msra.gmra.mrb[0].mxu1 %v8467_v6  ;;  %v9985_v6 = vld [vmem:[%s15235_s1 + $0x1f4] ss:$8 sps:$4 sm:$0xff]  }
  0x43   :  { %7756 = vmatmul.mubr.bf16.vlgmr.msra.gmra.mrb[0].mxu0 %v8501_v7  ;;  %7068 = vmatpush1.bf16.msra.mxu1 %v9891_v8  ;;  %v9988_v7 = vld [vmem:[%s15235_s1 + $0x12f4] ss:$8 sps:$4 sm:$0xff]   ;;  %v9983_v8 = vld [vmem:[%s15235_s1 + $0x1f0] ss:$8 sps:$4 sm:$0xff]  }
  0x44   :  { %7765 = vmatpush1.bf16.msra.mxu0 %v9896_v9  ;;  %7069 = vmatprep.subr.bf16.mxu1 %v9901_v10  ;;  %v9986_v9 = vld [vmem:[%s15235_s1 + $0x12f0] ss:$8 sps:$4 sm:$0xff]   ;;  %v9993_v10 = vld [vmem:[%s15235_s1 + $0x204] ss:$8 sps:$4 sm:$0xff]  }
  0x45   :  { %7766 = vmatprep.subr.bf16.mxu0 %v9904_v11  ;;  %7099 = vmatprep.mubr.bf16.mxu1 %v8470_v35  ;;  %v9998_v11 = vld [vmem:[%s15235_s1 + $0x1304] ss:$8 sps:$4 sm:$0xff]   ;;  %v10020_v35 = vld [vmem:[%s15235_s1 + $0x1340] ss:$8 sps:$4 sm:$0xff]  }
  0x46   :  { %7796 = vmatprep.mubr.bf16.mxu0 %v8504_v38  ;;  %v10023_v38 = vld [vmem:[%s15235_s1 + $0x250] ss:$8 sps:$4 sm:$0xff]  }
  0x47   :  { %7070 = vmatpush1.bf16.msra.mxu1 %v9899_v12  ;;  %v8469_v12 = vcombine.low %v11842_v32, %v11842_v32  ;;  %v10019_v32 = vld [vmem:[%s15235_s1 + $0x244] ss:$8 sps:$4 sm:$0xff]  }
  0x48   :  { %7767 = vmatpush1.bf16.msra.mxu0 %v9902_v13  ;;  %7071 = vmatprep.subr.bf16.mxu1 %v9907_v14  ;;  %v9991_v13 = vld [vmem:[%s15235_s1 + $0x200] ss:$8 sps:$4 sm:$0xff]   ;;  %v8503_v14 = vcombine.low %v11855_v36, %v11855_v36  ;;  %v10025_v36 = vld [vmem:[%s15235_s1 + $0x254] ss:$8 sps:$4 sm:$0xff]  }
  0x49   :  { %7768 = vmatprep.subr.bf16.mxu0 %v9910_v15  ;;  %v9996_v15 = vld [vmem:[%s15235_s1 + $0x1300] ss:$8 sps:$4 sm:$0xff]  }
  0x4b   :  { %7072 = vmatpush1.bf16.msra.mxu1 %v9905_v16  ;;  %v10001_v16 = vld [vmem:[%s15235_s1 + $0x214] ss:$8 sps:$4 sm:$0xff]  }
  0x4c   :  { %7769 = vmatpush1.bf16.msra.mxu0 %v9908_v17  ;;  %7073 = vmatprep.subr.bf16.mxu1 %v9913_v18  ;;  %v10004_v17 = vld [vmem:[%s15235_s1 + $0x1314] ss:$8 sps:$4 sm:$0xff]  }
  0x4d   :  { %7770 = vmatprep.subr.bf16.mxu0 %v9916_v19  ;;  %v11992_v18 = vld [vmem:[%s15236_s0 + $0x10] sm:$0xff] }
  0x4e   :  { %v8472_v19 = vcombine.high %v11992_v18, %v11992_v18 }
  0x4f   :  { %7074 = vmatpush1.bf16.msra.mxu1 %v9911_v20  ;;  %v11999_v20 = vld [vmem:[%s15236_s0 + $0x98] sm:$0xff] }
  0x50   :  { %7771 = vmatpush1.bf16.msra.mxu0 %v9914_v21  ;;  %7075 = vmatprep.subr.bf16.mxu1 %v9919_v22  ;;  %v9999_v21 = vld [vmem:[%s15235_s1 + $0x210] ss:$8 sps:$4 sm:$0xff]  }
  0x51   :  { %7772 = vmatprep.subr.bf16.mxu0 %v9922_v23  ;;  %v10002_v22 = vld [vmem:[%s15235_s1 + $0x1310] ss:$8 sps:$4 sm:$0xff]   ;;  %v8506_v23 = vcombine.high %v11999_v20, %v11999_v20 }
  0x53   :  { %7076 = vmatpush1.bf16.msra.mxu1 %v9917_v24  ;;  %v10007_v24 = vld [vmem:[%s15235_s1 + $0x224] ss:$8 sps:$4 sm:$0xff]  }
  0x54   :  { %7773 = vmatpush1.bf16.msra.mxu0 %v9920_v25  ;;  %7077 = vmatprep.subr.bf16.mxu1 %v9925_v26  ;;  %v10010_v25 = vld [vmem:[%s15235_s1 + $0x1324] ss:$8 sps:$4 sm:$0xff]   ;;  %v10005_v26 = vld [vmem:[%s15235_s1 + $0x220] ss:$8 sps:$4 sm:$0xff]  }
  0x55   :  { %7774 = vmatprep.subr.bf16.mxu0 %v9928_v27  ;;  %v10008_v27 = vld [vmem:[%s15235_s1 + $0x1320] ss:$8 sps:$4 sm:$0xff]  }
  0x57   :  { %7078 = vmatpush1.bf16.msra.mxu1 %v9923_v28  ;;  %v10013_v28 = vld [vmem:[%s15235_s1 + $0x234] ss:$8 sps:$4 sm:$0xff]  }
  0x58   :  { %7775 = vmatpush1.bf16.msra.mxu0 %v9926_v29  ;;  %7079 = vmatprep.subr.bf16.mxu1 %v9931_v30  ;;  %v10016_v29 = vld [vmem:[%s15235_s1 + $0x1334] ss:$8 sps:$4 sm:$0xff]   ;;  %v10011_v30 = vld [vmem:[%s15235_s1 + $0x230] ss:$8 sps:$4 sm:$0xff]  }
  0x59   :  { %7776 = vmatprep.subr.bf16.mxu0 %v9934_v31  ;;  %v10014_v31 = vld [vmem:[%s15235_s1 + $0x1330] ss:$8 sps:$4 sm:$0xff]  }
  0x5b   :  { %7080 = vmatpush1.bf16.msra.mxu1 %v9929_v33  ;;  %v10022_v33 = vld [vmem:[%s15235_s1 + $0x1344] ss:$8 sps:$4 sm:$0xff]  }
  0x5c   :  { %7777 = vmatpush1.bf16.msra.mxu0 %v9932_v34  ;;  %7081 = vmatprep.subr.bf16.mxu1 %v9937_v37  ;;  %v10017_v34 = vld [vmem:[%s15235_s1 + $0x240] ss:$8 sps:$4 sm:$0xff]   ;;  %v10028_v37 = vld [vmem:[%s15235_s1 + $0x1354] ss:$8 sps:$4 sm:$0xff]  }
  0x5d   :  { %7778 = vmatprep.subr.bf16.mxu0 %v9940_v39  ;;  %v10026_v39 = vld [vmem:[%s15235_s1 + $0x1350] ss:$8 sps:$4 sm:$0xff]  }
  0x5f   :  { %7082 = vmatpush1.bf16.msra.mxu1 %v9935_v40  ;;  %v10031_v40 = vld [vmem:[%s15235_s1 + $0x264] ss:$8 sps:$4 sm:$0xff]  }
  0x60   :  { %7779 = vmatpush1.bf16.msra.mxu0 %v9938_v41  ;;  %7083 = vmatprep.subr.bf16.mxu1 %v9943_v42  ;;  %v10034_v41 = vld [vmem:[%s15235_s1 + $0x1364] ss:$8 sps:$4 sm:$0xff]   ;;  %v10029_v42 = vld [vmem:[%s15235_s1 + $0x260] ss:$8 sps:$4 sm:$0xff]  }
  0x61   :  { %7780 = vmatprep.subr.bf16.mxu0 %v9946_v43  ;;  %v10032_v43 = vld [vmem:[%s15235_s1 + $0x1360] ss:$8 sps:$4 sm:$0xff]  }
  0x63   :  { %7084 = vmatpush1.bf16.msra.mxu1 %v9941_v44  ;;  %v10037_v44 = vld [vmem:[%s15235_s1 + $0x274] ss:$8 sps:$4 sm:$0xff]  }
  0x64   :  { %7781 = vmatpush1.bf16.msra.mxu0 %v9944_v45  ;;  %7085 = vmatprep.subr.bf16.mxu1 %v9949_v46  ;;  %v10040_v45 = vld [vmem:[%s15235_s1 + $0x1374] ss:$8 sps:$4 sm:$0xff]   ;;  %v10035_v46 = vld [vmem:[%s15235_s1 + $0x270] ss:$8 sps:$4 sm:$0xff]  }
  0x65   :  { %7782 = vmatprep.subr.bf16.mxu0 %v9952_v47  ;;  %v10038_v47 = vld [vmem:[%s15235_s1 + $0x1370] ss:$8 sps:$4 sm:$0xff]  }
  0x67   :  { %7086 = vmatpush1.bf16.msra.mxu1 %v9947_v48  ;;  %v10043_v48 = vld [vmem:[%s15235_s1 + $0x284] ss:$8 sps:$4 sm:$0xff]  }
  0x68   :  { %7783 = vmatpush1.bf16.msra.mxu0 %v9950_v49  ;;  %7087 = vmatprep.subr.bf16.mxu1 %v9955_v50  ;;  %v10046_v49 = vld [vmem:[%s15235_s1 + $0x1384] ss:$8 sps:$4 sm:$0xff]   ;;  %v10041_v50 = vld [vmem:[%s15235_s1 + $0x280] ss:$8 sps:$4 sm:$0xff]  }
  0x69   :  { %7784 = vmatprep.subr.bf16.mxu0 %v9958_v51  ;;  %v10044_v51 = vld [vmem:[%s15235_s1 + $0x1380] ss:$8 sps:$4 sm:$0xff]  }
  0x6b   :  { %7088 = vmatpush1.bf16.msra.mxu1 %v9953_v52  ;;  %v10049_v52 = vld [vmem:[%s15235_s1 + $0x294] ss:$8 sps:$4 sm:$0xff]  }
  0x6c   :  { %7785 = vmatpush1.bf16.msra.mxu0 %v9956_v53  ;;  %7089 = vmatprep.subr.bf16.mxu1 %v9961_v54  ;;  %v10052_v53 = vld [vmem:[%s15235_s1 + $0x1394] ss:$8 sps:$4 sm:$0xff]   ;;  %v10047_v54 = vld [vmem:[%s15235_s1 + $0x290] ss:$8 sps:$4 sm:$0xff]  }
  0x6d   :  { %7786 = vmatprep.subr.bf16.mxu0 %v9964_v55  ;;  %v10050_v55 = vld [vmem:[%s15235_s1 + $0x1390] ss:$8 sps:$4 sm:$0xff]  }
  0x6f   :  { %7090 = vmatpush1.bf16.msra.mxu1 %v9959_v56  ;;  %v10055_v56 = vld [vmem:[%s15235_s1 + $0x2a4] ss:$8 sps:$4 sm:$0xff]  }
  0x70   :  { %7787 = vmatpush1.bf16.msra.mxu0 %v9962_v57  ;;  %7091 = vmatprep.subr.bf16.mxu1 %v9967_v58  ;;  %v10058_v57 = vld [vmem:[%s15235_s1 + $0x13a4] ss:$8 sps:$4 sm:$0xff]   ;;  %v10053_v58 = vld [vmem:[%s15235_s1 + $0x2a0] ss:$8 sps:$4 sm:$0xff]  }
  0x71   :  { %7788 = vmatprep.subr.bf16.mxu0 %v9970_v59  ;;  %v10056_v59 = vld [vmem:[%s15235_s1 + $0x13a0] ss:$8 sps:$4 sm:$0xff]  }
  0x73   :  { %7092 = vmatpush1.bf16.msra.mxu1 %v9965_v60  ;;  %v10061_v60 = vld [vmem:[%s15235_s1 + $0x2b4] ss:$8 sps:$4 sm:$0xff]  }
  0x74   :  { %7789 = vmatpush1.bf16.msra.mxu0 %v9968_v61  ;;  %7093 = vmatprep.subr.bf16.mxu1 %v9973_v62  ;;  %v10064_v61 = vld [vmem:[%s15235_s1 + $0x13b4] ss:$8 sps:$4 sm:$0xff]   ;;  %v10059_v62 = vld [vmem:[%s15235_s1 + $0x2b0] ss:$8 sps:$4 sm:$0xff]  }
  0x75   :  { %7790 = vmatprep.subr.bf16.mxu0 %v9976_v63  ;;  %v10062_v63 = vld [vmem:[%s15235_s1 + $0x13b0] ss:$8 sps:$4 sm:$0xff]  }
  0x77   :  { %7094 = vmatpush1.bf16.msra.mxu1 %v9971_v0  ;;  %v10067_v0 = vld [vmem:[%s15235_s1 + $0x2c4] ss:$8 sps:$4 sm:$0xff]  }
  0x78   :  { %7791 = vmatpush1.bf16.msra.mxu0 %v9974_v1  ;;  %7095 = vmatprep.subr.bf16.mxu1 %v9979_v2  ;;  %v10070_v1 = vld [vmem:[%s15235_s1 + $0x13c4] ss:$8 sps:$4 sm:$0xff]   ;;  %v10065_v2 = vld [vmem:[%s15235_s1 + $0x2c0] ss:$8 sps:$4 sm:$0xff]  }
  0x79   :  { %7792 = vmatprep.subr.bf16.mxu0 %v9982_v3  ;;  %v10068_v3 = vld [vmem:[%s15235_s1 + $0x13c0] ss:$8 sps:$4 sm:$0xff]  }
  0x7b   :  { %7096 = vmatpush1.bf16.msra.mxu1 %v9977_v4  ;;  %v10073_v4 = vld [vmem:[%s15235_s1 + $0x2d4] ss:$8 sps:$4 sm:$0xff]  }
  0x7c   :  { %7793 = vmatpush1.bf16.msra.mxu0 %v9980_v5  ;;  %7097 = vmatprep.subr.bf16.mxu1 %v9985_v6  ;;  %v10076_v5 = vld [vmem:[%s15235_s1 + $0x13d4] ss:$8 sps:$4 sm:$0xff]   ;;  %v10071_v6 = vld [vmem:[%s15235_s1 + $0x2d0] ss:$8 sps:$4 sm:$0xff]  }
  0x7d   :  { %7794 = vmatprep.subr.bf16.mxu0 %v9988_v7  ;;  %v10074_v7 = vld [vmem:[%s15235_s1 + $0x13d0] ss:$8 sps:$4 sm:$0xff]  }
  0x7f   :  { %7098 = vmatpush1.bf16.msra.mxu1 %v9983_v8  ;;  %v10079_v8 = vld [vmem:[%s15235_s1 + $0x2e4] ss:$8 sps:$4 sm:$0xff]  }
  0x80   :  { %7795 = vmatpush1.bf16.msra.mxu0 %v9986_v9  ;;  %7108 = vmatprep.subr.bf16.mxu1 %v9993_v10  ;;  %v10082_v9 = vld [vmem:[%s15235_s1 + $0x13e4] ss:$8 sps:$4 sm:$0xff]   ;;  %v10077_v10 = vld [vmem:[%s15235_s1 + $0x2e0] ss:$8 sps:$4 sm:$0xff]  }
  0x81   :  { %7805 = vmatprep.subr.bf16.mxu0 %v9998_v11  ;;  %v10080_v11 = vld [vmem:[%s15235_s1 + $0x13e0] ss:$8 sps:$4 sm:$0xff]  }
  0x82   :  { %7100 = vmatmul.mubr.bf16.vlgmr.msra.gmra.mrb[0].mxu1 %v8469_v12  ;;  %v10085_v12 = vld [vmem:[%s15235_s1 + $0x2f4] ss:$8 sps:$4 sm:$0xff]  }
  0x83   :  { %7797 = vmatmul.mubr.bf16.vlgmr.msra.gmra.mrb[0].mxu0 %v8503_v14  ;;  %7109 = vmatpush1.bf16.msra.mxu1 %v9991_v13  ;;  %v10088_v13 = vld [vmem:[%s15235_s1 + $0x13f4] ss:$8 sps:$4 sm:$0xff]   ;;  %v10083_v14 = vld [vmem:[%s15235_s1 + $0x2f0] ss:$8 sps:$4 sm:$0xff]  }
  0x84   :  { %7806 = vmatpush1.bf16.msra.mxu0 %v9996_v15  ;;  %7110 = vmatprep.subr.bf16.mxu1 %v10001_v16  ;;  %v10086_v15 = vld [vmem:[%s15235_s1 + $0x13f0] ss:$8 sps:$4 sm:$0xff]   ;;  %v10093_v16 = vld [vmem:[%s15235_s1 + $0x304] ss:$8 sps:$4 sm:$0xff]  }
  0x85   :  { %7807 = vmatprep.subr.bf16.mxu0 %v10004_v17  ;;  %7140 = vmatprep.mubr.bf16.mxu1 %v8472_v19  ;;  %v10098_v17 = vld [vmem:[%s15235_s1 + $0x1404] ss:$8 sps:$4 sm:$0xff]   ;;  %v10091_v19 = vld [vmem:[%s15235_s1 + $0x300] ss:$8 sps:$4 sm:$0xff]  }
  0x86   :  { %7837 = vmatprep.mubr.bf16.mxu0 %v8506_v23  ;;  %v8505_v23 = vcombine.low %v11999_v20, %v11999_v20 }
  0x87   :  { %7111 = vmatpush1.bf16.msra.mxu1 %v9999_v21  ;;  %v10096_v21 = vld [vmem:[%s15235_s1 + $0x1400] ss:$8 sps:$4 sm:$0xff]  }
  0x88   :  { %7808 = vmatpush1.bf16.msra.mxu0 %v10002_v22  ;;  %7112 = vmatprep.subr.bf16.mxu1 %v10007_v24  ;;  %v8471_v22 = vcombine.low %v11992_v18, %v11992_v18  ;;  %v12196_v24 = vld [vmem:[%s15236_s0 + $0x18] sm:$0xff] }
  0x89   :  { %7809 = vmatprep.subr.bf16.mxu0 %v10010_v25  ;;  %v12201_v25 = vld [vmem:[%s15236_s0 + $0xa0] sm:$0xff]  ;;  %v10104_v18 = vld [vmem:[%s15235_s1 + $0x1414] ss:$8 sps:$4 sm:$0xff]   ;;  %v8474_v20 = vcombine.high %v12196_v24, %v12196_v24 }
  0x8b   :  { %7113 = vmatpush1.bf16.msra.mxu1 %v10005_v26  ;;  %v10101_v26 = vld [vmem:[%s15235_s1 + $0x314] ss:$8 sps:$4 sm:$0xff]  }
  0x8c   :  { %7810 = vmatpush1.bf16.msra.mxu0 %v10008_v27  ;;  %7114 = vmatprep.subr.bf16.mxu1 %v10013_v28  ;;  %v8508_v27 = vcombine.high %v12201_v25, %v12201_v25  ;;  %v10099_v28 = vld [vmem:[%s15235_s1 + $0x310] ss:$8 sps:$4 sm:$0xff]  }
  0x8d   :  { %7811 = vmatprep.subr.bf16.mxu0 %v10016_v29  ;;  %v10102_v29 = vld [vmem:[%s15235_s1 + $0x1410] ss:$8 sps:$4 sm:$0xff]  }
  0x8f   :  { %7115 = vmatpush1.bf16.msra.mxu1 %v10011_v30  ;;  %v10107_v30 = vld [vmem:[%s15235_s1 + $0x324] ss:$8 sps:$4 sm:$0xff]  }
  0x90   :  { %7812 = vmatpush1.bf16.msra.mxu0 %v10014_v31  ;;  %7116 = vmatprep.subr.bf16.mxu1 %v10019_v32  ;;  %v10110_v31 = vld [vmem:[%s15235_s1 + $0x1424] ss:$8 sps:$4 sm:$0xff]   ;;  %v10105_v32 = vld [vmem:[%s15235_s1 + $0x320] ss:$8 sps:$4 sm:$0xff]  }
  0x91   :  { %7813 = vmatprep.subr.bf16.mxu0 %v10022_v33  ;;  %v10108_v33 = vld [vmem:[%s15235_s1 + $0x1420] ss:$8 sps:$4 sm:$0xff]  }
  0x93   :  { %7117 = vmatpush1.bf16.msra.mxu1 %v10017_v34  ;;  %v10113_v34 = vld [vmem:[%s15235_s1 + $0x334] ss:$8 sps:$4 sm:$0xff]  }
  0x94   :  { %7814 = vmatpush1.bf16.msra.mxu0 %v10020_v35  ;;  %7118 = vmatprep.subr.bf16.mxu1 %v10025_v36  ;;  %v10116_v35 = vld [vmem:[%s15235_s1 + $0x1434] ss:$8 sps:$4 sm:$0xff]   ;;  %v10111_v36 = vld [vmem:[%s15235_s1 + $0x330] ss:$8 sps:$4 sm:$0xff]  }
  0x95   :  { %7815 = vmatprep.subr.bf16.mxu0 %v10028_v37  ;;  %v10114_v37 = vld [vmem:[%s15235_s1 + $0x1430] ss:$8 sps:$4 sm:$0xff]  }
  0x97   :  { %7119 = vmatpush1.bf16.msra.mxu1 %v10023_v38  ;;  %v10119_v38 = vld [vmem:[%s15235_s1 + $0x344] ss:$8 sps:$4 sm:$0xff]  }
  0x98   :  { %7816 = vmatpush1.bf16.msra.mxu0 %v10026_v39  ;;  %7120 = vmatprep.subr.bf16.mxu1 %v10031_v40  ;;  %v10122_v39 = vld [vmem:[%s15235_s1 + $0x1444] ss:$8 sps:$4 sm:$0xff]   ;;  %v10117_v40 = vld [vmem:[%s15235_s1 + $0x340] ss:$8 sps:$4 sm:$0xff]  }
  0x99   :  { %7817 = vmatprep.subr.bf16.mxu0 %v10034_v41  ;;  %v10120_v41 = vld [vmem:[%s15235_s1 + $0x1440] ss:$8 sps:$4 sm:$0xff]  }
  0x9b   :  { %7121 = vmatpush1.bf16.msra.mxu1 %v10029_v42  ;;  %v10125_v42 = vld [vmem:[%s15235_s1 + $0x354] ss:$8 sps:$4 sm:$0xff]  }
  0x9c   :  { %7818 = vmatpush1.bf16.msra.mxu0 %v10032_v43  ;;  %7122 = vmatprep.subr.bf16.mxu1 %v10037_v44  ;;  %v10128_v43 = vld [vmem:[%s15235_s1 + $0x1454] ss:$8 sps:$4 sm:$0xff]   ;;  %v10123_v44 = vld [vmem:[%s15235_s1 + $0x350] ss:$8 sps:$4 sm:$0xff]  }
  0x9d   :  { %7819 = vmatprep.subr.bf16.mxu0 %v10040_v45  ;;  %v10126_v45 = vld [vmem:[%s15235_s1 + $0x1450] ss:$8 sps:$4 sm:$0xff]  }
  0x9f   :  { %7123 = vmatpush1.bf16.msra.mxu1 %v10035_v46  ;;  %v10131_v46 = vld [vmem:[%s15235_s1 + $0x364] ss:$8 sps:$4 sm:$0xff]  }
  0xa0   :  { %7820 = vmatpush1.bf16.msra.mxu0 %v10038_v47  ;;  %7124 = vmatprep.subr.bf16.mxu1 %v10043_v48  ;;  %v10134_v47 = vld [vmem:[%s15235_s1 + $0x1464] ss:$8 sps:$4 sm:$0xff]   ;;  %v10129_v48 = vld [vmem:[%s15235_s1 + $0x360] ss:$8 sps:$4 sm:$0xff]  }
  0xa1   :  { %7821 = vmatprep.subr.bf16.mxu0 %v10046_v49  ;;  %v10132_v49 = vld [vmem:[%s15235_s1 + $0x1460] ss:$8 sps:$4 sm:$0xff]  }
  0xa3   :  { %7125 = vmatpush1.bf16.msra.mxu1 %v10041_v50  ;;  %v10137_v50 = vld [vmem:[%s15235_s1 + $0x374] ss:$8 sps:$4 sm:$0xff]  }
  0xa4   :  { %7822 = vmatpush1.bf16.msra.mxu0 %v10044_v51  ;;  %7126 = vmatprep.subr.bf16.mxu1 %v10049_v52  ;;  %v10140_v51 = vld [vmem:[%s15235_s1 + $0x1474] ss:$8 sps:$4 sm:$0xff]   ;;  %v10135_v52 = vld [vmem:[%s15235_s1 + $0x370] ss:$8 sps:$4 sm:$0xff]  }
  0xa5   :  { %7823 = vmatprep.subr.bf16.mxu0 %v10052_v53  ;;  %v10138_v53 = vld [vmem:[%s15235_s1 + $0x1470] ss:$8 sps:$4 sm:$0xff]  }
  0xa7   :  { %7127 = vmatpush1.bf16.msra.mxu1 %v10047_v54  ;;  %v10143_v54 = vld [vmem:[%s15235_s1 + $0x384] ss:$8 sps:$4 sm:$0xff]  }
  0xa8   :  { %7824 = vmatpush1.bf16.msra.mxu0 %v10050_v55  ;;  %7128 = vmatprep.subr.bf16.mxu1 %v10055_v56  ;;  %v10146_v55 = vld [vmem:[%s15235_s1 + $0x1484] ss:$8 sps:$4 sm:$0xff]   ;;  %v10141_v56 = vld [vmem:[%s15235_s1 + $0x380] ss:$8 sps:$4 sm:$0xff]  }
  0xa9   :  { %7825 = vmatprep.subr.bf16.mxu0 %v10058_v57  ;;  %v10144_v57 = vld [vmem:[%s15235_s1 + $0x1480] ss:$8 sps:$4 sm:$0xff]  }
  0xab   :  { %7129 = vmatpush1.bf16.msra.mxu1 %v10053_v58  ;;  %v10149_v58 = vld [vmem:[%s15235_s1 + $0x394] ss:$8 sps:$4 sm:$0xff]  }
  0xac   :  { %7826 = vmatpush1.bf16.msra.mxu0 %v10056_v59  ;;  %7130 = vmatprep.subr.bf16.mxu1 %v10061_v60  ;;  %v10152_v59 = vld [vmem:[%s15235_s1 + $0x1494] ss:$8 sps:$4 sm:$0xff]   ;;  %v10147_v60 = vld [vmem:[%s15235_s1 + $0x390] ss:$8 sps:$4 sm:$0xff]  }
  0xad   :  { %7827 = vmatprep.subr.bf16.mxu0 %v10064_v61  ;;  %v10150_v61 = vld [vmem:[%s15235_s1 + $0x1490] ss:$8 sps:$4 sm:$0xff]  }
  0xaf   :  { %7131 = vmatpush1.bf16.msra.mxu1 %v10059_v62  ;;  %v10155_v62 = vld [vmem:[%s15235_s1 + $0x3a4] ss:$8 sps:$4 sm:$0xff]  }
  0xb0   :  { %7828 = vmatpush1.bf16.msra.mxu0 %v10062_v63  ;;  %7132 = vmatprep.subr.bf16.mxu1 %v10067_v0  ;;  %v10158_v63 = vld [vmem:[%s15235_s1 + $0x14a4] ss:$8 sps:$4 sm:$0xff]   ;;  %v10153_v0 = vld [vmem:[%s15235_s1 + $0x3a0] ss:$8 sps:$4 sm:$0xff]  }
  0xb1   :  { %7829 = vmatprep.subr.bf16.mxu0 %v10070_v1  ;;  %v10156_v1 = vld [vmem:[%s15235_s1 + $0x14a0] ss:$8 sps:$4 sm:$0xff]  }
  0xb3   :  { %7133 = vmatpush1.bf16.msra.mxu1 %v10065_v2  ;;  %v10161_v2 = vld [vmem:[%s15235_s1 + $0x3b4] ss:$8 sps:$4 sm:$0xff]  }
  0xb4   :  { %7830 = vmatpush1.bf16.msra.mxu0 %v10068_v3  ;;  %7134 = vmatprep.subr.bf16.mxu1 %v10073_v4  ;;  %v10164_v3 = vld [vmem:[%s15235_s1 + $0x14b4] ss:$8 sps:$4 sm:$0xff]   ;;  %v10159_v4 = vld [vmem:[%s15235_s1 + $0x3b0] ss:$8 sps:$4 sm:$0xff]  }
  0xb5   :  { %7831 = vmatprep.subr.bf16.mxu0 %v10076_v5  ;;  %v10162_v5 = vld [vmem:[%s15235_s1 + $0x14b0] ss:$8 sps:$4 sm:$0xff]  }
  0xb7   :  { %7135 = vmatpush1.bf16.msra.mxu1 %v10071_v6  ;;  %v10167_v6 = vld [vmem:[%s15235_s1 + $0x3c4] ss:$8 sps:$4 sm:$0xff]  }
  0xb8   :  { %7832 = vmatpush1.bf16.msra.mxu0 %v10074_v7  ;;  %7136 = vmatprep.subr.bf16.mxu1 %v10079_v8  ;;  %v10170_v7 = vld [vmem:[%s15235_s1 + $0x14c4] ss:$8 sps:$4 sm:$0xff]   ;;  %v10165_v8 = vld [vmem:[%s15235_s1 + $0x3c0] ss:$8 sps:$4 sm:$0xff]  }
  0xb9   :  { %7833 = vmatprep.subr.bf16.mxu0 %v10082_v9  ;;  %v10168_v9 = vld [vmem:[%s15235_s1 + $0x14c0] ss:$8 sps:$4 sm:$0xff]  }
  0xbb   :  { %7137 = vmatpush1.bf16.msra.mxu1 %v10077_v10  ;;  %v10173_v10 = vld [vmem:[%s15235_s1 + $0x3d4] ss:$8 sps:$4 sm:$0xff]  }
  0xbc   :  { %7834 = vmatpush1.bf16.msra.mxu0 %v10080_v11  ;;  %7138 = vmatprep.subr.bf16.mxu1 %v10085_v12  ;;  %v10176_v11 = vld [vmem:[%s15235_s1 + $0x14d4] ss:$8 sps:$4 sm:$0xff]   ;;  %v10171_v12 = vld [vmem:[%s15235_s1 + $0x3d0] ss:$8 sps:$4 sm:$0xff]  }
  0xbd   :  { %7835 = vmatprep.subr.bf16.mxu0 %v10088_v13  ;;  %v10174_v13 = vld [vmem:[%s15235_s1 + $0x14d0] ss:$8 sps:$4 sm:$0xff]  }
  0xbf   :  { %7139 = vmatpush1.bf16.msra.mxu1 %v10083_v14  ;;  %v10179_v14 = vld [vmem:[%s15235_s1 + $0x3e4] ss:$8 sps:$4 sm:$0xff]  }
  0xc0   :  { %7836 = vmatpush1.bf16.msra.mxu0 %v10086_v15  ;;  %7149 = vmatprep.subr.bf16.mxu1 %v10093_v16  ;;  %v10182_v15 = vld [vmem:[%s15235_s1 + $0x14e4] ss:$8 sps:$4 sm:$0xff]   ;;  %v10177_v16 = vld [vmem:[%s15235_s1 + $0x3e0] ss:$8 sps:$4 sm:$0xff]  }
  0xc1   :  { %7846 = vmatprep.subr.bf16.mxu0 %v10098_v17  ;;  %v10180_v17 = vld [vmem:[%s15235_s1 + $0x14e0] ss:$8 sps:$4 sm:$0xff]  }
  0xc2   :  { %7141 = vmatmul.mubr.bf16.vlgmr.msra.gmra.mrb[0].mxu1 %v8471_v22  ;;  %v10183_v22 = vld [vmem:[%s15235_s1 + $0x3f0] ss:$8 sps:$4 sm:$0xff]  }
  0xc3   :  { %7838 = vmatmul.mubr.bf16.vlgmr.msra.gmra.mrb[0].mxu0 %v8505_v23  ;;  %7150 = vmatpush1.bf16.msra.mxu1 %v10091_v19  ;;  %v10185_v19 = vld [vmem:[%s15235_s1 + $0x3f4] ss:$8 sps:$4 sm:$0xff]   ;;  %v10186_v23 = vld [vmem:[%s15235_s1 + $0x14f0] ss:$8 sps:$4 sm:$0xff]  }
  0xc4   :  { %7847 = vmatpush1.bf16.msra.mxu0 %v10096_v21  ;;  %7151 = vmatprep.subr.bf16.mxu1 %v10101_v26  ;;  %v10188_v21 = vld [vmem:[%s15235_s1 + $0x14f4] ss:$8 sps:$4 sm:$0xff]   ;;  %v10193_v26 = vld [vmem:[%s15235_s1 + $0x404] ss:$8 sps:$4 sm:$0xff]  }
  0xc5   :  { %7848 = vmatprep.subr.bf16.mxu0 %v10104_v18  ;;  %7181 = vmatprep.mubr.bf16.mxu1 %v8474_v20  ;;  %v10198_v18 = vld [vmem:[%s15235_s1 + $0x1504] ss:$8 sps:$4 sm:$0xff]  }
  0xc6   :  { %7878 = vmatprep.mubr.bf16.mxu0 %v8508_v27  ;;  %v12396_v20 = vld [vmem:[%s15236_s0 + $0x20] sm:$0xff]  ;;  %v8473_v27 = vcombine.low %v12196_v24, %v12196_v24  ;;  %v10201_v24 = vld [vmem:[%s15235_s1 + $0x414] ss:$8 sps:$4 sm:$0xff]  }
  0xc7   :  { %7152 = vmatpush1.bf16.msra.mxu1 %v10099_v28  ;;  %v8507_v28 = vcombine.low %v12201_v25, %v12201_v25  ;;  %v10204_v25 = vld [vmem:[%s15235_s1 + $0x1514] ss:$8 sps:$4 sm:$0xff]  }
  0xc8   :  { %7849 = vmatpush1.bf16.msra.mxu0 %v10102_v29  ;;  %7153 = vmatprep.subr.bf16.mxu1 %v10107_v30  ;;  %v12405_v29 = vld [vmem:[%s15236_s0 + $0xa8] sm:$0xff] }
  0xc9   :  { %7850 = vmatprep.subr.bf16.mxu0 %v10110_v31  ;;  %v10191_v30 = vld [vmem:[%s15235_s1 + $0x400] ss:$8 sps:$4 sm:$0xff]  }
  0xca   :  { %v10196_v31 = vld [vmem:[%s15235_s1 + $0x1500] ss:$8 sps:$4 sm:$0xff]  }
  0xcb   :  { %7154 = vmatpush1.bf16.msra.mxu1 %v10105_v32  ;;  %v8476_v32 = vcombine.high %v12396_v20, %v12396_v20 }
  0xcc   :  { %7851 = vmatpush1.bf16.msra.mxu0 %v10108_v33  ;;  %7155 = vmatprep.subr.bf16.mxu1 %v10113_v34  ;;  %v8510_v33 = vcombine.high %v12405_v29, %v12405_v29  ;;  %v10199_v34 = vld [vmem:[%s15235_s1 + $0x410] ss:$8 sps:$4 sm:$0xff]  }
  0xcd   :  { %7852 = vmatprep.subr.bf16.mxu0 %v10116_v35  ;;  %v10202_v35 = vld [vmem:[%s15235_s1 + $0x1510] ss:$8 sps:$4 sm:$0xff]  }
  0xcf   :  { %7156 = vmatpush1.bf16.msra.mxu1 %v10111_v36  ;;  %v10207_v36 = vld [vmem:[%s15235_s1 + $0x424] ss:$8 sps:$4 sm:$0xff]  }
  0xd0   :  { %7853 = vmatpush1.bf16.msra.mxu0 %v10114_v37  ;;  %7157 = vmatprep.subr.bf16.mxu1 %v10119_v38  ;;  %v10210_v37 = vld [vmem:[%s15235_s1 + $0x1524] ss:$8 sps:$4 sm:$0xff]   ;;  %v10205_v38 = vld [vmem:[%s15235_s1 + $0x420] ss:$8 sps:$4 sm:$0xff]  }
  0xd1   :  { %7854 = vmatprep.subr.bf16.mxu0 %v10122_v39  ;;  %v10208_v39 = vld [vmem:[%s15235_s1 + $0x1520] ss:$8 sps:$4 sm:$0xff]  }
  0xd3   :  { %7158 = vmatpush1.bf16.msra.mxu1 %v10117_v40  ;;  %v10213_v40 = vld [vmem:[%s15235_s1 + $0x434] ss:$8 sps:$4 sm:$0xff]  }
  0xd4   :  { %7855 = vmatpush1.bf16.msra.mxu0 %v10120_v41  ;;  %7159 = vmatprep.subr.bf16.mxu1 %v10125_v42  ;;  %v10216_v41 = vld [vmem:[%s15235_s1 + $0x1534] ss:$8 sps:$4 sm:$0xff]   ;;  %v10211_v42 = vld [vmem:[%s15235_s1 + $0x430] ss:$8 sps:$4 sm:$0xff]  }
  0xd5   :  { %7856 = vmatprep.subr.bf16.mxu0 %v10128_v43  ;;  %v10214_v43 = vld [vmem:[%s15235_s1 + $0x1530] ss:$8 sps:$4 sm:$0xff]  }
  0xd7   :  { %7160 = vmatpush1.bf16.msra.mxu1 %v10123_v44  ;;  %v10219_v44 = vld [vmem:[%s15235_s1 + $0x444] ss:$8 sps:$4 sm:$0xff]  }
  0xd8   :  { %7857 = vmatpush1.bf16.msra.mxu0 %v10126_v45  ;;  %7161 = vmatprep.subr.bf16.mxu1 %v10131_v46  ;;  %v10222_v45 = vld [vmem:[%s15235_s1 + $0x1544] ss:$8 sps:$4 sm:$0xff]   ;;  %v10217_v46 = vld [vmem:[%s15235_s1 + $0x440] ss:$8 sps:$4 sm:$0xff]  }
  0xd9   :  { %7858 = vmatprep.subr.bf16.mxu0 %v10134_v47  ;;  %v10220_v47 = vld [vmem:[%s15235_s1 + $0x1540] ss:$8 sps:$4 sm:$0xff]  }
  0xdb   :  { %7162 = vmatpush1.bf16.msra.mxu1 %v10129_v48  ;;  %v10225_v48 = vld [vmem:[%s15235_s1 + $0x454] ss:$8 sps:$4 sm:$0xff]  }
  0xdc   :  { %7859 = vmatpush1.bf16.msra.mxu0 %v10132_v49  ;;  %7163 = vmatprep.subr.bf16.mxu1 %v10137_v50  ;;  %v10228_v49 = vld [vmem:[%s15235_s1 + $0x1554] ss:$8 sps:$4 sm:$0xff]   ;;  %v10223_v50 = vld [vmem:[%s15235_s1 + $0x450] ss:$8 sps:$4 sm:$0xff]  }
  0xdd   :  { %7860 = vmatprep.subr.bf16.mxu0 %v10140_v51  ;;  %v10226_v51 = vld [vmem:[%s15235_s1 + $0x1550] ss:$8 sps:$4 sm:$0xff]  }
  0xdf   :  { %7164 = vmatpush1.bf16.msra.mxu1 %v10135_v52  ;;  %v10231_v52 = vld [vmem:[%s15235_s1 + $0x464] ss:$8 sps:$4 sm:$0xff]  }
  0xe0   :  { %7861 = vmatpush1.bf16.msra.mxu0 %v10138_v53  ;;  %7165 = vmatprep.subr.bf16.mxu1 %v10143_v54  ;;  %v10234_v53 = vld [vmem:[%s15235_s1 + $0x1564] ss:$8 sps:$4 sm:$0xff]   ;;  %v10229_v54 = vld [vmem:[%s15235_s1 + $0x460] ss:$8 sps:$4 sm:$0xff]  }
  0xe1   :  { %7862 = vmatprep.subr.bf16.mxu0 %v10146_v55  ;;  %v10232_v55 = vld [vmem:[%s15235_s1 + $0x1560] ss:$8 sps:$4 sm:$0xff]  }
  0xe3   :  { %7166 = vmatpush1.bf16.msra.mxu1 %v10141_v56  ;;  %v10237_v56 = vld [vmem:[%s15235_s1 + $0x474] ss:$8 sps:$4 sm:$0xff]  }
  0xe4   :  { %7863 = vmatpush1.bf16.msra.mxu0 %v10144_v57  ;;  %7167 = vmatprep.subr.bf16.mxu1 %v10149_v58  ;;  %v10240_v57 = vld [vmem:[%s15235_s1 + $0x1574] ss:$8 sps:$4 sm:$0xff]   ;;  %v10235_v58 = vld [vmem:[%s15235_s1 + $0x470] ss:$8 sps:$4 sm:$0xff]  }
  0xe5   :  { %7864 = vmatprep.subr.bf16.mxu0 %v10152_v59  ;;  %v10238_v59 = vld [vmem:[%s15235_s1 + $0x1570] ss:$8 sps:$4 sm:$0xff]  }
  0xe7   :  { %7168 = vmatpush1.bf16.msra.mxu1 %v10147_v60  ;;  %v10243_v60 = vld [vmem:[%s15235_s1 + $0x484] ss:$8 sps:$4 sm:$0xff]  }
  0xe8   :  { %7865 = vmatpush1.bf16.msra.mxu0 %v10150_v61  ;;  %7169 = vmatprep.subr.bf16.mxu1 %v10155_v62  ;;  %v10246_v61 = vld [vmem:[%s15235_s1 + $0x1584] ss:$8 sps:$4 sm:$0xff]   ;;  %v10241_v62 = vld [vmem:[%s15235_s1 + $0x480] ss:$8 sps:$4 sm:$0xff]  }
  0xe9   :  { %7866 = vmatprep.subr.bf16.mxu0 %v10158_v63  ;;  %v10244_v63 = vld [vmem:[%s15235_s1 + $0x1580] ss:$8 sps:$4 sm:$0xff]  }
  0xeb   :  { %7170 = vmatpush1.bf16.msra.mxu1 %v10153_v0  ;;  %v10249_v0 = vld [vmem:[%s15235_s1 + $0x494] ss:$8 sps:$4 sm:$0xff]  }
  0xec   :  { %7867 = vmatpush1.bf16.msra.mxu0 %v10156_v1  ;;  %7171 = vmatprep.subr.bf16.mxu1 %v10161_v2  ;;  %v10252_v1 = vld [vmem:[%s15235_s1 + $0x1594] ss:$8 sps:$4 sm:$0xff]   ;;  %v10247_v2 = vld [vmem:[%s15235_s1 + $0x490] ss:$8 sps:$4 sm:$0xff]  }
  0xed   :  { %7868 = vmatprep.subr.bf16.mxu0 %v10164_v3  ;;  %v10250_v3 = vld [vmem:[%s15235_s1 + $0x1590] ss:$8 sps:$4 sm:$0xff]  }
  0xef   :  { %7172 = vmatpush1.bf16.msra.mxu1 %v10159_v4  ;;  %v10255_v4 = vld [vmem:[%s15235_s1 + $0x4a4] ss:$8 sps:$4 sm:$0xff]  }
  0xf0   :  { %7869 = vmatpush1.bf16.msra.mxu0 %v10162_v5  ;;  %7173 = vmatprep.subr.bf16.mxu1 %v10167_v6  ;;  %v10258_v5 = vld [vmem:[%s15235_s1 + $0x15a4] ss:$8 sps:$4 sm:$0xff]   ;;  %v10253_v6 = vld [vmem:[%s15235_s1 + $0x4a0] ss:$8 sps:$4 sm:$0xff]  }
  0xf1   :  { %7870 = vmatprep.subr.bf16.mxu0 %v10170_v7  ;;  %v10256_v7 = vld [vmem:[%s15235_s1 + $0x15a0] ss:$8 sps:$4 sm:$0xff]  }
  0xf3   :  { %7174 = vmatpush1.bf16.msra.mxu1 %v10165_v8  ;;  %v10261_v8 = vld [vmem:[%s15235_s1 + $0x4b4] ss:$8 sps:$4 sm:$0xff]  }
  0xf4   :  { %7871 = vmatpush1.bf16.msra.mxu0 %v10168_v9  ;;  %7175 = vmatprep.subr.bf16.mxu1 %v10173_v10  ;;  %v10264_v9 = vld [vmem:[%s15235_s1 + $0x15b4] ss:$8 sps:$4 sm:$0xff]   ;;  %v10259_v10 = vld [vmem:[%s15235_s1 + $0x4b0] ss:$8 sps:$4 sm:$0xff]  }
  0xf5   :  { %7872 = vmatprep.subr.bf16.mxu0 %v10176_v11  ;;  %v10262_v11 = vld [vmem:[%s15235_s1 + $0x15b0] ss:$8 sps:$4 sm:$0xff]  }
  0xf7   :  { %7176 = vmatpush1.bf16.msra.mxu1 %v10171_v12  ;;  %v10267_v12 = vld [vmem:[%s15235_s1 + $0x4c4] ss:$8 sps:$4 sm:$0xff]  }
  0xf8   :  { %7873 = vmatpush1.bf16.msra.mxu0 %v10174_v13  ;;  %7177 = vmatprep.subr.bf16.mxu1 %v10179_v14  ;;  %v10270_v13 = vld [vmem:[%s15235_s1 + $0x15c4] ss:$8 sps:$4 sm:$0xff]   ;;  %v10265_v14 = vld [vmem:[%s15235_s1 + $0x4c0] ss:$8 sps:$4 sm:$0xff]  }
  0xf9   :  { %7874 = vmatprep.subr.bf16.mxu0 %v10182_v15  ;;  %v10268_v15 = vld [vmem:[%s15235_s1 + $0x15c0] ss:$8 sps:$4 sm:$0xff]  }
  0xfb   :  { %7178 = vmatpush1.bf16.msra.mxu1 %v10177_v16  ;;  %v10273_v16 = vld [vmem:[%s15235_s1 + $0x4d4] ss:$8 sps:$4 sm:$0xff]  }
  0xfc   :  { %7875 = vmatpush1.bf16.msra.mxu0 %v10180_v17  ;;  %7179 = vmatprep.subr.bf16.mxu1 %v10185_v19  ;;  %v10276_v17 = vld [vmem:[%s15235_s1 + $0x15d4] ss:$8 sps:$4 sm:$0xff]   ;;  %v10271_v19 = vld [vmem:[%s15235_s1 + $0x4d0] ss:$8 sps:$4 sm:$0xff]  }
  0xfd   :  { %7876 = vmatprep.subr.bf16.mxu0 %v10188_v21  ;;  %v10274_v21 = vld [vmem:[%s15235_s1 + $0x15d0] ss:$8 sps:$4 sm:$0xff]  }
  0xff   :  { %7180 = vmatpush1.bf16.msra.mxu1 %v10183_v22  ;;  %v10279_v22 = vld [vmem:[%s15235_s1 + $0x4e4] ss:$8 sps:$4 sm:$0xff]  }
 0x100   :  { %7877 = vmatpush1.bf16.msra.mxu0 %v10186_v23  ;;  %7190 = vmatprep.subr.bf16.mxu1 %v10193_v26  ;;  %v10282_v23 = vld [vmem:[%s15235_s1 + $0x15e4] ss:$8 sps:$4 sm:$0xff]   ;;  %v10277_v26 = vld [vmem:[%s15235_s1 + $0x4e0] ss:$8 sps:$4 sm:$0xff]  }
 0x101   :  { %7887 = vmatprep.subr.bf16.mxu0 %v10198_v18  ;;  %v10280_v18 = vld [vmem:[%s15235_s1 + $0x15e0] ss:$8 sps:$4 sm:$0xff]  }
 0x102   :  { %7182 = vmatmul.mubr.bf16.vlgmr.msra.gmra.mrb[0].mxu1 %v8473_v27  ;;  %v10285_v27 = vld [vmem:[%s15235_s1 + $0x4f4] ss:$8 sps:$4 sm:$0xff]  }
 0x103   :  { %7879 = vmatmul.mubr.bf16.vlgmr.msra.gmra.mrb[0].mxu0 %v8507_v28  ;;  %7191 = vmatpush1.bf16.msra.mxu1 %v10191_v30  ;;  %v10288_v28 = vld [vmem:[%s15235_s1 + $0x15f4] ss:$8 sps:$4 sm:$0xff]   ;;  %v10283_v30 = vld [vmem:[%s15235_s1 + $0x4f0] ss:$8 sps:$4 sm:$0xff]  }
 0x104   :  { %7888 = vmatpush1.bf16.msra.mxu0 %v10196_v31  ;;  %7192 = vmatprep.subr.bf16.mxu1 %v10201_v24  ;;  %v10286_v31 = vld [vmem:[%s15235_s1 + $0x15f0] ss:$8 sps:$4 sm:$0xff]   ;;  %v10293_v24 = vld [vmem:[%s15235_s1 + $0x504] ss:$8 sps:$4 sm:$0xff]  }
 0x105   :  { %7889 = vmatprep.subr.bf16.mxu0 %v10204_v25  ;;  %7222 = vmatprep.mubr.bf16.mxu1 %v8476_v32  ;;  %v10298_v25 = vld [vmem:[%s15235_s1 + $0x1604] ss:$8 sps:$4 sm:$0xff]  }
 0x106   :  { %7919 = vmatprep.mubr.bf16.mxu0 %v8510_v33  ;;  %v12606_v32 = vld [vmem:[%s15236_s0 + $0x28] sm:$0xff]  ;;  %v12611_v33 = vld [vmem:[%s15236_s0 + $0xb0] sm:$0xff] }
 0x107   :  { %7193 = vmatpush1.bf16.msra.mxu1 %v10199_v34  ;;  %v8475_v34 = vcombine.low %v12396_v20, %v12396_v20  ;;  %v10304_v20 = vld [vmem:[%s15235_s1 + $0x1614] ss:$8 sps:$4 sm:$0xff]  }
 0x108   :  { %7890 = vmatpush1.bf16.msra.mxu0 %v10202_v35  ;;  %7194 = vmatprep.subr.bf16.mxu1 %v10207_v36  ;;  %v8509_v35 = vcombine.low %v12405_v29, %v12405_v29  ;;  %v10291_v36 = vld [vmem:[%s15235_s1 + $0x500] ss:$8 sps:$4 sm:$0xff]   ;;  %v8478_v29 = vcombine.high %v12606_v32, %v12606_v32 }
 0x109   :  { %7891 = vmatprep.subr.bf16.mxu0 %v10210_v37  ;;  %v10296_v37 = vld [vmem:[%s15235_s1 + $0x1600] ss:$8 sps:$4 sm:$0xff]  }
 0x10b   :  { %7195 = vmatpush1.bf16.msra.mxu1 %v10205_v38  ;;  %v10301_v38 = vld [vmem:[%s15235_s1 + $0x514] ss:$8 sps:$4 sm:$0xff]  }
 0x10c   :  { %7892 = vmatpush1.bf16.msra.mxu0 %v10208_v39  ;;  %7196 = vmatprep.subr.bf16.mxu1 %v10213_v40  ;;  %v8512_v39 = vcombine.high %v12611_v33, %v12611_v33  ;;  %v10299_v40 = vld [vmem:[%s15235_s1 + $0x510] ss:$8 sps:$4 sm:$0xff]  }
 0x10d   :  { %7893 = vmatprep.subr.bf16.mxu0 %v10216_v41  ;;  %v10302_v41 = vld [vmem:[%s15235_s1 + $0x1610] ss:$8 sps:$4 sm:$0xff]  }
 0x10f   :  { %7197 = vmatpush1.bf16.msra.mxu1 %v10211_v42  ;;  %v10307_v42 = vld [vmem:[%s15235_s1 + $0x524] ss:$8 sps:$4 sm:$0xff]  }
 0x110   :  { %7894 = vmatpush1.bf16.msra.mxu0 %v10214_v43  ;;  %7198 = vmatprep.subr.bf16.mxu1 %v10219_v44  ;;  %v10310_v43 = vld [vmem:[%s15235_s1 + $0x1624] ss:$8 sps:$4 sm:$0xff]   ;;  %v10305_v44 = vld [vmem:[%s15235_s1 + $0x520] ss:$8 sps:$4 sm:$0xff]  }
 0x111   :  { %7895 = vmatprep.subr.bf16.mxu0 %v10222_v45  ;;  %v10308_v45 = vld [vmem:[%s15235_s1 + $0x1620] ss:$8 sps:$4 sm:$0xff]  }
 0x113   :  { %7199 = vmatpush1.bf16.msra.mxu1 %v10217_v46  ;;  %v10313_v46 = vld [vmem:[%s15235_s1 + $0x534] ss:$8 sps:$4 sm:$0xff]  }
 0x114   :  { %7896 = vmatpush1.bf16.msra.mxu0 %v10220_v47  ;;  %7200 = vmatprep.subr.bf16.mxu1 %v10225_v48  ;;  %v10316_v47 = vld [vmem:[%s15235_s1 + $0x1634] ss:$8 sps:$4 sm:$0xff]   ;;  %v10311_v48 = vld [vmem:[%s15235_s1 + $0x530] ss:$8 sps:$4 sm:$0xff]  }
 0x115   :  { %7897 = vmatprep.subr.bf16.mxu0 %v10228_v49  ;;  %v10314_v49 = vld [vmem:[%s15235_s1 + $0x1630] ss:$8 sps:$4 sm:$0xff]  }
 0x117   :  { %7201 = vmatpush1.bf16.msra.mxu1 %v10223_v50  ;;  %v10319_v50 = vld [vmem:[%s15235_s1 + $0x544] ss:$8 sps:$4 sm:$0xff]  }
 0x118   :  { %7898 = vmatpush1.bf16.msra.mxu0 %v10226_v51  ;;  %7202 = vmatprep.subr.bf16.mxu1 %v10231_v52  ;;  %v10322_v51 = vld [vmem:[%s15235_s1 + $0x1644] ss:$8 sps:$4 sm:$0xff]   ;;  %v10317_v52 = vld [vmem:[%s15235_s1 + $0x540] ss:$8 sps:$4 sm:$0xff]  }
 0x119   :  { %7899 = vmatprep.subr.bf16.mxu0 %v10234_v53  ;;  %v10320_v53 = vld [vmem:[%s15235_s1 + $0x1640] ss:$8 sps:$4 sm:$0xff]  }
 0x11b   :  { %7203 = vmatpush1.bf16.msra.mxu1 %v10229_v54  ;;  %v10325_v54 = vld [vmem:[%s15235_s1 + $0x554] ss:$8 sps:$4 sm:$0xff]  }
 0x11c   :  { %7900 = vmatpush1.bf16.msra.mxu0 %v10232_v55  ;;  %7204 = vmatprep.subr.bf16.mxu1 %v10237_v56  ;;  %v10328_v55 = vld [vmem:[%s15235_s1 + $0x1654] ss:$8 sps:$4 sm:$0xff]   ;;  %v10323_v56 = vld [vmem:[%s15235_s1 + $0x550] ss:$8 sps:$4 sm:$0xff]  }
 0x11d   :  { %7901 = vmatprep.subr.bf16.mxu0 %v10240_v57  ;;  %v10326_v57 = vld [vmem:[%s15235_s1 + $0x1650] ss:$8 sps:$4 sm:$0xff]  }
 0x11f   :  { %7205 = vmatpush1.bf16.msra.mxu1 %v10235_v58  ;;  %v10331_v58 = vld [vmem:[%s15235_s1 + $0x564] ss:$8 sps:$4 sm:$0xff]  }
 0x120   :  { %7902 = vmatpush1.bf16.msra.mxu0 %v10238_v59  ;;  %7206 = vmatprep.subr.bf16.mxu1 %v10243_v60  ;;  %v10334_v59 = vld [vmem:[%s15235_s1 + $0x1664] ss:$8 sps:$4 sm:$0xff]   ;;  %v10329_v60 = vld [vmem:[%s15235_s1 + $0x560] ss:$8 sps:$4 sm:$0xff]  }
 0x121   :  { %7903 = vmatprep.subr.bf16.mxu0 %v10246_v61  ;;  %v10332_v61 = vld [vmem:[%s15235_s1 + $0x1660] ss:$8 sps:$4 sm:$0xff]  }
 0x123   :  { %7207 = vmatpush1.bf16.msra.mxu1 %v10241_v62  ;;  %v10337_v62 = vld [vmem:[%s15235_s1 + $0x574] ss:$8 sps:$4 sm:$0xff]  }
 0x124   :  { %7904 = vmatpush1.bf16.msra.mxu0 %v10244_v63  ;;  %7208 = vmatprep.subr.bf16.mxu1 %v10249_v0  ;;  %v10340_v63 = vld [vmem:[%s15235_s1 + $0x1674] ss:$8 sps:$4 sm:$0xff]   ;;  %v10335_v0 = vld [vmem:[%s15235_s1 + $0x570] ss:$8 sps:$4 sm:$0xff]  }
 0x125   :  { %7905 = vmatprep.subr.bf16.mxu0 %v10252_v1  ;;  %v10338_v1 = vld [vmem:[%s15235_s1 + $0x1670] ss:$8 sps:$4 sm:$0xff]  }
 0x127   :  { %7209 = vmatpush1.bf16.msra.mxu1 %v10247_v2  ;;  %v10343_v2 = vld [vmem:[%s15235_s1 + $0x584] ss:$8 sps:$4 sm:$0xff]  }
 0x128   :  { %7906 = vmatpush1.bf16.msra.mxu0 %v10250_v3  ;;  %7210 = vmatprep.subr.bf16.mxu1 %v10255_v4  ;;  %v10346_v3 = vld [vmem:[%s15235_s1 + $0x1684] ss:$8 sps:$4 sm:$0xff]   ;;  %v10341_v4 = vld [vmem:[%s15235_s1 + $0x580] ss:$8 sps:$4 sm:$0xff]  }
 0x129   :  { %7907 = vmatprep.subr.bf16.mxu0 %v10258_v5  ;;  %v10344_v5 = vld [vmem:[%s15235_s1 + $0x1680] ss:$8 sps:$4 sm:$0xff]  }
 0x12b   :  { %7211 = vmatpush1.bf16.msra.mxu1 %v10253_v6  ;;  %v10349_v6 = vld [vmem:[%s15235_s1 + $0x594] ss:$8 sps:$4 sm:$0xff]  }
 0x12c   :  { %7908 = vmatpush1.bf16.msra.mxu0 %v10256_v7  ;;  %7212 = vmatprep.subr.bf16.mxu1 %v10261_v8  ;;  %v10352_v7 = vld [vmem:[%s15235_s1 + $0x1694] ss:$8 sps:$4 sm:$0xff]   ;;  %v10347_v8 = vld [vmem:[%s15235_s1 + $0x590] ss:$8 sps:$4 sm:$0xff]  }
 0x12d   :  { %7909 = vmatprep.subr.bf16.mxu0 %v10264_v9  ;;  %v10350_v9 = vld [vmem:[%s15235_s1 + $0x1690] ss:$8 sps:$4 sm:$0xff]  }
 0x12f   :  { %7213 = vmatpush1.bf16.msra.mxu1 %v10259_v10  ;;  %v10355_v10 = vld [vmem:[%s15235_s1 + $0x5a4] ss:$8 sps:$4 sm:$0xff]  }
 0x130   :  { %7910 = vmatpush1.bf16.msra.mxu0 %v10262_v11  ;;  %7214 = vmatprep.subr.bf16.mxu1 %v10267_v12  ;;  %v10358_v11 = vld [vmem:[%s15235_s1 + $0x16a4] ss:$8 sps:$4 sm:$0xff]   ;;  %v10353_v12 = vld [vmem:[%s15235_s1 + $0x5a0] ss:$8 sps:$4 sm:$0xff]  }
 0x131   :  { %7911 = vmatprep.subr.bf16.mxu0 %v10270_v13  ;;  %v10356_v13 = vld [vmem:[%s15235_s1 + $0x16a0] ss:$8 sps:$4 sm:$0xff]  }
 0x133   :  { %7215 = vmatpush1.bf16.msra.mxu1 %v10265_v14  ;;  %v10361_v14 = vld [vmem:[%s15235_s1 + $0x5b4] ss:$8 sps:$4 sm:$0xff]  }
 0x134   :  { %7912 = vmatpush1.bf16.msra.mxu0 %v10268_v15  ;;  %7216 = vmatprep.subr.bf16.mxu1 %v10273_v16  ;;  %v10364_v15 = vld [vmem:[%s15235_s1 + $0x16b4] ss:$8 sps:$4 sm:$0xff]   ;;  %v10359_v16 = vld [vmem:[%s15235_s1 + $0x5b0] ss:$8 sps:$4 sm:$0xff]  }
 0x135   :  { %7913 = vmatprep.subr.bf16.mxu0 %v10276_v17  ;;  %v10362_v17 = vld [vmem:[%s15235_s1 + $0x16b0] ss:$8 sps:$4 sm:$0xff]  }
 0x137   :  { %7217 = vmatpush1.bf16.msra.mxu1 %v10271_v19  ;;  %v10367_v19 = vld [vmem:[%s15235_s1 + $0x5c4] ss:$8 sps:$4 sm:$0xff]  }
 0x138   :  { %7914 = vmatpush1.bf16.msra.mxu0 %v10274_v21  ;;  %7218 = vmatprep.subr.bf16.mxu1 %v10279_v22  ;;  %v10370_v21 = vld [vmem:[%s15235_s1 + $0x16c4] ss:$8 sps:$4 sm:$0xff]   ;;  %v10365_v22 = vld [vmem:[%s15235_s1 + $0x5c0] ss:$8 sps:$4 sm:$0xff]  }
 0x139   :  { %7915 = vmatprep.subr.bf16.mxu0 %v10282_v23  ;;  %v10368_v23 = vld [vmem:[%s15235_s1 + $0x16c0] ss:$8 sps:$4 sm:$0xff]  }
 0x13b   :  { %7219 = vmatpush1.bf16.msra.mxu1 %v10277_v26  ;;  %v10373_v26 = vld [vmem:[%s15235_s1 + $0x5d4] ss:$8 sps:$4 sm:$0xff]  }
 0x13c   :  { %7916 = vmatpush1.bf16.msra.mxu0 %v10280_v18  ;;  %7220 = vmatprep.subr.bf16.mxu1 %v10285_v27  ;;  %v10376_v18 = vld [vmem:[%s15235_s1 + $0x16d4] ss:$8 sps:$4 sm:$0xff]   ;;  %v10371_v27 = vld [vmem:[%s15235_s1 + $0x5d0] ss:$8 sps:$4 sm:$0xff]  }
 0x13d   :  { %7917 = vmatprep.subr.bf16.mxu0 %v10288_v28  ;;  %v10374_v28 = vld [vmem:[%s15235_s1 + $0x16d0] ss:$8 sps:$4 sm:$0xff]  }
 0x13f   :  { %7221 = vmatpush1.bf16.msra.mxu1 %v10283_v30  ;;  %v10379_v30 = vld [vmem:[%s15235_s1 + $0x5e4] ss:$8 sps:$4 sm:$0xff]  }
 0x140   :  { %7918 = vmatpush1.bf16.msra.mxu0 %v10286_v31  ;;  %7231 = vmatprep.subr.bf16.mxu1 %v10293_v24  ;;  %v10382_v31 = vld [vmem:[%s15235_s1 + $0x16e4] ss:$8 sps:$4 sm:$0xff]   ;;  %v10377_v24 = vld [vmem:[%s15235_s1 + $0x5e0] ss:$8 sps:$4 sm:$0xff]  }
 0x141   :  { %7928 = vmatprep.subr.bf16.mxu0 %v10298_v25  ;;  %v10380_v25 = vld [vmem:[%s15235_s1 + $0x16e0] ss:$8 sps:$4 sm:$0xff]  }
 0x142   :  { %7223 = vmatmul.mubr.bf16.vlgmr.msra.gmra.mrb[0].mxu1 %v8475_v34  ;;  %v10385_v34 = vld [vmem:[%s15235_s1 + $0x5f4] ss:$8 sps:$4 sm:$0xff]  }
 0x143   :  { %7920 = vmatmul.mubr.bf16.vlgmr.msra.gmra.mrb[0].mxu0 %v8509_v35  ;;  %7232 = vmatpush1.bf16.msra.mxu1 %v10291_v36  ;;  %v10388_v35 = vld [vmem:[%s15235_s1 + $0x16f4] ss:$8 sps:$4 sm:$0xff]   ;;  %v10383_v36 = vld [vmem:[%s15235_s1 + $0x5f0] ss:$8 sps:$4 sm:$0xff]  }
 0x144   :  { %7929 = vmatpush1.bf16.msra.mxu0 %v10296_v37  ;;  %7233 = vmatprep.subr.bf16.mxu1 %v10301_v38  ;;  %v10386_v37 = vld [vmem:[%s15235_s1 + $0x16f0] ss:$8 sps:$4 sm:$0xff]   ;;  %v10393_v38 = vld [vmem:[%s15235_s1 + $0x604] ss:$8 sps:$4 sm:$0xff]  }
 0x145   :  { %7930 = vmatprep.subr.bf16.mxu0 %v10304_v20  ;;  %7263 = vmatprep.mubr.bf16.mxu1 %v8478_v29  ;;  %v10398_v20 = vld [vmem:[%s15235_s1 + $0x1704] ss:$8 sps:$4 sm:$0xff]   ;;  %v12816_v29 = vld [vmem:[%s15236_s0 + $0x30] sm:$0xff] }
 0x146   :  { %7960 = vmatprep.mubr.bf16.mxu0 %v8512_v39  ;;  %v12821_v39 = vld [vmem:[%s15236_s0 + $0xb8] sm:$0xff] }
 0x147   :  { %7234 = vmatpush1.bf16.msra.mxu1 %v10299_v40  ;;  %v8477_v40 = vcombine.low %v12606_v32, %v12606_v32  ;;  %v10404_v32 = vld [vmem:[%s15235_s1 + $0x1714] ss:$8 sps:$4 sm:$0xff]  }
 0x148   :  { %7931 = vmatpush1.bf16.msra.mxu0 %v10302_v41  ;;  %7235 = vmatprep.subr.bf16.mxu1 %v10307_v42  ;;  %v8511_v41 = vcombine.low %v12611_v33, %v12611_v33  ;;  %v10391_v42 = vld [vmem:[%s15235_s1 + $0x600] ss:$8 sps:$4 sm:$0xff]   ;;  %v8480_v33 = vcombine.high %v12816_v29, %v12816_v29 }
 0x149   :  { %7932 = vmatprep.subr.bf16.mxu0 %v10310_v43  ;;  %v10396_v43 = vld [vmem:[%s15235_s1 + $0x1700] ss:$8 sps:$4 sm:$0xff]  }
 0x14b   :  { %7236 = vmatpush1.bf16.msra.mxu1 %v10305_v44  ;;  %v10401_v44 = vld [vmem:[%s15235_s1 + $0x614] ss:$8 sps:$4 sm:$0xff]  }
 0x14c   :  { %7933 = vmatpush1.bf16.msra.mxu0 %v10308_v45  ;;  %7237 = vmatprep.subr.bf16.mxu1 %v10313_v46  ;;  %v8514_v45 = vcombine.high %v12821_v39, %v12821_v39  ;;  %v10399_v46 = vld [vmem:[%s15235_s1 + $0x610] ss:$8 sps:$4 sm:$0xff]  }
 0x14d   :  { %7934 = vmatprep.subr.bf16.mxu0 %v10316_v47  ;;  %v10402_v47 = vld [vmem:[%s15235_s1 + $0x1710] ss:$8 sps:$4 sm:$0xff]  }
 0x14f   :  { %7238 = vmatpush1.bf16.msra.mxu1 %v10311_v48  ;;  %v10407_v48 = vld [vmem:[%s15235_s1 + $0x624] ss:$8 sps:$4 sm:$0xff]  }
 0x150   :  { %7935 = vmatpush1.bf16.msra.mxu0 %v10314_v49  ;;  %7239 = vmatprep.subr.bf16.mxu1 %v10319_v50  ;;  %v10410_v49 = vld [vmem:[%s15235_s1 + $0x1724] ss:$8 sps:$4 sm:$0xff]   ;;  %v10405_v50 = vld [vmem:[%s15235_s1 + $0x620] ss:$8 sps:$4 sm:$0xff]  }
 0x151   :  { %7936 = vmatprep.subr.bf16.mxu0 %v10322_v51  ;;  %v10408_v51 = vld [vmem:[%s15235_s1 + $0x1720] ss:$8 sps:$4 sm:$0xff]  }
 0x153   :  { %7240 = vmatpush1.bf16.msra.mxu1 %v10317_v52  ;;  %v10413_v52 = vld [vmem:[%s15235_s1 + $0x634] ss:$8 sps:$4 sm:$0xff]  }
 0x154   :  { %7937 = vmatpush1.bf16.msra.mxu0 %v10320_v53  ;;  %7241 = vmatprep.subr.bf16.mxu1 %v10325_v54  ;;  %v10416_v53 = vld [vmem:[%s15235_s1 + $0x1734] ss:$8 sps:$4 sm:$0xff]   ;;  %v10411_v54 = vld [vmem:[%s15235_s1 + $0x630] ss:$8 sps:$4 sm:$0xff]  }
 0x155   :  { %7938 = vmatprep.subr.bf16.mxu0 %v10328_v55  ;;  %v10414_v55 = vld [vmem:[%s15235_s1 + $0x1730] ss:$8 sps:$4 sm:$0xff]  }
 0x157   :  { %7242 = vmatpush1.bf16.msra.mxu1 %v10323_v56  ;;  %v10419_v56 = vld [vmem:[%s15235_s1 + $0x644] ss:$8 sps:$4 sm:$0xff]  }
 0x158   :  { %7939 = vmatpush1.bf16.msra.mxu0 %v10326_v57  ;;  %7243 = vmatprep.subr.bf16.mxu1 %v10331_v58  ;;  %v10422_v57 = vld [vmem:[%s15235_s1 + $0x1744] ss:$8 sps:$4 sm:$0xff]   ;;  %v10417_v58 = vld [vmem:[%s15235_s1 + $0x640] ss:$8 sps:$4 sm:$0xff]  }
 0x159   :  { %7940 = vmatprep.subr.bf16.mxu0 %v10334_v59  ;;  %v10420_v59 = vld [vmem:[%s15235_s1 + $0x1740] ss:$8 sps:$4 sm:$0xff]  }
 0x15b   :  { %7244 = vmatpush1.bf16.msra.mxu1 %v10329_v60  ;;  %v10425_v60 = vld [vmem:[%s15235_s1 + $0x654] ss:$8 sps:$4 sm:$0xff]  }
 0x15c   :  { %7941 = vmatpush1.bf16.msra.mxu0 %v10332_v61  ;;  %7245 = vmatprep.subr.bf16.mxu1 %v10337_v62  ;;  %v10428_v61 = vld [vmem:[%s15235_s1 + $0x1754] ss:$8 sps:$4 sm:$0xff]   ;;  %v10423_v62 = vld [vmem:[%s15235_s1 + $0x650] ss:$8 sps:$4 sm:$0xff]  }
 0x15d   :  { %7942 = vmatprep.subr.bf16.mxu0 %v10340_v63  ;;  %v10426_v63 = vld [vmem:[%s15235_s1 + $0x1750] ss:$8 sps:$4 sm:$0xff]  }
 0x15f   :  { %7246 = vmatpush1.bf16.msra.mxu1 %v10335_v0  ;;  %v10431_v0 = vld [vmem:[%s15235_s1 + $0x664] ss:$8 sps:$4 sm:$0xff]  }
 0x160   :  { %7943 = vmatpush1.bf16.msra.mxu0 %v10338_v1  ;;  %7247 = vmatprep.subr.bf16.mxu1 %v10343_v2  ;;  %v10434_v1 = vld [vmem:[%s15235_s1 + $0x1764] ss:$8 sps:$4 sm:$0xff]   ;;  %v10429_v2 = vld [vmem:[%s15235_s1 + $0x660] ss:$8 sps:$4 sm:$0xff]  }
 0x161   :  { %7944 = vmatprep.subr.bf16.mxu0 %v10346_v3  ;;  %v10432_v3 = vld [vmem:[%s15235_s1 + $0x1760] ss:$8 sps:$4 sm:$0xff]  }
 0x163   :  { %7248 = vmatpush1.bf16.msra.mxu1 %v10341_v4  ;;  %v10437_v4 = vld [vmem:[%s15235_s1 + $0x674] ss:$8 sps:$4 sm:$0xff]  }
 0x164   :  { %7945 = vmatpush1.bf16.msra.mxu0 %v10344_v5  ;;  %7249 = vmatprep.subr.bf16.mxu1 %v10349_v6  ;;  %v10440_v5 = vld [vmem:[%s15235_s1 + $0x1774] ss:$8 sps:$4 sm:$0xff]   ;;  %v10435_v6 = vld [vmem:[%s15235_s1 + $0x670] ss:$8 sps:$4 sm:$0xff]  }
 0x165   :  { %7946 = vmatprep.subr.bf16.mxu0 %v10352_v7  ;;  %v10438_v7 = vld [vmem:[%s15235_s1 + $0x1770] ss:$8 sps:$4 sm:$0xff]  }
 0x167   :  { %7250 = vmatpush1.bf16.msra.mxu1 %v10347_v8  ;;  %v10443_v8 = vld [vmem:[%s15235_s1 + $0x684] ss:$8 sps:$4 sm:$0xff]  }
 0x168   :  { %7947 = vmatpush1.bf16.msra.mxu0 %v10350_v9  ;;  %7251 = vmatprep.subr.bf16.mxu1 %v10355_v10  ;;  %v10446_v9 = vld [vmem:[%s15235_s1 + $0x1784] ss:$8 sps:$4 sm:$0xff]   ;;  %v10441_v10 = vld [vmem:[%s15235_s1 + $0x680] ss:$8 sps:$4 sm:$0xff]  }
 0x169   :  { %7948 = vmatprep.subr.bf16.mxu0 %v10358_v11  ;;  %v10444_v11 = vld [vmem:[%s15235_s1 + $0x1780] ss:$8 sps:$4 sm:$0xff]  }
 0x16b   :  { %7252 = vmatpush1.bf16.msra.mxu1 %v10353_v12  ;;  %v10449_v12 = vld [vmem:[%s15235_s1 + $0x694] ss:$8 sps:$4 sm:$0xff]  }
 0x16c   :  { %7949 = vmatpush1.bf16.msra.mxu0 %v10356_v13  ;;  %7253 = vmatprep.subr.bf16.mxu1 %v10361_v14  ;;  %v10452_v13 = vld [vmem:[%s15235_s1 + $0x1794] ss:$8 sps:$4 sm:$0xff]   ;;  %v10447_v14 = vld [vmem:[%s15235_s1 + $0x690] ss:$8 sps:$4 sm:$0xff]  }
 0x16d   :  { %7950 = vmatprep.subr.bf16.mxu0 %v10364_v15  ;;  %v10450_v15 = vld [vmem:[%s15235_s1 + $0x1790] ss:$8 sps:$4 sm:$0xff]  }
 0x16f   :  { %7254 = vmatpush1.bf16.msra.mxu1 %v10359_v16  ;;  %v10455_v16 = vld [vmem:[%s15235_s1 + $0x6a4] ss:$8 sps:$4 sm:$0xff]  }
 0x170   :  { %7951 = vmatpush1.bf16.msra.mxu0 %v10362_v17  ;;  %7255 = vmatprep.subr.bf16.mxu1 %v10367_v19  ;;  %v10458_v17 = vld [vmem:[%s15235_s1 + $0x17a4] ss:$8 sps:$4 sm:$0xff]   ;;  %v10453_v19 = vld [vmem:[%s15235_s1 + $0x6a0] ss:$8 sps:$4 sm:$0xff]  }
 0x171   :  { %7952 = vmatprep.subr.bf16.mxu0 %v10370_v21  ;;  %v10456_v21 = vld [vmem:[%s15235_s1 + $0x17a0] ss:$8 sps:$4 sm:$0xff]  }
 0x173   :  { %7256 = vmatpush1.bf16.msra.mxu1 %v10365_v22  ;;  %v10461_v22 = vld [vmem:[%s15235_s1 + $0x6b4] ss:$8 sps:$4 sm:$0xff]  }
 0x174   :  { %7953 = vmatpush1.bf16.msra.mxu0 %v10368_v23  ;;  %7257 = vmatprep.subr.bf16.mxu1 %v10373_v26  ;;  %v10464_v23 = vld [vmem:[%s15235_s1 + $0x17b4] ss:$8 sps:$4 sm:$0xff]   ;;  %v10459_v26 = vld [vmem:[%s15235_s1 + $0x6b0] ss:$8 sps:$4 sm:$0xff]  }
 0x175   :  { %7954 = vmatprep.subr.bf16.mxu0 %v10376_v18  ;;  %v10462_v18 = vld [vmem:[%s15235_s1 + $0x17b0] ss:$8 sps:$4 sm:$0xff]  }
 0x177   :  { %7258 = vmatpush1.bf16.msra.mxu1 %v10371_v27  ;;  %v10467_v27 = vld [vmem:[%s15235_s1 + $0x6c4] ss:$8 sps:$4 sm:$0xff]  }
 0x178   :  { %7955 = vmatpush1.bf16.msra.mxu0 %v10374_v28  ;;  %7259 = vmatprep.subr.bf16.mxu1 %v10379_v30  ;;  %v10470_v28 = vld [vmem:[%s15235_s1 + $0x17c4] ss:$8 sps:$4 sm:$0xff]   ;;  %v10465_v30 = vld [vmem:[%s15235_s1 + $0x6c0] ss:$8 sps:$4 sm:$0xff]  }
 0x179   :  { %7956 = vmatprep.subr.bf16.mxu0 %v10382_v31  ;;  %v10468_v31 = vld [vmem:[%s15235_s1 + $0x17c0] ss:$8 sps:$4 sm:$0xff]  }
 0x17b   :  { %7260 = vmatpush1.bf16.msra.mxu1 %v10377_v24  ;;  %v10473_v24 = vld [vmem:[%s15235_s1 + $0x6d4] ss:$8 sps:$4 sm:$0xff]  }
 0x17c   :  { %7957 = vmatpush1.bf16.msra.mxu0 %v10380_v25  ;;  %7261 = vmatprep.subr.bf16.mxu1 %v10385_v34  ;;  %v10476_v25 = vld [vmem:[%s15235_s1 + $0x17d4] ss:$8 sps:$4 sm:$0xff]   ;;  %v10471_v34 = vld [vmem:[%s15235_s1 + $0x6d0] ss:$8 sps:$4 sm:$0xff]  }
 0x17d   :  { %7958 = vmatprep.subr.bf16.mxu0 %v10388_v35  ;;  %v10474_v35 = vld [vmem:[%s15235_s1 + $0x17d0] ss:$8 sps:$4 sm:$0xff]  }
 0x17f   :  { %7262 = vmatpush1.bf16.msra.mxu1 %v10383_v36  ;;  %v10479_v36 = vld [vmem:[%s15235_s1 + $0x6e4] ss:$8 sps:$4 sm:$0xff]  }
 0x180   :  { %7959 = vmatpush1.bf16.msra.mxu0 %v10386_v37  ;;  %7272 = vmatprep.subr.bf16.mxu1 %v10393_v38  ;;  %v10482_v37 = vld [vmem:[%s15235_s1 + $0x17e4] ss:$8 sps:$4 sm:$0xff]   ;;  %v10477_v38 = vld [vmem:[%s15235_s1 + $0x6e0] ss:$8 sps:$4 sm:$0xff]  }
 0x181   :  { %7969 = vmatprep.subr.bf16.mxu0 %v10398_v20  ;;  %v10480_v20 = vld [vmem:[%s15235_s1 + $0x17e0] ss:$8 sps:$4 sm:$0xff]  }
 0x182   :  { %7264 = vmatmul.mubr.bf16.vlgmr.msra.gmra.mrb[0].mxu1 %v8477_v40  ;;  %v10485_v40 = vld [vmem:[%s15235_s1 + $0x6f4] ss:$8 sps:$4 sm:$0xff]  }
 0x183   :  { %7961 = vmatmul.mubr.bf16.vlgmr.msra.gmra.mrb[0].mxu0 %v8511_v41  ;;  %7273 = vmatpush1.bf16.msra.mxu1 %v10391_v42  ;;  %v10488_v41 = vld [vmem:[%s15235_s1 + $0x17f4] ss:$8 sps:$4 sm:$0xff]   ;;  %v10483_v42 = vld [vmem:[%s15235_s1 + $0x6f0] ss:$8 sps:$4 sm:$0xff]  }
 0x184   :  { %7970 = vmatpush1.bf16.msra.mxu0 %v10396_v43  ;;  %7274 = vmatprep.subr.bf16.mxu1 %v10401_v44  ;;  %v10486_v43 = vld [vmem:[%s15235_s1 + $0x17f0] ss:$8 sps:$4 sm:$0xff]   ;;  %v10493_v44 = vld [vmem:[%s15235_s1 + $0x704] ss:$8 sps:$4 sm:$0xff]  }
 0x185   :  { %7971 = vmatprep.subr.bf16.mxu0 %v10404_v32  ;;  %7304 = vmatprep.mubr.bf16.mxu1 %v8480_v33  ;;  %v10498_v32 = vld [vmem:[%s15235_s1 + $0x1804] ss:$8 sps:$4 sm:$0xff]   ;;  %v13026_v33 = vld [vmem:[%s15236_s0 + $0x38] sm:$0xff] }
 0x186   :  { %8001 = vmatprep.mubr.bf16.mxu0 %v8514_v45  ;;  %v13031_v45 = vld [vmem:[%s15236_s0 + $0xc0] sm:$0xff] }
 0x187   :  { %7275 = vmatpush1.bf16.msra.mxu1 %v10399_v46  ;;  %v8479_v46 = vcombine.low %v12816_v29, %v12816_v29  ;;  %v10504_v29 = vld [vmem:[%s15235_s1 + $0x1814] ss:$8 sps:$4 sm:$0xff]  }
 0x188   :  { %7972 = vmatpush1.bf16.msra.mxu0 %v10402_v47  ;;  %7276 = vmatprep.subr.bf16.mxu1 %v10407_v48  ;;  %v8513_v47 = vcombine.low %v12821_v39, %v12821_v39  ;;  %v10491_v48 = vld [vmem:[%s15235_s1 + $0x700] ss:$8 sps:$4 sm:$0xff]   ;;  %v8482_v39 = vcombine.high %v13026_v33, %v13026_v33 }
 0x189   :  { %7973 = vmatprep.subr.bf16.mxu0 %v10410_v49  ;;  %v10496_v49 = vld [vmem:[%s15235_s1 + $0x1800] ss:$8 sps:$4 sm:$0xff]  }
 0x18b   :  { %7277 = vmatpush1.bf16.msra.mxu1 %v10405_v50  ;;  %v10501_v50 = vld [vmem:[%s15235_s1 + $0x714] ss:$8 sps:$4 sm:$0xff]  }
 0x18c   :  { %7974 = vmatpush1.bf16.msra.mxu0 %v10408_v51  ;;  %7278 = vmatprep.subr.bf16.mxu1 %v10413_v52  ;;  %v8516_v51 = vcombine.high %v13031_v45, %v13031_v45  ;;  %v10499_v52 = vld [vmem:[%s15235_s1 + $0x710] ss:$8 sps:$4 sm:$0xff]  }
 0x18d   :  { %7975 = vmatprep.subr.bf16.mxu0 %v10416_v53  ;;  %v10502_v53 = vld [vmem:[%s15235_s1 + $0x1810] ss:$8 sps:$4 sm:$0xff]  }
 0x18f   :  { %7279 = vmatpush1.bf16.msra.mxu1 %v10411_v54  ;;  %v10507_v54 = vld [vmem:[%s15235_s1 + $0x724] ss:$8 sps:$4 sm:$0xff]  }
 0x190   :  { %7976 = vmatpush1.bf16.msra.mxu0 %v10414_v55  ;;  %7280 = vmatprep.subr.bf16.mxu1 %v10419_v56  ;;  %v10510_v55 = vld [vmem:[%s15235_s1 + $0x1824] ss:$8 sps:$4 sm:$0xff]   ;;  %v10505_v56 = vld [vmem:[%s15235_s1 + $0x720] ss:$8 sps:$4 sm:$0xff]  }
 0x191   :  { %7977 = vmatprep.subr.bf16.mxu0 %v10422_v57  ;;  %v10508_v57 = vld [vmem:[%s15235_s1 + $0x1820] ss:$8 sps:$4 sm:$0xff]  }
 0x193   :  { %7281 = vmatpush1.bf16.msra.mxu1 %v10417_v58  ;;  %v10513_v58 = vld [vmem:[%s15235_s1 + $0x734] ss:$8 sps:$4 sm:$0xff]  }
 0x194   :  { %7978 = vmatpush1.bf16.msra.mxu0 %v10420_v59  ;;  %7282 = vmatprep.subr.bf16.mxu1 %v10425_v60  ;;  %v10516_v59 = vld [vmem:[%s15235_s1 + $0x1834] ss:$8 sps:$4 sm:$0xff]   ;;  %v10511_v60 = vld [vmem:[%s15235_s1 + $0x730] ss:$8 sps:$4 sm:$0xff]  }
 0x195   :  { %7979 = vmatprep.subr.bf16.mxu0 %v10428_v61  ;;  %v10514_v61 = vld [vmem:[%s15235_s1 + $0x1830] ss:$8 sps:$4 sm:$0xff]  }
 0x197   :  { %7283 = vmatpush1.bf16.msra.mxu1 %v10423_v62  ;;  %v10519_v62 = vld [vmem:[%s15235_s1 + $0x744] ss:$8 sps:$4 sm:$0xff]  }
 0x198   :  { %7980 = vmatpush1.bf16.msra.mxu0 %v10426_v63  ;;  %7284 = vmatprep.subr.bf16.mxu1 %v10431_v0  ;;  %v10522_v63 = vld [vmem:[%s15235_s1 + $0x1844] ss:$8 sps:$4 sm:$0xff]   ;;  %v10517_v0 = vld [vmem:[%s15235_s1 + $0x740] ss:$8 sps:$4 sm:$0xff]  }
 0x199   :  { %7981 = vmatprep.subr.bf16.mxu0 %v10434_v1  ;;  %v10520_v1 = vld [vmem:[%s15235_s1 + $0x1840] ss:$8 sps:$4 sm:$0xff]  }
 0x19b   :  { %7285 = vmatpush1.bf16.msra.mxu1 %v10429_v2  ;;  %v10525_v2 = vld [vmem:[%s15235_s1 + $0x754] ss:$8 sps:$4 sm:$0xff]  }
 0x19c   :  { %7982 = vmatpush1.bf16.msra.mxu0 %v10432_v3  ;;  %7286 = vmatprep.subr.bf16.mxu1 %v10437_v4  ;;  %v10528_v3 = vld [vmem:[%s15235_s1 + $0x1854] ss:$8 sps:$4 sm:$0xff]   ;;  %v10523_v4 = vld [vmem:[%s15235_s1 + $0x750] ss:$8 sps:$4 sm:$0xff]  }
 0x19d   :  { %7983 = vmatprep.subr.bf16.mxu0 %v10440_v5  ;;  %v10526_v5 = vld [vmem:[%s15235_s1 + $0x1850] ss:$8 sps:$4 sm:$0xff]  }
 0x19f   :  { %7287 = vmatpush1.bf16.msra.mxu1 %v10435_v6  ;;  %v10531_v6 = vld [vmem:[%s15235_s1 + $0x764] ss:$8 sps:$4 sm:$0xff]  }
 0x1a0   :  { %7984 = vmatpush1.bf16.msra.mxu0 %v10438_v7  ;;  %7288 = vmatprep.subr.bf16.mxu1 %v10443_v8  ;;  %v10534_v7 = vld [vmem:[%s15235_s1 + $0x1864] ss:$8 sps:$4 sm:$0xff]   ;;  %v10529_v8 = vld [vmem:[%s15235_s1 + $0x760] ss:$8 sps:$4 sm:$0xff]  }
 0x1a1   :  { %7985 = vmatprep.subr.bf16.mxu0 %v10446_v9  ;;  %v10532_v9 = vld [vmem:[%s15235_s1 + $0x1860] ss:$8 sps:$4 sm:$0xff]  }
 0x1a3   :  { %7289 = vmatpush1.bf16.msra.mxu1 %v10441_v10  ;;  %v10537_v10 = vld [vmem:[%s15235_s1 + $0x774] ss:$8 sps:$4 sm:$0xff]  }
 0x1a4   :  { %7986 = vmatpush1.bf16.msra.mxu0 %v10444_v11  ;;  %7290 = vmatprep.subr.bf16.mxu1 %v10449_v12  ;;  %v10540_v11 = vld [vmem:[%s15235_s1 + $0x1874] ss:$8 sps:$4 sm:$0xff]   ;;  %v10535_v12 = vld [vmem:[%s15235_s1 + $0x770] ss:$8 sps:$4 sm:$0xff]  }
 0x1a5   :  { %7987 = vmatprep.subr.bf16.mxu0 %v10452_v13  ;;  %v10538_v13 = vld [vmem:[%s15235_s1 + $0x1870] ss:$8 sps:$4 sm:$0xff]  }
 0x1a7   :  { %7291 = vmatpush1.bf16.msra.mxu1 %v10447_v14  ;;  %v10543_v14 = vld [vmem:[%s15235_s1 + $0x784] ss:$8 sps:$4 sm:$0xff]  }
 0x1a8   :  { %7988 = vmatpush1.bf16.msra.mxu0 %v10450_v15  ;;  %7292 = vmatprep.subr.bf16.mxu1 %v10455_v16  ;;  %v10546_v15 = vld [vmem:[%s15235_s1 + $0x1884] ss:$8 sps:$4 sm:$0xff]   ;;  %v10541_v16 = vld [vmem:[%s15235_s1 + $0x780] ss:$8 sps:$4 sm:$0xff]  }
 0x1a9   :  { %7989 = vmatprep.subr.bf16.mxu0 %v10458_v17  ;;  %v10544_v17 = vld [vmem:[%s15235_s1 + $0x1880] ss:$8 sps:$4 sm:$0xff]  }
 0x1ab   :  { %7293 = vmatpush1.bf16.msra.mxu1 %v10453_v19  ;;  %v10549_v19 = vld [vmem:[%s15235_s1 + $0x794] ss:$8 sps:$4 sm:$0xff]  }
 0x1ac   :  { %7990 = vmatpush1.bf16.msra.mxu0 %v10456_v21  ;;  %7294 = vmatprep.subr.bf16.mxu1 %v10461_v22  ;;  %v10552_v21 = vld [vmem:[%s15235_s1 + $0x1894] ss:$8 sps:$4 sm:$0xff]   ;;  %v10547_v22 = vld [vmem:[%s15235_s1 + $0x790] ss:$8 sps:$4 sm:$0xff]  }
 0x1ad   :  { %7991 = vmatprep.subr.bf16.mxu0 %v10464_v23  ;;  %v10550_v23 = vld [vmem:[%s15235_s1 + $0x1890] ss:$8 sps:$4 sm:$0xff]  }
 0x1af   :  { %7295 = vmatpush1.bf16.msra.mxu1 %v10459_v26  ;;  %v10555_v26 = vld [vmem:[%s15235_s1 + $0x7a4] ss:$8 sps:$4 sm:$0xff]  }
 0x1b0   :  { %7992 = vmatpush1.bf16.msra.mxu0 %v10462_v18  ;;  %7296 = vmatprep.subr.bf16.mxu1 %v10467_v27  ;;  %v10558_v18 = vld [vmem:[%s15235_s1 + $0x18a4] ss:$8 sps:$4 sm:$0xff]   ;;  %v10553_v27 = vld [vmem:[%s15235_s1 + $0x7a0] ss:$8 sps:$4 sm:$0xff]  }
 0x1b1   :  { %7993 = vmatprep.subr.bf16.mxu0 %v10470_v28  ;;  %v10556_v28 = vld [vmem:[%s15235_s1 + $0x18a0] ss:$8 sps:$4 sm:$0xff]  }
 0x1b3   :  { %7297 = vmatpush1.bf16.msra.mxu1 %v10465_v30  ;;  %v10561_v30 = vld [vmem:[%s15235_s1 + $0x7b4] ss:$8 sps:$4 sm:$0xff]  }
 0x1b4   :  { %7994 = vmatpush1.bf16.msra.mxu0 %v10468_v31  ;;  %7298 = vmatprep.subr.bf16.mxu1 %v10473_v24  ;;  %v10564_v31 = vld [vmem:[%s15235_s1 + $0x18b4] ss:$8 sps:$4 sm:$0xff]   ;;  %v10559_v24 = vld [vmem:[%s15235_s1 + $0x7b0] ss:$8 sps:$4 sm:$0xff]  }
 0x1b5   :  { %7995 = vmatprep.subr.bf16.mxu0 %v10476_v25  ;;  %v10562_v25 = vld [vmem:[%s15235_s1 + $0x18b0] ss:$8 sps:$4 sm:$0xff]  }
 0x1b7   :  { %7299 = vmatpush1.bf16.msra.mxu1 %v10471_v34  ;;  %v10567_v34 = vld [vmem:[%s15235_s1 + $0x7c4] ss:$8 sps:$4 sm:$0xff]  }
 0x1b8   :  { %7996 = vmatpush1.bf16.msra.mxu0 %v10474_v35  ;;  %7300 = vmatprep.subr.bf16.mxu1 %v10479_v36  ;;  %v10570_v35 = vld [vmem:[%s15235_s1 + $0x18c4] ss:$8 sps:$4 sm:$0xff]   ;;  %v10565_v36 = vld [vmem:[%s15235_s1 + $0x7c0] ss:$8 sps:$4 sm:$0xff]  }
 0x1b9   :  { %7997 = vmatprep.subr.bf16.mxu0 %v10482_v37  ;;  %v10568_v37 = vld [vmem:[%s15235_s1 + $0x18c0] ss:$8 sps:$4 sm:$0xff]  }
 0x1bb   :  { %7301 = vmatpush1.bf16.msra.mxu1 %v10477_v38  ;;  %v10573_v38 = vld [vmem:[%s15235_s1 + $0x7d4] ss:$8 sps:$4 sm:$0xff]  }
 0x1bc   :  { %7998 = vmatpush1.bf16.msra.mxu0 %v10480_v20  ;;  %7302 = vmatprep.subr.bf16.mxu1 %v10485_v40  ;;  %v10576_v20 = vld [vmem:[%s15235_s1 + $0x18d4] ss:$8 sps:$4 sm:$0xff]   ;;  %v10571_v40 = vld [vmem:[%s15235_s1 + $0x7d0] ss:$8 sps:$4 sm:$0xff]  }
 0x1bd   :  { %7999 = vmatprep.subr.bf16.mxu0 %v10488_v41  ;;  %v10574_v41 = vld [vmem:[%s15235_s1 + $0x18d0] ss:$8 sps:$4 sm:$0xff]  }
 0x1bf   :  { %7303 = vmatpush1.bf16.msra.mxu1 %v10483_v42  ;;  %v10579_v42 = vld [vmem:[%s15235_s1 + $0x7e4] ss:$8 sps:$4 sm:$0xff]  }
 0x1c0   :  { %8000 = vmatpush1.bf16.msra.mxu0 %v10486_v43  ;;  %7313 = vmatprep.subr.bf16.mxu1 %v10493_v44  ;;  %v10582_v43 = vld [vmem:[%s15235_s1 + $0x18e4] ss:$8 sps:$4 sm:$0xff]   ;;  %v10577_v44 = vld [vmem:[%s15235_s1 + $0x7e0] ss:$8 sps:$4 sm:$0xff]  }
 0x1c1   :  { %8010 = vmatprep.subr.bf16.mxu0 %v10498_v32  ;;  %v10580_v32 = vld [vmem:[%s15235_s1 + $0x18e0] ss:$8 sps:$4 sm:$0xff]  }
 0x1c2   :  { %7305 = vmatmul.mubr.bf16.vlgmr.msra.gmra.mrb[0].mxu1 %v8479_v46  ;;  %v10585_v46 = vld [vmem:[%s15235_s1 + $0x7f4] ss:$8 sps:$4 sm:$0xff]  }
 0x1c3   :  { %8002 = vmatmul.mubr.bf16.vlgmr.msra.gmra.mrb[0].mxu0 %v8513_v47  ;;  %7314 = vmatpush1.bf16.msra.mxu1 %v10491_v48  ;;  %v10588_v47 = vld [vmem:[%s15235_s1 + $0x18f4] ss:$8 sps:$4 sm:$0xff]   ;;  %v10583_v48 = vld [vmem:[%s15235_s1 + $0x7f0] ss:$8 sps:$4 sm:$0xff]  }
 0x1c4   :  { %8011 = vmatpush1.bf16.msra.mxu0 %v10496_v49  ;;  %7315 = vmatprep.subr.bf16.mxu1 %v10501_v50  ;;  %v10586_v49 = vld [vmem:[%s15235_s1 + $0x18f0] ss:$8 sps:$4 sm:$0xff]   ;;  %v10593_v50 = vld [vmem:[%s15235_s1 + $0x804] ss:$8 sps:$4 sm:$0xff]  }
 0x1c5   :  { %8012 = vmatprep.subr.bf16.mxu0 %v10504_v29  ;;  %7345 = vmatprep.mubr.bf16.mxu1 %v8482_v39  ;;  %v10598_v29 = vld [vmem:[%s15235_s1 + $0x1904] ss:$8 sps:$4 sm:$0xff]  }
 0x1c6   :  { %8042 = vmatprep.mubr.bf16.mxu0 %v8516_v51  ;;  %v13236_v39 = vld [vmem:[%s15236_s0 + $0x40] sm:$0xff]  ;;  %v13241_v51 = vld [vmem:[%s15236_s0 + $0xc8] sm:$0xff] }
 0x1c7   :  { %7316 = vmatpush1.bf16.msra.mxu1 %v10499_v52  ;;  %v8481_v52 = vcombine.low %v13026_v33, %v13026_v33  ;;  %v10604_v33 = vld [vmem:[%s15235_s1 + $0x1914] ss:$8 sps:$4 sm:$0xff]  }
 0x1c8   :  { %8013 = vmatpush1.bf16.msra.mxu0 %v10502_v53  ;;  %7317 = vmatprep.subr.bf16.mxu1 %v10507_v54  ;;  %v8515_v53 = vcombine.low %v13031_v45, %v13031_v45  ;;  %v10591_v54 = vld [vmem:[%s15235_s1 + $0x800] ss:$8 sps:$4 sm:$0xff]   ;;  %v8484_v45 = vcombine.high %v13236_v39, %v13236_v39 }
 0x1c9   :  { %8014 = vmatprep.subr.bf16.mxu0 %v10510_v55  ;;  %v10596_v55 = vld [vmem:[%s15235_s1 + $0x1900] ss:$8 sps:$4 sm:$0xff]  }
 0x1cb   :  { %7318 = vmatpush1.bf16.msra.mxu1 %v10505_v56  ;;  %v10601_v56 = vld [vmem:[%s15235_s1 + $0x814] ss:$8 sps:$4 sm:$0xff]  }
 0x1cc   :  { %8015 = vmatpush1.bf16.msra.mxu0 %v10508_v57  ;;  %7319 = vmatprep.subr.bf16.mxu1 %v10513_v58  ;;  %v8518_v57 = vcombine.high %v13241_v51, %v13241_v51  ;;  %v10599_v58 = vld [vmem:[%s15235_s1 + $0x810] ss:$8 sps:$4 sm:$0xff]  }
 0x1cd   :  { %8016 = vmatprep.subr.bf16.mxu0 %v10516_v59  ;;  %v10602_v59 = vld [vmem:[%s15235_s1 + $0x1910] ss:$8 sps:$4 sm:$0xff]  }
 0x1cf   :  { %7320 = vmatpush1.bf16.msra.mxu1 %v10511_v60  ;;  %v10607_v60 = vld [vmem:[%s15235_s1 + $0x824] ss:$8 sps:$4 sm:$0xff]  }
 0x1d0   :  { %8017 = vmatpush1.bf16.msra.mxu0 %v10514_v61  ;;  %7321 = vmatprep.subr.bf16.mxu1 %v10519_v62  ;;  %v10610_v61 = vld [vmem:[%s15235_s1 + $0x1924] ss:$8 sps:$4 sm:$0xff]   ;;  %v10605_v62 = vld [vmem:[%s15235_s1 + $0x820] ss:$8 sps:$4 sm:$0xff]  }
 0x1d1   :  { %8018 = vmatprep.subr.bf16.mxu0 %v10522_v63  ;;  %v10608_v63 = vld [vmem:[%s15235_s1 + $0x1920] ss:$8 sps:$4 sm:$0xff]  }
 0x1d3   :  { %7322 = vmatpush1.bf16.msra.mxu1 %v10517_v0  ;;  %v10613_v0 = vld [vmem:[%s15235_s1 + $0x834] ss:$8 sps:$4 sm:$0xff]  }
 0x1d4   :  { %8019 = vmatpush1.bf16.msra.mxu0 %v10520_v1  ;;  %7323 = vmatprep.subr.bf16.mxu1 %v10525_v2  ;;  %v10616_v1 = vld [vmem:[%s15235_s1 + $0x1934] ss:$8 sps:$4 sm:$0xff]   ;;  %v10611_v2 = vld [vmem:[%s15235_s1 + $0x830] ss:$8 sps:$4 sm:$0xff]  }
 0x1d5   :  { %8020 = vmatprep.subr.bf16.mxu0 %v10528_v3  ;;  %v10614_v3 = vld [vmem:[%s15235_s1 + $0x1930] ss:$8 sps:$4 sm:$0xff]  }
 0x1d7   :  { %7324 = vmatpush1.bf16.msra.mxu1 %v10523_v4  ;;  %v10619_v4 = vld [vmem:[%s15235_s1 + $0x844] ss:$8 sps:$4 sm:$0xff]  }
 0x1d8   :  { %8021 = vmatpush1.bf16.msra.mxu0 %v10526_v5  ;;  %7325 = vmatprep.subr.bf16.mxu1 %v10531_v6  ;;  %v10622_v5 = vld [vmem:[%s15235_s1 + $0x1944] ss:$8 sps:$4 sm:$0xff]   ;;  %v10617_v6 = vld [vmem:[%s15235_s1 + $0x840] ss:$8 sps:$4 sm:$0xff]  }
 0x1d9   :  { %8022 = vmatprep.subr.bf16.mxu0 %v10534_v7  ;;  %v10620_v7 = vld [vmem:[%s15235_s1 + $0x1940] ss:$8 sps:$4 sm:$0xff]  }
 0x1db   :  { %7326 = vmatpush1.bf16.msra.mxu1 %v10529_v8  ;;  %v10625_v8 = vld [vmem:[%s15235_s1 + $0x854] ss:$8 sps:$4 sm:$0xff]  }
 0x1dc   :  { %8023 = vmatpush1.bf16.msra.mxu0 %v10532_v9  ;;  %7327 = vmatprep.subr.bf16.mxu1 %v10537_v10  ;;  %v10628_v9 = vld [vmem:[%s15235_s1 + $0x1954] ss:$8 sps:$4 sm:$0xff]   ;;  %v10623_v10 = vld [vmem:[%s15235_s1 + $0x850] ss:$8 sps:$4 sm:$0xff]  }
 0x1dd   :  { %8024 = vmatprep.subr.bf16.mxu0 %v10540_v11  ;;  %v10626_v11 = vld [vmem:[%s15235_s1 + $0x1950] ss:$8 sps:$4 sm:$0xff]  }
 0x1df   :  { %7328 = vmatpush1.bf16.msra.mxu1 %v10535_v12  ;;  %v10631_v12 = vld [vmem:[%s15235_s1 + $0x864] ss:$8 sps:$4 sm:$0xff]  }
 0x1e0   :  { %8025 = vmatpush1.bf16.msra.mxu0 %v10538_v13  ;;  %7329 = vmatprep.subr.bf16.mxu1 %v10543_v14  ;;  %v10634_v13 = vld [vmem:[%s15235_s1 + $0x1964] ss:$8 sps:$4 sm:$0xff]   ;;  %v10629_v14 = vld [vmem:[%s15235_s1 + $0x860] ss:$8 sps:$4 sm:$0xff]  }
 0x1e1   :  { %8026 = vmatprep.subr.bf16.mxu0 %v10546_v15  ;;  %v10632_v15 = vld [vmem:[%s15235_s1 + $0x1960] ss:$8 sps:$4 sm:$0xff]  }
 0x1e3   :  { %7330 = vmatpush1.bf16.msra.mxu1 %v10541_v16  ;;  %v10637_v16 = vld [vmem:[%s15235_s1 + $0x874] ss:$8 sps:$4 sm:$0xff]  }
 0x1e4   :  { %8027 = vmatpush1.bf16.msra.mxu0 %v10544_v17  ;;  %7331 = vmatprep.subr.bf16.mxu1 %v10549_v19  ;;  %v10640_v17 = vld [vmem:[%s15235_s1 + $0x1974] ss:$8 sps:$4 sm:$0xff]   ;;  %v10635_v19 = vld [vmem:[%s15235_s1 + $0x870] ss:$8 sps:$4 sm:$0xff]  }
 0x1e5   :  { %8028 = vmatprep.subr.bf16.mxu0 %v10552_v21  ;;  %v10638_v21 = vld [vmem:[%s15235_s1 + $0x1970] ss:$8 sps:$4 sm:$0xff]  }
 0x1e7   :  { %7332 = vmatpush1.bf16.msra.mxu1 %v10547_v22  ;;  %v10643_v22 = vld [vmem:[%s15235_s1 + $0x884] ss:$8 sps:$4 sm:$0xff]  }
 0x1e8   :  { %8029 = vmatpush1.bf16.msra.mxu0 %v10550_v23  ;;  %7333 = vmatprep.subr.bf16.mxu1 %v10555_v26  ;;  %v10646_v23 = vld [vmem:[%s15235_s1 + $0x1984] ss:$8 sps:$4 sm:$0xff]   ;;  %v10641_v26 = vld [vmem:[%s15235_s1 + $0x880] ss:$8 sps:$4 sm:$0xff]  }
 0x1e9   :  { %8030 = vmatprep.subr.bf16.mxu0 %v10558_v18  ;;  %v10644_v18 = vld [vmem:[%s15235_s1 + $0x1980] ss:$8 sps:$4 sm:$0xff]  }
 0x1eb   :  { %7334 = vmatpush1.bf16.msra.mxu1 %v10553_v27  ;;  %v10649_v27 = vld [vmem:[%s15235_s1 + $0x894] ss:$8 sps:$4 sm:$0xff]  }
 0x1ec   :  { %8031 = vmatpush1.bf16.msra.mxu0 %v10556_v28  ;;  %7335 = vmatprep.subr.bf16.mxu1 %v10561_v30  ;;  %v10652_v28 = vld [vmem:[%s15235_s1 + $0x1994] ss:$8 sps:$4 sm:$0xff]   ;;  %v10647_v30 = vld [vmem:[%s15235_s1 + $0x890] ss:$8 sps:$4 sm:$0xff]  }
 0x1ed   :  { %8032 = vmatprep.subr.bf16.mxu0 %v10564_v31  ;;  %v10650_v31 = vld [vmem:[%s15235_s1 + $0x1990] ss:$8 sps:$4 sm:$0xff]  }
 0x1ef   :  { %7336 = vmatpush1.bf16.msra.mxu1 %v10559_v24  ;;  %v10655_v24 = vld [vmem:[%s15235_s1 + $0x8a4] ss:$8 sps:$4 sm:$0xff]  }
 0x1f0   :  { %8033 = vmatpush1.bf16.msra.mxu0 %v10562_v25  ;;  %7337 = vmatprep.subr.bf16.mxu1 %v10567_v34  ;;  %v10658_v25 = vld [vmem:[%s15235_s1 + $0x19a4] ss:$8 sps:$4 sm:$0xff]   ;;  %v10653_v34 = vld [vmem:[%s15235_s1 + $0x8a0] ss:$8 sps:$4 sm:$0xff]  }
 0x1f1   :  { %8034 = vmatprep.subr.bf16.mxu0 %v10570_v35  ;;  %v10656_v35 = vld [vmem:[%s15235_s1 + $0x19a0] ss:$8 sps:$4 sm:$0xff]  }
 0x1f3   :  { %7338 = vmatpush1.bf16.msra.mxu1 %v10565_v36  ;;  %v10661_v36 = vld [vmem:[%s15235_s1 + $0x8b4] ss:$8 sps:$4 sm:$0xff]  }
 0x1f4   :  { %8035 = vmatpush1.bf16.msra.mxu0 %v10568_v37  ;;  %7339 = vmatprep.subr.bf16.mxu1 %v10573_v38  ;;  %v10664_v37 = vld [vmem:[%s15235_s1 + $0x19b4] ss:$8 sps:$4 sm:$0xff]   ;;  %v10659_v38 = vld [vmem:[%s15235_s1 + $0x8b0] ss:$8 sps:$4 sm:$0xff]  }
 0x1f5   :  { %8036 = vmatprep.subr.bf16.mxu0 %v10576_v20  ;;  %v10662_v20 = vld [vmem:[%s15235_s1 + $0x19b0] ss:$8 sps:$4 sm:$0xff]  }
 0x1f7   :  { %7340 = vmatpush1.bf16.msra.mxu1 %v10571_v40  ;;  %v10667_v40 = vld [vmem:[%s15235_s1 + $0x8c4] ss:$8 sps:$4 sm:$0xff]  }
 0x1f8   :  { %8037 = vmatpush1.bf16.msra.mxu0 %v10574_v41  ;;  %7341 = vmatprep.subr.bf16.mxu1 %v10579_v42  ;;  %v10670_v41 = vld [vmem:[%s15235_s1 + $0x19c4] ss:$8 sps:$4 sm:$0xff]   ;;  %v10665_v42 = vld [vmem:[%s15235_s1 + $0x8c0] ss:$8 sps:$4 sm:$0xff]  }
 0x1f9   :  { %8038 = vmatprep.subr.bf16.mxu0 %v10582_v43  ;;  %v10668_v43 = vld [vmem:[%s15235_s1 + $0x19c0] ss:$8 sps:$4 sm:$0xff]  }
 0x1fb   :  { %7342 = vmatpush1.bf16.msra.mxu1 %v10577_v44  ;;  %v10673_v44 = vld [vmem:[%s15235_s1 + $0x8d4] ss:$8 sps:$4 sm:$0xff]  }
 0x1fc   :  { %8039 = vmatpush1.bf16.msra.mxu0 %v10580_v32  ;;  %7343 = vmatprep.subr.bf16.mxu1 %v10585_v46  ;;  %v10676_v32 = vld [vmem:[%s15235_s1 + $0x19d4] ss:$8 sps:$4 sm:$0xff]   ;;  %v10671_v46 = vld [vmem:[%s15235_s1 + $0x8d0] ss:$8 sps:$4 sm:$0xff]  }
 0x1fd   :  { %8040 = vmatprep.subr.bf16.mxu0 %v10588_v47  ;;  %v10674_v47 = vld [vmem:[%s15235_s1 + $0x19d0] ss:$8 sps:$4 sm:$0xff]  }
 0x1ff   :  { %7344 = vmatpush1.bf16.msra.mxu1 %v10583_v48  ;;  %v10679_v48 = vld [vmem:[%s15235_s1 + $0x8e4] ss:$8 sps:$4 sm:$0xff]  }
 0x200   :  { %8041 = vmatpush1.bf16.msra.mxu0 %v10586_v49  ;;  %7354 = vmatprep.subr.bf16.mxu1 %v10593_v50  ;;  %v10682_v49 = vld [vmem:[%s15235_s1 + $0x19e4] ss:$8 sps:$4 sm:$0xff]   ;;  %v10677_v50 = vld [vmem:[%s15235_s1 + $0x8e0] ss:$8 sps:$4 sm:$0xff]  }
 0x201   :  { %8051 = vmatprep.subr.bf16.mxu0 %v10598_v29  ;;  %v10680_v29 = vld [vmem:[%s15235_s1 + $0x19e0] ss:$8 sps:$4 sm:$0xff]  }
 0x202   :  { %7346 = vmatmul.mubr.bf16.vlgmr.msra.gmra.mrb[0].mxu1 %v8481_v52  ;;  %v10685_v52 = vld [vmem:[%s15235_s1 + $0x8f4] ss:$8 sps:$4 sm:$0xff]  }
 0x203   :  { %8043 = vmatmul.mubr.bf16.vlgmr.msra.gmra.mrb[0].mxu0 %v8515_v53  ;;  %7355 = vmatpush1.bf16.msra.mxu1 %v10591_v54  ;;  %v10688_v53 = vld [vmem:[%s15235_s1 + $0x19f4] ss:$8 sps:$4 sm:$0xff]   ;;  %v10683_v54 = vld [vmem:[%s15235_s1 + $0x8f0] ss:$8 sps:$4 sm:$0xff]  }
 0x204   :  { %8052 = vmatpush1.bf16.msra.mxu0 %v10596_v55  ;;  %7356 = vmatprep.subr.bf16.mxu1 %v10601_v56  ;;  %v10686_v55 = vld [vmem:[%s15235_s1 + $0x19f0] ss:$8 sps:$4 sm:$0xff]   ;;  %v10693_v56 = vld [vmem:[%s15235_s1 + $0x904] ss:$8 sps:$4 sm:$0xff]  }
 0x205   :  { %8053 = vmatprep.subr.bf16.mxu0 %v10604_v33  ;;  %7386 = vmatprep.mubr.bf16.mxu1 %v8484_v45  ;;  %v10698_v33 = vld [vmem:[%s15235_s1 + $0x1a04] ss:$8 sps:$4 sm:$0xff]  }
 0x206   :  { %8083 = vmatprep.mubr.bf16.mxu0 %v8518_v57  ;;  %v13446_v45 = vld [vmem:[%s15236_s0 + $0x48] sm:$0xff]  ;;  %v13451_v57 = vld [vmem:[%s15236_s0 + $0xd0] sm:$0xff] }
 0x207   :  { %7357 = vmatpush1.bf16.msra.mxu1 %v10599_v58  ;;  %v8483_v58 = vcombine.low %v13236_v39, %v13236_v39  ;;  %v10704_v39 = vld [vmem:[%s15235_s1 + $0x1a14] ss:$8 sps:$4 sm:$0xff]  }
 0x208   :  { %8054 = vmatpush1.bf16.msra.mxu0 %v10602_v59  ;;  %7358 = vmatprep.subr.bf16.mxu1 %v10607_v60  ;;  %v8517_v59 = vcombine.low %v13241_v51, %v13241_v51  ;;  %v10691_v60 = vld [vmem:[%s15235_s1 + $0x900] ss:$8 sps:$4 sm:$0xff]   ;;  %v8486_v51 = vcombine.high %v13446_v45, %v13446_v45 }
 0x209   :  { %8055 = vmatprep.subr.bf16.mxu0 %v10610_v61  ;;  %v10696_v61 = vld [vmem:[%s15235_s1 + $0x1a00] ss:$8 sps:$4 sm:$0xff]  }
 0x20b   :  { %7359 = vmatpush1.bf16.msra.mxu1 %v10605_v62  ;;  %v10701_v62 = vld [vmem:[%s15235_s1 + $0x914] ss:$8 sps:$4 sm:$0xff]  }
 0x20c   :  { %8056 = vmatpush1.bf16.msra.mxu0 %v10608_v63  ;;  %7360 = vmatprep.subr.bf16.mxu1 %v10613_v0  ;;  %v8520_v63 = vcombine.high %v13451_v57, %v13451_v57  ;;  %v10699_v0 = vld [vmem:[%s15235_s1 + $0x910] ss:$8 sps:$4 sm:$0xff]  }
 0x20d   :  { %8057 = vmatprep.subr.bf16.mxu0 %v10616_v1  ;;  %v10702_v1 = vld [vmem:[%s15235_s1 + $0x1a10] ss:$8 sps:$4 sm:$0xff]  }
 0x20f   :  { %7361 = vmatpush1.bf16.msra.mxu1 %v10611_v2  ;;  %v10707_v2 = vld [vmem:[%s15235_s1 + $0x924] ss:$8 sps:$4 sm:$0xff]  }
 0x210   :  { %8058 = vmatpush1.bf16.msra.mxu0 %v10614_v3  ;;  %7362 = vmatprep.subr.bf16.mxu1 %v10619_v4  ;;  %v10710_v3 = vld [vmem:[%s15235_s1 + $0x1a24] ss:$8 sps:$4 sm:$0xff]   ;;  %v10705_v4 = vld [vmem:[%s15235_s1 + $0x920] ss:$8 sps:$4 sm:$0xff]  }
 0x211   :  { %8059 = vmatprep.subr.bf16.mxu0 %v10622_v5  ;;  %v10708_v5 = vld [vmem:[%s15235_s1 + $0x1a20] ss:$8 sps:$4 sm:$0xff]  }
 0x213   :  { %7363 = vmatpush1.bf16.msra.mxu1 %v10617_v6  ;;  %v10713_v6 = vld [vmem:[%s15235_s1 + $0x934] ss:$8 sps:$4 sm:$0xff]  }
 0x214   :  { %8060 = vmatpush1.bf16.msra.mxu0 %v10620_v7  ;;  %7364 = vmatprep.subr.bf16.mxu1 %v10625_v8  ;;  %v10716_v7 = vld [vmem:[%s15235_s1 + $0x1a34] ss:$8 sps:$4 sm:$0xff]   ;;  %v10711_v8 = vld [vmem:[%s15235_s1 + $0x930] ss:$8 sps:$4 sm:$0xff]  }
 0x215   :  { %8061 = vmatprep.subr.bf16.mxu0 %v10628_v9  ;;  %v10714_v9 = vld [vmem:[%s15235_s1 + $0x1a30] ss:$8 sps:$4 sm:$0xff]  }
 0x217   :  { %7365 = vmatpush1.bf16.msra.mxu1 %v10623_v10  ;;  %v10719_v10 = vld [vmem:[%s15235_s1 + $0x944] ss:$8 sps:$4 sm:$0xff]  }
 0x218   :  { %8062 = vmatpush1.bf16.msra.mxu0 %v10626_v11  ;;  %7366 = vmatprep.subr.bf16.mxu1 %v10631_v12  ;;  %v10722_v11 = vld [vmem:[%s15235_s1 + $0x1a44] ss:$8 sps:$4 sm:$0xff]   ;;  %v10717_v12 = vld [vmem:[%s15235_s1 + $0x940] ss:$8 sps:$4 sm:$0xff]  }
 0x219   :  { %8063 = vmatprep.subr.bf16.mxu0 %v10634_v13  ;;  %v10720_v13 = vld [vmem:[%s15235_s1 + $0x1a40] ss:$8 sps:$4 sm:$0xff]  }
 0x21b   :  { %7367 = vmatpush1.bf16.msra.mxu1 %v10629_v14  ;;  %v10725_v14 = vld [vmem:[%s15235_s1 + $0x954] ss:$8 sps:$4 sm:$0xff]  }
 0x21c   :  { %8064 = vmatpush1.bf16.msra.mxu0 %v10632_v15  ;;  %7368 = vmatprep.subr.bf16.mxu1 %v10637_v16  ;;  %v10728_v15 = vld [vmem:[%s15235_s1 + $0x1a54] ss:$8 sps:$4 sm:$0xff]   ;;  %v10723_v16 = vld [vmem:[%s15235_s1 + $0x950] ss:$8 sps:$4 sm:$0xff]  }
 0x21d   :  { %8065 = vmatprep.subr.bf16.mxu0 %v10640_v17  ;;  %v10726_v17 = vld [vmem:[%s15235_s1 + $0x1a50] ss:$8 sps:$4 sm:$0xff]  }
 0x21f   :  { %7369 = vmatpush1.bf16.msra.mxu1 %v10635_v19  ;;  %v10731_v19 = vld [vmem:[%s15235_s1 + $0x964] ss:$8 sps:$4 sm:$0xff]  }
 0x220   :  { %8066 = vmatpush1.bf16.msra.mxu0 %v10638_v21  ;;  %7370 = vmatprep.subr.bf16.mxu1 %v10643_v22  ;;  %v10734_v21 = vld [vmem:[%s15235_s1 + $0x1a64] ss:$8 sps:$4 sm:$0xff]   ;;  %v10729_v22 = vld [vmem:[%s15235_s1 + $0x960] ss:$8 sps:$4 sm:$0xff]  }
 0x221   :  { %8067 = vmatprep.subr.bf16.mxu0 %v10646_v23  ;;  %v10732_v23 = vld [vmem:[%s15235_s1 + $0x1a60] ss:$8 sps:$4 sm:$0xff]  }
 0x223   :  { %7371 = vmatpush1.bf16.msra.mxu1 %v10641_v26  ;;  %v10737_v26 = vld [vmem:[%s15235_s1 + $0x974] ss:$8 sps:$4 sm:$0xff]  }
 0x224   :  { %8068 = vmatpush1.bf16.msra.mxu0 %v10644_v18  ;;  %7372 = vmatprep.subr.bf16.mxu1 %v10649_v27  ;;  %v10740_v18 = vld [vmem:[%s15235_s1 + $0x1a74] ss:$8 sps:$4 sm:$0xff]   ;;  %v10735_v27 = vld [vmem:[%s15235_s1 + $0x970] ss:$8 sps:$4 sm:$0xff]  }
 0x225   :  { %8069 = vmatprep.subr.bf16.mxu0 %v10652_v28  ;;  %v10738_v28 = vld [vmem:[%s15235_s1 + $0x1a70] ss:$8 sps:$4 sm:$0xff]  }
 0x227   :  { %7373 = vmatpush1.bf16.msra.mxu1 %v10647_v30  ;;  %v10743_v30 = vld [vmem:[%s15235_s1 + $0x984] ss:$8 sps:$4 sm:$0xff]  }
 0x228   :  { %8070 = vmatpush1.bf16.msra.mxu0 %v10650_v31  ;;  %7374 = vmatprep.subr.bf16.mxu1 %v10655_v24  ;;  %v10746_v31 = vld [vmem:[%s15235_s1 + $0x1a84] ss:$8 sps:$4 sm:$0xff]   ;;  %v10741_v24 = vld [vmem:[%s15235_s1 + $0x980] ss:$8 sps:$4 sm:$0xff]  }
 0x229   :  { %8071 = vmatprep.subr.bf16.mxu0 %v10658_v25  ;;  %v10744_v25 = vld [vmem:[%s15235_s1 + $0x1a80] ss:$8 sps:$4 sm:$0xff]  }
 0x22b   :  { %7375 = vmatpush1.bf16.msra.mxu1 %v10653_v34  ;;  %v10749_v34 = vld [vmem:[%s15235_s1 + $0x994] ss:$8 sps:$4 sm:$0xff]  }
 0x22c   :  { %8072 = vmatpush1.bf16.msra.mxu0 %v10656_v35  ;;  %7376 = vmatprep.subr.bf16.mxu1 %v10661_v36  ;;  %v10752_v35 = vld [vmem:[%s15235_s1 + $0x1a94] ss:$8 sps:$4 sm:$0xff]   ;;  %v10747_v36 = vld [vmem:[%s15235_s1 + $0x990] ss:$8 sps:$4 sm:$0xff]  }
 0x22d   :  { %8073 = vmatprep.subr.bf16.mxu0 %v10664_v37  ;;  %v10750_v37 = vld [vmem:[%s15235_s1 + $0x1a90] ss:$8 sps:$4 sm:$0xff]  }
 0x22f   :  { %7377 = vmatpush1.bf16.msra.mxu1 %v10659_v38  ;;  %v10755_v38 = vld [vmem:[%s15235_s1 + $0x9a4] ss:$8 sps:$4 sm:$0xff]  }
 0x230   :  { %8074 = vmatpush1.bf16.msra.mxu0 %v10662_v20  ;;  %7378 = vmatprep.subr.bf16.mxu1 %v10667_v40  ;;  %v10758_v20 = vld [vmem:[%s15235_s1 + $0x1aa4] ss:$8 sps:$4 sm:$0xff]   ;;  %v10753_v40 = vld [vmem:[%s15235_s1 + $0x9a0] ss:$8 sps:$4 sm:$0xff]  }
 0x231   :  { %8075 = vmatprep.subr.bf16.mxu0 %v10670_v41  ;;  %v10756_v41 = vld [vmem:[%s15235_s1 + $0x1aa0] ss:$8 sps:$4 sm:$0xff]  }
 0x233   :  { %7379 = vmatpush1.bf16.msra.mxu1 %v10665_v42  ;;  %v10761_v42 = vld [vmem:[%s15235_s1 + $0x9b4] ss:$8 sps:$4 sm:$0xff]  }
 0x234   :  { %8076 = vmatpush1.bf16.msra.mxu0 %v10668_v43  ;;  %7380 = vmatprep.subr.bf16.mxu1 %v10673_v44  ;;  %v10764_v43 = vld [vmem:[%s15235_s1 + $0x1ab4] ss:$8 sps:$4 sm:$0xff]   ;;  %v10759_v44 = vld [vmem:[%s15235_s1 + $0x9b0] ss:$8 sps:$4 sm:$0xff]  }
 0x235   :  { %8077 = vmatprep.subr.bf16.mxu0 %v10676_v32  ;;  %v10762_v32 = vld [vmem:[%s15235_s1 + $0x1ab0] ss:$8 sps:$4 sm:$0xff]  }
 0x237   :  { %7381 = vmatpush1.bf16.msra.mxu1 %v10671_v46  ;;  %v10767_v46 = vld [vmem:[%s15235_s1 + $0x9c4] ss:$8 sps:$4 sm:$0xff]  }
 0x238   :  { %8078 = vmatpush1.bf16.msra.mxu0 %v10674_v47  ;;  %7382 = vmatprep.subr.bf16.mxu1 %v10679_v48  ;;  %v10770_v47 = vld [vmem:[%s15235_s1 + $0x1ac4] ss:$8 sps:$4 sm:$0xff]   ;;  %v10765_v48 = vld [vmem:[%s15235_s1 + $0x9c0] ss:$8 sps:$4 sm:$0xff]  }
 0x239   :  { %8079 = vmatprep.subr.bf16.mxu0 %v10682_v49  ;;  %v10768_v49 = vld [vmem:[%s15235_s1 + $0x1ac0] ss:$8 sps:$4 sm:$0xff]  }
 0x23b   :  { %7383 = vmatpush1.bf16.msra.mxu1 %v10677_v50  ;;  %v10773_v50 = vld [vmem:[%s15235_s1 + $0x9d4] ss:$8 sps:$4 sm:$0xff]  }
 0x23c   :  { %8080 = vmatpush1.bf16.msra.mxu0 %v10680_v29  ;;  %7384 = vmatprep.subr.bf16.mxu1 %v10685_v52  ;;  %v10776_v29 = vld [vmem:[%s15235_s1 + $0x1ad4] ss:$8 sps:$4 sm:$0xff]   ;;  %v10771_v52 = vld [vmem:[%s15235_s1 + $0x9d0] ss:$8 sps:$4 sm:$0xff]  }
 0x23d   :  { %8081 = vmatprep.subr.bf16.mxu0 %v10688_v53  ;;  %v10774_v53 = vld [vmem:[%s15235_s1 + $0x1ad0] ss:$8 sps:$4 sm:$0xff]  }
 0x23f   :  { %7385 = vmatpush1.bf16.msra.mxu1 %v10683_v54  ;;  %v10779_v54 = vld [vmem:[%s15235_s1 + $0x9e4] ss:$8 sps:$4 sm:$0xff]  }
 0x240   :  { %8082 = vmatpush1.bf16.msra.mxu0 %v10686_v55  ;;  %7395 = vmatprep.subr.bf16.mxu1 %v10693_v56  ;;  %v10782_v55 = vld [vmem:[%s15235_s1 + $0x1ae4] ss:$8 sps:$4 sm:$0xff]   ;;  %v10777_v56 = vld [vmem:[%s15235_s1 + $0x9e0] ss:$8 sps:$4 sm:$0xff]  }
 0x241   :  { %8092 = vmatprep.subr.bf16.mxu0 %v10698_v33  ;;  %v10780_v33 = vld [vmem:[%s15235_s1 + $0x1ae0] ss:$8 sps:$4 sm:$0xff]  }
 0x242   :  { %7387 = vmatmul.mubr.bf16.vlgmr.msra.gmra.mrb[0].mxu1 %v8483_v58  ;;  %v10785_v58 = vld [vmem:[%s15235_s1 + $0x9f4] ss:$8 sps:$4 sm:$0xff]  }
 0x243   :  { %8084 = vmatmul.mubr.bf16.vlgmr.msra.gmra.mrb[0].mxu0 %v8517_v59  ;;  %7396 = vmatpush1.bf16.msra.mxu1 %v10691_v60  ;;  %v10788_v59 = vld [vmem:[%s15235_s1 + $0x1af4] ss:$8 sps:$4 sm:$0xff]   ;;  %v10783_v60 = vld [vmem:[%s15235_s1 + $0x9f0] ss:$8 sps:$4 sm:$0xff]  }
 0x244   :  { %8093 = vmatpush1.bf16.msra.mxu0 %v10696_v61  ;;  %7397 = vmatprep.subr.bf16.mxu1 %v10701_v62  ;;  %v10786_v61 = vld [vmem:[%s15235_s1 + $0x1af0] ss:$8 sps:$4 sm:$0xff]   ;;  %v10793_v62 = vld [vmem:[%s15235_s1 + $0xa04] ss:$8 sps:$4 sm:$0xff]  }
 0x245   :  { %8094 = vmatprep.subr.bf16.mxu0 %v10704_v39  ;;  %7427 = vmatprep.mubr.bf16.mxu1 %v8486_v51  ;;  %v10798_v39 = vld [vmem:[%s15235_s1 + $0x1b04] ss:$8 sps:$4 sm:$0xff]   ;;  %v8485_v51 = vcombine.low %v13446_v45, %v13446_v45  ;;  %v10796_v45 = vld [vmem:[%s15235_s1 + $0x1b00] ss:$8 sps:$4 sm:$0xff]  }
 0x246   :  { %8124 = vmatprep.mubr.bf16.mxu0 %v8520_v63  ;;  %v8519_v63 = vcombine.low %v13451_v57, %v13451_v57  ;;  %v10801_v57 = vld [vmem:[%s15235_s1 + $0xa14] ss:$8 sps:$4 sm:$0xff]  }
 0x247   :  { %7398 = vmatpush1.bf16.msra.mxu1 %v10699_v0  ;;  %v13660_v0 = vld [vmem:[%s15236_s0 + $0x50] sm:$0xff] }
 0x248   :  { %8095 = vmatpush1.bf16.msra.mxu0 %v10702_v1  ;;  %7399 = vmatprep.subr.bf16.mxu1 %v10707_v2  ;;  %v13665_v1 = vld [vmem:[%s15236_s0 + $0xd8] sm:$0xff]  ;;  %v10791_v2 = vld [vmem:[%s15235_s1 + $0xa00] ss:$8 sps:$4 sm:$0xff]  }
 0x249   :  { %8096 = vmatprep.subr.bf16.mxu0 %v10710_v3  ;;  %v10804_v3 = vld [vmem:[%s15235_s1 + $0x1b14] ss:$8 sps:$4 sm:$0xff]  }
 0x24b   :  { %7400 = vmatpush1.bf16.msra.mxu1 %v10705_v4  ;;  %v8488_v4 = vcombine.high %v13660_v0, %v13660_v0 }
 0x24c   :  { %8097 = vmatpush1.bf16.msra.mxu0 %v10708_v5  ;;  %7401 = vmatprep.subr.bf16.mxu1 %v10713_v6  ;;  %v8522_v5 = vcombine.high %v13665_v1, %v13665_v1  ;;  %v10799_v6 = vld [vmem:[%s15235_s1 + $0xa10] ss:$8 sps:$4 sm:$0xff]  }
 0x24d   :  { %8098 = vmatprep.subr.bf16.mxu0 %v10716_v7  ;;  %v10802_v7 = vld [vmem:[%s15235_s1 + $0x1b10] ss:$8 sps:$4 sm:$0xff]  }
 0x24f   :  { %7402 = vmatpush1.bf16.msra.mxu1 %v10711_v8  ;;  %v10807_v8 = vld [vmem:[%s15235_s1 + $0xa24] ss:$8 sps:$4 sm:$0xff]  }
 0x250   :  { %8099 = vmatpush1.bf16.msra.mxu0 %v10714_v9  ;;  %7403 = vmatprep.subr.bf16.mxu1 %v10719_v10  ;;  %v10810_v9 = vld [vmem:[%s15235_s1 + $0x1b24] ss:$8 sps:$4 sm:$0xff]   ;;  %v10805_v10 = vld [vmem:[%s15235_s1 + $0xa20] ss:$8 sps:$4 sm:$0xff]  }
 0x251   :  { %8100 = vmatprep.subr.bf16.mxu0 %v10722_v11  ;;  %v10808_v11 = vld [vmem:[%s15235_s1 + $0x1b20] ss:$8 sps:$4 sm:$0xff]  }
 0x253   :  { %7404 = vmatpush1.bf16.msra.mxu1 %v10717_v12  ;;  %v10813_v12 = vld [vmem:[%s15235_s1 + $0xa34] ss:$8 sps:$4 sm:$0xff]  }
 0x254   :  { %8101 = vmatpush1.bf16.msra.mxu0 %v10720_v13  ;;  %7405 = vmatprep.subr.bf16.mxu1 %v10725_v14  ;;  %v10816_v13 = vld [vmem:[%s15235_s1 + $0x1b34] ss:$8 sps:$4 sm:$0xff]   ;;  %v10811_v14 = vld [vmem:[%s15235_s1 + $0xa30] ss:$8 sps:$4 sm:$0xff]  }
 0x255   :  { %8102 = vmatprep.subr.bf16.mxu0 %v10728_v15  ;;  %v10814_v15 = vld [vmem:[%s15235_s1 + $0x1b30] ss:$8 sps:$4 sm:$0xff]  }
 0x257   :  { %7406 = vmatpush1.bf16.msra.mxu1 %v10723_v16  ;;  %v10819_v16 = vld [vmem:[%s15235_s1 + $0xa44] ss:$8 sps:$4 sm:$0xff]  }
 0x258   :  { %8103 = vmatpush1.bf16.msra.mxu0 %v10726_v17  ;;  %7407 = vmatprep.subr.bf16.mxu1 %v10731_v19  ;;  %v10822_v17 = vld [vmem:[%s15235_s1 + $0x1b44] ss:$8 sps:$4 sm:$0xff]   ;;  %v10817_v19 = vld [vmem:[%s15235_s1 + $0xa40] ss:$8 sps:$4 sm:$0xff]  }
 0x259   :  { %8104 = vmatprep.subr.bf16.mxu0 %v10734_v21  ;;  %v10820_v21 = vld [vmem:[%s15235_s1 + $0x1b40] ss:$8 sps:$4 sm:$0xff]  }
 0x25b   :  { %7408 = vmatpush1.bf16.msra.mxu1 %v10729_v22  ;;  %v10825_v22 = vld [vmem:[%s15235_s1 + $0xa54] ss:$8 sps:$4 sm:$0xff]  }
 0x25c   :  { %8105 = vmatpush1.bf16.msra.mxu0 %v10732_v23  ;;  %7409 = vmatprep.subr.bf16.mxu1 %v10737_v26  ;;  %v10828_v23 = vld [vmem:[%s15235_s1 + $0x1b54] ss:$8 sps:$4 sm:$0xff]   ;;  %v10823_v26 = vld [vmem:[%s15235_s1 + $0xa50] ss:$8 sps:$4 sm:$0xff]  }
 0x25d   :  { %8106 = vmatprep.subr.bf16.mxu0 %v10740_v18  ;;  %v10826_v18 = vld [vmem:[%s15235_s1 + $0x1b50] ss:$8 sps:$4 sm:$0xff]  }
 0x25f   :  { %7410 = vmatpush1.bf16.msra.mxu1 %v10735_v27  ;;  %v10831_v27 = vld [vmem:[%s15235_s1 + $0xa64] ss:$8 sps:$4 sm:$0xff]  }
 0x260   :  { %8107 = vmatpush1.bf16.msra.mxu0 %v10738_v28  ;;  %7411 = vmatprep.subr.bf16.mxu1 %v10743_v30  ;;  %v10834_v28 = vld [vmem:[%s15235_s1 + $0x1b64] ss:$8 sps:$4 sm:$0xff]   ;;  %v10829_v30 = vld [vmem:[%s15235_s1 + $0xa60] ss:$8 sps:$4 sm:$0xff]  }
 0x261   :  { %8108 = vmatprep.subr.bf16.mxu0 %v10746_v31  ;;  %v10832_v31 = vld [vmem:[%s15235_s1 + $0x1b60] ss:$8 sps:$4 sm:$0xff]  }
 0x263   :  { %7412 = vmatpush1.bf16.msra.mxu1 %v10741_v24  ;;  %v10837_v24 = vld [vmem:[%s15235_s1 + $0xa74] ss:$8 sps:$4 sm:$0xff]  }
 0x264   :  { %8109 = vmatpush1.bf16.msra.mxu0 %v10744_v25  ;;  %7413 = vmatprep.subr.bf16.mxu1 %v10749_v34  ;;  %v10840_v25 = vld [vmem:[%s15235_s1 + $0x1b74] ss:$8 sps:$4 sm:$0xff]   ;;  %v10835_v34 = vld [vmem:[%s15235_s1 + $0xa70] ss:$8 sps:$4 sm:$0xff]  }
 0x265   :  { %8110 = vmatprep.subr.bf16.mxu0 %v10752_v35  ;;  %v10838_v35 = vld [vmem:[%s15235_s1 + $0x1b70] ss:$8 sps:$4 sm:$0xff]  }
 0x267   :  { %7414 = vmatpush1.bf16.msra.mxu1 %v10747_v36  ;;  %v10843_v36 = vld [vmem:[%s15235_s1 + $0xa84] ss:$8 sps:$4 sm:$0xff]  }
 0x268   :  { %8111 = vmatpush1.bf16.msra.mxu0 %v10750_v37  ;;  %7415 = vmatprep.subr.bf16.mxu1 %v10755_v38  ;;  %v10846_v37 = vld [vmem:[%s15235_s1 + $0x1b84] ss:$8 sps:$4 sm:$0xff]   ;;  %v10841_v38 = vld [vmem:[%s15235_s1 + $0xa80] ss:$8 sps:$4 sm:$0xff]  }
 0x269   :  { %8112 = vmatprep.subr.bf16.mxu0 %v10758_v20  ;;  %v10844_v20 = vld [vmem:[%s15235_s1 + $0x1b80] ss:$8 sps:$4 sm:$0xff]  }
 0x26b   :  { %7416 = vmatpush1.bf16.msra.mxu1 %v10753_v40  ;;  %v10849_v40 = vld [vmem:[%s15235_s1 + $0xa94] ss:$8 sps:$4 sm:$0xff]  }
 0x26c   :  { %8113 = vmatpush1.bf16.msra.mxu0 %v10756_v41  ;;  %7417 = vmatprep.subr.bf16.mxu1 %v10761_v42  ;;  %v10852_v41 = vld [vmem:[%s15235_s1 + $0x1b94] ss:$8 sps:$4 sm:$0xff]   ;;  %v10847_v42 = vld [vmem:[%s15235_s1 + $0xa90] ss:$8 sps:$4 sm:$0xff]  }
 0x26d   :  { %8114 = vmatprep.subr.bf16.mxu0 %v10764_v43  ;;  %v10850_v43 = vld [vmem:[%s15235_s1 + $0x1b90] ss:$8 sps:$4 sm:$0xff]  }
 0x26f   :  { %7418 = vmatpush1.bf16.msra.mxu1 %v10759_v44  ;;  %v10855_v44 = vld [vmem:[%s15235_s1 + $0xaa4] ss:$8 sps:$4 sm:$0xff]  }
 0x270   :  { %8115 = vmatpush1.bf16.msra.mxu0 %v10762_v32  ;;  %7419 = vmatprep.subr.bf16.mxu1 %v10767_v46  ;;  %v10858_v32 = vld [vmem:[%s15235_s1 + $0x1ba4] ss:$8 sps:$4 sm:$0xff]   ;;  %v10853_v46 = vld [vmem:[%s15235_s1 + $0xaa0] ss:$8 sps:$4 sm:$0xff]  }
 0x271   :  { %8116 = vmatprep.subr.bf16.mxu0 %v10770_v47  ;;  %v10856_v47 = vld [vmem:[%s15235_s1 + $0x1ba0] ss:$8 sps:$4 sm:$0xff]  }
 0x273   :  { %7420 = vmatpush1.bf16.msra.mxu1 %v10765_v48  ;;  %v10861_v48 = vld [vmem:[%s15235_s1 + $0xab4] ss:$8 sps:$4 sm:$0xff]  }
 0x274   :  { %8117 = vmatpush1.bf16.msra.mxu0 %v10768_v49  ;;  %7421 = vmatprep.subr.bf16.mxu1 %v10773_v50  ;;  %v10864_v49 = vld [vmem:[%s15235_s1 + $0x1bb4] ss:$8 sps:$4 sm:$0xff]   ;;  %v10859_v50 = vld [vmem:[%s15235_s1 + $0xab0] ss:$8 sps:$4 sm:$0xff]  }
 0x275   :  { %8118 = vmatprep.subr.bf16.mxu0 %v10776_v29  ;;  %v10862_v29 = vld [vmem:[%s15235_s1 + $0x1bb0] ss:$8 sps:$4 sm:$0xff]  }
 0x277   :  { %7422 = vmatpush1.bf16.msra.mxu1 %v10771_v52  ;;  %v10867_v52 = vld [vmem:[%s15235_s1 + $0xac4] ss:$8 sps:$4 sm:$0xff]  }
 0x278   :  { %8119 = vmatpush1.bf16.msra.mxu0 %v10774_v53  ;;  %7423 = vmatprep.subr.bf16.mxu1 %v10779_v54  ;;  %v10870_v53 = vld [vmem:[%s15235_s1 + $0x1bc4] ss:$8 sps:$4 sm:$0xff]   ;;  %v10865_v54 = vld [vmem:[%s15235_s1 + $0xac0] ss:$8 sps:$4 sm:$0xff]  }
 0x279   :  { %8120 = vmatprep.subr.bf16.mxu0 %v10782_v55  ;;  %v10868_v55 = vld [vmem:[%s15235_s1 + $0x1bc0] ss:$8 sps:$4 sm:$0xff]  }
 0x27b   :  { %7424 = vmatpush1.bf16.msra.mxu1 %v10777_v56  ;;  %v10873_v56 = vld [vmem:[%s15235_s1 + $0xad4] ss:$8 sps:$4 sm:$0xff]  }
 0x27c   :  { %8121 = vmatpush1.bf16.msra.mxu0 %v10780_v33  ;;  %7425 = vmatprep.subr.bf16.mxu1 %v10785_v58  ;;  %v10876_v33 = vld [vmem:[%s15235_s1 + $0x1bd4] ss:$8 sps:$4 sm:$0xff]   ;;  %v10871_v58 = vld [vmem:[%s15235_s1 + $0xad0] ss:$8 sps:$4 sm:$0xff]  }
 0x27d   :  { %8122 = vmatprep.subr.bf16.mxu0 %v10788_v59  ;;  %v10874_v59 = vld [vmem:[%s15235_s1 + $0x1bd0] ss:$8 sps:$4 sm:$0xff]  }
 0x27f   :  { %7426 = vmatpush1.bf16.msra.mxu1 %v10783_v60  ;;  %v10879_v60 = vld [vmem:[%s15235_s1 + $0xae4] ss:$8 sps:$4 sm:$0xff]  }
 0x280   :  { %8123 = vmatpush1.bf16.msra.mxu0 %v10786_v61  ;;  %7436 = vmatprep.subr.bf16.mxu1 %v10793_v62  ;;  %v10882_v61 = vld [vmem:[%s15235_s1 + $0x1be4] ss:$8 sps:$4 sm:$0xff]   ;;  %v10877_v62 = vld [vmem:[%s15235_s1 + $0xae0] ss:$8 sps:$4 sm:$0xff]  }
 0x281   :  { %8133 = vmatprep.subr.bf16.mxu0 %v10798_v39  ;;  %v10880_v39 = vld [vmem:[%s15235_s1 + $0x1be0] ss:$8 sps:$4 sm:$0xff]  }
 0x282   :  { %7428 = vmatmul.mubr.bf16.vlgmr.msra.gmra.mrb[0].mxu1 %v8485_v51  ;;  %v10885_v51 = vld [vmem:[%s15235_s1 + $0xaf4] ss:$8 sps:$4 sm:$0xff]  }
 0x283   :  { %8125 = vmatmul.mubr.bf16.vlgmr.msra.gmra.mrb[0].mxu0 %v8519_v63  ;;  %7437 = vmatpush1.bf16.msra.mxu1 %v10791_v2  ;;  %v10888_v63 = vld [vmem:[%s15235_s1 + $0x1bf4] ss:$8 sps:$4 sm:$0xff]   ;;  %v10883_v2 = vld [vmem:[%s15235_s1 + $0xaf0] ss:$8 sps:$4 sm:$0xff]  }
 0x284   :  { %8134 = vmatpush1.bf16.msra.mxu0 %v10796_v45  ;;  %7438 = vmatprep.subr.bf16.mxu1 %v10801_v57  ;;  %v10886_v45 = vld [vmem:[%s15235_s1 + $0x1bf0] ss:$8 sps:$4 sm:$0xff]   ;;  %v10893_v57 = vld [vmem:[%s15235_s1 + $0xb04] ss:$8 sps:$4 sm:$0xff]  }
 0x285   :  { %8135 = vmatprep.subr.bf16.mxu0 %v10804_v3  ;;  %7468 = vmatprep.mubr.bf16.mxu1 %v8488_v4  ;;  %v10898_v3 = vld [vmem:[%s15235_s1 + $0x1c04] ss:$8 sps:$4 sm:$0xff]   ;;  %v8487_v4 = vcombine.low %v13660_v0, %v13660_v0  ;;  %v10896_v0 = vld [vmem:[%s15235_s1 + $0x1c00] ss:$8 sps:$4 sm:$0xff]  }
 0x286   :  { %8165 = vmatprep.mubr.bf16.mxu0 %v8522_v5  ;;  %v8521_v5 = vcombine.low %v13665_v1, %v13665_v1  ;;  %v10901_v1 = vld [vmem:[%s15235_s1 + $0xb14] ss:$8 sps:$4 sm:$0xff]  }
 0x287   :  { %7439 = vmatpush1.bf16.msra.mxu1 %v10799_v6  ;;  %v13870_v6 = vld [vmem:[%s15236_s0 + $0x58] sm:$0xff] }
 0x288   :  { %8136 = vmatpush1.bf16.msra.mxu0 %v10802_v7  ;;  %7440 = vmatprep.subr.bf16.mxu1 %v10807_v8  ;;  %v13875_v7 = vld [vmem:[%s15236_s0 + $0xe0] sm:$0xff] }
 0x289   :  { %8137 = vmatprep.subr.bf16.mxu0 %v10810_v9  ;;  %v10891_v8 = vld [vmem:[%s15235_s1 + $0xb00] ss:$8 sps:$4 sm:$0xff]   ;;  %v10904_v9 = vld [vmem:[%s15235_s1 + $0x1c14] ss:$8 sps:$4 sm:$0xff]  }
 0x28b   :  { %7441 = vmatpush1.bf16.msra.mxu1 %v10805_v10  ;;  %v8490_v10 = vcombine.high %v13870_v6, %v13870_v6 }
 0x28c   :  { %8138 = vmatpush1.bf16.msra.mxu0 %v10808_v11  ;;  %7442 = vmatprep.subr.bf16.mxu1 %v10813_v12  ;;  %v8524_v11 = vcombine.high %v13875_v7, %v13875_v7  ;;  %v10899_v12 = vld [vmem:[%s15235_s1 + $0xb10] ss:$8 sps:$4 sm:$0xff]  }
 0x28d   :  { %8139 = vmatprep.subr.bf16.mxu0 %v10816_v13  ;;  %v10902_v13 = vld [vmem:[%s15235_s1 + $0x1c10] ss:$8 sps:$4 sm:$0xff]  }
 0x28f   :  { %7443 = vmatpush1.bf16.msra.mxu1 %v10811_v14  ;;  %v10907_v14 = vld [vmem:[%s15235_s1 + $0xb24] ss:$8 sps:$4 sm:$0xff]  }
 0x290   :  { %8140 = vmatpush1.bf16.msra.mxu0 %v10814_v15  ;;  %7444 = vmatprep.subr.bf16.mxu1 %v10819_v16  ;;  %v10910_v15 = vld [vmem:[%s15235_s1 + $0x1c24] ss:$8 sps:$4 sm:$0xff]   ;;  %v10905_v16 = vld [vmem:[%s15235_s1 + $0xb20] ss:$8 sps:$4 sm:$0xff]  }
 0x291   :  { %8141 = vmatprep.subr.bf16.mxu0 %v10822_v17  ;;  %v10908_v17 = vld [vmem:[%s15235_s1 + $0x1c20] ss:$8 sps:$4 sm:$0xff]  }
 0x293   :  { %7445 = vmatpush1.bf16.msra.mxu1 %v10817_v19  ;;  %v10913_v19 = vld [vmem:[%s15235_s1 + $0xb34] ss:$8 sps:$4 sm:$0xff]  }
 0x294   :  { %8142 = vmatpush1.bf16.msra.mxu0 %v10820_v21  ;;  %7446 = vmatprep.subr.bf16.mxu1 %v10825_v22  ;;  %v10916_v21 = vld [vmem:[%s15235_s1 + $0x1c34] ss:$8 sps:$4 sm:$0xff]   ;;  %v10911_v22 = vld [vmem:[%s15235_s1 + $0xb30] ss:$8 sps:$4 sm:$0xff]  }
 0x295   :  { %8143 = vmatprep.subr.bf16.mxu0 %v10828_v23  ;;  %v10914_v23 = vld [vmem:[%s15235_s1 + $0x1c30] ss:$8 sps:$4 sm:$0xff]  }
 0x297   :  { %7447 = vmatpush1.bf16.msra.mxu1 %v10823_v26  ;;  %v10919_v26 = vld [vmem:[%s15235_s1 + $0xb44] ss:$8 sps:$4 sm:$0xff]  }
 0x298   :  { %8144 = vmatpush1.bf16.msra.mxu0 %v10826_v18  ;;  %7448 = vmatprep.subr.bf16.mxu1 %v10831_v27  ;;  %v10922_v18 = vld [vmem:[%s15235_s1 + $0x1c44] ss:$8 sps:$4 sm:$0xff]   ;;  %v10917_v27 = vld [vmem:[%s15235_s1 + $0xb40] ss:$8 sps:$4 sm:$0xff]  }
 0x299   :  { %8145 = vmatprep.subr.bf16.mxu0 %v10834_v28  ;;  %v10920_v28 = vld [vmem:[%s15235_s1 + $0x1c40] ss:$8 sps:$4 sm:$0xff]  }
 0x29b   :  { %7449 = vmatpush1.bf16.msra.mxu1 %v10829_v30  ;;  %v10925_v30 = vld [vmem:[%s15235_s1 + $0xb54] ss:$8 sps:$4 sm:$0xff]  }
 0x29c   :  { %8146 = vmatpush1.bf16.msra.mxu0 %v10832_v31  ;;  %7450 = vmatprep.subr.bf16.mxu1 %v10837_v24  ;;  %v10928_v31 = vld [vmem:[%s15235_s1 + $0x1c54] ss:$8 sps:$4 sm:$0xff]   ;;  %v10923_v24 = vld [vmem:[%s15235_s1 + $0xb50] ss:$8 sps:$4 sm:$0xff]  }
 0x29d   :  { %8147 = vmatprep.subr.bf16.mxu0 %v10840_v25  ;;  %v10926_v25 = vld [vmem:[%s15235_s1 + $0x1c50] ss:$8 sps:$4 sm:$0xff]  }
 0x29f   :  { %7451 = vmatpush1.bf16.msra.mxu1 %v10835_v34  ;;  %v10931_v34 = vld [vmem:[%s15235_s1 + $0xb64] ss:$8 sps:$4 sm:$0xff]  }
 0x2a0   :  { %8148 = vmatpush1.bf16.msra.mxu0 %v10838_v35  ;;  %7452 = vmatprep.subr.bf16.mxu1 %v10843_v36  ;;  %v10934_v35 = vld [vmem:[%s15235_s1 + $0x1c64] ss:$8 sps:$4 sm:$0xff]   ;;  %v10929_v36 = vld [vmem:[%s15235_s1 + $0xb60] ss:$8 sps:$4 sm:$0xff]  }
 0x2a1   :  { %8149 = vmatprep.subr.bf16.mxu0 %v10846_v37  ;;  %v10932_v37 = vld [vmem:[%s15235_s1 + $0x1c60] ss:$8 sps:$4 sm:$0xff]  }
 0x2a3   :  { %7453 = vmatpush1.bf16.msra.mxu1 %v10841_v38  ;;  %v10937_v38 = vld [vmem:[%s15235_s1 + $0xb74] ss:$8 sps:$4 sm:$0xff]  }
 0x2a4   :  { %8150 = vmatpush1.bf16.msra.mxu0 %v10844_v20  ;;  %7454 = vmatprep.subr.bf16.mxu1 %v10849_v40  ;;  %v10940_v20 = vld [vmem:[%s15235_s1 + $0x1c74] ss:$8 sps:$4 sm:$0xff]   ;;  %v10935_v40 = vld [vmem:[%s15235_s1 + $0xb70] ss:$8 sps:$4 sm:$0xff]  }
 0x2a5   :  { %8151 = vmatprep.subr.bf16.mxu0 %v10852_v41  ;;  %v10938_v41 = vld [vmem:[%s15235_s1 + $0x1c70] ss:$8 sps:$4 sm:$0xff]  }
 0x2a7   :  { %7455 = vmatpush1.bf16.msra.mxu1 %v10847_v42  ;;  %v10943_v42 = vld [vmem:[%s15235_s1 + $0xb84] ss:$8 sps:$4 sm:$0xff]  }
 0x2a8   :  { %8152 = vmatpush1.bf16.msra.mxu0 %v10850_v43  ;;  %7456 = vmatprep.subr.bf16.mxu1 %v10855_v44  ;;  %v10946_v43 = vld [vmem:[%s15235_s1 + $0x1c84] ss:$8 sps:$4 sm:$0xff]   ;;  %v10941_v44 = vld [vmem:[%s15235_s1 + $0xb80] ss:$8 sps:$4 sm:$0xff]  }
 0x2a9   :  { %8153 = vmatprep.subr.bf16.mxu0 %v10858_v32  ;;  %v10944_v32 = vld [vmem:[%s15235_s1 + $0x1c80] ss:$8 sps:$4 sm:$0xff]  }
 0x2ab   :  { %7457 = vmatpush1.bf16.msra.mxu1 %v10853_v46  ;;  %v10949_v46 = vld [vmem:[%s15235_s1 + $0xb94] ss:$8 sps:$4 sm:$0xff]  }
 0x2ac   :  { %8154 = vmatpush1.bf16.msra.mxu0 %v10856_v47  ;;  %7458 = vmatprep.subr.bf16.mxu1 %v10861_v48  ;;  %v10952_v47 = vld [vmem:[%s15235_s1 + $0x1c94] ss:$8 sps:$4 sm:$0xff]   ;;  %v10947_v48 = vld [vmem:[%s15235_s1 + $0xb90] ss:$8 sps:$4 sm:$0xff]  }
 0x2ad   :  { %8155 = vmatprep.subr.bf16.mxu0 %v10864_v49  ;;  %v10950_v49 = vld [vmem:[%s15235_s1 + $0x1c90] ss:$8 sps:$4 sm:$0xff]  }
 0x2af   :  { %7459 = vmatpush1.bf16.msra.mxu1 %v10859_v50  ;;  %v10955_v50 = vld [vmem:[%s15235_s1 + $0xba4] ss:$8 sps:$4 sm:$0xff]  }
 0x2b0   :  { %8156 = vmatpush1.bf16.msra.mxu0 %v10862_v29  ;;  %7460 = vmatprep.subr.bf16.mxu1 %v10867_v52  ;;  %v10958_v29 = vld [vmem:[%s15235_s1 + $0x1ca4] ss:$8 sps:$4 sm:$0xff]   ;;  %v10953_v52 = vld [vmem:[%s15235_s1 + $0xba0] ss:$8 sps:$4 sm:$0xff]  }
 0x2b1   :  { %8157 = vmatprep.subr.bf16.mxu0 %v10870_v53  ;;  %v10956_v53 = vld [vmem:[%s15235_s1 + $0x1ca0] ss:$8 sps:$4 sm:$0xff]  }
 0x2b3   :  { %7461 = vmatpush1.bf16.msra.mxu1 %v10865_v54  ;;  %v10961_v54 = vld [vmem:[%s15235_s1 + $0xbb4] ss:$8 sps:$4 sm:$0xff]  }
 0x2b4   :  { %8158 = vmatpush1.bf16.msra.mxu0 %v10868_v55  ;;  %7462 = vmatprep.subr.bf16.mxu1 %v10873_v56  ;;  %v10964_v55 = vld [vmem:[%s15235_s1 + $0x1cb4] ss:$8 sps:$4 sm:$0xff]   ;;  %v10959_v56 = vld [vmem:[%s15235_s1 + $0xbb0] ss:$8 sps:$4 sm:$0xff]  }
 0x2b5   :  { %8159 = vmatprep.subr.bf16.mxu0 %v10876_v33  ;;  %v10962_v33 = vld [vmem:[%s15235_s1 + $0x1cb0] ss:$8 sps:$4 sm:$0xff]  }
 0x2b7   :  { %7463 = vmatpush1.bf16.msra.mxu1 %v10871_v58  ;;  %v10967_v58 = vld [vmem:[%s15235_s1 + $0xbc4] ss:$8 sps:$4 sm:$0xff]  }
 0x2b8   :  { %8160 = vmatpush1.bf16.msra.mxu0 %v10874_v59  ;;  %7464 = vmatprep.subr.bf16.mxu1 %v10879_v60  ;;  %v10970_v59 = vld [vmem:[%s15235_s1 + $0x1cc4] ss:$8 sps:$4 sm:$0xff]   ;;  %v10965_v60 = vld [vmem:[%s15235_s1 + $0xbc0] ss:$8 sps:$4 sm:$0xff]  }
 0x2b9   :  { %8161 = vmatprep.subr.bf16.mxu0 %v10882_v61  ;;  %v10968_v61 = vld [vmem:[%s15235_s1 + $0x1cc0] ss:$8 sps:$4 sm:$0xff]  }
 0x2bb   :  { %7465 = vmatpush1.bf16.msra.mxu1 %v10877_v62  ;;  %v10973_v62 = vld [vmem:[%s15235_s1 + $0xbd4] ss:$8 sps:$4 sm:$0xff]  }
 0x2bc   :  { %8162 = vmatpush1.bf16.msra.mxu0 %v10880_v39  ;;  %7466 = vmatprep.subr.bf16.mxu1 %v10885_v51  ;;  %v10976_v39 = vld [vmem:[%s15235_s1 + $0x1cd4] ss:$8 sps:$4 sm:$0xff]   ;;  %v10971_v51 = vld [vmem:[%s15235_s1 + $0xbd0] ss:$8 sps:$4 sm:$0xff]  }
 0x2bd   :  { %8163 = vmatprep.subr.bf16.mxu0 %v10888_v63  ;;  %v10974_v63 = vld [vmem:[%s15235_s1 + $0x1cd0] ss:$8 sps:$4 sm:$0xff]  }
 0x2bf   :  { %7467 = vmatpush1.bf16.msra.mxu1 %v10883_v2  ;;  %v10979_v2 = vld [vmem:[%s15235_s1 + $0xbe4] ss:$8 sps:$4 sm:$0xff]  }
 0x2c0   :  { %8164 = vmatpush1.bf16.msra.mxu0 %v10886_v45  ;;  %7477 = vmatprep.subr.bf16.mxu1 %v10893_v57  ;;  %v10982_v45 = vld [vmem:[%s15235_s1 + $0x1ce4] ss:$8 sps:$4 sm:$0xff]   ;;  %v10977_v57 = vld [vmem:[%s15235_s1 + $0xbe0] ss:$8 sps:$4 sm:$0xff]  }
 0x2c1   :  { %8174 = vmatprep.subr.bf16.mxu0 %v10898_v3  ;;  %v10980_v3 = vld [vmem:[%s15235_s1 + $0x1ce0] ss:$8 sps:$4 sm:$0xff]  }
 0x2c2   :  { %7469 = vmatmul.mubr.bf16.vlgmr.msra.gmra.mrb[0].mxu1 %v8487_v4  ;;  %v10985_v4 = vld [vmem:[%s15235_s1 + $0xbf4] ss:$8 sps:$4 sm:$0xff]  }
 0x2c3   :  { %8166 = vmatmul.mubr.bf16.vlgmr.msra.gmra.mrb[0].mxu0 %v8521_v5  ;;  %7478 = vmatpush1.bf16.msra.mxu1 %v10891_v8  ;;  %v10988_v5 = vld [vmem:[%s15235_s1 + $0x1cf4] ss:$8 sps:$4 sm:$0xff]   ;;  %v10983_v8 = vld [vmem:[%s15235_s1 + $0xbf0] ss:$8 sps:$4 sm:$0xff]  }
 0x2c4   :  { %8175 = vmatpush1.bf16.msra.mxu0 %v10896_v0  ;;  %7479 = vmatprep.subr.bf16.mxu1 %v10901_v1  ;;  %v10986_v0 = vld [vmem:[%s15235_s1 + $0x1cf0] ss:$8 sps:$4 sm:$0xff]   ;;  %v10993_v1 = vld [vmem:[%s15235_s1 + $0xc04] ss:$8 sps:$4 sm:$0xff]  }
 0x2c5   :  { %8176 = vmatprep.subr.bf16.mxu0 %v10904_v9  ;;  %7509 = vmatprep.mubr.bf16.mxu1 %v8490_v10  ;;  %v10998_v9 = vld [vmem:[%s15235_s1 + $0x1d04] ss:$8 sps:$4 sm:$0xff]   ;;  %v8489_v10 = vcombine.low %v13870_v6, %v13870_v6  ;;  %v10996_v6 = vld [vmem:[%s15235_s1 + $0x1d00] ss:$8 sps:$4 sm:$0xff]  }
 0x2c6   :  { %8206 = vmatprep.mubr.bf16.mxu0 %v8524_v11  ;;  %v8523_v11 = vcombine.low %v13875_v7, %v13875_v7  ;;  %v11001_v7 = vld [vmem:[%s15235_s1 + $0xc14] ss:$8 sps:$4 sm:$0xff]  }
 0x2c7   :  { %7480 = vmatpush1.bf16.msra.mxu1 %v10899_v12  ;;  %v14080_v12 = vld [vmem:[%s15236_s0 + $0x60] sm:$0xff] }
 0x2c8   :  { %8177 = vmatpush1.bf16.msra.mxu0 %v10902_v13  ;;  %7481 = vmatprep.subr.bf16.mxu1 %v10907_v14  ;;  %v14085_v13 = vld [vmem:[%s15236_s0 + $0xe8] sm:$0xff] }
 0x2c9   :  { %8178 = vmatprep.subr.bf16.mxu0 %v10910_v15  ;;  %v10991_v14 = vld [vmem:[%s15235_s1 + $0xc00] ss:$8 sps:$4 sm:$0xff]   ;;  %v11004_v15 = vld [vmem:[%s15235_s1 + $0x1d14] ss:$8 sps:$4 sm:$0xff]  }
 0x2cb   :  { %7482 = vmatpush1.bf16.msra.mxu1 %v10905_v16  ;;  %v8492_v16 = vcombine.high %v14080_v12, %v14080_v12 }
 0x2cc   :  { %8179 = vmatpush1.bf16.msra.mxu0 %v10908_v17  ;;  %7483 = vmatprep.subr.bf16.mxu1 %v10913_v19  ;;  %v8526_v17 = vcombine.high %v14085_v13, %v14085_v13  ;;  %v10999_v19 = vld [vmem:[%s15235_s1 + $0xc10] ss:$8 sps:$4 sm:$0xff]  }
 0x2cd   :  { %8180 = vmatprep.subr.bf16.mxu0 %v10916_v21  ;;  %v11002_v21 = vld [vmem:[%s15235_s1 + $0x1d10] ss:$8 sps:$4 sm:$0xff]  }
 0x2cf   :  { %7484 = vmatpush1.bf16.msra.mxu1 %v10911_v22  ;;  %v11007_v22 = vld [vmem:[%s15235_s1 + $0xc24] ss:$8 sps:$4 sm:$0xff]  }
 0x2d0   :  { %8181 = vmatpush1.bf16.msra.mxu0 %v10914_v23  ;;  %7485 = vmatprep.subr.bf16.mxu1 %v10919_v26  ;;  %v11010_v23 = vld [vmem:[%s15235_s1 + $0x1d24] ss:$8 sps:$4 sm:$0xff]   ;;  %v11005_v26 = vld [vmem:[%s15235_s1 + $0xc20] ss:$8 sps:$4 sm:$0xff]  }
 0x2d1   :  { %8182 = vmatprep.subr.bf16.mxu0 %v10922_v18  ;;  %v11008_v18 = vld [vmem:[%s15235_s1 + $0x1d20] ss:$8 sps:$4 sm:$0xff]  }
 0x2d3   :  { %7486 = vmatpush1.bf16.msra.mxu1 %v10917_v27  ;;  %v11013_v27 = vld [vmem:[%s15235_s1 + $0xc34] ss:$8 sps:$4 sm:$0xff]  }
 0x2d4   :  { %8183 = vmatpush1.bf16.msra.mxu0 %v10920_v28  ;;  %7487 = vmatprep.subr.bf16.mxu1 %v10925_v30  ;;  %v11016_v28 = vld [vmem:[%s15235_s1 + $0x1d34] ss:$8 sps:$4 sm:$0xff]   ;;  %v11011_v30 = vld [vmem:[%s15235_s1 + $0xc30] ss:$8 sps:$4 sm:$0xff]  }
 0x2d5   :  { %8184 = vmatprep.subr.bf16.mxu0 %v10928_v31  ;;  %v11014_v31 = vld [vmem:[%s15235_s1 + $0x1d30] ss:$8 sps:$4 sm:$0xff]  }
 0x2d7   :  { %7488 = vmatpush1.bf16.msra.mxu1 %v10923_v24  ;;  %v11019_v24 = vld [vmem:[%s15235_s1 + $0xc44] ss:$8 sps:$4 sm:$0xff]  }
 0x2d8   :  { %8185 = vmatpush1.bf16.msra.mxu0 %v10926_v25  ;;  %7489 = vmatprep.subr.bf16.mxu1 %v10931_v34  ;;  %v11022_v25 = vld [vmem:[%s15235_s1 + $0x1d44] ss:$8 sps:$4 sm:$0xff]   ;;  %v11017_v34 = vld [vmem:[%s15235_s1 + $0xc40] ss:$8 sps:$4 sm:$0xff]  }
 0x2d9   :  { %8186 = vmatprep.subr.bf16.mxu0 %v10934_v35  ;;  %v11020_v35 = vld [vmem:[%s15235_s1 + $0x1d40] ss:$8 sps:$4 sm:$0xff]  }
 0x2db   :  { %7490 = vmatpush1.bf16.msra.mxu1 %v10929_v36  ;;  %v11025_v36 = vld [vmem:[%s15235_s1 + $0xc54] ss:$8 sps:$4 sm:$0xff]  }
 0x2dc   :  { %8187 = vmatpush1.bf16.msra.mxu0 %v10932_v37  ;;  %7491 = vmatprep.subr.bf16.mxu1 %v10937_v38  ;;  %v11028_v37 = vld [vmem:[%s15235_s1 + $0x1d54] ss:$8 sps:$4 sm:$0xff]   ;;  %v11023_v38 = vld [vmem:[%s15235_s1 + $0xc50] ss:$8 sps:$4 sm:$0xff]  }
 0x2dd   :  { %8188 = vmatprep.subr.bf16.mxu0 %v10940_v20  ;;  %v11026_v20 = vld [vmem:[%s15235_s1 + $0x1d50] ss:$8 sps:$4 sm:$0xff]  }
 0x2df   :  { %7492 = vmatpush1.bf16.msra.mxu1 %v10935_v40  ;;  %v11031_v40 = vld [vmem:[%s15235_s1 + $0xc64] ss:$8 sps:$4 sm:$0xff]  }
 0x2e0   :  { %8189 = vmatpush1.bf16.msra.mxu0 %v10938_v41  ;;  %7493 = vmatprep.subr.bf16.mxu1 %v10943_v42  ;;  %v11034_v41 = vld [vmem:[%s15235_s1 + $0x1d64] ss:$8 sps:$4 sm:$0xff]   ;;  %v11029_v42 = vld [vmem:[%s15235_s1 + $0xc60] ss:$8 sps:$4 sm:$0xff]  }
 0x2e1   :  { %8190 = vmatprep.subr.bf16.mxu0 %v10946_v43  ;;  %v11032_v43 = vld [vmem:[%s15235_s1 + $0x1d60] ss:$8 sps:$4 sm:$0xff]  }
 0x2e3   :  { %7494 = vmatpush1.bf16.msra.mxu1 %v10941_v44  ;;  %v11037_v44 = vld [vmem:[%s15235_s1 + $0xc74] ss:$8 sps:$4 sm:$0xff]  }
 0x2e4   :  { %8191 = vmatpush1.bf16.msra.mxu0 %v10944_v32  ;;  %7495 = vmatprep.subr.bf16.mxu1 %v10949_v46  ;;  %v11040_v32 = vld [vmem:[%s15235_s1 + $0x1d74] ss:$8 sps:$4 sm:$0xff]   ;;  %v11035_v46 = vld [vmem:[%s15235_s1 + $0xc70] ss:$8 sps:$4 sm:$0xff]  }
 0x2e5   :  { %8192 = vmatprep.subr.bf16.mxu0 %v10952_v47  ;;  %v11038_v47 = vld [vmem:[%s15235_s1 + $0x1d70] ss:$8 sps:$4 sm:$0xff]  }
 0x2e7   :  { %7496 = vmatpush1.bf16.msra.mxu1 %v10947_v48  ;;  %v11043_v48 = vld [vmem:[%s15235_s1 + $0xc84] ss:$8 sps:$4 sm:$0xff]  }
 0x2e8   :  { %8193 = vmatpush1.bf16.msra.mxu0 %v10950_v49  ;;  %7497 = vmatprep.subr.bf16.mxu1 %v10955_v50  ;;  %v11046_v49 = vld [vmem:[%s15235_s1 + $0x1d84] ss:$8 sps:$4 sm:$0xff]   ;;  %v11041_v50 = vld [vmem:[%s15235_s1 + $0xc80] ss:$8 sps:$4 sm:$0xff]  }
 0x2e9   :  { %8194 = vmatprep.subr.bf16.mxu0 %v10958_v29  ;;  %v11044_v29 = vld [vmem:[%s15235_s1 + $0x1d80] ss:$8 sps:$4 sm:$0xff]  }
 0x2eb   :  { %7498 = vmatpush1.bf16.msra.mxu1 %v10953_v52  ;;  %v11049_v52 = vld [vmem:[%s15235_s1 + $0xc94] ss:$8 sps:$4 sm:$0xff]  }
 0x2ec   :  { %8195 = vmatpush1.bf16.msra.mxu0 %v10956_v53  ;;  %7499 = vmatprep.subr.bf16.mxu1 %v10961_v54  ;;  %v11052_v53 = vld [vmem:[%s15235_s1 + $0x1d94] ss:$8 sps:$4 sm:$0xff]   ;;  %v11047_v54 = vld [vmem:[%s15235_s1 + $0xc90] ss:$8 sps:$4 sm:$0xff]  }
 0x2ed   :  { %8196 = vmatprep.subr.bf16.mxu0 %v10964_v55  ;;  %v11050_v55 = vld [vmem:[%s15235_s1 + $0x1d90] ss:$8 sps:$4 sm:$0xff]  }
 0x2ef   :  { %7500 = vmatpush1.bf16.msra.mxu1 %v10959_v56  ;;  %v11055_v56 = vld [vmem:[%s15235_s1 + $0xca4] ss:$8 sps:$4 sm:$0xff]  }
 0x2f0   :  { %8197 = vmatpush1.bf16.msra.mxu0 %v10962_v33  ;;  %7501 = vmatprep.subr.bf16.mxu1 %v10967_v58  ;;  %v11058_v33 = vld [vmem:[%s15235_s1 + $0x1da4] ss:$8 sps:$4 sm:$0xff]   ;;  %v11053_v58 = vld [vmem:[%s15235_s1 + $0xca0] ss:$8 sps:$4 sm:$0xff]  }
 0x2f1   :  { %8198 = vmatprep.subr.bf16.mxu0 %v10970_v59  ;;  %v11056_v59 = vld [vmem:[%s15235_s1 + $0x1da0] ss:$8 sps:$4 sm:$0xff]  }
 0x2f3   :  { %7502 = vmatpush1.bf16.msra.mxu1 %v10965_v60  ;;  %v11061_v60 = vld [vmem:[%s15235_s1 + $0xcb4] ss:$8 sps:$4 sm:$0xff]  }
 0x2f4   :  { %8199 = vmatpush1.bf16.msra.mxu0 %v10968_v61  ;;  %7503 = vmatprep.subr.bf16.mxu1 %v10973_v62  ;;  %v11064_v61 = vld [vmem:[%s15235_s1 + $0x1db4] ss:$8 sps:$4 sm:$0xff]   ;;  %v11059_v62 = vld [vmem:[%s15235_s1 + $0xcb0] ss:$8 sps:$4 sm:$0xff]  }
 0x2f5   :  { %8200 = vmatprep.subr.bf16.mxu0 %v10976_v39  ;;  %v11062_v39 = vld [vmem:[%s15235_s1 + $0x1db0] ss:$8 sps:$4 sm:$0xff]  }
 0x2f7   :  { %7504 = vmatpush1.bf16.msra.mxu1 %v10971_v51  ;;  %v11067_v51 = vld [vmem:[%s15235_s1 + $0xcc4] ss:$8 sps:$4 sm:$0xff]  }
 0x2f8   :  { %8201 = vmatpush1.bf16.msra.mxu0 %v10974_v63  ;;  %7505 = vmatprep.subr.bf16.mxu1 %v10979_v2  ;;  %v11070_v63 = vld [vmem:[%s15235_s1 + $0x1dc4] ss:$8 sps:$4 sm:$0xff]   ;;  %v11065_v2 = vld [vmem:[%s15235_s1 + $0xcc0] ss:$8 sps:$4 sm:$0xff]  }
 0x2f9   :  { %8202 = vmatprep.subr.bf16.mxu0 %v10982_v45  ;;  %v11068_v45 = vld [vmem:[%s15235_s1 + $0x1dc0] ss:$8 sps:$4 sm:$0xff]  }
 0x2fb   :  { %7506 = vmatpush1.bf16.msra.mxu1 %v10977_v57  ;;  %v11073_v57 = vld [vmem:[%s15235_s1 + $0xcd4] ss:$8 sps:$4 sm:$0xff]  }
 0x2fc   :  { %8203 = vmatpush1.bf16.msra.mxu0 %v10980_v3  ;;  %7507 = vmatprep.subr.bf16.mxu1 %v10985_v4  ;;  %v11076_v3 = vld [vmem:[%s15235_s1 + $0x1dd4] ss:$8 sps:$4 sm:$0xff]   ;;  %v11071_v4 = vld [vmem:[%s15235_s1 + $0xcd0] ss:$8 sps:$4 sm:$0xff]  }
 0x2fd   :  { %8204 = vmatprep.subr.bf16.mxu0 %v10988_v5  ;;  %v11074_v5 = vld [vmem:[%s15235_s1 + $0x1dd0] ss:$8 sps:$4 sm:$0xff]  }
 0x2ff   :  { %7508 = vmatpush1.bf16.msra.mxu1 %v10983_v8  ;;  %v11079_v8 = vld [vmem:[%s15235_s1 + $0xce4] ss:$8 sps:$4 sm:$0xff]  }
 0x300   :  { %8205 = vmatpush1.bf16.msra.mxu0 %v10986_v0  ;;  %7518 = vmatprep.subr.bf16.mxu1 %v10993_v1  ;;  %v11082_v0 = vld [vmem:[%s15235_s1 + $0x1de4] ss:$8 sps:$4 sm:$0xff]   ;;  %v11077_v1 = vld [vmem:[%s15235_s1 + $0xce0] ss:$8 sps:$4 sm:$0xff]  }
 0x301   :  { %8215 = vmatprep.subr.bf16.mxu0 %v10998_v9  ;;  %v11080_v9 = vld [vmem:[%s15235_s1 + $0x1de0] ss:$8 sps:$4 sm:$0xff]  }
 0x302   :  { %7510 = vmatmul.mubr.bf16.vlgmr.msra.gmra.mrb[0].mxu1 %v8489_v10  ;;  %v11085_v10 = vld [vmem:[%s15235_s1 + $0xcf4] ss:$8 sps:$4 sm:$0xff]  }
 0x303   :  { %8207 = vmatmul.mubr.bf16.vlgmr.msra.gmra.mrb[0].mxu0 %v8523_v11  ;;  %7519 = vmatpush1.bf16.msra.mxu1 %v10991_v14  ;;  %v11088_v11 = vld [vmem:[%s15235_s1 + $0x1df4] ss:$8 sps:$4 sm:$0xff]   ;;  %v11083_v14 = vld [vmem:[%s15235_s1 + $0xcf0] ss:$8 sps:$4 sm:$0xff]  }
 0x304   :  { %8216 = vmatpush1.bf16.msra.mxu0 %v10996_v6  ;;  %7520 = vmatprep.subr.bf16.mxu1 %v11001_v7  ;;  %v11086_v6 = vld [vmem:[%s15235_s1 + $0x1df0] ss:$8 sps:$4 sm:$0xff]   ;;  %v11093_v7 = vld [vmem:[%s15235_s1 + $0xd04] ss:$8 sps:$4 sm:$0xff]  }
 0x305   :  { %8217 = vmatprep.subr.bf16.mxu0 %v11004_v15  ;;  %7550 = vmatprep.mubr.bf16.mxu1 %v8492_v16  ;;  %v11098_v15 = vld [vmem:[%s15235_s1 + $0x1e04] ss:$8 sps:$4 sm:$0xff]   ;;  %v8491_v16 = vcombine.low %v14080_v12, %v14080_v12  ;;  %v11096_v12 = vld [vmem:[%s15235_s1 + $0x1e00] ss:$8 sps:$4 sm:$0xff]  }
 0x306   :  { %8247 = vmatprep.mubr.bf16.mxu0 %v8526_v17  ;;  %v8525_v17 = vcombine.low %v14085_v13, %v14085_v13  ;;  %v11101_v13 = vld [vmem:[%s15235_s1 + $0xd14] ss:$8 sps:$4 sm:$0xff]  }
 0x307   :  { %7521 = vmatpush1.bf16.msra.mxu1 %v10999_v19  ;;  %v14290_v19 = vld [vmem:[%s15236_s0 + $0x68] sm:$0xff] }
 0x308   :  { %8218 = vmatpush1.bf16.msra.mxu0 %v11002_v21  ;;  %7522 = vmatprep.subr.bf16.mxu1 %v11007_v22  ;;  %v14295_v21 = vld [vmem:[%s15236_s0 + $0xf0] sm:$0xff]  ;;  %v11091_v22 = vld [vmem:[%s15235_s1 + $0xd00] ss:$8 sps:$4 sm:$0xff]  }
 0x309   :  { %8219 = vmatprep.subr.bf16.mxu0 %v11010_v23  ;;  %v11104_v23 = vld [vmem:[%s15235_s1 + $0x1e14] ss:$8 sps:$4 sm:$0xff]  }
 0x30b   :  { %7523 = vmatpush1.bf16.msra.mxu1 %v11005_v26  ;;  %v8494_v26 = vcombine.high %v14290_v19, %v14290_v19 }
 0x30c   :  { %8220 = vmatpush1.bf16.msra.mxu0 %v11008_v18  ;;  %7524 = vmatprep.subr.bf16.mxu1 %v11013_v27  ;;  %v8528_v18 = vcombine.high %v14295_v21, %v14295_v21  ;;  %v11099_v27 = vld [vmem:[%s15235_s1 + $0xd10] ss:$8 sps:$4 sm:$0xff]  }
 0x30d   :  { %8221 = vmatprep.subr.bf16.mxu0 %v11016_v28  ;;  %v11102_v28 = vld [vmem:[%s15235_s1 + $0x1e10] ss:$8 sps:$4 sm:$0xff]  }
 0x30f   :  { %7525 = vmatpush1.bf16.msra.mxu1 %v11011_v30  ;;  %v11107_v30 = vld [vmem:[%s15235_s1 + $0xd24] ss:$8 sps:$4 sm:$0xff]  }
 0x310   :  { %8222 = vmatpush1.bf16.msra.mxu0 %v11014_v31  ;;  %7526 = vmatprep.subr.bf16.mxu1 %v11019_v24  ;;  %v11110_v31 = vld [vmem:[%s15235_s1 + $0x1e24] ss:$8 sps:$4 sm:$0xff]   ;;  %v11105_v24 = vld [vmem:[%s15235_s1 + $0xd20] ss:$8 sps:$4 sm:$0xff]  }
 0x311   :  { %8223 = vmatprep.subr.bf16.mxu0 %v11022_v25  ;;  %v11108_v25 = vld [vmem:[%s15235_s1 + $0x1e20] ss:$8 sps:$4 sm:$0xff]  }
 0x313   :  { %7527 = vmatpush1.bf16.msra.mxu1 %v11017_v34  ;;  %v11113_v34 = vld [vmem:[%s15235_s1 + $0xd34] ss:$8 sps:$4 sm:$0xff]  }
 0x314   :  { %8224 = vmatpush1.bf16.msra.mxu0 %v11020_v35  ;;  %7528 = vmatprep.subr.bf16.mxu1 %v11025_v36  ;;  %v11116_v35 = vld [vmem:[%s15235_s1 + $0x1e34] ss:$8 sps:$4 sm:$0xff]   ;;  %v11111_v36 = vld [vmem:[%s15235_s1 + $0xd30] ss:$8 sps:$4 sm:$0xff]  }
 0x315   :  { %8225 = vmatprep.subr.bf16.mxu0 %v11028_v37  ;;  %v11114_v37 = vld [vmem:[%s15235_s1 + $0x1e30] ss:$8 sps:$4 sm:$0xff]  }
 0x317   :  { %7529 = vmatpush1.bf16.msra.mxu1 %v11023_v38  ;;  %v11119_v38 = vld [vmem:[%s15235_s1 + $0xd44] ss:$8 sps:$4 sm:$0xff]  }
 0x318   :  { %8226 = vmatpush1.bf16.msra.mxu0 %v11026_v20  ;;  %7530 = vmatprep.subr.bf16.mxu1 %v11031_v40  ;;  %v11122_v20 = vld [vmem:[%s15235_s1 + $0x1e44] ss:$8 sps:$4 sm:$0xff]   ;;  %v11117_v40 = vld [vmem:[%s15235_s1 + $0xd40] ss:$8 sps:$4 sm:$0xff]  }
 0x319   :  { %8227 = vmatprep.subr.bf16.mxu0 %v11034_v41  ;;  %v11120_v41 = vld [vmem:[%s15235_s1 + $0x1e40] ss:$8 sps:$4 sm:$0xff]  }
 0x31b   :  { %7531 = vmatpush1.bf16.msra.mxu1 %v11029_v42  ;;  %v11125_v42 = vld [vmem:[%s15235_s1 + $0xd54] ss:$8 sps:$4 sm:$0xff]  }
 0x31c   :  { %8228 = vmatpush1.bf16.msra.mxu0 %v11032_v43  ;;  %7532 = vmatprep.subr.bf16.mxu1 %v11037_v44  ;;  %v11128_v43 = vld [vmem:[%s15235_s1 + $0x1e54] ss:$8 sps:$4 sm:$0xff]   ;;  %v11123_v44 = vld [vmem:[%s15235_s1 + $0xd50] ss:$8 sps:$4 sm:$0xff]  }
 0x31d   :  { %8229 = vmatprep.subr.bf16.mxu0 %v11040_v32  ;;  %v11126_v32 = vld [vmem:[%s15235_s1 + $0x1e50] ss:$8 sps:$4 sm:$0xff]  }
 0x31f   :  { %7533 = vmatpush1.bf16.msra.mxu1 %v11035_v46  ;;  %v11131_v46 = vld [vmem:[%s15235_s1 + $0xd64] ss:$8 sps:$4 sm:$0xff]  }
 0x320   :  { %8230 = vmatpush1.bf16.msra.mxu0 %v11038_v47  ;;  %7534 = vmatprep.subr.bf16.mxu1 %v11043_v48  ;;  %v11134_v47 = vld [vmem:[%s15235_s1 + $0x1e64] ss:$8 sps:$4 sm:$0xff]   ;;  %v11129_v48 = vld [vmem:[%s15235_s1 + $0xd60] ss:$8 sps:$4 sm:$0xff]  }
 0x321   :  { %8231 = vmatprep.subr.bf16.mxu0 %v11046_v49  ;;  %v11132_v49 = vld [vmem:[%s15235_s1 + $0x1e60] ss:$8 sps:$4 sm:$0xff]  }
 0x323   :  { %7535 = vmatpush1.bf16.msra.mxu1 %v11041_v50  ;;  %v11137_v50 = vld [vmem:[%s15235_s1 + $0xd74] ss:$8 sps:$4 sm:$0xff]  }
 0x324   :  { %8232 = vmatpush1.bf16.msra.mxu0 %v11044_v29  ;;  %7536 = vmatprep.subr.bf16.mxu1 %v11049_v52  ;;  %v11140_v29 = vld [vmem:[%s15235_s1 + $0x1e74] ss:$8 sps:$4 sm:$0xff]   ;;  %v11135_v52 = vld [vmem:[%s15235_s1 + $0xd70] ss:$8 sps:$4 sm:$0xff]  }
 0x325   :  { %8233 = vmatprep.subr.bf16.mxu0 %v11052_v53  ;;  %v11138_v53 = vld [vmem:[%s15235_s1 + $0x1e70] ss:$8 sps:$4 sm:$0xff]  }
 0x327   :  { %7537 = vmatpush1.bf16.msra.mxu1 %v11047_v54  ;;  %v11143_v54 = vld [vmem:[%s15235_s1 + $0xd84] ss:$8 sps:$4 sm:$0xff]  }
 0x328   :  { %8234 = vmatpush1.bf16.msra.mxu0 %v11050_v55  ;;  %7538 = vmatprep.subr.bf16.mxu1 %v11055_v56  ;;  %v11146_v55 = vld [vmem:[%s15235_s1 + $0x1e84] ss:$8 sps:$4 sm:$0xff]   ;;  %v11141_v56 = vld [vmem:[%s15235_s1 + $0xd80] ss:$8 sps:$4 sm:$0xff]  }
 0x329   :  { %8235 = vmatprep.subr.bf16.mxu0 %v11058_v33  ;;  %v11144_v33 = vld [vmem:[%s15235_s1 + $0x1e80] ss:$8 sps:$4 sm:$0xff]  }
 0x32b   :  { %7539 = vmatpush1.bf16.msra.mxu1 %v11053_v58  ;;  %v11149_v58 = vld [vmem:[%s15235_s1 + $0xd94] ss:$8 sps:$4 sm:$0xff]  }
 0x32c   :  { %8236 = vmatpush1.bf16.msra.mxu0 %v11056_v59  ;;  %7540 = vmatprep.subr.bf16.mxu1 %v11061_v60  ;;  %v11152_v59 = vld [vmem:[%s15235_s1 + $0x1e94] ss:$8 sps:$4 sm:$0xff]   ;;  %v11147_v60 = vld [vmem:[%s15235_s1 + $0xd90] ss:$8 sps:$4 sm:$0xff]  }
 0x32d   :  { %8237 = vmatprep.subr.bf16.mxu0 %v11064_v61  ;;  %v11150_v61 = vld [vmem:[%s15235_s1 + $0x1e90] ss:$8 sps:$4 sm:$0xff]  }
 0x32f   :  { %7541 = vmatpush1.bf16.msra.mxu1 %v11059_v62  ;;  %v11155_v62 = vld [vmem:[%s15235_s1 + $0xda4] ss:$8 sps:$4 sm:$0xff]  }
 0x330   :  { %8238 = vmatpush1.bf16.msra.mxu0 %v11062_v39  ;;  %7542 = vmatprep.subr.bf16.mxu1 %v11067_v51  ;;  %v11158_v39 = vld [vmem:[%s15235_s1 + $0x1ea4] ss:$8 sps:$4 sm:$0xff]   ;;  %v11153_v51 = vld [vmem:[%s15235_s1 + $0xda0] ss:$8 sps:$4 sm:$0xff]  }
 0x331   :  { %8239 = vmatprep.subr.bf16.mxu0 %v11070_v63  ;;  %v11156_v63 = vld [vmem:[%s15235_s1 + $0x1ea0] ss:$8 sps:$4 sm:$0xff]  }
 0x333   :  { %7543 = vmatpush1.bf16.msra.mxu1 %v11065_v2  ;;  %v11161_v2 = vld [vmem:[%s15235_s1 + $0xdb4] ss:$8 sps:$4 sm:$0xff]  }
 0x334   :  { %8240 = vmatpush1.bf16.msra.mxu0 %v11068_v45  ;;  %7544 = vmatprep.subr.bf16.mxu1 %v11073_v57  ;;  %v11164_v45 = vld [vmem:[%s15235_s1 + $0x1eb4] ss:$8 sps:$4 sm:$0xff]   ;;  %v11159_v57 = vld [vmem:[%s15235_s1 + $0xdb0] ss:$8 sps:$4 sm:$0xff]  }
 0x335   :  { %8241 = vmatprep.subr.bf16.mxu0 %v11076_v3  ;;  %v11162_v3 = vld [vmem:[%s15235_s1 + $0x1eb0] ss:$8 sps:$4 sm:$0xff]  }
 0x337   :  { %7545 = vmatpush1.bf16.msra.mxu1 %v11071_v4  ;;  %v11167_v4 = vld [vmem:[%s15235_s1 + $0xdc4] ss:$8 sps:$4 sm:$0xff]  }
 0x338   :  { %8242 = vmatpush1.bf16.msra.mxu0 %v11074_v5  ;;  %7546 = vmatprep.subr.bf16.mxu1 %v11079_v8  ;;  %v11170_v5 = vld [vmem:[%s15235_s1 + $0x1ec4] ss:$8 sps:$4 sm:$0xff]   ;;  %v11165_v8 = vld [vmem:[%s15235_s1 + $0xdc0] ss:$8 sps:$4 sm:$0xff]  }
 0x339   :  { %8243 = vmatprep.subr.bf16.mxu0 %v11082_v0  ;;  %v11168_v0 = vld [vmem:[%s15235_s1 + $0x1ec0] ss:$8 sps:$4 sm:$0xff]  }
 0x33b   :  { %7547 = vmatpush1.bf16.msra.mxu1 %v11077_v1  ;;  %v11173_v1 = vld [vmem:[%s15235_s1 + $0xdd4] ss:$8 sps:$4 sm:$0xff]  }
 0x33c   :  { %8244 = vmatpush1.bf16.msra.mxu0 %v11080_v9  ;;  %7548 = vmatprep.subr.bf16.mxu1 %v11085_v10  ;;  %v11176_v9 = vld [vmem:[%s15235_s1 + $0x1ed4] ss:$8 sps:$4 sm:$0xff]   ;;  %v11171_v10 = vld [vmem:[%s15235_s1 + $0xdd0] ss:$8 sps:$4 sm:$0xff]  }
 0x33d   :  { %8245 = vmatprep.subr.bf16.mxu0 %v11088_v11  ;;  %v11174_v11 = vld [vmem:[%s15235_s1 + $0x1ed0] ss:$8 sps:$4 sm:$0xff]  }
 0x33f   :  { %7549 = vmatpush1.bf16.msra.mxu1 %v11083_v14  ;;  %v11179_v14 = vld [vmem:[%s15235_s1 + $0xde4] ss:$8 sps:$4 sm:$0xff]  }
 0x340   :  { %8246 = vmatpush1.bf16.msra.mxu0 %v11086_v6  ;;  %7559 = vmatprep.subr.bf16.mxu1 %v11093_v7  ;;  %v11182_v6 = vld [vmem:[%s15235_s1 + $0x1ee4] ss:$8 sps:$4 sm:$0xff]   ;;  %v11177_v7 = vld [vmem:[%s15235_s1 + $0xde0] ss:$8 sps:$4 sm:$0xff]  }
 0x341   :  { %8256 = vmatprep.subr.bf16.mxu0 %v11098_v15  ;;  %v11180_v15 = vld [vmem:[%s15235_s1 + $0x1ee0] ss:$8 sps:$4 sm:$0xff]  }
 0x342   :  { %7551 = vmatmul.mubr.bf16.vlgmr.msra.gmra.mrb[0].mxu1 %v8491_v16  ;;  %v11185_v16 = vld [vmem:[%s15235_s1 + $0xdf4] ss:$8 sps:$4 sm:$0xff]  }
 0x343   :  { %8248 = vmatmul.mubr.bf16.vlgmr.msra.gmra.mrb[0].mxu0 %v8525_v17  ;;  %7560 = vmatpush1.bf16.msra.mxu1 %v11091_v22  ;;  %v11188_v17 = vld [vmem:[%s15235_s1 + $0x1ef4] ss:$8 sps:$4 sm:$0xff]   ;;  %v11183_v22 = vld [vmem:[%s15235_s1 + $0xdf0] ss:$8 sps:$4 sm:$0xff]  }
 0x344   :  { %8257 = vmatpush1.bf16.msra.mxu0 %v11096_v12  ;;  %7561 = vmatprep.subr.bf16.mxu1 %v11101_v13  ;;  %v11186_v12 = vld [vmem:[%s15235_s1 + $0x1ef0] ss:$8 sps:$4 sm:$0xff]   ;;  %v11193_v13 = vld [vmem:[%s15235_s1 + $0xe04] ss:$8 sps:$4 sm:$0xff]  }
 0x345   :  { %8258 = vmatprep.subr.bf16.mxu0 %v11104_v23  ;;  %7591 = vmatprep.mubr.bf16.mxu1 %v8494_v26  ;;  %v11198_v23 = vld [vmem:[%s15235_s1 + $0x1f04] ss:$8 sps:$4 sm:$0xff]   ;;  %v8493_v26 = vcombine.low %v14290_v19, %v14290_v19  ;;  %v11196_v19 = vld [vmem:[%s15235_s1 + $0x1f00] ss:$8 sps:$4 sm:$0xff]  }
 0x346   :  { %8288 = vmatprep.mubr.bf16.mxu0 %v8528_v18  ;;  %v8527_v18 = vcombine.low %v14295_v21, %v14295_v21  ;;  %v11201_v21 = vld [vmem:[%s15235_s1 + $0xe14] ss:$8 sps:$4 sm:$0xff]  }
 0x347   :  { %7562 = vmatpush1.bf16.msra.mxu1 %v11099_v27  ;;  %v14500_v27 = vld [vmem:[%s15236_s0 + $0x70] sm:$0xff] }
 0x348   :  { %8259 = vmatpush1.bf16.msra.mxu0 %v11102_v28  ;;  %7563 = vmatprep.subr.bf16.mxu1 %v11107_v30  ;;  %v14505_v28 = vld [vmem:[%s15236_s0 + $0xf8] sm:$0xff]  ;;  %v11191_v30 = vld [vmem:[%s15235_s1 + $0xe00] ss:$8 sps:$4 sm:$0xff]  }
 0x349   :  { %8260 = vmatprep.subr.bf16.mxu0 %v11110_v31  ;;  %v11204_v31 = vld [vmem:[%s15235_s1 + $0x1f14] ss:$8 sps:$4 sm:$0xff]  }
 0x34b   :  { %7564 = vmatpush1.bf16.msra.mxu1 %v11105_v24  ;;  %v8496_v24 = vcombine.high %v14500_v27, %v14500_v27 }
 0x34c   :  { %8261 = vmatpush1.bf16.msra.mxu0 %v11108_v25  ;;  %7565 = vmatprep.subr.bf16.mxu1 %v11113_v34  ;;  %v8530_v25 = vcombine.high %v14505_v28, %v14505_v28  ;;  %v11199_v34 = vld [vmem:[%s15235_s1 + $0xe10] ss:$8 sps:$4 sm:$0xff]  }
 0x34d   :  { %8262 = vmatprep.subr.bf16.mxu0 %v11116_v35  ;;  %v11202_v35 = vld [vmem:[%s15235_s1 + $0x1f10] ss:$8 sps:$4 sm:$0xff]  }
 0x34f   :  { %7566 = vmatpush1.bf16.msra.mxu1 %v11111_v36  ;;  %v11207_v36 = vld [vmem:[%s15235_s1 + $0xe24] ss:$8 sps:$4 sm:$0xff]  }
 0x350   :  { %8263 = vmatpush1.bf16.msra.mxu0 %v11114_v37  ;;  %7567 = vmatprep.subr.bf16.mxu1 %v11119_v38  ;;  %v11210_v37 = vld [vmem:[%s15235_s1 + $0x1f24] ss:$8 sps:$4 sm:$0xff]   ;;  %v11205_v38 = vld [vmem:[%s15235_s1 + $0xe20] ss:$8 sps:$4 sm:$0xff]  }
 0x351   :  { %8264 = vmatprep.subr.bf16.mxu0 %v11122_v20  ;;  %v11208_v20 = vld [vmem:[%s15235_s1 + $0x1f20] ss:$8 sps:$4 sm:$0xff]  }
 0x353   :  { %7568 = vmatpush1.bf16.msra.mxu1 %v11117_v40  ;;  %v11213_v40 = vld [vmem:[%s15235_s1 + $0xe34] ss:$8 sps:$4 sm:$0xff]  }
 0x354   :  { %8265 = vmatpush1.bf16.msra.mxu0 %v11120_v41  ;;  %7569 = vmatprep.subr.bf16.mxu1 %v11125_v42  ;;  %v11216_v41 = vld [vmem:[%s15235_s1 + $0x1f34] ss:$8 sps:$4 sm:$0xff]   ;;  %v11211_v42 = vld [vmem:[%s15235_s1 + $0xe30] ss:$8 sps:$4 sm:$0xff]  }
 0x355   :  { %8266 = vmatprep.subr.bf16.mxu0 %v11128_v43  ;;  %v11214_v43 = vld [vmem:[%s15235_s1 + $0x1f30] ss:$8 sps:$4 sm:$0xff]  }
 0x357   :  { %7570 = vmatpush1.bf16.msra.mxu1 %v11123_v44  ;;  %v11219_v44 = vld [vmem:[%s15235_s1 + $0xe44] ss:$8 sps:$4 sm:$0xff]  }
 0x358   :  { %8267 = vmatpush1.bf16.msra.mxu0 %v11126_v32  ;;  %7571 = vmatprep.subr.bf16.mxu1 %v11131_v46  ;;  %v11222_v32 = vld [vmem:[%s15235_s1 + $0x1f44] ss:$8 sps:$4 sm:$0xff]   ;;  %v11217_v46 = vld [vmem:[%s15235_s1 + $0xe40] ss:$8 sps:$4 sm:$0xff]  }
 0x359   :  { %8268 = vmatprep.subr.bf16.mxu0 %v11134_v47  ;;  %v11220_v47 = vld [vmem:[%s15235_s1 + $0x1f40] ss:$8 sps:$4 sm:$0xff]  }
 0x35b   :  { %7572 = vmatpush1.bf16.msra.mxu1 %v11129_v48  ;;  %v11225_v48 = vld [vmem:[%s15235_s1 + $0xe54] ss:$8 sps:$4 sm:$0xff]  }
 0x35c   :  { %8269 = vmatpush1.bf16.msra.mxu0 %v11132_v49  ;;  %7573 = vmatprep.subr.bf16.mxu1 %v11137_v50  ;;  %v11228_v49 = vld [vmem:[%s15235_s1 + $0x1f54] ss:$8 sps:$4 sm:$0xff]   ;;  %v11223_v50 = vld [vmem:[%s15235_s1 + $0xe50] ss:$8 sps:$4 sm:$0xff]  }
 0x35d   :  { %8270 = vmatprep.subr.bf16.mxu0 %v11140_v29  ;;  %v11226_v29 = vld [vmem:[%s15235_s1 + $0x1f50] ss:$8 sps:$4 sm:$0xff]  }
 0x35f   :  { %7574 = vmatpush1.bf16.msra.mxu1 %v11135_v52  ;;  %v11231_v52 = vld [vmem:[%s15235_s1 + $0xe64] ss:$8 sps:$4 sm:$0xff]  }
 0x360   :  { %8271 = vmatpush1.bf16.msra.mxu0 %v11138_v53  ;;  %7575 = vmatprep.subr.bf16.mxu1 %v11143_v54  ;;  %v11234_v53 = vld [vmem:[%s15235_s1 + $0x1f64] ss:$8 sps:$4 sm:$0xff]   ;;  %v11229_v54 = vld [vmem:[%s15235_s1 + $0xe60] ss:$8 sps:$4 sm:$0xff]  }
 0x361   :  { %8272 = vmatprep.subr.bf16.mxu0 %v11146_v55  ;;  %v11232_v55 = vld [vmem:[%s15235_s1 + $0x1f60] ss:$8 sps:$4 sm:$0xff]  }
 0x363   :  { %7576 = vmatpush1.bf16.msra.mxu1 %v11141_v56  ;;  %v11237_v56 = vld [vmem:[%s15235_s1 + $0xe74] ss:$8 sps:$4 sm:$0xff]  }
 0x364   :  { %8273 = vmatpush1.bf16.msra.mxu0 %v11144_v33  ;;  %7577 = vmatprep.subr.bf16.mxu1 %v11149_v58  ;;  %v11240_v33 = vld [vmem:[%s15235_s1 + $0x1f74] ss:$8 sps:$4 sm:$0xff]   ;;  %v11235_v58 = vld [vmem:[%s15235_s1 + $0xe70] ss:$8 sps:$4 sm:$0xff]  }
 0x365   :  { %8274 = vmatprep.subr.bf16.mxu0 %v11152_v59  ;;  %v11238_v59 = vld [vmem:[%s15235_s1 + $0x1f70] ss:$8 sps:$4 sm:$0xff]  }
 0x367   :  { %7578 = vmatpush1.bf16.msra.mxu1 %v11147_v60  ;;  %v11243_v60 = vld [vmem:[%s15235_s1 + $0xe84] ss:$8 sps:$4 sm:$0xff]  }
 0x368   :  { %8275 = vmatpush1.bf16.msra.mxu0 %v11150_v61  ;;  %7579 = vmatprep.subr.bf16.mxu1 %v11155_v62  ;;  %v11246_v61 = vld [vmem:[%s15235_s1 + $0x1f84] ss:$8 sps:$4 sm:$0xff]   ;;  %v11241_v62 = vld [vmem:[%s15235_s1 + $0xe80] ss:$8 sps:$4 sm:$0xff]  }
 0x369   :  { %8276 = vmatprep.subr.bf16.mxu0 %v11158_v39  ;;  %v11244_v39 = vld [vmem:[%s15235_s1 + $0x1f80] ss:$8 sps:$4 sm:$0xff]  }
 0x36b   :  { %7580 = vmatpush1.bf16.msra.mxu1 %v11153_v51  ;;  %v11249_v51 = vld [vmem:[%s15235_s1 + $0xe94] ss:$8 sps:$4 sm:$0xff]  }
 0x36c   :  { %8277 = vmatpush1.bf16.msra.mxu0 %v11156_v63  ;;  %7581 = vmatprep.subr.bf16.mxu1 %v11161_v2  ;;  %v11252_v63 = vld [vmem:[%s15235_s1 + $0x1f94] ss:$8 sps:$4 sm:$0xff]   ;;  %v11247_v2 = vld [vmem:[%s15235_s1 + $0xe90] ss:$8 sps:$4 sm:$0xff]  }
 0x36d   :  { %8278 = vmatprep.subr.bf16.mxu0 %v11164_v45  ;;  %v11250_v45 = vld [vmem:[%s15235_s1 + $0x1f90] ss:$8 sps:$4 sm:$0xff]  }
 0x36f   :  { %7582 = vmatpush1.bf16.msra.mxu1 %v11159_v57  ;;  %v11255_v57 = vld [vmem:[%s15235_s1 + $0xea4] ss:$8 sps:$4 sm:$0xff]  }
 0x370   :  { %8279 = vmatpush1.bf16.msra.mxu0 %v11162_v3  ;;  %7583 = vmatprep.subr.bf16.mxu1 %v11167_v4  ;;  %v11258_v3 = vld [vmem:[%s15235_s1 + $0x1fa4] ss:$8 sps:$4 sm:$0xff]   ;;  %v11253_v4 = vld [vmem:[%s15235_s1 + $0xea0] ss:$8 sps:$4 sm:$0xff]  }
 0x371   :  { %8280 = vmatprep.subr.bf16.mxu0 %v11170_v5  ;;  %v11256_v5 = vld [vmem:[%s15235_s1 + $0x1fa0] ss:$8 sps:$4 sm:$0xff]  }
 0x373   :  { %7584 = vmatpush1.bf16.msra.mxu1 %v11165_v8  ;;  %v11261_v8 = vld [vmem:[%s15235_s1 + $0xeb4] ss:$8 sps:$4 sm:$0xff]  }
 0x374   :  { %8281 = vmatpush1.bf16.msra.mxu0 %v11168_v0  ;;  %7585 = vmatprep.subr.bf16.mxu1 %v11173_v1  ;;  %v11264_v0 = vld [vmem:[%s15235_s1 + $0x1fb4] ss:$8 sps:$4 sm:$0xff]   ;;  %v11259_v1 = vld [vmem:[%s15235_s1 + $0xeb0] ss:$8 sps:$4 sm:$0xff]  }
 0x375   :  { %8282 = vmatprep.subr.bf16.mxu0 %v11176_v9  ;;  %v11262_v9 = vld [vmem:[%s15235_s1 + $0x1fb0] ss:$8 sps:$4 sm:$0xff]  }
 0x377   :  { %7586 = vmatpush1.bf16.msra.mxu1 %v11171_v10  ;;  %v11267_v10 = vld [vmem:[%s15235_s1 + $0xec4] ss:$8 sps:$4 sm:$0xff]  }
 0x378   :  { %8283 = vmatpush1.bf16.msra.mxu0 %v11174_v11  ;;  %7587 = vmatprep.subr.bf16.mxu1 %v11179_v14  ;;  %v11270_v11 = vld [vmem:[%s15235_s1 + $0x1fc4] ss:$8 sps:$4 sm:$0xff]   ;;  %v11265_v14 = vld [vmem:[%s15235_s1 + $0xec0] ss:$8 sps:$4 sm:$0xff]  }
 0x379   :  { %8284 = vmatprep.subr.bf16.mxu0 %v11182_v6  ;;  %v11268_v6 = vld [vmem:[%s15235_s1 + $0x1fc0] ss:$8 sps:$4 sm:$0xff]  }
 0x37b   :  { %7588 = vmatpush1.bf16.msra.mxu1 %v11177_v7  ;;  %v11273_v7 = vld [vmem:[%s15235_s1 + $0xed4] ss:$8 sps:$4 sm:$0xff]  }
 0x37c   :  { %8285 = vmatpush1.bf16.msra.mxu0 %v11180_v15  ;;  %7589 = vmatprep.subr.bf16.mxu1 %v11185_v16  ;;  %v11276_v15 = vld [vmem:[%s15235_s1 + $0x1fd4] ss:$8 sps:$4 sm:$0xff]   ;;  %v11271_v16 = vld [vmem:[%s15235_s1 + $0xed0] ss:$8 sps:$4 sm:$0xff]  }
 0x37d   :  { %8286 = vmatprep.subr.bf16.mxu0 %v11188_v17  ;;  %v11274_v17 = vld [vmem:[%s15235_s1 + $0x1fd0] ss:$8 sps:$4 sm:$0xff]  }
 0x37f   :  { %7590 = vmatpush1.bf16.msra.mxu1 %v11183_v22  ;;  %v11279_v22 = vld [vmem:[%s15235_s1 + $0xee4] ss:$8 sps:$4 sm:$0xff]  }
 0x380   :  { %8287 = vmatpush1.bf16.msra.mxu0 %v11186_v12  ;;  %7600 = vmatprep.subr.bf16.mxu1 %v11193_v13  ;;  %v11282_v12 = vld [vmem:[%s15235_s1 + $0x1fe4] ss:$8 sps:$4 sm:$0xff]   ;;  %v11277_v13 = vld [vmem:[%s15235_s1 + $0xee0] ss:$8 sps:$4 sm:$0xff]  }
 0x381   :  { %8297 = vmatprep.subr.bf16.mxu0 %v11198_v23  ;;  %v11280_v23 = vld [vmem:[%s15235_s1 + $0x1fe0] ss:$8 sps:$4 sm:$0xff]  }
 0x382   :  { %7592 = vmatmul.mubr.bf16.vlgmr.msra.gmra.mrb[0].mxu1 %v8493_v26  ;;  %v11285_v26 = vld [vmem:[%s15235_s1 + $0xef4] ss:$8 sps:$4 sm:$0xff]  }
 0x383   :  { %8289 = vmatmul.mubr.bf16.vlgmr.msra.gmra.mrb[0].mxu0 %v8527_v18  ;;  %7601 = vmatpush1.bf16.msra.mxu1 %v11191_v30  ;;  %v11288_v18 = vld [vmem:[%s15235_s1 + $0x1ff4] ss:$8 sps:$4 sm:$0xff]   ;;  %v11283_v30 = vld [vmem:[%s15235_s1 + $0xef0] ss:$8 sps:$4 sm:$0xff]  }
 0x384   :  { %8298 = vmatpush1.bf16.msra.mxu0 %v11196_v19  ;;  %7602 = vmatprep.subr.bf16.mxu1 %v11201_v21  ;;  %v11286_v19 = vld [vmem:[%s15235_s1 + $0x1ff0] ss:$8 sps:$4 sm:$0xff]   ;;  %v11293_v21 = vld [vmem:[%s15235_s1 + $0xf04] ss:$8 sps:$4 sm:$0xff]  }
 0x385   :  { %8299 = vmatprep.subr.bf16.mxu0 %v11204_v31  ;;  %7632 = vmatprep.mubr.bf16.mxu1 %v8496_v24  ;;  %v11298_v31 = vld [vmem:[%s15235_s1 + $0x2004] ss:$8 sps:$4 sm:$0xff]   ;;  %v8495_v24 = vcombine.low %v14500_v27, %v14500_v27  ;;  %v11296_v27 = vld [vmem:[%s15235_s1 + $0x2000] ss:$8 sps:$4 sm:$0xff]  }
 0x386   :  { %8329 = vmatprep.mubr.bf16.mxu0 %v8530_v25  ;;  %v8529_v25 = vcombine.low %v14505_v28, %v14505_v28  ;;  %v11301_v28 = vld [vmem:[%s15235_s1 + $0xf14] ss:$8 sps:$4 sm:$0xff]  }
 0x387   :  { %7603 = vmatpush1.bf16.msra.mxu1 %v11199_v34  ;;  %v14710_v34 = vld [vmem:[%s15236_s0 + $0x78] sm:$0xff] }
 0x388   :  { %8300 = vmatpush1.bf16.msra.mxu0 %v11202_v35  ;;  %7604 = vmatprep.subr.bf16.mxu1 %v11207_v36  ;;  %v14715_v35 = vld [vmem:[%s15236_s0 + $0x100] sm:$0xff] }
 0x389   :  { %8301 = vmatprep.subr.bf16.mxu0 %v11210_v37  ;;  %v11291_v36 = vld [vmem:[%s15235_s1 + $0xf00] ss:$8 sps:$4 sm:$0xff]   ;;  %v11304_v37 = vld [vmem:[%s15235_s1 + $0x2014] ss:$8 sps:$4 sm:$0xff]  }
 0x38b   :  { %7605 = vmatpush1.bf16.msra.mxu1 %v11205_v38  ;;  %v8498_v38 = vcombine.high %v14710_v34, %v14710_v34 }
 0x38c   :  { %8302 = vmatpush1.bf16.msra.mxu0 %v11208_v20  ;;  %7606 = vmatprep.subr.bf16.mxu1 %v11213_v40  ;;  %v8532_v20 = vcombine.high %v14715_v35, %v14715_v35  ;;  %v11299_v40 = vld [vmem:[%s15235_s1 + $0xf10] ss:$8 sps:$4 sm:$0xff]  }
 0x38d   :  { %8303 = vmatprep.subr.bf16.mxu0 %v11216_v41  ;;  %v11302_v41 = vld [vmem:[%s15235_s1 + $0x2010] ss:$8 sps:$4 sm:$0xff]  }
 0x38f   :  { %7607 = vmatpush1.bf16.msra.mxu1 %v11211_v42  ;;  %v11307_v42 = vld [vmem:[%s15235_s1 + $0xf24] ss:$8 sps:$4 sm:$0xff]  }
 0x390   :  { %8304 = vmatpush1.bf16.msra.mxu0 %v11214_v43  ;;  %7608 = vmatprep.subr.bf16.mxu1 %v11219_v44  ;;  %v11310_v43 = vld [vmem:[%s15235_s1 + $0x2024] ss:$8 sps:$4 sm:$0xff]   ;;  %v11305_v44 = vld [vmem:[%s15235_s1 + $0xf20] ss:$8 sps:$4 sm:$0xff]  }
 0x391   :  { %8305 = vmatprep.subr.bf16.mxu0 %v11222_v32  ;;  %v11308_v32 = vld [vmem:[%s15235_s1 + $0x2020] ss:$8 sps:$4 sm:$0xff]  }
 0x393   :  { %7609 = vmatpush1.bf16.msra.mxu1 %v11217_v46  ;;  %v11313_v46 = vld [vmem:[%s15235_s1 + $0xf34] ss:$8 sps:$4 sm:$0xff]  }
 0x394   :  { %8306 = vmatpush1.bf16.msra.mxu0 %v11220_v47  ;;  %7610 = vmatprep.subr.bf16.mxu1 %v11225_v48  ;;  %v11316_v47 = vld [vmem:[%s15235_s1 + $0x2034] ss:$8 sps:$4 sm:$0xff]   ;;  %v11311_v48 = vld [vmem:[%s15235_s1 + $0xf30] ss:$8 sps:$4 sm:$0xff]  }
 0x395   :  { %8307 = vmatprep.subr.bf16.mxu0 %v11228_v49  ;;  %v11314_v49 = vld [vmem:[%s15235_s1 + $0x2030] ss:$8 sps:$4 sm:$0xff]  }
 0x397   :  { %7611 = vmatpush1.bf16.msra.mxu1 %v11223_v50  ;;  %v11319_v50 = vld [vmem:[%s15235_s1 + $0xf44] ss:$8 sps:$4 sm:$0xff]  }
 0x398   :  { %8308 = vmatpush1.bf16.msra.mxu0 %v11226_v29  ;;  %7612 = vmatprep.subr.bf16.mxu1 %v11231_v52  ;;  %v11322_v29 = vld [vmem:[%s15235_s1 + $0x2044] ss:$8 sps:$4 sm:$0xff]   ;;  %v11317_v52 = vld [vmem:[%s15235_s1 + $0xf40] ss:$8 sps:$4 sm:$0xff]  }
 0x399   :  { %8309 = vmatprep.subr.bf16.mxu0 %v11234_v53  ;;  %v11320_v53 = vld [vmem:[%s15235_s1 + $0x2040] ss:$8 sps:$4 sm:$0xff]  }
 0x39b   :  { %7613 = vmatpush1.bf16.msra.mxu1 %v11229_v54  ;;  %v11325_v54 = vld [vmem:[%s15235_s1 + $0xf54] ss:$8 sps:$4 sm:$0xff]  }
 0x39c   :  { %8310 = vmatpush1.bf16.msra.mxu0 %v11232_v55  ;;  %7614 = vmatprep.subr.bf16.mxu1 %v11237_v56  ;;  %v11328_v55 = vld [vmem:[%s15235_s1 + $0x2054] ss:$8 sps:$4 sm:$0xff]   ;;  %v11323_v56 = vld [vmem:[%s15235_s1 + $0xf50] ss:$8 sps:$4 sm:$0xff]  }
 0x39d   :  { %8311 = vmatprep.subr.bf16.mxu0 %v11240_v33  ;;  %v11326_v33 = vld [vmem:[%s15235_s1 + $0x2050] ss:$8 sps:$4 sm:$0xff]  }
 0x39f   :  { %7615 = vmatpush1.bf16.msra.mxu1 %v11235_v58  ;;  %v11331_v58 = vld [vmem:[%s15235_s1 + $0xf64] ss:$8 sps:$4 sm:$0xff]  }
 0x3a0   :  { %8312 = vmatpush1.bf16.msra.mxu0 %v11238_v59  ;;  %7616 = vmatprep.subr.bf16.mxu1 %v11243_v60  ;;  %v11334_v59 = vld [vmem:[%s15235_s1 + $0x2064] ss:$8 sps:$4 sm:$0xff]   ;;  %v11329_v60 = vld [vmem:[%s15235_s1 + $0xf60] ss:$8 sps:$4 sm:$0xff]  }
 0x3a1   :  { %8313 = vmatprep.subr.bf16.mxu0 %v11246_v61  ;;  %v11332_v61 = vld [vmem:[%s15235_s1 + $0x2060] ss:$8 sps:$4 sm:$0xff]  }
 0x3a3   :  { %7617 = vmatpush1.bf16.msra.mxu1 %v11241_v62  ;;  %v11337_v62 = vld [vmem:[%s15235_s1 + $0xf74] ss:$8 sps:$4 sm:$0xff]  }
 0x3a4   :  { %8314 = vmatpush1.bf16.msra.mxu0 %v11244_v39  ;;  %7618 = vmatprep.subr.bf16.mxu1 %v11249_v51  ;;  %v11340_v39 = vld [vmem:[%s15235_s1 + $0x2074] ss:$8 sps:$4 sm:$0xff]   ;;  %v11335_v51 = vld [vmem:[%s15235_s1 + $0xf70] ss:$8 sps:$4 sm:$0xff]  }
 0x3a5   :  { %8315 = vmatprep.subr.bf16.mxu0 %v11252_v63  ;;  %v11338_v63 = vld [vmem:[%s15235_s1 + $0x2070] ss:$8 sps:$4 sm:$0xff]  }
 0x3a7   :  { %7619 = vmatpush1.bf16.msra.mxu1 %v11247_v2  ;;  %v11343_v2 = vld [vmem:[%s15235_s1 + $0xf84] ss:$8 sps:$4 sm:$0xff]  }
 0x3a8   :  { %8316 = vmatpush1.bf16.msra.mxu0 %v11250_v45  ;;  %7620 = vmatprep.subr.bf16.mxu1 %v11255_v57  ;;  %v11346_v45 = vld [vmem:[%s15235_s1 + $0x2084] ss:$8 sps:$4 sm:$0xff]   ;;  %v11341_v57 = vld [vmem:[%s15235_s1 + $0xf80] ss:$8 sps:$4 sm:$0xff]  }
 0x3a9   :  { %8317 = vmatprep.subr.bf16.mxu0 %v11258_v3  ;;  %v11344_v3 = vld [vmem:[%s15235_s1 + $0x2080] ss:$8 sps:$4 sm:$0xff]  }
 0x3ab   :  { %7621 = vmatpush1.bf16.msra.mxu1 %v11253_v4  ;;  %v11349_v4 = vld [vmem:[%s15235_s1 + $0xf94] ss:$8 sps:$4 sm:$0xff]  }
 0x3ac   :  { %8318 = vmatpush1.bf16.msra.mxu0 %v11256_v5  ;;  %7622 = vmatprep.subr.bf16.mxu1 %v11261_v8  ;;  %v11352_v5 = vld [vmem:[%s15235_s1 + $0x2094] ss:$8 sps:$4 sm:$0xff]   ;;  %v11347_v8 = vld [vmem:[%s15235_s1 + $0xf90] ss:$8 sps:$4 sm:$0xff]  }
 0x3ad   :  { %8319 = vmatprep.subr.bf16.mxu0 %v11264_v0  ;;  %v11350_v0 = vld [vmem:[%s15235_s1 + $0x2090] ss:$8 sps:$4 sm:$0xff]  }
 0x3af   :  { %7623 = vmatpush1.bf16.msra.mxu1 %v11259_v1  ;;  %v11355_v1 = vld [vmem:[%s15235_s1 + $0xfa4] ss:$8 sps:$4 sm:$0xff]  }
 0x3b0   :  { %8320 = vmatpush1.bf16.msra.mxu0 %v11262_v9  ;;  %7624 = vmatprep.subr.bf16.mxu1 %v11267_v10  ;;  %v11358_v9 = vld [vmem:[%s15235_s1 + $0x20a4] ss:$8 sps:$4 sm:$0xff]   ;;  %v11353_v10 = vld [vmem:[%s15235_s1 + $0xfa0] ss:$8 sps:$4 sm:$0xff]  }
 0x3b1   :  { %8321 = vmatprep.subr.bf16.mxu0 %v11270_v11  ;;  %v11356_v11 = vld [vmem:[%s15235_s1 + $0x20a0] ss:$8 sps:$4 sm:$0xff]  }
 0x3b3   :  { %7625 = vmatpush1.bf16.msra.mxu1 %v11265_v14  ;;  %v11361_v14 = vld [vmem:[%s15235_s1 + $0xfb4] ss:$8 sps:$4 sm:$0xff]  }
 0x3b4   :  { %8322 = vmatpush1.bf16.msra.mxu0 %v11268_v6  ;;  %7626 = vmatprep.subr.bf16.mxu1 %v11273_v7  ;;  %v11364_v6 = vld [vmem:[%s15235_s1 + $0x20b4] ss:$8 sps:$4 sm:$0xff]   ;;  %v11359_v7 = vld [vmem:[%s15235_s1 + $0xfb0] ss:$8 sps:$4 sm:$0xff]  }
 0x3b5   :  { %8323 = vmatprep.subr.bf16.mxu0 %v11276_v15  ;;  %v11362_v15 = vld [vmem:[%s15235_s1 + $0x20b0] ss:$8 sps:$4 sm:$0xff]  }
 0x3b7   :  { %7627 = vmatpush1.bf16.msra.mxu1 %v11271_v16  ;;  %v11367_v16 = vld [vmem:[%s15235_s1 + $0xfc4] ss:$8 sps:$4 sm:$0xff]  }
 0x3b8   :  { %8324 = vmatpush1.bf16.msra.mxu0 %v11274_v17  ;;  %7628 = vmatprep.subr.bf16.mxu1 %v11279_v22  ;;  %v11370_v17 = vld [vmem:[%s15235_s1 + $0x20c4] ss:$8 sps:$4 sm:$0xff]   ;;  %v11365_v22 = vld [vmem:[%s15235_s1 + $0xfc0] ss:$8 sps:$4 sm:$0xff]  }
 0x3b9   :  { %8325 = vmatprep.subr.bf16.mxu0 %v11282_v12  ;;  %v11368_v12 = vld [vmem:[%s15235_s1 + $0x20c0] ss:$8 sps:$4 sm:$0xff]  }
 0x3bb   :  { %7629 = vmatpush1.bf16.msra.mxu1 %v11277_v13  ;;  %v11373_v13 = vld [vmem:[%s15235_s1 + $0xfd4] ss:$8 sps:$4 sm:$0xff]  }
 0x3bc   :  { %8326 = vmatpush1.bf16.msra.mxu0 %v11280_v23  ;;  %7630 = vmatprep.subr.bf16.mxu1 %v11285_v26  ;;  %v11376_v23 = vld [vmem:[%s15235_s1 + $0x20d4] ss:$8 sps:$4 sm:$0xff]   ;;  %v11371_v26 = vld [vmem:[%s15235_s1 + $0xfd0] ss:$8 sps:$4 sm:$0xff]  }
 0x3bd   :  { %8327 = vmatprep.subr.bf16.mxu0 %v11288_v18  ;;  %v11374_v18 = vld [vmem:[%s15235_s1 + $0x20d0] ss:$8 sps:$4 sm:$0xff]  }
 0x3bf   :  { %7631 = vmatpush1.bf16.msra.mxu1 %v11283_v30  ;;  %v11379_v30 = vld [vmem:[%s15235_s1 + $0xfe4] ss:$8 sps:$4 sm:$0xff]  }
 0x3c0   :  { %8328 = vmatpush1.bf16.msra.mxu0 %v11286_v19  ;;  %7641 = vmatprep.subr.bf16.mxu1 %v11293_v21  ;;  %v11382_v19 = vld [vmem:[%s15235_s1 + $0x20e4] ss:$8 sps:$4 sm:$0xff]   ;;  %v11377_v21 = vld [vmem:[%s15235_s1 + $0xfe0] ss:$8 sps:$4 sm:$0xff]  }
 0x3c1   :  { %8338 = vmatprep.subr.bf16.mxu0 %v11298_v31  ;;  %v11380_v31 = vld [vmem:[%s15235_s1 + $0x20e0] ss:$8 sps:$4 sm:$0xff]  }
 0x3c2   :  { %7633 = vmatmul.mubr.bf16.vlgmr.msra.gmra.mrb[0].mxu1 %v8495_v24  ;;  %v11385_v24 = vld [vmem:[%s15235_s1 + $0xff4] ss:$8 sps:$4 sm:$0xff]  }
 0x3c3   :  { %8330 = vmatmul.mubr.bf16.vlgmr.msra.gmra.mrb[0].mxu0 %v8529_v25  ;;  %7642 = vmatpush1.bf16.msra.mxu1 %v11291_v36  ;;  %v11388_v25 = vld [vmem:[%s15235_s1 + $0x20f4] ss:$8 sps:$4 sm:$0xff]   ;;  %v11383_v36 = vld [vmem:[%s15235_s1 + $0xff0] ss:$8 sps:$4 sm:$0xff]  }
 0x3c4   :  { %8339 = vmatpush1.bf16.msra.mxu0 %v11296_v27  ;;  %7643 = vmatprep.subr.bf16.mxu1 %v11301_v28  ;;  %v11386_v27 = vld [vmem:[%s15235_s1 + $0x20f0] ss:$8 sps:$4 sm:$0xff]   ;;  %v11393_v28 = vld [vmem:[%s15235_s1 + $0x1004] ss:$8 sps:$4 sm:$0xff]  }
 0x3c5   :  { %8340 = vmatprep.subr.bf16.mxu0 %v11304_v37  ;;  %7673 = vmatprep.mubr.bf16.mxu1 %v8498_v38  ;;  %v11398_v37 = vld [vmem:[%s15235_s1 + $0x2104] ss:$8 sps:$4 sm:$0xff]   ;;  %v8497_v38 = vcombine.low %v14710_v34, %v14710_v34  ;;  %v11396_v34 = vld [vmem:[%s15235_s1 + $0x2100] ss:$8 sps:$4 sm:$0xff]  }
 0x3c6   :  { %8370 = vmatprep.mubr.bf16.mxu0 %v8532_v20  ;;  %v8531_v20 = vcombine.low %v14715_v35, %v14715_v35  ;;  %v11401_v35 = vld [vmem:[%s15235_s1 + $0x1014] ss:$8 sps:$4 sm:$0xff]  }
 0x3c7   :  { %7644 = vmatpush1.bf16.msra.mxu1 %v11299_v40  ;;  %v14920_v40 = vld [vmem:[%s15236_s0 + $0x80] sm:$0xff] }
 0x3c8   :  { %8341 = vmatpush1.bf16.msra.mxu0 %v11302_v41  ;;  %7645 = vmatprep.subr.bf16.mxu1 %v11307_v42  ;;  %v14925_v41 = vld [vmem:[%s15236_s0 + $0x108] sm:$0xff] }
 0x3c9   :  { %8342 = vmatprep.subr.bf16.mxu0 %v11310_v43  ;;  %v11391_v42 = vld [vmem:[%s15235_s1 + $0x1000] ss:$8 sps:$4 sm:$0xff]   ;;  %v11404_v43 = vld [vmem:[%s15235_s1 + $0x2114] ss:$8 sps:$4 sm:$0xff]  }
 0x3cb   :  { %7646 = vmatpush1.bf16.msra.mxu1 %v11305_v44  ;;  %v8500_v44 = vcombine.high %v14920_v40, %v14920_v40 }
 0x3cc   :  { %8343 = vmatpush1.bf16.msra.mxu0 %v11308_v32  ;;  %7647 = vmatprep.subr.bf16.mxu1 %v11313_v46  ;;  %v8534_v32 = vcombine.high %v14925_v41, %v14925_v41  ;;  %v11399_v46 = vld [vmem:[%s15235_s1 + $0x1010] ss:$8 sps:$4 sm:$0xff]  }
 0x3cd   :  { %8344 = vmatprep.subr.bf16.mxu0 %v11316_v47  ;;  %v11402_v47 = vld [vmem:[%s15235_s1 + $0x2110] ss:$8 sps:$4 sm:$0xff]  }
 0x3cf   :  { %7648 = vmatpush1.bf16.msra.mxu1 %v11311_v48  ;;  %v11407_v48 = vld [vmem:[%s15235_s1 + $0x1024] ss:$8 sps:$4 sm:$0xff]  }
 0x3d0   :  { %8345 = vmatpush1.bf16.msra.mxu0 %v11314_v49  ;;  %7649 = vmatprep.subr.bf16.mxu1 %v11319_v50  ;;  %v11410_v49 = vld [vmem:[%s15235_s1 + $0x2124] ss:$8 sps:$4 sm:$0xff]   ;;  %v11405_v50 = vld [vmem:[%s15235_s1 + $0x1020] ss:$8 sps:$4 sm:$0xff]  }
 0x3d1   :  { %8346 = vmatprep.subr.bf16.mxu0 %v11322_v29  ;;  %v11408_v29 = vld [vmem:[%s15235_s1 + $0x2120] ss:$8 sps:$4 sm:$0xff]  }
 0x3d3   :  { %7650 = vmatpush1.bf16.msra.mxu1 %v11317_v52  ;;  %v11413_v52 = vld [vmem:[%s15235_s1 + $0x1034] ss:$8 sps:$4 sm:$0xff]  }
 0x3d4   :  { %8347 = vmatpush1.bf16.msra.mxu0 %v11320_v53  ;;  %7651 = vmatprep.subr.bf16.mxu1 %v11325_v54  ;;  %v11416_v53 = vld [vmem:[%s15235_s1 + $0x2134] ss:$8 sps:$4 sm:$0xff]   ;;  %v11411_v54 = vld [vmem:[%s15235_s1 + $0x1030] ss:$8 sps:$4 sm:$0xff]  }
 0x3d5   :  { %8348 = vmatprep.subr.bf16.mxu0 %v11328_v55  ;;  %v11414_v55 = vld [vmem:[%s15235_s1 + $0x2130] ss:$8 sps:$4 sm:$0xff]  }
 0x3d7   :  { %7652 = vmatpush1.bf16.msra.mxu1 %v11323_v56  ;;  %v11419_v56 = vld [vmem:[%s15235_s1 + $0x1044] ss:$8 sps:$4 sm:$0xff]  }
 0x3d8   :  { %8349 = vmatpush1.bf16.msra.mxu0 %v11326_v33  ;;  %7653 = vmatprep.subr.bf16.mxu1 %v11331_v58  ;;  %v11422_v33 = vld [vmem:[%s15235_s1 + $0x2144] ss:$8 sps:$4 sm:$0xff]   ;;  %v11417_v58 = vld [vmem:[%s15235_s1 + $0x1040] ss:$8 sps:$4 sm:$0xff]  }
 0x3d9   :  { %8350 = vmatprep.subr.bf16.mxu0 %v11334_v59  ;;  %v11420_v59 = vld [vmem:[%s15235_s1 + $0x2140] ss:$8 sps:$4 sm:$0xff]  }
 0x3db   :  { %7654 = vmatpush1.bf16.msra.mxu1 %v11329_v60  ;;  %v11425_v60 = vld [vmem:[%s15235_s1 + $0x1054] ss:$8 sps:$4 sm:$0xff]  }
 0x3dc   :  { %8351 = vmatpush1.bf16.msra.mxu0 %v11332_v61  ;;  %7655 = vmatprep.subr.bf16.mxu1 %v11337_v62  ;;  %v11428_v61 = vld [vmem:[%s15235_s1 + $0x2154] ss:$8 sps:$4 sm:$0xff]   ;;  %v11423_v62 = vld [vmem:[%s15235_s1 + $0x1050] ss:$8 sps:$4 sm:$0xff]  }
 0x3dd   :  { %8352 = vmatprep.subr.bf16.mxu0 %v11340_v39  ;;  %v11426_v39 = vld [vmem:[%s15235_s1 + $0x2150] ss:$8 sps:$4 sm:$0xff]  }
 0x3df   :  { %7656 = vmatpush1.bf16.msra.mxu1 %v11335_v51  ;;  %v11431_v51 = vld [vmem:[%s15235_s1 + $0x1064] ss:$8 sps:$4 sm:$0xff]  }
 0x3e0   :  { %8353 = vmatpush1.bf16.msra.mxu0 %v11338_v63  ;;  %7657 = vmatprep.subr.bf16.mxu1 %v11343_v2  ;;  %v11434_v63 = vld [vmem:[%s15235_s1 + $0x2164] ss:$8 sps:$4 sm:$0xff]   ;;  %v11429_v2 = vld [vmem:[%s15235_s1 + $0x1060] ss:$8 sps:$4 sm:$0xff]  }
 0x3e1   :  { %8354 = vmatprep.subr.bf16.mxu0 %v11346_v45  ;;  %v11432_v45 = vld [vmem:[%s15235_s1 + $0x2160] ss:$8 sps:$4 sm:$0xff]  }
 0x3e3   :  { %7658 = vmatpush1.bf16.msra.mxu1 %v11341_v57  ;;  %v11437_v57 = vld [vmem:[%s15235_s1 + $0x1074] ss:$8 sps:$4 sm:$0xff]  }
 0x3e4   :  { %8355 = vmatpush1.bf16.msra.mxu0 %v11344_v3  ;;  %7659 = vmatprep.subr.bf16.mxu1 %v11349_v4  ;;  %v11440_v3 = vld [vmem:[%s15235_s1 + $0x2174] ss:$8 sps:$4 sm:$0xff]   ;;  %v11435_v4 = vld [vmem:[%s15235_s1 + $0x1070] ss:$8 sps:$4 sm:$0xff]  }
 0x3e5   :  { %8356 = vmatprep.subr.bf16.mxu0 %v11352_v5  ;;  %v11438_v5 = vld [vmem:[%s15235_s1 + $0x2170] ss:$8 sps:$4 sm:$0xff]  }
 0x3e7   :  { %7660 = vmatpush1.bf16.msra.mxu1 %v11347_v8  ;;  %v11443_v8 = vld [vmem:[%s15235_s1 + $0x1084] ss:$8 sps:$4 sm:$0xff]  }
 0x3e8   :  { %8357 = vmatpush1.bf16.msra.mxu0 %v11350_v0  ;;  %7661 = vmatprep.subr.bf16.mxu1 %v11355_v1  ;;  %v11446_v0 = vld [vmem:[%s15235_s1 + $0x2184] ss:$8 sps:$4 sm:$0xff]   ;;  %v11441_v1 = vld [vmem:[%s15235_s1 + $0x1080] ss:$8 sps:$4 sm:$0xff]  }
 0x3e9   :  { %8358 = vmatprep.subr.bf16.mxu0 %v11358_v9  ;;  %v11444_v9 = vld [vmem:[%s15235_s1 + $0x2180] ss:$8 sps:$4 sm:$0xff]  }
 0x3eb   :  { %7662 = vmatpush1.bf16.msra.mxu1 %v11353_v10  ;;  %v11449_v10 = vld [vmem:[%s15235_s1 + $0x1094] ss:$8 sps:$4 sm:$0xff]  }
 0x3ec   :  { %8359 = vmatpush1.bf16.msra.mxu0 %v11356_v11  ;;  %7663 = vmatprep.subr.bf16.mxu1 %v11361_v14  ;;  %v11452_v11 = vld [vmem:[%s15235_s1 + $0x2194] ss:$8 sps:$4 sm:$0xff]   ;;  %v11447_v14 = vld [vmem:[%s15235_s1 + $0x1090] ss:$8 sps:$4 sm:$0xff]  }
 0x3ed   :  { %8360 = vmatprep.subr.bf16.mxu0 %v11364_v6  ;;  %v11450_v6 = vld [vmem:[%s15235_s1 + $0x2190] ss:$8 sps:$4 sm:$0xff]  }
 0x3ef   :  { %7664 = vmatpush1.bf16.msra.mxu1 %v11359_v7  ;;  %v11455_v7 = vld [vmem:[%s15235_s1 + $0x10a4] ss:$8 sps:$4 sm:$0xff]  }
 0x3f0   :  { %8361 = vmatpush1.bf16.msra.mxu0 %v11362_v15  ;;  %7665 = vmatprep.subr.bf16.mxu1 %v11367_v16  ;;  %v11458_v15 = vld [vmem:[%s15235_s1 + $0x21a4] ss:$8 sps:$4 sm:$0xff]   ;;  %v11453_v16 = vld [vmem:[%s15235_s1 + $0x10a0] ss:$8 sps:$4 sm:$0xff]  }
 0x3f1   :  { %8362 = vmatprep.subr.bf16.mxu0 %v11370_v17  ;;  %v11456_v17 = vld [vmem:[%s15235_s1 + $0x21a0] ss:$8 sps:$4 sm:$0xff]  }
 0x3f3   :  { %7666 = vmatpush1.bf16.msra.mxu1 %v11365_v22  ;;  %v11461_v22 = vld [vmem:[%s15235_s1 + $0x10b4] ss:$8 sps:$4 sm:$0xff]  }
 0x3f4   :  { %8363 = vmatpush1.bf16.msra.mxu0 %v11368_v12  ;;  %7667 = vmatprep.subr.bf16.mxu1 %v11373_v13  ;;  %v11464_v12 = vld [vmem:[%s15235_s1 + $0x21b4] ss:$8 sps:$4 sm:$0xff]   ;;  %v11459_v13 = vld [vmem:[%s15235_s1 + $0x10b0] ss:$8 sps:$4 sm:$0xff]  }
 0x3f5   :  { %8364 = vmatprep.subr.bf16.mxu0 %v11376_v23  ;;  %v11462_v23 = vld [vmem:[%s15235_s1 + $0x21b0] ss:$8 sps:$4 sm:$0xff]  }
 0x3f7   :  { %7668 = vmatpush1.bf16.msra.mxu1 %v11371_v26  ;;  %v11467_v26 = vld [vmem:[%s15235_s1 + $0x10c4] ss:$8 sps:$4 sm:$0xff]  }
 0x3f8   :  { %8365 = vmatpush1.bf16.msra.mxu0 %v11374_v18  ;;  %7669 = vmatprep.subr.bf16.mxu1 %v11379_v30  ;;  %v11470_v18 = vld [vmem:[%s15235_s1 + $0x21c4] ss:$8 sps:$4 sm:$0xff]   ;;  %v11465_v30 = vld [vmem:[%s15235_s1 + $0x10c0] ss:$8 sps:$4 sm:$0xff]  }
 0x3f9   :  { %8366 = vmatprep.subr.bf16.mxu0 %v11382_v19  ;;  %v11468_v19 = vld [vmem:[%s15235_s1 + $0x21c0] ss:$8 sps:$4 sm:$0xff]  }
 0x3fb   :  { %7670 = vmatpush1.bf16.msra.mxu1 %v11377_v21  ;;  %v11473_v21 = vld [vmem:[%s15235_s1 + $0x10d4] ss:$8 sps:$4 sm:$0xff]  }
 0x3fc   :  { %8367 = vmatpush1.bf16.msra.mxu0 %v11380_v31  ;;  %7671 = vmatprep.subr.bf16.mxu1 %v11385_v24  ;;  %v11476_v31 = vld [vmem:[%s15235_s1 + $0x21d4] ss:$8 sps:$4 sm:$0xff]   ;;  %v11471_v24 = vld [vmem:[%s15235_s1 + $0x10d0] ss:$8 sps:$4 sm:$0xff]  }
 0x3fd   :  { %8368 = vmatprep.subr.bf16.mxu0 %v11388_v25  ;;  %v11474_v25 = vld [vmem:[%s15235_s1 + $0x21d0] ss:$8 sps:$4 sm:$0xff]  }
 0x3ff   :  { %7672 = vmatpush1.bf16.msra.mxu1 %v11383_v36  ;;  %v11479_v36 = vld [vmem:[%s15235_s1 + $0x10e4] ss:$8 sps:$4 sm:$0xff]  }
 0x400   :  { %8369 = vmatpush1.bf16.msra.mxu0 %v11386_v27  ;;  %7682 = vmatprep.subr.bf16.mxu1 %v11393_v28  ;;  %v11482_v27 = vld [vmem:[%s15235_s1 + $0x21e4] ss:$8 sps:$4 sm:$0xff]   ;;  %v11477_v28 = vld [vmem:[%s15235_s1 + $0x10e0] ss:$8 sps:$4 sm:$0xff]  }
 0x401   :  { %8379 = vmatprep.subr.bf16.mxu0 %v11398_v37  ;;  %v11480_v37 = vld [vmem:[%s15235_s1 + $0x21e0] ss:$8 sps:$4 sm:$0xff]  }
 0x402   :  { %7674 = vmatmul.mubr.bf16.vlgmr.msra.gmra.mrb[0].mxu1 %v8497_v38  ;;  %v11485_v38 = vld [vmem:[%s15235_s1 + $0x10f4] ss:$8 sps:$4 sm:$0xff]  }
 0x403   :  { %8371 = vmatmul.mubr.bf16.vlgmr.msra.gmra.mrb[0].mxu0 %v8531_v20  ;;  %7683 = vmatpush1.bf16.msra.mxu1 %v11391_v42  ;;  %v11488_v20 = vld [vmem:[%s15235_s1 + $0x21f4] ss:$8 sps:$4 sm:$0xff]   ;;  %v11483_v42 = vld [vmem:[%s15235_s1 + $0x10f0] ss:$8 sps:$4 sm:$0xff]  }
 0x404   :  { %8380 = vmatpush1.bf16.msra.mxu0 %v11396_v34  ;;  %7684 = vmatprep.subr.bf16.mxu1 %v11401_v35  ;;  %v11486_v34 = vld [vmem:[%s15235_s1 + $0x21f0] ss:$8 sps:$4 sm:$0xff]   ;;  %v11495_v35 = vld [vmem:[%s15235_s1 + $0x2204] ss:$8 sps:$4 sm:$0xff]  }
 0x405   :  { %8381 = vmatprep.subr.bf16.mxu0 %v11404_v43  ;;  %7714 = vmatprep.mubr.bf16.mxu1 %v8500_v44  ;;  %v15123_v43 = vld [vmem:[%s15236_s0 + $0x110] sm:$0xff]  ;;  %v8499_v44 = vcombine.low %v14920_v40, %v14920_v40 }
 0x406   :  { %8411 = vmatprep.mubr.bf16.mxu0 %v8534_v32  ;;  %v8533_v32 = vcombine.low %v14925_v41, %v14925_v41  ;;  %v11496_v40 = vld [vmem:[%s15235_s1 + $0x2210] ss:$8 sps:$4 sm:$0xff]   ;;  %v11501_v41 = vld [vmem:[%s15235_s1 + $0x2224] ss:$8 sps:$4 sm:$0xff]  }
 0x407   :  { %7685 = vmatpush1.bf16.msra.mxu1 %v11399_v46  ;;  %v11493_v46 = vld [vmem:[%s15235_s1 + $0x2200] ss:$8 sps:$4 sm:$0xff]  }
 0x408   :  { %8382 = vmatpush1.bf16.msra.mxu0 %v11402_v47  ;;  %7686 = vmatprep.subr.bf16.mxu1 %v11407_v48  ;;  %v8536_v47 = vcombine.high %v15123_v43, %v15123_v43  ;;  %v11498_v48 = vld [vmem:[%s15235_s1 + $0x2214] ss:$8 sps:$4 sm:$0xff]  }
 0x409   :  { %8383 = vmatprep.subr.bf16.mxu0 %v11410_v49  ;;  %v11499_v49 = vld [vmem:[%s15235_s1 + $0x2220] ss:$8 sps:$4 sm:$0xff]  }
 0x40b   :  { %7687 = vmatpush1.bf16.msra.mxu1 %v11405_v50  ;;  %v11504_v50 = vld [vmem:[%s15235_s1 + $0x2234] ss:$8 sps:$4 sm:$0xff]  }
 0x40c   :  { %8384 = vmatpush1.bf16.msra.mxu0 %v11408_v29  ;;  %7688 = vmatprep.subr.bf16.mxu1 %v11413_v52  ;;  %v11502_v29 = vld [vmem:[%s15235_s1 + $0x2230] ss:$8 sps:$4 sm:$0xff]   ;;  %v11507_v52 = vld [vmem:[%s15235_s1 + $0x2244] ss:$8 sps:$4 sm:$0xff]  }
 0x40d   :  { %8385 = vmatprep.subr.bf16.mxu0 %v11416_v53  ;;  %v11505_v53 = vld [vmem:[%s15235_s1 + $0x2240] ss:$8 sps:$4 sm:$0xff]  }
 0x40f   :  { %7689 = vmatpush1.bf16.msra.mxu1 %v11411_v54  ;;  %v11510_v54 = vld [vmem:[%s15235_s1 + $0x2254] ss:$8 sps:$4 sm:$0xff]  }
 0x410   :  { %8386 = vmatpush1.bf16.msra.mxu0 %v11414_v55  ;;  %7690 = vmatprep.subr.bf16.mxu1 %v11419_v56  ;;  %v11508_v55 = vld [vmem:[%s15235_s1 + $0x2250] ss:$8 sps:$4 sm:$0xff]   ;;  %v11513_v56 = vld [vmem:[%s15235_s1 + $0x2264] ss:$8 sps:$4 sm:$0xff]  }
 0x411   :  { %8387 = vmatprep.subr.bf16.mxu0 %v11422_v33  ;;  %v11511_v33 = vld [vmem:[%s15235_s1 + $0x2260] ss:$8 sps:$4 sm:$0xff]  }
 0x413   :  { %7691 = vmatpush1.bf16.msra.mxu1 %v11417_v58  ;;  %v11516_v58 = vld [vmem:[%s15235_s1 + $0x2274] ss:$8 sps:$4 sm:$0xff]  }
 0x414   :  { %8388 = vmatpush1.bf16.msra.mxu0 %v11420_v59  ;;  %7692 = vmatprep.subr.bf16.mxu1 %v11425_v60  ;;  %v11514_v59 = vld [vmem:[%s15235_s1 + $0x2270] ss:$8 sps:$4 sm:$0xff]   ;;  %v11519_v60 = vld [vmem:[%s15235_s1 + $0x2284] ss:$8 sps:$4 sm:$0xff]  }
 0x415   :  { %8389 = vmatprep.subr.bf16.mxu0 %v11428_v61  ;;  %v11517_v61 = vld [vmem:[%s15235_s1 + $0x2280] ss:$8 sps:$4 sm:$0xff]  }
 0x417   :  { %7693 = vmatpush1.bf16.msra.mxu1 %v11423_v62  ;;  %v11522_v62 = vld [vmem:[%s15235_s1 + $0x2294] ss:$8 sps:$4 sm:$0xff]  }
 0x418   :  { %8390 = vmatpush1.bf16.msra.mxu0 %v11426_v39  ;;  %7694 = vmatprep.subr.bf16.mxu1 %v11431_v51  ;;  %v11520_v39 = vld [vmem:[%s15235_s1 + $0x2290] ss:$8 sps:$4 sm:$0xff]   ;;  %v11525_v51 = vld [vmem:[%s15235_s1 + $0x22a4] ss:$8 sps:$4 sm:$0xff]  }
 0x419   :  { %8391 = vmatprep.subr.bf16.mxu0 %v11434_v63  ;;  %v11523_v63 = vld [vmem:[%s15235_s1 + $0x22a0] ss:$8 sps:$4 sm:$0xff]  }
 0x41b   :  { %7695 = vmatpush1.bf16.msra.mxu1 %v11429_v2  ;;  %v11528_v2 = vld [vmem:[%s15235_s1 + $0x22b4] ss:$8 sps:$4 sm:$0xff]  }
 0x41c   :  { %8392 = vmatpush1.bf16.msra.mxu0 %v11432_v45  ;;  %7696 = vmatprep.subr.bf16.mxu1 %v11437_v57  ;;  %v11526_v45 = vld [vmem:[%s15235_s1 + $0x22b0] ss:$8 sps:$4 sm:$0xff]   ;;  %v11531_v57 = vld [vmem:[%s15235_s1 + $0x22c4] ss:$8 sps:$4 sm:$0xff]  }
 0x41d   :  { %8393 = vmatprep.subr.bf16.mxu0 %v11440_v3  ;;  %v11529_v3 = vld [vmem:[%s15235_s1 + $0x22c0] ss:$8 sps:$4 sm:$0xff]  }
 0x41f   :  { %7697 = vmatpush1.bf16.msra.mxu1 %v11435_v4  ;;  %v11534_v4 = vld [vmem:[%s15235_s1 + $0x22d4] ss:$8 sps:$4 sm:$0xff]  }
 0x420   :  { %8394 = vmatpush1.bf16.msra.mxu0 %v11438_v5  ;;  %7698 = vmatprep.subr.bf16.mxu1 %v11443_v8  ;;  %v11532_v5 = vld [vmem:[%s15235_s1 + $0x22d0] ss:$8 sps:$4 sm:$0xff]   ;;  %v11537_v8 = vld [vmem:[%s15235_s1 + $0x22e4] ss:$8 sps:$4 sm:$0xff]  }
 0x421   :  { %8395 = vmatprep.subr.bf16.mxu0 %v11446_v0  ;;  %v11535_v0 = vld [vmem:[%s15235_s1 + $0x22e0] ss:$8 sps:$4 sm:$0xff]  }
 0x423   :  { %7699 = vmatpush1.bf16.msra.mxu1 %v11441_v1  ;;  %v11540_v1 = vld [vmem:[%s15235_s1 + $0x22f4] ss:$8 sps:$4 sm:$0xff]  }
 0x424   :  { %8396 = vmatpush1.bf16.msra.mxu0 %v11444_v9  ;;  %7700 = vmatprep.subr.bf16.mxu1 %v11449_v10  ;;  %v11538_v9 = vld [vmem:[%s15235_s1 + $0x22f0] ss:$8 sps:$4 sm:$0xff]   ;;  %v8535_v10 = vcombine.low %v15123_v43, %v15123_v43 }
 0x425   :  { %8397 = vmatprep.subr.bf16.mxu0 %v11452_v11 }
 0x427   :  { %7701 = vmatpush1.bf16.msra.mxu1 %v11447_v14 }
 0x428   :  { %8398 = vmatpush1.bf16.msra.mxu0 %v11450_v6  ;;  %7702 = vmatprep.subr.bf16.mxu1 %v11455_v7 }
 0x429   :  { %8399 = vmatprep.subr.bf16.mxu0 %v11458_v15  ;;  %v1171_v15 = vlaneseq }
 0x42b   :  { %7703 = vmatpush1.bf16.msra.mxu1 %v11453_v16  ;;  %v1172_v16 = vshrl.u32 %v1171_v15, 7 }
 0x42c   :  { %8400 = vmatpush1.bf16.msra.mxu0 %v11456_v17  ;;  %7704 = vmatprep.subr.bf16.mxu1 %v11461_v22  ;;  %v1169_v22 = vld [vmem:[%s15237_s2] sm:$0x3] }
 0x42d   :  { %8401 = vmatprep.subr.bf16.mxu0 %v11464_v12  ;;  %v1173_v17 = vsub.s32 0, %v1172_v16  ;;  %v1177_v12 = vsub.s32 1, %v1172_v16 }
 0x42f   :  { %7705 = vmatpush1.bf16.msra.mxu1 %v11459_v13  ;;  %v1174_v13 = vrot.slane %v1169_v22, %v1173_v17 }
 0x430   :  { %8402 = vmatpush1.bf16.msra.mxu0 %v11462_v23  ;;  %7706 = vmatprep.subr.bf16.mxu1 %v11467_v26  ;;  %v1178_v23 = vrot.slane %v1169_v22, %v1177_v12 }
 0x431   :  { %8403 = vmatprep.subr.bf16.mxu0 %v11470_v18 }
 0x433   :  { %7707 = vmatpush1.bf16.msra.mxu1 %v11465_v30 }
 0x434   :  { %8404 = vmatpush1.bf16.msra.mxu0 %v11468_v19  ;;  %7708 = vmatprep.subr.bf16.mxu1 %v11473_v21 }
 0x435   :  { %8405 = vmatprep.subr.bf16.mxu0 %v11476_v31 }
 0x437   :  { %7709 = vmatpush1.bf16.msra.mxu1 %v11471_v24 }
 0x438   :  { %8406 = vmatpush1.bf16.msra.mxu0 %v11474_v25  ;;  %7710 = vmatprep.subr.bf16.mxu1 %v11479_v36 }
 0x439   :  { %8407 = vmatprep.subr.bf16.mxu0 %v11482_v27 }
 0x43b   :  { %7711 = vmatpush1.bf16.msra.mxu1 %v11477_v28 }
 0x43c   :  { %8408 = vmatpush1.bf16.msra.mxu0 %v11480_v37  ;;  %7712 = vmatprep.subr.bf16.mxu1 %v11485_v38 }
 0x43d   :  { %8409 = vmatprep.subr.bf16.mxu0 %v11488_v20 }
 0x43f   :  { %7713 = vmatpush1.bf16.msra.mxu1 %v11483_v42 }
 0x440   :  { %8410 = vmatpush1.bf16.msra.mxu0 %v11486_v34 }
 0x441   :  { %8420 = vmatprep.subr.bf16.mxu0 %v11495_v35 }
 0x442   :  { %7715 = vmatmul.mubr.bf16.vlgmr.msra.gmra.mrb[0].mxu1 %v8499_v44 }
 0x443   :  { %8412 = vmatmul.mubr.bf16.vlgmr.msra.gmra.mrb[0].mxu0 %v8533_v32 }
 0x444   :  { %8421 = vmatpush1.bf16.msra.mxu0 %v11493_v46  ;;  %8452 = vmatprep.mubr.bf16.mxu0 %v8536_v47 }
 0x445   :  { %8422 = vmatprep.subr.bf16.mxu0 %v11498_v48 }
 0x448   :  { %8423 = vmatpush1.bf16.msra.mxu0 %v11496_v40 }
 0x449   :  { %8424 = vmatprep.subr.bf16.mxu0 %v11501_v41 }
 0x44c   :  { %8425 = vmatpush1.bf16.msra.mxu0 %v11499_v49 }
 0x44d   :  { %8426 = vmatprep.subr.bf16.mxu0 %v11504_v50 }
 0x450   :  { %8427 = vmatpush1.bf16.msra.mxu0 %v11502_v29 }
 0x451   :  { %8428 = vmatprep.subr.bf16.mxu0 %v11507_v52 }
 0x454   :  { %8429 = vmatpush1.bf16.msra.mxu0 %v11505_v53 }
 0x455   :  { %8430 = vmatprep.subr.bf16.mxu0 %v11510_v54 }
 0x458   :  { %8431 = vmatpush1.bf16.msra.mxu0 %v11508_v55 }
 0x459   :  { %8432 = vmatprep.subr.bf16.mxu0 %v11513_v56 }
 0x45c   :  { %8433 = vmatpush1.bf16.msra.mxu0 %v11511_v33 }
 0x45d   :  { %8434 = vmatprep.subr.bf16.mxu0 %v11516_v58 }
 0x460   :  { %8435 = vmatpush1.bf16.msra.mxu0 %v11514_v59 }
 0x461   :  { %8436 = vmatprep.subr.bf16.mxu0 %v11519_v60 }
 0x464   :  { %8437 = vmatpush1.bf16.msra.mxu0 %v11517_v61 }
 0x465   :  { %8438 = vmatprep.subr.bf16.mxu0 %v11522_v62 }
 0x468   :  { %8439 = vmatpush1.bf16.msra.mxu0 %v11520_v39 }
 0x469   :  { %8440 = vmatprep.subr.bf16.mxu0 %v11525_v51 }
 0x46c   :  { %8441 = vmatpush1.bf16.msra.mxu0 %v11523_v63 }
 0x46d   :  { %8442 = vmatprep.subr.bf16.mxu0 %v11528_v2 }
 0x470   :  { %8443 = vmatpush1.bf16.msra.mxu0 %v11526_v45 }
 0x471   :  { %8444 = vmatprep.subr.bf16.mxu0 %v11531_v57 }
 0x474   :  { %8445 = vmatpush1.bf16.msra.mxu0 %v11529_v3 }
 0x475   :  { %8446 = vmatprep.subr.bf16.mxu0 %v11534_v4 }
 0x478   :  { %8447 = vmatpush1.bf16.msra.mxu0 %v11532_v5 }
 0x479   :  { %8448 = vmatprep.subr.bf16.mxu0 %v11537_v8 }
 0x47c   :  { %8449 = vmatpush1.bf16.msra.mxu0 %v11535_v0 }
 0x47d   :  { %8450 = vmatprep.subr.bf16.mxu0 %v11540_v1 }
 0x480   :  { %8451 = vmatpush1.bf16.msra.mxu0 %v11538_v9 }
 0x483   :  { %8453 = vmatmul.mubr.bf16.vlgmr.msra.gmra.mrb[0].mxu0 %v8535_v10 }
 0x515   :  { %v7716_v11 = vpop.f32.mrb[0].mxu1 }
 0x516   :  { %v7718_v14 = vpop.f32.mrb[1].mxu1  ;;  %v9657_v26 = vadd.f32 %v7716_v11, %v1174_v13 }
 0x517   :  { %v7720_v6 = vpop.f32.mrb[2].mxu1  ;;  %v9659_v18 = vadd.f32 %v7718_v14, %v1178_v23 }
 0x518   :  { %v7721_v7 = vpop.f32.mrb[3].mxu1 }
 0x556   :  { %v8454_v30 = vpop.f32.mrb[0].mxu0 }
 0x557   :  { %v9658_v19 = vadd.f32 %v9657_v26, %v8454_v30  ;;  %v8456_v21 = vpop.f32.mrb[1].mxu0 }
 0x558   :  { %v9660_v31 = vadd.f32 %v9659_v18, %v8456_v21  ;;  %v8458_v24 = vpop.f32.mrb[2].mxu0 }
 0x559   :  { %8461 = vst [vmem:[%s15238_s3] sm:$0xff] %v9658_v19  ;;  %v8459_v25 = vpop.f32.mrb[3].mxu0 }
 0x55a   :  { %8462 = vst [vmem:[%s15238_s3 + $0x8] sm:$0xff] %v9660_v31 }

</bundles_post_ra>
